<compile_context>
chip_gen: v6e
topology: v6e:2x2x1
jax: 0.10.0
libtpu: 0.0.40
codegen_flags: <defaults>
</compile_context>

<pallas_src>
import jax
import jax.numpy as jnp
from jax.experimental import pallas as pl
from jax.experimental.pallas import tpu as pltpu

# ----------------------------------------------------------------------------
# Stage configuration (mirrors EfficientNet-B7 stage channels / strides):
#   features[0] stem : 3   -> 64,  stride 2
#   features[1]      : 64  -> 32,  stride 1
#   features[2]      : 32  -> 48,  stride 2
#   features[3]      : 48  -> 80,  stride 2
#   features[4]      : 80  -> 160, stride 2
#   features[5]      : 160 -> 224, stride 1
# ----------------------------------------------------------------------------
STAGES = [
    (3, 64, 2),
    (64, 32, 1),
    (32, 48, 2),
    (48, 80, 2),
    (80, 160, 2),
    (160, 224, 1),
]
LOSS_INDICES = (1, 2, 3, 4, 5)
LOSS_WEIGHTS = (1.0 / 16, 1.0 / 8, 1.0 / 4, 1.0, 1.0)

_IMAGENET_MEAN = (0.485, 0.456, 0.406)
_IMAGENET_STD = (0.229, 0.224, 0.225)

TILE_M_MAX = 1024  # rows per grid step in the im2col path


def _round_up(x, m):
    return (x + m - 1) // m * m


# ----------------------------------------------------------------------------
# Generation-aware VMEM budget (v5e/v6e: 128 MiB phys -> 96 MiB; v7x: 64 -> 48).
# ----------------------------------------------------------------------------
_VMEM_LIMIT = None


def _vmem_limit_bytes():
    global _VMEM_LIMIT
    if _VMEM_LIMIT is None:
        cap = 64 * 1024 * 1024  # conservative default (v7x physical VMEM)
        try:
            info = pltpu.get_tpu_info()
            cap = int(getattr(info, "vmem_capacity_bytes", cap))
        except Exception:
            pass
        _VMEM_LIMIT = int(min(cap * 3 // 4, 100 * 1024 * 1024))
    return _VMEM_LIMIT


# ----------------------------------------------------------------------------
# In-kernel helpers.
# ----------------------------------------------------------------------------
def _silu(a):
    # SiLU in f32; reciprocal in approx mode runs on the EUP slot so the f32
    # epilogue hides under the MXU (matters most on v5e, all-f32 VPU path).
    return a * pl.reciprocal(1.0 + jnp.exp(-a), approx=True)


def _loss_partial(ax, ay):
    # Per-grid-step partial L1 sum, written as a lane-dense (1, 8, 128) block
    # (a compliant tile) so all grid axes stay "parallel" (v7x megacore) and
    # there is no order-dependent scalar += across the grid.  The wrapper
    # reads [:, 0, 0] and sums in f32.
    s = jnp.sum(jnp.abs(ax - ay))
    return jnp.full((1, 8, 128), s, jnp.float32)


# ----------------------------------------------------------------------------
# Kernel: im2col (patches already built) -> matmul + bias + SiLU [+ L1 partial].
# ----------------------------------------------------------------------------
def _make_im2col_kernel(store_act, compute_loss):
    def kernel(xp_ref, yp_ref, w_ref, b_ref, *out_refs):
        w = w_ref[...]                                   # (K, Cout) bf16, resident
        b = b_ref[...]                                   # (1, Cout) f32
        ax = jnp.dot(xp_ref[...], w, preferred_element_type=jnp.float32) + b
        ay = jnp.dot(yp_ref[...], w, preferred_element_type=jnp.float32) + b
        ax = _silu(ax)
        ay = _silu(ay)
        o = 0
        if store_act:
            out_refs[0][...] = ax.astype(out_refs[0].dtype)
            out_refs[1][...] = ay.astype(out_refs[1].dtype)
            o = 2
        if compute_loss:
            # Padded rows are zero in BOTH xp and yp -> both give SiLU(bias)
            # -> they contribute exactly 0 to the partial sum.
            out_refs[o][...] = _loss_partial(ax, ay)
    return kernel


# ----------------------------------------------------------------------------
# Kernel: fused 3x3 stride-1 conv (9 accumulating tap matmuls, no im2col in
# HBM) + bias + SiLU [+ L1 partial].  One (spatially padded) image per step.
# ----------------------------------------------------------------------------
def _make_fused_kernel(ho, wo, cin, cout, store_act, compute_loss):
    def kernel(x_ref, y_ref, w_ref, b_ref, *out_refs):
        m = ho * wo
        xw = x_ref[0]                                    # (Ho+2, Wo+2, Cin) bf16
        yw = y_ref[0]
        accx = jnp.zeros((m, cout), jnp.float32)
        accy = jnp.zeros((m, cout), jnp.float32)
        for di in range(3):
            for dj in range(3):
                wt = w_ref[3 * di + dj]                  # (Cin, Cout) bf16
                xs = xw[di:di + ho, dj:dj + wo, :].reshape(m, cin)
                ys = yw[di:di + ho, dj:dj + wo, :].reshape(m, cin)
                accx = accx + jnp.dot(xs, wt, preferred_element_type=jnp.float32)
                accy = accy + jnp.dot(ys, wt, preferred_element_type=jnp.float32)
        b = b_ref[...]                                   # (1, Cout) f32
        ax = _silu(accx + b)
        ay = _silu(accy + b)
        o = 0
        if store_act:
            out_refs[0][...] = ax.reshape(1, ho, wo, cout).astype(out_refs[0].dtype)
            out_refs[1][...] = ay.reshape(1, ho, wo, cout).astype(out_refs[1].dtype)
            o = 2
        if compute_loss:
            out_refs[o][...] = _loss_partial(ax, ay)
    return kernel


def _fused_fits(h, w, cin, cout, store_act):
    """Rough per-grid-step VMEM estimate for the fused path (with headroom)."""
    hp, wp = h + 2, w + 2
    m = h * w
    est = (4 * hp * wp * cin * 2          # x/y input blocks, double-buffered, bf16
           + 4 * m * cin * 2              # per-tap slice temporaries (x + y)
           + 4 * m * cout * 4             # f32 accumulators + epilogue temps
           + (4 * m * cout * 2 if store_act else 0)   # bf16 outputs, double-buffered
           + 9 * cin * cout * 2
           + (1 << 18))
    return est <= _vmem_limit_bytes() // 2


# ----------------------------------------------------------------------------
# Stage wrappers.
# ----------------------------------------------------------------------------
def _fused_stage(x, y, w3, b, store_act, compute_loss):
    assert store_act or compute_loss
    n, h, w, cin = x.shape
    cout = w3.shape[2]
    ho, wo = h, w                               # 3x3, stride 1, padding 1
    hp, wp = h + 2, w + 2
    xpad = jnp.pad(x, ((0, 0), (1, 1), (1, 1), (0, 0)))
    ypad = jnp.pad(y, ((0, 0), (1, 1), (1, 1), (0, 0)))

    out_shapes, out_specs = [], []
    if store_act:
        out_shapes += [jax.ShapeDtypeStruct((n, ho, wo, cout), jnp.bfloat16)] * 2
        out_specs += [pl.BlockSpec((1, ho, wo, cout), lambda i: (i, 0, 0, 0))] * 2
    if compute_loss:
        out_shapes.append(jax.ShapeDtypeStruct((n, 8, 128), jnp.float32))
        out_specs.append(pl.BlockSpec((1, 8, 128), lambda i: (i, 0, 0)))

    flops = 2 * 2 * n * ho * wo * 9 * cin * cout
    trans = 2 * n * ho * wo * cout
    bytes_acc = (2 * n * hp * wp * cin * 2 + 9 * cin * cout * 2 + cout * 4
                 + (2 * n * ho * wo * cout * 2 if store_act else 0)
                 + (n * 8 * 128 * 4 if compute_loss else 0))

    outs = pl.pallas_call(
        _make_fused_kernel(ho, wo, cin, cout, store_act, compute_loss),
        grid=(n,),
        out_shape=tuple(out_shapes),
        in_specs=[
            pl.BlockSpec((1, hp, wp, cin), lambda i: (i, 0, 0, 0)),
            pl.BlockSpec((1, hp, wp, cin), lambda i: (i, 0, 0, 0)),
            pl.BlockSpec((9, cin, cout), lambda i: (0, 0, 0)),   # resident taps
            pl.BlockSpec((1, cout), lambda i: (0, 0)),           # resident bias
        ],
        out_specs=tuple(out_specs),
        compiler_params=pltpu.CompilerParams(
            dimension_semantics=("parallel",),
            vmem_limit_bytes=_vmem_limit_bytes(),
        ),
        cost_estimate=pl.CostEstimate(
            flops=flops, transcendentals=trans, bytes_accessed=bytes_acc),
    )(xpad, ypad, w3, b)
    if not isinstance(outs, (list, tuple)):
        outs = (outs,)

    ox = oy = lsum = None
    o = 0
    if store_act:
        ox, oy = outs[0], outs[1]
        o = 2
    if compute_loss:
        lsum = jnp.sum(outs[o][:, 0, 0])
    return ox, oy, lsum


def _im2col_3x3(x, stride):
    """x: (N, H, W, C) -> patches (N*Ho*Wo, 9*C) (tap-major, channel-minor)."""
    n, h, w, c = x.shape
    xp = jnp.pad(x, ((0, 0), (1, 1), (1, 1), (0, 0)))
    ho = (h - 1) // stride + 1
    wo = (w - 1) // stride + 1
    pieces = []
    for di in range(3):
        for dj in range(3):
            pieces.append(
                xp[:,
                   di:di + stride * (ho - 1) + 1:stride,
                   dj:dj + stride * (wo - 1) + 1:stride,
                   :])
    patches = jnp.concatenate(pieces, axis=-1)           # (N, Ho, Wo, 9*C)
    return patches.reshape(n * ho * wo, 9 * c), ho, wo


def _im2col_stage(x, y, w3, b, stride, store_act, compute_loss):
    assert store_act or compute_loss
    n, h, w, cin = x.shape
    cout = w3.shape[2]
    w2 = w3.reshape(9 * cin, cout)                       # bf16, real K = 9*Cin

    xp, ho, wo = _im2col_3x3(x, stride)
    yp, _, _ = _im2col_3x3(y, stride)
    m, k = xp.shape

    # Tile rows: at least 2 grid steps whenever possible (pipelining + v7x
    # megacore), tiles a multiple of 8 sublanes.
    if m > 128:
        tile_m = min(TILE_M_MAX, _round_up(-(-m // 2), 128))
    else:
        tile_m = _round_up(m, 8)
    m_pad = _round_up(m, tile_m)
    if m_pad != m:
        # Zero rows for BOTH tensors: padded rows yield identical SiLU(bias)
        # activations, hence contribute exactly 0 to the L1 partial sums.
        xp = jnp.pad(xp, ((0, m_pad - m), (0, 0)))
        yp = jnp.pad(yp, ((0, m_pad - m), (0, 0)))
    grid_m = m_pad // tile_m

    out_shapes, out_specs = [], []
    if store_act:
        out_shapes += [jax.ShapeDtypeStruct((m_pad, cout), jnp.bfloat16)] * 2
        out_specs += [pl.BlockSpec((tile_m, cout), lambda i: (i, 0))] * 2
    if compute_loss:
        out_shapes.append(jax.ShapeDtypeStruct((grid_m, 8, 128), jnp.float32))
        out_specs.append(pl.BlockSpec((1, 8, 128), lambda i: (i, 0, 0)))

    flops = 2 * 2 * m_pad * k * cout
    trans = 2 * m_pad * cout
    bytes_acc = (2 * m_pad * k * 2 + k * cout * 2 + cout * 4
                 + (2 * m_pad * cout * 2 if store_act else 0)
                 + (grid_m * 8 * 128 * 4 if compute_loss else 0))

    outs = pl.pallas_call(
        _make_im2col_kernel(store_act, compute_loss),
        grid=(grid_m,),
        out_shape=tuple(out_shapes),
        in_specs=[
            pl.BlockSpec((tile_m, k), lambda i: (i, 0)),
            pl.BlockSpec((tile_m, k), lambda i: (i, 0)),
            pl.BlockSpec((k, cout), lambda i: (0, 0)),   # resident weights
            pl.BlockSpec((1, cout), lambda i: (0, 0)),   # resident bias
        ],
        out_specs=tuple(out_specs),
        compiler_params=pltpu.CompilerParams(
            dimension_semantics=("parallel",),
            vmem_limit_bytes=_vmem_limit_bytes(),
        ),
        cost_estimate=pl.CostEstimate(
            flops=flops, transcendentals=trans, bytes_accessed=bytes_acc),
    )(xp, yp, w2, b)
    if not isinstance(outs, (list, tuple)):
        outs = (outs,)

    ox = oy = lsum = None
    o = 0
    if store_act:
        ox = outs[0][:m].reshape(n, ho, wo, cout)
        oy = outs[1][:m].reshape(n, ho, wo, cout)
        o = 2
    if compute_loss:
        lsum = jnp.sum(outs[o][:, 0, 0])
    return ox, oy, lsum


# ----------------------------------------------------------------------------
# Parameters: synthetic per-stage conv weights (real channel counts only),
# with the ImageNet 1/std folded into stage 0.
# ----------------------------------------------------------------------------
def init_params(key):
    params = []
    for i, (cin, cout, _stride) in enumerate(STAGES):
        k1, k2 = jax.random.split(jax.random.fold_in(key, i))
        fan_in = 9 * cin
        wmat = jax.random.normal(k1, (fan_in, cout), jnp.float32) / jnp.sqrt(
            jnp.float32(fan_in))
        bias = 0.01 * jax.random.normal(k2, (1, cout), jnp.float32)
        params.append((wmat, bias))
    return params


def prepare_params(params):
    """Reshape to (9, Cin, Cout) taps, fold 1/std into stage 0, cast to bf16."""
    istd = 1.0 / jnp.array(_IMAGENET_STD, jnp.float32)
    prepared = []
    for i, ((wmat, bias), (cin, cout, _stride)) in enumerate(zip(params, STAGES)):
        w3 = wmat.reshape(9, cin, cout)                  # tap-major, channel-minor
        if i == 0:
            # Fold the per-channel 1/std of the normalization into conv-0.
            # The -mean shift is applied to the image in the wrapper so that
            # the conv's zero padding stays exact in normalized space.
            w3 = w3 * istd[None, :, None]
        prepared.append((w3.astype(jnp.bfloat16), bias.astype(jnp.float32)))
    return prepared


# ----------------------------------------------------------------------------
# The loss (rescale=False path of the PyTorch module).
# ----------------------------------------------------------------------------
@jax.jit
def effic_loss(x_nchw, y_nchw, params):
    mean = jnp.array(_IMAGENET_MEAN, jnp.float32)

    def prep(img):
        # NCHW -> NHWC, subtract mean (fuses with the transpose/cast in XLA;
        # the 1/std scale is folded into the stage-0 weights), cast to bf16.
        img = jnp.transpose(img, (0, 2, 3, 1)).astype(jnp.float32) - mean
        return img.astype(jnp.bfloat16)

    x = prep(x_nchw)
    y = prep(y_nchw)

    loss = jnp.float32(0.0)
    k = 0
    for i, (cin, cout, stride) in enumerate(STAGES):
        w3, b = params[i]
        compute_loss = i in LOSS_INDICES
        store_act = i != len(STAGES) - 1        # final stage is loss-only
        n, h, w, _ = x.shape
        ho = (h - 1) // stride + 1
        wo = (w - 1) // stride + 1

        if stride == 1 and _fused_fits(h, w, cin, cout, store_act):
            ox, oy, lsum = _fused_stage(x, y, w3, b, store_act, compute_loss)
        else:
            ox, oy, lsum = _im2col_stage(x, y, w3, b, stride, store_act,
                                         compute_loss)

        if compute_loss:
            count = n * ho * wo * cout          # real element count (L1 mean)
            loss = loss + lsum * (LOSS_WEIGHTS[k] / float(count))
            k += 1
        x, y = ox, oy
    return loss


if __name__ == "__main__":
    key = jax.random.PRNGKey(0)
    kx, ky, kp = jax.random.split(key, 3)

    # Small image-like inputs in [0, 1], NCHW as in the PyTorch module.
    X = jax.random.uniform(kx, (2, 3, 16, 16), jnp.float32)
    Y = jax.random.uniform(ky, (2, 3, 16, 16), jnp.float32)

    params = init_params(kp)
    prepared = prepare_params(params)

    loss = effic_loss(X, Y, prepared)
    jax.block_until_ready(loss)
    assert bool(jnp.isfinite(loss))
    print("KERNEL_OK")
</pallas_src>

<mosaic_0001>
module attributes {stable_mosaic.version = 11 : i64} {
  func.func @kernel(%arg0: i32, %arg1: memref<128x27xbf16, #tpu.memory_space<vmem>>, %arg2: memref<128x27xbf16, #tpu.memory_space<vmem>>, %arg3: memref<27x64xbf16, #tpu.memory_space<vmem>>, %arg4: memref<1x64xf32, #tpu.memory_space<vmem>>, %arg5: memref<128x64xbf16, #tpu.memory_space<vmem>>, %arg6: memref<128x64xbf16, #tpu.memory_space<vmem>>) attributes {dimension_semantics = [#tpu.dimension_semantics<parallel>], iteration_bounds = array<i64: 1>, scalar_prefetch = 0 : i64, scratch_operands = 0 : i64, tpu.core_type = #tpu.core_type<tc>, window_params = [{transform_indices = @transform_0, window_bounds = array<i64: 128, 27>}, {transform_indices = @transform_1, window_bounds = array<i64: 128, 27>}, {pipeline_mode = #tpu.pipeline_mode<synchronous>, transform_indices = @transform_2, window_bounds = array<i64: 27, 64>}, {pipeline_mode = #tpu.pipeline_mode<synchronous>, transform_indices = @transform_3, window_bounds = array<i64: 1, 64>}, {transform_indices = @transform_4, window_bounds = array<i64: 128, 64>}, {transform_indices = @transform_5, window_bounds = array<i64: 128, 64>}]} {
    %c0 = arith.constant 0 : index
    %c0_0 = arith.constant 0 : index
    %0 = vector.load %arg3[%c0, %c0_0] : memref<27x64xbf16, #tpu.memory_space<vmem>>, vector<27x64xbf16>
    %c0_1 = arith.constant 0 : index
    %c0_2 = arith.constant 0 : index
    %1 = vector.load %arg4[%c0_1, %c0_2] : memref<1x64xf32, #tpu.memory_space<vmem>>, vector<1x64xf32>
    %c0_3 = arith.constant 0 : index
    %c0_4 = arith.constant 0 : index
    %2 = vector.load %arg1[%c0_3, %c0_4] : memref<128x27xbf16, #tpu.memory_space<vmem>>, vector<128x27xbf16>
    %cst = arith.constant dense<0.000000e+00> : vector<128x64xf32>
    %3 = tpu.matmul %2, %0, %cst {dimension_numbers = #tpu.dot_dimension_numbers<[1], [0], [0], [1], [0, 0, 1, 1], [], []>} : vector<128x27xbf16>, vector<27x64xbf16>, vector<128x64xf32> -> vector<128x64xf32>
    %4 = vector.broadcast %1 : vector<1x64xf32> to vector<128x64xf32>
    %5 = arith.addf %3, %4 : vector<128x64xf32>
    %c0_5 = arith.constant 0 : index
    %c0_6 = arith.constant 0 : index
    %6 = vector.load %arg2[%c0_5, %c0_6] : memref<128x27xbf16, #tpu.memory_space<vmem>>, vector<128x27xbf16>
    %cst_7 = arith.constant dense<0.000000e+00> : vector<128x64xf32>
    %7 = tpu.matmul %6, %0, %cst_7 {dimension_numbers = #tpu.dot_dimension_numbers<[1], [0], [0], [1], [0, 0, 1, 1], [], []>} : vector<128x27xbf16>, vector<27x64xbf16>, vector<128x64xf32> -> vector<128x64xf32>
    %8 = vector.broadcast %1 : vector<1x64xf32> to vector<128x64xf32>
    %9 = arith.addf %7, %8 : vector<128x64xf32>
    %cst_8 = arith.constant 0.000000e+00 : f32
    %10 = vector.broadcast %cst_8 : f32 to vector<128x64xf32>
    %11 = arith.subf %10, %5 : vector<128x64xf32>
    %12 = math.exp %11 : vector<128x64xf32>
    %cst_9 = arith.constant 1.000000e+00 : f32
    %13 = vector.broadcast %cst_9 : f32 to vector<128x64xf32>
    %14 = arith.addf %13, %12 : vector<128x64xf32>
    %15 = tpu.reciprocal %14 {approx = true} : vector<128x64xf32> -> vector<128x64xf32>
    %16 = arith.mulf %5, %15 : vector<128x64xf32>
    %cst_10 = arith.constant 0.000000e+00 : f32
    %17 = vector.broadcast %cst_10 : f32 to vector<128x64xf32>
    %18 = arith.subf %17, %9 : vector<128x64xf32>
    %19 = math.exp %18 : vector<128x64xf32>
    %cst_11 = arith.constant 1.000000e+00 : f32
    %20 = vector.broadcast %cst_11 : f32 to vector<128x64xf32>
    %21 = arith.addf %20, %19 : vector<128x64xf32>
    %22 = tpu.reciprocal %21 {approx = true} : vector<128x64xf32> -> vector<128x64xf32>
    %23 = arith.mulf %9, %22 : vector<128x64xf32>
    %24 = arith.truncf %16 : vector<128x64xf32> to vector<128x64xbf16>
    %c0_12 = arith.constant 0 : index
    %c0_13 = arith.constant 0 : index
    %25 = vector.load %arg5[%c0_12, %c0_13] : memref<128x64xbf16, #tpu.memory_space<vmem>>, vector<128x64xbf16>
    tpu.vector_store %arg5[%c0_12, %c0_13], %24 {strides = array<i32>} : memref<128x64xbf16, #tpu.memory_space<vmem>>, vector<128x64xbf16>,
    %26 = arith.truncf %23 : vector<128x64xf32> to vector<128x64xbf16>
    %c0_14 = arith.constant 0 : index
    %c0_15 = arith.constant 0 : index
    %27 = vector.load %arg6[%c0_14, %c0_15] : memref<128x64xbf16, #tpu.memory_space<vmem>>, vector<128x64xbf16>
    tpu.vector_store %arg6[%c0_14, %c0_15], %26 {strides = array<i32>} : memref<128x64xbf16, #tpu.memory_space<vmem>>, vector<128x64xbf16>,
    return
  }
  func.func @transform_0(%arg0: i32) -> (i32, i32) {
    %c0_i32 = arith.constant 0 : i32
    %c0_i32_0 = arith.constant 0 : i32
    return %arg0, %c0_i32 : i32, i32
  }
  func.func @transform_1(%arg0: i32) -> (i32, i32) {
    %c0_i32 = arith.constant 0 : i32
    %c0_i32_0 = arith.constant 0 : i32
    return %arg0, %c0_i32 : i32, i32
  }
  func.func @transform_2(%arg0: i32) -> (i32, i32) {
    %c0_i32 = arith.constant 0 : i32
    %c0_i32_0 = arith.constant 0 : i32
    %c0_i32_1 = arith.constant 0 : i32
    return %c0_i32, %c0_i32_0 : i32, i32
  }
  func.func @transform_3(%arg0: i32) -> (i32, i32) {
    %c0_i32 = arith.constant 0 : i32
    %c0_i32_0 = arith.constant 0 : i32
    %c0_i32_1 = arith.constant 0 : i32
    return %c0_i32, %c0_i32_0 : i32, i32
  }
  func.func @transform_4(%arg0: i32) -> (i32, i32) {
    %c0_i32 = arith.constant 0 : i32
    %c0_i32_0 = arith.constant 0 : i32
    return %arg0, %c0_i32 : i32, i32
  }
  func.func @transform_5(%arg0: i32) -> (i32, i32) {
    %c0_i32 = arith.constant 0 : i32
    %c0_i32_0 = arith.constant 0 : i32
    return %arg0, %c0_i32 : i32, i32
  }
}

module attributes {stable_mosaic.version = 11 : i64} {
  func.func @kernel(%arg0: i32, %arg1: memref<1x10x10x64xbf16, #tpu.memory_space<vmem>>, %arg2: memref<1x10x10x64xbf16, #tpu.memory_space<vmem>>, %arg3: memref<9x64x32xbf16, #tpu.memory_space<vmem>>, %arg4: memref<1x32xf32, #tpu.memory_space<vmem>>, %arg5: memref<1x8x8x32xbf16, #tpu.memory_space<vmem>>, %arg6: memref<1x8x8x32xbf16, #tpu.memory_space<vmem>>, %arg7: memref<1x8x128xf32, #tpu.memory_space<vmem>>) attributes {dimension_semantics = [#tpu.dimension_semantics<parallel>], iteration_bounds = array<i64: 2>, scalar_prefetch = 0 : i64, scratch_operands = 0 : i64, tpu.core_type = #tpu.core_type<tc>, window_params = [{transform_indices = @transform_0, window_bounds = array<i64: 1, 10, 10, 64>}, {transform_indices = @transform_1, window_bounds = array<i64: 1, 10, 10, 64>}, {pipeline_mode = #tpu.pipeline_mode<synchronous>, transform_indices = @transform_2, window_bounds = array<i64: 9, 64, 32>}, {pipeline_mode = #tpu.pipeline_mode<synchronous>, transform_indices = @transform_3, window_bounds = array<i64: 1, 32>}, {transform_indices = @transform_4, window_bounds = array<i64: 1, 8, 8, 32>}, {transform_indices = @transform_5, window_bounds = array<i64: 1, 8, 8, 32>}, {transform_indices = @transform_6, window_bounds = array<i64: 1, 8, 128>}]} {
    %c0 = arith.constant 0 : index
    %c0_0 = arith.constant 0 : index
    %c0_1 = arith.constant 0 : index
    %c0_2 = arith.constant 0 : index
    %0 = vector.load %arg1[%c0, %c0_0, %c0_1, %c0_2] : memref<1x10x10x64xbf16, #tpu.memory_space<vmem>>, vector<1x10x10x64xbf16>
    %1 = vector.shape_cast %0 : vector<1x10x10x64xbf16> to vector<10x10x64xbf16>
    %c0_3 = arith.constant 0 : index
    %c0_4 = arith.constant 0 : index
    %c0_5 = arith.constant 0 : index
    %c0_6 = arith.constant 0 : index
    %2 = vector.load %arg2[%c0_3, %c0_4, %c0_5, %c0_6] : memref<1x10x10x64xbf16, #tpu.memory_space<vmem>>, vector<1x10x10x64xbf16>
    %3 = vector.shape_cast %2 : vector<1x10x10x64xbf16> to vector<10x10x64xbf16>
    %cst = arith.constant 0.000000e+00 : f32
    %4 = vector.broadcast %cst : f32 to vector<64x32xf32>
    %cst_7 = arith.constant 0.000000e+00 : f32
    %5 = vector.broadcast %cst_7 : f32 to vector<64x32xf32>
    %c0_8 = arith.constant 0 : index
    %c0_9 = arith.constant 0 : index
    %c0_10 = arith.constant 0 : index
    %6 = vector.load %arg3[%c0_8, %c0_9, %c0_10] : memref<9x64x32xbf16, #tpu.memory_space<vmem>>, vector<1x64x32xbf16>
    %7 = vector.shape_cast %6 : vector<1x64x32xbf16> to vector<64x32xbf16>
    %8 = vector.extract_strided_slice %1 {offsets = [0, 0, 0], sizes = [8, 8, 64], strides = [1, 1, 1]} : vector<10x10x64xbf16> to vector<8x8x64xbf16>
    %9 = vector.shape_cast %8 : vector<8x8x64xbf16> to vector<64x64xbf16>
    %10 = vector.extract_strided_slice %3 {offsets = [0, 0, 0], sizes = [8, 8, 64], strides = [1, 1, 1]} : vector<10x10x64xbf16> to vector<8x8x64xbf16>
    %11 = vector.shape_cast %10 : vector<8x8x64xbf16> to vector<64x64xbf16>
    %cst_11 = arith.constant dense<0.000000e+00> : vector<64x32xf32>
    %12 = tpu.matmul %9, %7, %cst_11 {dimension_numbers = #tpu.dot_dimension_numbers<[1], [0], [0], [1], [0, 0, 1, 1], [], []>} : vector<64x64xbf16>, vector<64x32xbf16>, vector<64x32xf32> -> vector<64x32xf32>
    %13 = arith.addf %4, %12 : vector<64x32xf32>
    %cst_12 = arith.constant dense<0.000000e+00> : vector<64x32xf32>
    %14 = tpu.matmul %11, %7, %cst_12 {dimension_numbers = #tpu.dot_dimension_numbers<[1], [0], [0], [1], [0, 0, 1, 1], [], []>} : vector<64x64xbf16>, vector<64x32xbf16>, vector<64x32xf32> -> vector<64x32xf32>
    %15 = arith.addf %5, %14 : vector<64x32xf32>
    %c1 = arith.constant 1 : index
    %c0_13 = arith.constant 0 : index
    %c0_14 = arith.constant 0 : index
    %16 = vector.load %arg3[%c1, %c0_13, %c0_14] : memref<9x64x32xbf16, #tpu.memory_space<vmem>>, vector<1x64x32xbf16>
    %17 = vector.shape_cast %16 : vector<1x64x32xbf16> to vector<64x32xbf16>
    %18 = vector.extract_strided_slice %1 {offsets = [0, 1, 0], sizes = [8, 8, 64], strides = [1, 1, 1]} : vector<10x10x64xbf16> to vector<8x8x64xbf16>
    %19 = vector.shape_cast %18 : vector<8x8x64xbf16> to vector<64x64xbf16>
    %20 = vector.extract_strided_slice %3 {offsets = [0, 1, 0], sizes = [8, 8, 64], strides = [1, 1, 1]} : vector<10x10x64xbf16> to vector<8x8x64xbf16>
    %21 = vector.shape_cast %20 : vector<8x8x64xbf16> to vector<64x64xbf16>
    %cst_15 = arith.constant dense<0.000000e+00> : vector<64x32xf32>
    %22 = tpu.matmul %19, %17, %cst_15 {dimension_numbers = #tpu.dot_dimension_numbers<[1], [0], [0], [1], [0, 0, 1, 1], [], []>} : vector<64x64xbf16>, vector<64x32xbf16>, vector<64x32xf32> -> vector<64x32xf32>
    %23 = arith.addf %13, %22 : vector<64x32xf32>
    %cst_16 = arith.constant dense<0.000000e+00> : vector<64x32xf32>
    %24 = tpu.matmul %21, %17, %cst_16 {dimension_numbers = #tpu.dot_dimension_numbers<[1], [0], [0], [1], [0, 0, 1, 1], [], []>} : vector<64x64xbf16>, vector<64x32xbf16>, vector<64x32xf32> -> vector<64x32xf32>
    %25 = arith.addf %15, %24 : vector<64x32xf32>
    %c2 = arith.constant 2 : index
    %c0_17 = arith.constant 0 : index
    %c0_18 = arith.constant 0 : index
    %26 = vector.load %arg3[%c2, %c0_17, %c0_18] : memref<9x64x32xbf16, #tpu.memory_space<vmem>>, vector<1x64x32xbf16>
    %27 = vector.shape_cast %26 : vector<1x64x32xbf16> to vector<64x32xbf16>
    %28 = vector.extract_strided_slice %1 {offsets = [0, 2, 0], sizes = [8, 8, 64], strides = [1, 1, 1]} : vector<10x10x64xbf16> to vector<8x8x64xbf16>
    %29 = vector.shape_cast %28 : vector<8x8x64xbf16> to vector<64x64xbf16>
    %30 = vector.extract_strided_slice %3 {offsets = [0, 2, 0], sizes = [8, 8, 64], strides = [1, 1, 1]} : vector<10x10x64xbf16> to vector<8x8x64xbf16>
    %31 = vector.shape_cast %30 : vector<8x8x64xbf16> to vector<64x64xbf16>
    %cst_19 = arith.constant dense<0.000000e+00> : vector<64x32xf32>
    %32 = tpu.matmul %29, %27, %cst_19 {dimension_numbers = #tpu.dot_dimension_numbers<[1], [0], [0], [1], [0, 0, 1, 1], [], []>} : vector<64x64xbf16>, vector<64x32xbf16>, vector<64x32xf32> -> vector<64x32xf32>
    %33 = arith.addf %23, %32 : vector<64x32xf32>
    %cst_20 = arith.constant dense<0.000000e+00> : vector<64x32xf32>
    %34 = tpu.matmul %31, %27, %cst_20 {dimension_numbers = #tpu.dot_dimension_numbers<[1], [0], [0], [1], [0, 0, 1, 1], [], []>} : vector<64x64xbf16>, vector<64x32xbf16>, vector<64x32xf32> -> vector<64x32xf32>
    %35 = arith.addf %25, %34 : vector<64x32xf32>
    %c3 = arith.constant 3 : index
    %c0_21 = arith.constant 0 : index
    %c0_22 = arith.constant 0 : index
    %36 = vector.load %arg3[%c3, %c0_21, %c0_22] : memref<9x64x32xbf16, #tpu.memory_space<vmem>>, vector<1x64x32xbf16>
    %37 = vector.shape_cast %36 : vector<1x64x32xbf16> to vector<64x32xbf16>
    %38 = vector.extract_strided_slice %1 {offsets = [1, 0, 0], sizes = [8, 8, 64], strides = [1, 1, 1]} : vector<10x10x64xbf16> to vector<8x8x64xbf16>
    %39 = vector.shape_cast %38 : vector<8x8x64xbf16> to vector<64x64xbf16>
    %40 = vector.extract_strided_slice %3 {offsets = [1, 0, 0], sizes = [8, 8, 64], strides = [1, 1, 1]} : vector<10x10x64xbf16> to vector<8x8x64xbf16>
    %41 = vector.shape_cast %40 : vector<8x8x64xbf16> to vector<64x64xbf16>
    %cst_23 = arith.constant dense<0.000000e+00> : vector<64x32xf32>
    %42 = tpu.matmul %39, %37, %cst_23 {dimension_numbers = #tpu.dot_dimension_numbers<[1], [0], [0], [1], [0, 0, 1, 1], [], []>} : vector<64x64xbf16>, vector<64x32xbf16>, vector<64x32xf32> -> vector<64x32xf32>
    %43 = arith.addf %33, %42 : vector<64x32xf32>
    %cst_24 = arith.constant dense<0.000000e+00> : vector<64x32xf32>
    %44 = tpu.matmul %41, %37, %cst_24 {dimension_numbers = #tpu.dot_dimension_numbers<[1], [0], [0], [1], [0, 0, 1, 1], [], []>} : vector<64x64xbf16>, vector<64x32xbf16>, vector<64x32xf32> -> vector<64x32xf32>
    %45 = arith.addf %35, %44 : vector<64x32xf32>
    %c4 = arith.constant 4 : index
    %c0_25 = arith.constant 0 : index
    %c0_26 = arith.constant 0 : index
    %46 = vector.load %arg3[%c4, %c0_25, %c0_26] : memref<9x64x32xbf16, #tpu.memory_space<vmem>>, vector<1x64x32xbf16>
    %47 = vector.shape_cast %46 : vector<1x64x32xbf16> to vector<64x32xbf16>
    %48 = vector.extract_strided_slice %1 {offsets = [1, 1, 0], sizes = [8, 8, 64], strides = [1, 1, 1]} : vector<10x10x64xbf16> to vector<8x8x64xbf16>
    %49 = vector.shape_cast %48 : vector<8x8x64xbf16> to vector<64x64xbf16>
    %50 = vector.extract_strided_slice %3 {offsets = [1, 1, 0], sizes = [8, 8, 64], strides = [1, 1, 1]} : vector<10x10x64xbf16> to vector<8x8x64xbf16>
    %51 = vector.shape_cast %50 : vector<8x8x64xbf16> to vector<64x64xbf16>
    %cst_27 = arith.constant dense<0.000000e+00> : vector<64x32xf32>
    %52 = tpu.matmul %49, %47, %cst_27 {dimension_numbers = #tpu.dot_dimension_numbers<[1], [0], [0], [1], [0, 0, 1, 1], [], []>} : vector<64x64xbf16>, vector<64x32xbf16>, vector<64x32xf32> -> vector<64x32xf32>
    %53 = arith.addf %43, %52 : vector<64x32xf32>
    %cst_28 = arith.constant dense<0.000000e+00> : vector<64x32xf32>
    %54 = tpu.matmul %51, %47, %cst_28 {dimension_numbers = #tpu.dot_dimension_numbers<[1], [0], [0], [1], [0, 0, 1, 1], [], []>} : vector<64x64xbf16>, vector<64x32xbf16>, vector<64x32xf32> -> vector<64x32xf32>
    %55 = arith.addf %45, %54 : vector<64x32xf32>
    %c5 = arith.constant 5 : index
    %c0_29 = arith.constant 0 : index
    %c0_30 = arith.constant 0 : index
    %56 = vector.load %arg3[%c5, %c0_29, %c0_30] : memref<9x64x32xbf16, #tpu.memory_space<vmem>>, vector<1x64x32xbf16>
    %57 = vector.shape_cast %56 : vector<1x64x32xbf16> to vector<64x32xbf16>
    %58 = vector.extract_strided_slice %1 {offsets = [1, 2, 0], sizes = [8, 8, 64], strides = [1, 1, 1]} : vector<10x10x64xbf16> to vector<8x8x64xbf16>
    %59 = vector.shape_cast %58 : vector<8x8x64xbf16> to vector<64x64xbf16>
    %60 = vector.extract_strided_slice %3 {offsets = [1, 2, 0], sizes = [8, 8, 64], strides = [1, 1, 1]} : vector<10x10x64xbf16> to vector<8x8x64xbf16>
    %61 = vector.shape_cast %60 : vector<8x8x64xbf16> to vector<64x64xbf16>
    %cst_31 = arith.constant dense<0.000000e+00> : vector<64x32xf32>
    %62 = tpu.matmul %59, %57, %cst_31 {dimension_numbers = #tpu.dot_dimension_numbers<[1], [0], [0], [1], [0, 0, 1, 1], [], []>} : vector<64x64xbf16>, vector<64x32xbf16>, vector<64x32xf32> -> vector<64x32xf32>
    %63 = arith.addf %53, %62 : vector<64x32xf32>
    %cst_32 = arith.constant dense<0.000000e+00> : vector<64x32xf32>
    %64 = tpu.matmul %61, %57, %cst_32 {dimension_numbers = #tpu.dot_dimension_numbers<[1], [0], [0], [1], [0, 0, 1, 1], [], []>} : vector<64x64xbf16>, vector<64x32xbf16>, vector<64x32xf32> -> vector<64x32xf32>
    %65 = arith.addf %55, %64 : vector<64x32xf32>
    %c6 = arith.constant 6 : index
    %c0_33 = arith.constant 0 : index
    %c0_34 = arith.constant 0 : index
    %66 = vector.load %arg3[%c6, %c0_33, %c0_34] : memref<9x64x32xbf16, #tpu.memory_space<vmem>>, vector<1x64x32xbf16>
    %67 = vector.shape_cast %66 : vector<1x64x32xbf16> to vector<64x32xbf16>
    %68 = vector.extract_strided_slice %1 {offsets = [2, 0, 0], sizes = [8, 8, 64], strides = [1, 1, 1]} : vector<10x10x64xbf16> to vector<8x8x64xbf16>
    %69 = vector.shape_cast %68 : vector<8x8x64xbf16> to vector<64x64xbf16>
    %70 = vector.extract_strided_slice %3 {offsets = [2, 0, 0], sizes = [8, 8, 64], strides = [1, 1, 1]} : vector<10x10x64xbf16> to vector<8x8x64xbf16>
    %71 = vector.shape_cast %70 : vector<8x8x64xbf16> to vector<64x64xbf16>
    %cst_35 = arith.constant dense<0.000000e+00> : vector<64x32xf32>
    %72 = tpu.matmul %69, %67, %cst_35 {dimension_numbers = #tpu.dot_dimension_numbers<[1], [0], [0], [1], [0, 0, 1, 1], [], []>} : vector<64x64xbf16>, vector<64x32xbf16>, vector<64x32xf32> -> vector<64x32xf32>
    %73 = arith.addf %63, %72 : vector<64x32xf32>
    %cst_36 = arith.constant dense<0.000000e+00> : vector<64x32xf32>
    %74 = tpu.matmul %71, %67, %cst_36 {dimension_numbers = #tpu.dot_dimension_numbers<[1], [0], [0], [1], [0, 0, 1, 1], [], []>} : vector<64x64xbf16>, vector<64x32xbf16>, vector<64x32xf32> -> vector<64x32xf32>
    %75 = arith.addf %65, %74 : vector<64x32xf32>
    %c7 = arith.constant 7 : index
    %c0_37 = arith.constant 0 : index
    %c0_38 = arith.constant 0 : index
    %76 = vector.load %arg3[%c7, %c0_37, %c0_38] : memref<9x64x32xbf16, #tpu.memory_space<vmem>>, vector<1x64x32xbf16>
    %77 = vector.shape_cast %76 : vector<1x64x32xbf16> to vector<64x32xbf16>
    %78 = vector.extract_strided_slice %1 {offsets = [2, 1, 0], sizes = [8, 8, 64], strides = [1, 1, 1]} : vector<10x10x64xbf16> to vector<8x8x64xbf16>
    %79 = vector.shape_cast %78 : vector<8x8x64xbf16> to vector<64x64xbf16>
    %80 = vector.extract_strided_slice %3 {offsets = [2, 1, 0], sizes = [8, 8, 64], strides = [1, 1, 1]} : vector<10x10x64xbf16> to vector<8x8x64xbf16>
    %81 = vector.shape_cast %80 : vector<8x8x64xbf16> to vector<64x64xbf16>
    %cst_39 = arith.constant dense<0.000000e+00> : vector<64x32xf32>
    %82 = tpu.matmul %79, %77, %cst_39 {dimension_numbers = #tpu.dot_dimension_numbers<[1], [0], [0], [1], [0, 0, 1, 1], [], []>} : vector<64x64xbf16>, vector<64x32xbf16>, vector<64x32xf32> -> vector<64x32xf32>
    %83 = arith.addf %73, %82 : vector<64x32xf32>
    %cst_40 = arith.constant dense<0.000000e+00> : vector<64x32xf32>
    %84 = tpu.matmul %81, %77, %cst_40 {dimension_numbers = #tpu.dot_dimension_numbers<[1], [0], [0], [1], [0, 0, 1, 1], [], []>} : vector<64x64xbf16>, vector<64x32xbf16>, vector<64x32xf32> -> vector<64x32xf32>
    %85 = arith.addf %75, %84 : vector<64x32xf32>
    %c8 = arith.constant 8 : index
    %c0_41 = arith.constant 0 : index
    %c0_42 = arith.constant 0 : index
    %86 = vector.load %arg3[%c8, %c0_41, %c0_42] : memref<9x64x32xbf16, #tpu.memory_space<vmem>>, vector<1x64x32xbf16>
    %87 = vector.shape_cast %86 : vector<1x64x32xbf16> to vector<64x32xbf16>
    %88 = vector.extract_strided_slice %1 {offsets = [2, 2, 0], sizes = [8, 8, 64], strides = [1, 1, 1]} : vector<10x10x64xbf16> to vector<8x8x64xbf16>
    %89 = vector.shape_cast %88 : vector<8x8x64xbf16> to vector<64x64xbf16>
    %90 = vector.extract_strided_slice %3 {offsets = [2, 2, 0], sizes = [8, 8, 64], strides = [1, 1, 1]} : vector<10x10x64xbf16> to vector<8x8x64xbf16>
    %91 = vector.shape_cast %90 : vector<8x8x64xbf16> to vector<64x64xbf16>
    %cst_43 = arith.constant dense<0.000000e+00> : vector<64x32xf32>
    %92 = tpu.matmul %89, %87, %cst_43 {dimension_numbers = #tpu.dot_dimension_numbers<[1], [0], [0], [1], [0, 0, 1, 1], [], []>} : vector<64x64xbf16>, vector<64x32xbf16>, vector<64x32xf32> -> vector<64x32xf32>
    %93 = arith.addf %83, %92 : vector<64x32xf32>
    %cst_44 = arith.constant dense<0.000000e+00> : vector<64x32xf32>
    %94 = tpu.matmul %91, %87, %cst_44 {dimension_numbers = #tpu.dot_dimension_numbers<[1], [0], [0], [1], [0, 0, 1, 1], [], []>} : vector<64x64xbf16>, vector<64x32xbf16>, vector<64x32xf32> -> vector<64x32xf32>
    %95 = arith.addf %85, %94 : vector<64x32xf32>
    %c0_45 = arith.constant 0 : index
    %c0_46 = arith.constant 0 : index
    %96 = vector.load %arg4[%c0_45, %c0_46] : memref<1x32xf32, #tpu.memory_space<vmem>>, vector<1x32xf32>
    %97 = vector.broadcast %96 : vector<1x32xf32> to vector<64x32xf32>
    %98 = arith.addf %93, %97 : vector<64x32xf32>
    %cst_47 = arith.constant 0.000000e+00 : f32
    %99 = vector.broadcast %cst_47 : f32 to vector<64x32xf32>
    %100 = arith.subf %99, %98 : vector<64x32xf32>
    %101 = math.exp %100 : vector<64x32xf32>
    %cst_48 = arith.constant 1.000000e+00 : f32
    %102 = vector.broadcast %cst_48 : f32 to vector<64x32xf32>
    %103 = arith.addf %102, %101 : vector<64x32xf32>
    %104 = tpu.reciprocal %103 {approx = true} : vector<64x32xf32> -> vector<64x32xf32>
    %105 = arith.mulf %98, %104 : vector<64x32xf32>
    %106 = vector.broadcast %96 : vector<1x32xf32> to vector<64x32xf32>
    %107 = arith.addf %95, %106 : vector<64x32xf32>
    %cst_49 = arith.constant 0.000000e+00 : f32
    %108 = vector.broadcast %cst_49 : f32 to vector<64x32xf32>
    %109 = arith.subf %108, %107 : vector<64x32xf32>
    %110 = math.exp %109 : vector<64x32xf32>
    %cst_50 = arith.constant 1.000000e+00 : f32
    %111 = vector.broadcast %cst_50 : f32 to vector<64x32xf32>
    %112 = arith.addf %111, %110 : vector<64x32xf32>
    %113 = tpu.reciprocal %112 {approx = true} : vector<64x32xf32> -> vector<64x32xf32>
    %114 = arith.mulf %107, %113 : vector<64x32xf32>
    %115 = vector.shape_cast %105 : vector<64x32xf32> to vector<1x8x8x32xf32>
    %116 = arith.truncf %115 : vector<1x8x8x32xf32> to vector<1x8x8x32xbf16>
    %c0_51 = arith.constant 0 : index
    %c0_52 = arith.constant 0 : index
    %c0_53 = arith.constant 0 : index
    %c0_54 = arith.constant 0 : index
    %117 = vector.load %arg5[%c0_51, %c0_52, %c0_53, %c0_54] : memref<1x8x8x32xbf16, #tpu.memory_space<vmem>>, vector<1x8x8x32xbf16>
    tpu.vector_store %arg5[%c0_51, %c0_52, %c0_53, %c0_54], %116 {strides = array<i32>} : memref<1x8x8x32xbf16, #tpu.memory_space<vmem>>, vector<1x8x8x32xbf16>,
    %118 = vector.shape_cast %114 : vector<64x32xf32> to vector<1x8x8x32xf32>
    %119 = arith.truncf %118 : vector<1x8x8x32xf32> to vector<1x8x8x32xbf16>
    %c0_55 = arith.constant 0 : index
    %c0_56 = arith.constant 0 : index
    %c0_57 = arith.constant 0 : index
    %c0_58 = arith.constant 0 : index
    %120 = vector.load %arg6[%c0_55, %c0_56, %c0_57, %c0_58] : memref<1x8x8x32xbf16, #tpu.memory_space<vmem>>, vector<1x8x8x32xbf16>
    tpu.vector_store %arg6[%c0_55, %c0_56, %c0_57, %c0_58], %119 {strides = array<i32>} : memref<1x8x8x32xbf16, #tpu.memory_space<vmem>>, vector<1x8x8x32xbf16>,
    %121 = arith.subf %105, %114 : vector<64x32xf32>
    %122 = math.absf %121 : vector<64x32xf32>
    %123 = vector.shape_cast %122 : vector<64x32xf32> to vector<1x64x32xf32>
    %cst_59 = arith.constant dense<0.000000e+00> : vector<1xf32>
    %124 = vector.multi_reduction <add>, %123, %cst_59 [1, 2] : vector<1x64x32xf32> to vector<1xf32>
    %125 = vector.shape_cast %124 : vector<1xf32> to vector<1x1x1xf32>
    %126 = vector.extract %125[0, 0, 0] : f32 from vector<1x1x1xf32>
    %127 = vector.broadcast %126 : f32 to vector<1x8x128xf32>
    %c0_60 = arith.constant 0 : index
    %c0_61 = arith.constant 0 : index
    %c0_62 = arith.constant 0 : index
    %128 = vector.load %arg7[%c0_60, %c0_61, %c0_62] : memref<1x8x128xf32, #tpu.memory_space<vmem>>, vector<1x8x128xf32>
    tpu.vector_store %arg7[%c0_60, %c0_61, %c0_62], %127 {strides = array<i32>} : memref<1x8x128xf32, #tpu.memory_space<vmem>>, vector<1x8x128xf32>,
    return
  }
  func.func @transform_0(%arg0: i32) -> (i32, i32, i32, i32) {
    %c0_i32 = arith.constant 0 : i32
    %c0_i32_0 = arith.constant 0 : i32
    %c0_i32_1 = arith.constant 0 : i32
    %c0_i32_2 = arith.constant 0 : i32
    return %arg0, %c0_i32, %c0_i32_0, %c0_i32_1 : i32, i32, i32, i32
  }
  func.func @transform_1(%arg0: i32) -> (i32, i32, i32, i32) {
    %c0_i32 = arith.constant 0 : i32
    %c0_i32_0 = arith.constant 0 : i32
    %c0_i32_1 = arith.constant 0 : i32
    %c0_i32_2 = arith.constant 0 : i32
    return %arg0, %c0_i32, %c0_i32_0, %c0_i32_1 : i32, i32, i32, i32
  }
  func.func @transform_2(%arg0: i32) -> (i32, i32, i32) {
    %c0_i32 = arith.constant 0 : i32
    %c0_i32_0 = arith.constant 0 : i32
    %c0_i32_1 = arith.constant 0 : i32
    %c0_i32_2 = arith.constant 0 : i32
    return %c0_i32, %c0_i32_0, %c0_i32_1 : i32, i32, i32
  }
  func.func @transform_3(%arg0: i32) -> (i32, i32) {
    %c0_i32 = arith.constant 0 : i32
    %c0_i32_0 = arith.constant 0 : i32
    %c0_i32_1 = arith.constant 0 : i32
    return %c0_i32, %c0_i32_0 : i32, i32
  }
  func.func @transform_4(%arg0: i32) -> (i32, i32, i32, i32) {
    %c0_i32 = arith.constant 0 : i32
    %c0_i32_0 = arith.constant 0 : i32
    %c0_i32_1 = arith.constant 0 : i32
    %c0_i32_2 = arith.constant 0 : i32
    return %arg0, %c0_i32, %c0_i32_0, %c0_i32_1 : i32, i32, i32, i32
  }
  func.func @transform_5(%arg0: i32) -> (i32, i32, i32, i32) {
    %c0_i32 = arith.constant 0 : i32
    %c0_i32_0 = arith.constant 0 : i32
    %c0_i32_1 = arith.constant 0 : i32
    %c0_i32_2 = arith.constant 0 : i32
    return %arg0, %c0_i32, %c0_i32_0, %c0_i32_1 : i32, i32, i32, i32
  }
  func.func @transform_6(%arg0: i32) -> (i32, i32, i32) {
    %c0_i32 = arith.constant 0 : i32
    %c0_i32_0 = arith.constant 0 : i32
    %c0_i32_1 = arith.constant 0 : i32
    return %arg0, %c0_i32, %c0_i32_0 : i32, i32, i32
  }
}

module attributes {stable_mosaic.version = 11 : i64} {
  func.func @kernel(%arg0: i32, %arg1: memref<32x288xbf16, #tpu.memory_space<vmem>>, %arg2: memref<32x288xbf16, #tpu.memory_space<vmem>>, %arg3: memref<288x48xbf16, #tpu.memory_space<vmem>>, %arg4: memref<1x48xf32, #tpu.memory_space<vmem>>, %arg5: memref<32x48xbf16, #tpu.memory_space<vmem>>, %arg6: memref<32x48xbf16, #tpu.memory_space<vmem>>, %arg7: memref<1x8x128xf32, #tpu.memory_space<vmem>>) attributes {dimension_semantics = [#tpu.dimension_semantics<parallel>], iteration_bounds = array<i64: 1>, scalar_prefetch = 0 : i64, scratch_operands = 0 : i64, tpu.core_type = #tpu.core_type<tc>, window_params = [{transform_indices = @transform_0, window_bounds = array<i64: 32, 288>}, {transform_indices = @transform_1, window_bounds = array<i64: 32, 288>}, {pipeline_mode = #tpu.pipeline_mode<synchronous>, transform_indices = @transform_2, window_bounds = array<i64: 288, 48>}, {pipeline_mode = #tpu.pipeline_mode<synchronous>, transform_indices = @transform_3, window_bounds = array<i64: 1, 48>}, {transform_indices = @transform_4, window_bounds = array<i64: 32, 48>}, {transform_indices = @transform_5, window_bounds = array<i64: 32, 48>}, {transform_indices = @transform_6, window_bounds = array<i64: 1, 8, 128>}]} {
    %c0 = arith.constant 0 : index
    %c0_0 = arith.constant 0 : index
    %0 = vector.load %arg3[%c0, %c0_0] : memref<288x48xbf16, #tpu.memory_space<vmem>>, vector<288x48xbf16>
    %c0_1 = arith.constant 0 : index
    %c0_2 = arith.constant 0 : index
    %1 = vector.load %arg4[%c0_1, %c0_2] : memref<1x48xf32, #tpu.memory_space<vmem>>, vector<1x48xf32>
    %c0_3 = arith.constant 0 : index
    %c0_4 = arith.constant 0 : index
    %2 = vector.load %arg1[%c0_3, %c0_4] : memref<32x288xbf16, #tpu.memory_space<vmem>>, vector<32x288xbf16>
    %cst = arith.constant dense<0.000000e+00> : vector<32x48xf32>
    %3 = tpu.matmul %2, %0, %cst {dimension_numbers = #tpu.dot_dimension_numbers<[1], [0], [0], [1], [0, 0, 1, 1], [], []>} : vector<32x288xbf16>, vector<288x48xbf16>, vector<32x48xf32> -> vector<32x48xf32>
    %4 = vector.broadcast %1 : vector<1x48xf32> to vector<32x48xf32>
    %5 = arith.addf %3, %4 : vector<32x48xf32>
    %c0_5 = arith.constant 0 : index
    %c0_6 = arith.constant 0 : index
    %6 = vector.load %arg2[%c0_5, %c0_6] : memref<32x288xbf16, #tpu.memory_space<vmem>>, vector<32x288xbf16>
    %cst_7 = arith.constant dense<0.000000e+00> : vector<32x48xf32>
    %7 = tpu.matmul %6, %0, %cst_7 {dimension_numbers = #tpu.dot_dimension_numbers<[1], [0], [0], [1], [0, 0, 1, 1], [], []>} : vector<32x288xbf16>, vector<288x48xbf16>, vector<32x48xf32> -> vector<32x48xf32>
    %8 = vector.broadcast %1 : vector<1x48xf32> to vector<32x48xf32>
    %9 = arith.addf %7, %8 : vector<32x48xf32>
    %cst_8 = arith.constant 0.000000e+00 : f32
    %10 = vector.broadcast %cst_8 : f32 to vector<32x48xf32>
    %11 = arith.subf %10, %5 : vector<32x48xf32>
    %12 = math.exp %11 : vector<32x48xf32>
    %cst_9 = arith.constant 1.000000e+00 : f32
    %13 = vector.broadcast %cst_9 : f32 to vector<32x48xf32>
    %14 = arith.addf %13, %12 : vector<32x48xf32>
    %15 = tpu.reciprocal %14 {approx = true} : vector<32x48xf32> -> vector<32x48xf32>
    %16 = arith.mulf %5, %15 : vector<32x48xf32>
    %cst_10 = arith.constant 0.000000e+00 : f32
    %17 = vector.broadcast %cst_10 : f32 to vector<32x48xf32>
    %18 = arith.subf %17, %9 : vector<32x48xf32>
    %19 = math.exp %18 : vector<32x48xf32>
    %cst_11 = arith.constant 1.000000e+00 : f32
    %20 = vector.broadcast %cst_11 : f32 to vector<32x48xf32>
    %21 = arith.addf %20, %19 : vector<32x48xf32>
    %22 = tpu.reciprocal %21 {approx = true} : vector<32x48xf32> -> vector<32x48xf32>
    %23 = arith.mulf %9, %22 : vector<32x48xf32>
    %24 = arith.truncf %16 : vector<32x48xf32> to vector<32x48xbf16>
    %c0_12 = arith.constant 0 : index
    %c0_13 = arith.constant 0 : index
    %25 = vector.load %arg5[%c0_12, %c0_13] : memref<32x48xbf16, #tpu.memory_space<vmem>>, vector<32x48xbf16>
    tpu.vector_store %arg5[%c0_12, %c0_13], %24 {strides = array<i32>} : memref<32x48xbf16, #tpu.memory_space<vmem>>, vector<32x48xbf16>,
    %26 = arith.truncf %23 : vector<32x48xf32> to vector<32x48xbf16>
    %c0_14 = arith.constant 0 : index
    %c0_15 = arith.constant 0 : index
    %27 = vector.load %arg6[%c0_14, %c0_15] : memref<32x48xbf16, #tpu.memory_space<vmem>>, vector<32x48xbf16>
    tpu.vector_store %arg6[%c0_14, %c0_15], %26 {strides = array<i32>} : memref<32x48xbf16, #tpu.memory_space<vmem>>, vector<32x48xbf16>,
    %28 = arith.subf %16, %23 : vector<32x48xf32>
    %29 = math.absf %28 : vector<32x48xf32>
    %30 = vector.shape_cast %29 : vector<32x48xf32> to vector<1x32x48xf32>
    %cst_16 = arith.constant dense<0.000000e+00> : vector<1xf32>
    %31 = vector.multi_reduction <add>, %30, %cst_16 [1, 2] : vector<1x32x48xf32> to vector<1xf32>
    %32 = vector.shape_cast %31 : vector<1xf32> to vector<1x1x1xf32>
    %33 = vector.extract %32[0, 0, 0] : f32 from vector<1x1x1xf32>
    %34 = vector.broadcast %33 : f32 to vector<1x8x128xf32>
    %c0_17 = arith.constant 0 : index
    %c0_18 = arith.constant 0 : index
    %c0_19 = arith.constant 0 : index
    %35 = vector.load %arg7[%c0_17, %c0_18, %c0_19] : memref<1x8x128xf32, #tpu.memory_space<vmem>>, vector<1x8x128xf32>
    tpu.vector_store %arg7[%c0_17, %c0_18, %c0_19], %34 {strides = array<i32>} : memref<1x8x128xf32, #tpu.memory_space<vmem>>, vector<1x8x128xf32>,
    return
  }
  func.func @transform_0(%arg0: i32) -> (i32, i32) {
    %c0_i32 = arith.constant 0 : i32
    %c0_i32_0 = arith.constant 0 : i32
    return %arg0, %c0_i32 : i32, i32
  }
  func.func @transform_1(%arg0: i32) -> (i32, i32) {
    %c0_i32 = arith.constant 0 : i32
    %c0_i32_0 = arith.constant 0 : i32
    return %arg0, %c0_i32 : i32, i32
  }
  func.func @transform_2(%arg0: i32) -> (i32, i32) {
    %c0_i32 = arith.constant 0 : i32
    %c0_i32_0 = arith.constant 0 : i32
    %c0_i32_1 = arith.constant 0 : i32
    return %c0_i32, %c0_i32_0 : i32, i32
  }
  func.func @transform_3(%arg0: i32) -> (i32, i32) {
    %c0_i32 = arith.constant 0 : i32
    %c0_i32_0 = arith.constant 0 : i32
    %c0_i32_1 = arith.constant 0 : i32
    return %c0_i32, %c0_i32_0 : i32, i32
  }
  func.func @transform_4(%arg0: i32) -> (i32, i32) {
    %c0_i32 = arith.constant 0 : i32
    %c0_i32_0 = arith.constant 0 : i32
    return %arg0, %c0_i32 : i32, i32
  }
  func.func @transform_5(%arg0: i32) -> (i32, i32) {
    %c0_i32 = arith.constant 0 : i32
    %c0_i32_0 = arith.constant 0 : i32
    return %arg0, %c0_i32 : i32, i32
  }
  func.func @transform_6(%arg0: i32) -> (i32, i32, i32) {
    %c0_i32 = arith.constant 0 : i32
    %c0_i32_0 = arith.constant 0 : i32
    %c0_i32_1 = arith.constant 0 : i32
    return %arg0, %c0_i32, %c0_i32_0 : i32, i32, i32
  }
}

module attributes {stable_mosaic.version = 11 : i64} {
  func.func @kernel(%arg0: i32, %arg1: memref<8x432xbf16, #tpu.memory_space<vmem>>, %arg2: memref<8x432xbf16, #tpu.memory_space<vmem>>, %arg3: memref<432x80xbf16, #tpu.memory_space<vmem>>, %arg4: memref<1x80xf32, #tpu.memory_space<vmem>>, %arg5: memref<8x80xbf16, #tpu.memory_space<vmem>>, %arg6: memref<8x80xbf16, #tpu.memory_space<vmem>>, %arg7: memref<1x8x128xf32, #tpu.memory_space<vmem>>) attributes {dimension_semantics = [#tpu.dimension_semantics<parallel>], iteration_bounds = array<i64: 1>, scalar_prefetch = 0 : i64, scratch_operands = 0 : i64, tpu.core_type = #tpu.core_type<tc>, window_params = [{transform_indices = @transform_0, window_bounds = array<i64: 8, 432>}, {transform_indices = @transform_1, window_bounds = array<i64: 8, 432>}, {pipeline_mode = #tpu.pipeline_mode<synchronous>, transform_indices = @transform_2, window_bounds = array<i64: 432, 80>}, {pipeline_mode = #tpu.pipeline_mode<synchronous>, transform_indices = @transform_3, window_bounds = array<i64: 1, 80>}, {transform_indices = @transform_4, window_bounds = array<i64: 8, 80>}, {transform_indices = @transform_5, window_bounds = array<i64: 8, 80>}, {transform_indices = @transform_6, window_bounds = array<i64: 1, 8, 128>}]} {
    %c0 = arith.constant 0 : index
    %c0_0 = arith.constant 0 : index
    %0 = vector.load %arg3[%c0, %c0_0] : memref<432x80xbf16, #tpu.memory_space<vmem>>, vector<432x80xbf16>
    %c0_1 = arith.constant 0 : index
    %c0_2 = arith.constant 0 : index
    %1 = vector.load %arg4[%c0_1, %c0_2] : memref<1x80xf32, #tpu.memory_space<vmem>>, vector<1x80xf32>
    %c0_3 = arith.constant 0 : index
    %c0_4 = arith.constant 0 : index
    %2 = vector.load %arg1[%c0_3, %c0_4] : memref<8x432xbf16, #tpu.memory_space<vmem>>, vector<8x432xbf16>
    %cst = arith.constant dense<0.000000e+00> : vector<8x80xf32>
    %3 = tpu.matmul %2, %0, %cst {dimension_numbers = #tpu.dot_dimension_numbers<[1], [0], [0], [1], [0, 0, 1, 1], [], []>} : vector<8x432xbf16>, vector<432x80xbf16>, vector<8x80xf32> -> vector<8x80xf32>
    %4 = vector.broadcast %1 : vector<1x80xf32> to vector<8x80xf32>
    %5 = arith.addf %3, %4 : vector<8x80xf32>
    %c0_5 = arith.constant 0 : index
    %c0_6 = arith.constant 0 : index
    %6 = vector.load %arg2[%c0_5, %c0_6] : memref<8x432xbf16, #tpu.memory_space<vmem>>, vector<8x432xbf16>
    %cst_7 = arith.constant dense<0.000000e+00> : vector<8x80xf32>
    %7 = tpu.matmul %6, %0, %cst_7 {dimension_numbers = #tpu.dot_dimension_numbers<[1], [0], [0], [1], [0, 0, 1, 1], [], []>} : vector<8x432xbf16>, vector<432x80xbf16>, vector<8x80xf32> -> vector<8x80xf32>
    %8 = vector.broadcast %1 : vector<1x80xf32> to vector<8x80xf32>
    %9 = arith.addf %7, %8 : vector<8x80xf32>
    %cst_8 = arith.constant 0.000000e+00 : f32
    %10 = vector.broadcast %cst_8 : f32 to vector<8x80xf32>
    %11 = arith.subf %10, %5 : vector<8x80xf32>
    %12 = math.exp %11 : vector<8x80xf32>
    %cst_9 = arith.constant 1.000000e+00 : f32
    %13 = vector.broadcast %cst_9 : f32 to vector<8x80xf32>
    %14 = arith.addf %13, %12 : vector<8x80xf32>
    %15 = tpu.reciprocal %14 {approx = true} : vector<8x80xf32> -> vector<8x80xf32>
    %16 = arith.mulf %5, %15 : vector<8x80xf32>
    %cst_10 = arith.constant 0.000000e+00 : f32
    %17 = vector.broadcast %cst_10 : f32 to vector<8x80xf32>
    %18 = arith.subf %17, %9 : vector<8x80xf32>
    %19 = math.exp %18 : vector<8x80xf32>
    %cst_11 = arith.constant 1.000000e+00 : f32
    %20 = vector.broadcast %cst_11 : f32 to vector<8x80xf32>
    %21 = arith.addf %20, %19 : vector<8x80xf32>
    %22 = tpu.reciprocal %21 {approx = true} : vector<8x80xf32> -> vector<8x80xf32>
    %23 = arith.mulf %9, %22 : vector<8x80xf32>
    %24 = arith.truncf %16 : vector<8x80xf32> to vector<8x80xbf16>
    %c0_12 = arith.constant 0 : index
    %c0_13 = arith.constant 0 : index
    %25 = vector.load %arg5[%c0_12, %c0_13] : memref<8x80xbf16, #tpu.memory_space<vmem>>, vector<8x80xbf16>
    tpu.vector_store %arg5[%c0_12, %c0_13], %24 {strides = array<i32>} : memref<8x80xbf16, #tpu.memory_space<vmem>>, vector<8x80xbf16>,
    %26 = arith.truncf %23 : vector<8x80xf32> to vector<8x80xbf16>
    %c0_14 = arith.constant 0 : index
    %c0_15 = arith.constant 0 : index
    %27 = vector.load %arg6[%c0_14, %c0_15] : memref<8x80xbf16, #tpu.memory_space<vmem>>, vector<8x80xbf16>
    tpu.vector_store %arg6[%c0_14, %c0_15], %26 {strides = array<i32>} : memref<8x80xbf16, #tpu.memory_space<vmem>>, vector<8x80xbf16>,
    %28 = arith.subf %16, %23 : vector<8x80xf32>
    %29 = math.absf %28 : vector<8x80xf32>
    %30 = vector.shape_cast %29 : vector<8x80xf32> to vector<1x8x80xf32>
    %cst_16 = arith.constant dense<0.000000e+00> : vector<1xf32>
    %31 = vector.multi_reduction <add>, %30, %cst_16 [1, 2] : vector<1x8x80xf32> to vector<1xf32>
    %32 = vector.shape_cast %31 : vector<1xf32> to vector<1x1x1xf32>
    %33 = vector.extract %32[0, 0, 0] : f32 from vector<1x1x1xf32>
    %34 = vector.broadcast %33 : f32 to vector<1x8x128xf32>
    %c0_17 = arith.constant 0 : index
    %c0_18 = arith.constant 0 : index
    %c0_19 = arith.constant 0 : index
    %35 = vector.load %arg7[%c0_17, %c0_18, %c0_19] : memref<1x8x128xf32, #tpu.memory_space<vmem>>, vector<1x8x128xf32>
    tpu.vector_store %arg7[%c0_17, %c0_18, %c0_19], %34 {strides = array<i32>} : memref<1x8x128xf32, #tpu.memory_space<vmem>>, vector<1x8x128xf32>,
    return
  }
  func.func @transform_0(%arg0: i32) -> (i32, i32) {
    %c0_i32 = arith.constant 0 : i32
    %c0_i32_0 = arith.constant 0 : i32
    return %arg0, %c0_i32 : i32, i32
  }
  func.func @transform_1(%arg0: i32) -> (i32, i32) {
    %c0_i32 = arith.constant 0 : i32
    %c0_i32_0 = arith.constant 0 : i32
    return %arg0, %c0_i32 : i32, i32
  }
  func.func @transform_2(%arg0: i32) -> (i32, i32) {
    %c0_i32 = arith.constant 0 : i32
    %c0_i32_0 = arith.constant 0 : i32
    %c0_i32_1 = arith.constant 0 : i32
    return %c0_i32, %c0_i32_0 : i32, i32
  }
  func.func @transform_3(%arg0: i32) -> (i32, i32) {
    %c0_i32 = arith.constant 0 : i32
    %c0_i32_0 = arith.constant 0 : i32
    %c0_i32_1 = arith.constant 0 : i32
    return %c0_i32, %c0_i32_0 : i32, i32
  }
  func.func @transform_4(%arg0: i32) -> (i32, i32) {
    %c0_i32 = arith.constant 0 : i32
    %c0_i32_0 = arith.constant 0 : i32
    return %arg0, %c0_i32 : i32, i32
  }
  func.func @transform_5(%arg0: i32) -> (i32, i32) {
    %c0_i32 = arith.constant 0 : i32
    %c0_i32_0 = arith.constant 0 : i32
    return %arg0, %c0_i32 : i32, i32
  }
  func.func @transform_6(%arg0: i32) -> (i32, i32, i32) {
    %c0_i32 = arith.constant 0 : i32
    %c0_i32_0 = arith.constant 0 : i32
    %c0_i32_1 = arith.constant 0 : i32
    return %arg0, %c0_i32, %c0_i32_0 : i32, i32, i32
  }
}

module attributes {stable_mosaic.version = 11 : i64} {
  func.func @kernel(%arg0: i32, %arg1: memref<8x720xbf16, #tpu.memory_space<vmem>>, %arg2: memref<8x720xbf16, #tpu.memory_space<vmem>>, %arg3: memref<720x160xbf16, #tpu.memory_space<vmem>>, %arg4: memref<1x160xf32, #tpu.memory_space<vmem>>, %arg5: memref<8x160xbf16, #tpu.memory_space<vmem>>, %arg6: memref<8x160xbf16, #tpu.memory_space<vmem>>, %arg7: memref<1x8x128xf32, #tpu.memory_space<vmem>>) attributes {dimension_semantics = [#tpu.dimension_semantics<parallel>], iteration_bounds = array<i64: 1>, scalar_prefetch = 0 : i64, scratch_operands = 0 : i64, tpu.core_type = #tpu.core_type<tc>, window_params = [{transform_indices = @transform_0, window_bounds = array<i64: 8, 720>}, {transform_indices = @transform_1, window_bounds = array<i64: 8, 720>}, {pipeline_mode = #tpu.pipeline_mode<synchronous>, transform_indices = @transform_2, window_bounds = array<i64: 720, 160>}, {pipeline_mode = #tpu.pipeline_mode<synchronous>, transform_indices = @transform_3, window_bounds = array<i64: 1, 160>}, {transform_indices = @transform_4, window_bounds = array<i64: 8, 160>}, {transform_indices = @transform_5, window_bounds = array<i64: 8, 160>}, {transform_indices = @transform_6, window_bounds = array<i64: 1, 8, 128>}]} {
    %c0 = arith.constant 0 : index
    %c0_0 = arith.constant 0 : index
    %0 = vector.load %arg3[%c0, %c0_0] : memref<720x160xbf16, #tpu.memory_space<vmem>>, vector<720x160xbf16>
    %c0_1 = arith.constant 0 : index
    %c0_2 = arith.constant 0 : index
    %1 = vector.load %arg4[%c0_1, %c0_2] : memref<1x160xf32, #tpu.memory_space<vmem>>, vector<1x160xf32>
    %c0_3 = arith.constant 0 : index
    %c0_4 = arith.constant 0 : index
    %2 = vector.load %arg1[%c0_3, %c0_4] : memref<8x720xbf16, #tpu.memory_space<vmem>>, vector<8x720xbf16>
    %cst = arith.constant dense<0.000000e+00> : vector<8x160xf32>
    %3 = tpu.matmul %2, %0, %cst {dimension_numbers = #tpu.dot_dimension_numbers<[1], [0], [0], [1], [0, 0, 1, 1], [], []>} : vector<8x720xbf16>, vector<720x160xbf16>, vector<8x160xf32> -> vector<8x160xf32>
    %4 = vector.broadcast %1 : vector<1x160xf32> to vector<8x160xf32>
    %5 = arith.addf %3, %4 : vector<8x160xf32>
    %c0_5 = arith.constant 0 : index
    %c0_6 = arith.constant 0 : index
    %6 = vector.load %arg2[%c0_5, %c0_6] : memref<8x720xbf16, #tpu.memory_space<vmem>>, vector<8x720xbf16>
    %cst_7 = arith.constant dense<0.000000e+00> : vector<8x160xf32>
    %7 = tpu.matmul %6, %0, %cst_7 {dimension_numbers = #tpu.dot_dimension_numbers<[1], [0], [0], [1], [0, 0, 1, 1], [], []>} : vector<8x720xbf16>, vector<720x160xbf16>, vector<8x160xf32> -> vector<8x160xf32>
    %8 = vector.broadcast %1 : vector<1x160xf32> to vector<8x160xf32>
    %9 = arith.addf %7, %8 : vector<8x160xf32>
    %cst_8 = arith.constant 0.000000e+00 : f32
    %10 = vector.broadcast %cst_8 : f32 to vector<8x160xf32>
    %11 = arith.subf %10, %5 : vector<8x160xf32>
    %12 = math.exp %11 : vector<8x160xf32>
    %cst_9 = arith.constant 1.000000e+00 : f32
    %13 = vector.broadcast %cst_9 : f32 to vector<8x160xf32>
    %14 = arith.addf %13, %12 : vector<8x160xf32>
    %15 = tpu.reciprocal %14 {approx = true} : vector<8x160xf32> -> vector<8x160xf32>
    %16 = arith.mulf %5, %15 : vector<8x160xf32>
    %cst_10 = arith.constant 0.000000e+00 : f32
    %17 = vector.broadcast %cst_10 : f32 to vector<8x160xf32>
    %18 = arith.subf %17, %9 : vector<8x160xf32>
    %19 = math.exp %18 : vector<8x160xf32>
    %cst_11 = arith.constant 1.000000e+00 : f32
    %20 = vector.broadcast %cst_11 : f32 to vector<8x160xf32>
    %21 = arith.addf %20, %19 : vector<8x160xf32>
    %22 = tpu.reciprocal %21 {approx = true} : vector<8x160xf32> -> vector<8x160xf32>
    %23 = arith.mulf %9, %22 : vector<8x160xf32>
    %24 = arith.truncf %16 : vector<8x160xf32> to vector<8x160xbf16>
    %c0_12 = arith.constant 0 : index
    %c0_13 = arith.constant 0 : index
    %25 = vector.load %arg5[%c0_12, %c0_13] : memref<8x160xbf16, #tpu.memory_space<vmem>>, vector<8x160xbf16>
    tpu.vector_store %arg5[%c0_12, %c0_13], %24 {strides = array<i32>} : memref<8x160xbf16, #tpu.memory_space<vmem>>, vector<8x160xbf16>,
    %26 = arith.truncf %23 : vector<8x160xf32> to vector<8x160xbf16>
    %c0_14 = arith.constant 0 : index
    %c0_15 = arith.constant 0 : index
    %27 = vector.load %arg6[%c0_14, %c0_15] : memref<8x160xbf16, #tpu.memory_space<vmem>>, vector<8x160xbf16>
    tpu.vector_store %arg6[%c0_14, %c0_15], %26 {strides = array<i32>} : memref<8x160xbf16, #tpu.memory_space<vmem>>, vector<8x160xbf16>,
    %28 = arith.subf %16, %23 : vector<8x160xf32>
    %29 = math.absf %28 : vector<8x160xf32>
    %30 = vector.shape_cast %29 : vector<8x160xf32> to vector<1x8x160xf32>
    %cst_16 = arith.constant dense<0.000000e+00> : vector<1xf32>
    %31 = vector.multi_reduction <add>, %30, %cst_16 [1, 2] : vector<1x8x160xf32> to vector<1xf32>
    %32 = vector.shape_cast %31 : vector<1xf32> to vector<1x1x1xf32>
    %33 = vector.extract %32[0, 0, 0] : f32 from vector<1x1x1xf32>
    %34 = vector.broadcast %33 : f32 to vector<1x8x128xf32>
    %c0_17 = arith.constant 0 : index
    %c0_18 = arith.constant 0 : index
    %c0_19 = arith.constant 0 : index
    %35 = vector.load %arg7[%c0_17, %c0_18, %c0_19] : memref<1x8x128xf32, #tpu.memory_space<vmem>>, vector<1x8x128xf32>
    tpu.vector_store %arg7[%c0_17, %c0_18, %c0_19], %34 {strides = array<i32>} : memref<1x8x128xf32, #tpu.memory_space<vmem>>, vector<1x8x128xf32>,
    return
  }
  func.func @transform_0(%arg0: i32) -> (i32, i32) {
    %c0_i32 = arith.constant 0 : i32
    %c0_i32_0 = arith.constant 0 : i32
    return %arg0, %c0_i32 : i32, i32
  }
  func.func @transform_1(%arg0: i32) -> (i32, i32) {
    %c0_i32 = arith.constant 0 : i32
    %c0_i32_0 = arith.constant 0 : i32
    return %arg0, %c0_i32 : i32, i32
  }
  func.func @transform_2(%arg0: i32) -> (i32, i32) {
    %c0_i32 = arith.constant 0 : i32
    %c0_i32_0 = arith.constant 0 : i32
    %c0_i32_1 = arith.constant 0 : i32
    return %c0_i32, %c0_i32_0 : i32, i32
  }
  func.func @transform_3(%arg0: i32) -> (i32, i32) {
    %c0_i32 = arith.constant 0 : i32
    %c0_i32_0 = arith.constant 0 : i32
    %c0_i32_1 = arith.constant 0 : i32
    return %c0_i32, %c0_i32_0 : i32, i32
  }
  func.func @transform_4(%arg0: i32) -> (i32, i32) {
    %c0_i32 = arith.constant 0 : i32
    %c0_i32_0 = arith.constant 0 : i32
    return %arg0, %c0_i32 : i32, i32
  }
  func.func @transform_5(%arg0: i32) -> (i32, i32) {
    %c0_i32 = arith.constant 0 : i32
    %c0_i32_0 = arith.constant 0 : i32
    return %arg0, %c0_i32 : i32, i32
  }
  func.func @transform_6(%arg0: i32) -> (i32, i32, i32) {
    %c0_i32 = arith.constant 0 : i32
    %c0_i32_0 = arith.constant 0 : i32
    %c0_i32_1 = arith.constant 0 : i32
    return %arg0, %c0_i32, %c0_i32_0 : i32, i32, i32
  }
}

module attributes {stable_mosaic.version = 11 : i64} {
  func.func @kernel(%arg0: i32, %arg1: memref<1x3x3x160xbf16, #tpu.memory_space<vmem>>, %arg2: memref<1x3x3x160xbf16, #tpu.memory_space<vmem>>, %arg3: memref<9x160x224xbf16, #tpu.memory_space<vmem>>, %arg4: memref<1x224xf32, #tpu.memory_space<vmem>>, %arg5: memref<1x8x128xf32, #tpu.memory_space<vmem>>) attributes {dimension_semantics = [#tpu.dimension_semantics<parallel>], iteration_bounds = array<i64: 2>, scalar_prefetch = 0 : i64, scratch_operands = 0 : i64, tpu.core_type = #tpu.core_type<tc>, window_params = [{transform_indices = @transform_0, window_bounds = array<i64: 1, 3, 3, 160>}, {transform_indices = @transform_1, window_bounds = array<i64: 1, 3, 3, 160>}, {pipeline_mode = #tpu.pipeline_mode<synchronous>, transform_indices = @transform_2, window_bounds = array<i64: 9, 160, 224>}, {pipeline_mode = #tpu.pipeline_mode<synchronous>, transform_indices = @transform_3, window_bounds = array<i64: 1, 224>}, {transform_indices = @transform_4, window_bounds = array<i64: 1, 8, 128>}]} {
    %c0 = arith.constant 0 : index
    %c0_0 = arith.constant 0 : index
    %c0_1 = arith.constant 0 : index
    %c0_2 = arith.constant 0 : index
    %0 = vector.load %arg1[%c0, %c0_0, %c0_1, %c0_2] : memref<1x3x3x160xbf16, #tpu.memory_space<vmem>>, vector<1x3x3x160xbf16>
    %1 = vector.shape_cast %0 : vector<1x3x3x160xbf16> to vector<3x3x160xbf16>
    %c0_3 = arith.constant 0 : index
    %c0_4 = arith.constant 0 : index
    %c0_5 = arith.constant 0 : index
    %c0_6 = arith.constant 0 : index
    %2 = vector.load %arg2[%c0_3, %c0_4, %c0_5, %c0_6] : memref<1x3x3x160xbf16, #tpu.memory_space<vmem>>, vector<1x3x3x160xbf16>
    %3 = vector.shape_cast %2 : vector<1x3x3x160xbf16> to vector<3x3x160xbf16>
    %cst = arith.constant 0.000000e+00 : f32
    %4 = vector.broadcast %cst : f32 to vector<1x224xf32>
    %cst_7 = arith.constant 0.000000e+00 : f32
    %5 = vector.broadcast %cst_7 : f32 to vector<1x224xf32>
    %c0_8 = arith.constant 0 : index
    %c0_9 = arith.constant 0 : index
    %c0_10 = arith.constant 0 : index
    %6 = vector.load %arg3[%c0_8, %c0_9, %c0_10] : memref<9x160x224xbf16, #tpu.memory_space<vmem>>, vector<1x160x224xbf16>
    %7 = vector.shape_cast %6 : vector<1x160x224xbf16> to vector<160x224xbf16>
    %8 = vector.extract_strided_slice %1 {offsets = [0, 0, 0], sizes = [1, 1, 160], strides = [1, 1, 1]} : vector<3x3x160xbf16> to vector<1x1x160xbf16>
    %9 = vector.shape_cast %8 : vector<1x1x160xbf16> to vector<1x160xbf16>
    %10 = vector.extract_strided_slice %3 {offsets = [0, 0, 0], sizes = [1, 1, 160], strides = [1, 1, 1]} : vector<3x3x160xbf16> to vector<1x1x160xbf16>
    %11 = vector.shape_cast %10 : vector<1x1x160xbf16> to vector<1x160xbf16>
    %cst_11 = arith.constant dense<0.000000e+00> : vector<1x224xf32>
    %12 = tpu.matmul %9, %7, %cst_11 {dimension_numbers = #tpu.dot_dimension_numbers<[1], [0], [0], [1], [0, 0, 1, 1], [], []>} : vector<1x160xbf16>, vector<160x224xbf16>, vector<1x224xf32> -> vector<1x224xf32>
    %13 = arith.addf %4, %12 : vector<1x224xf32>
    %cst_12 = arith.constant dense<0.000000e+00> : vector<1x224xf32>
    %14 = tpu.matmul %11, %7, %cst_12 {dimension_numbers = #tpu.dot_dimension_numbers<[1], [0], [0], [1], [0, 0, 1, 1], [], []>} : vector<1x160xbf16>, vector<160x224xbf16>, vector<1x224xf32> -> vector<1x224xf32>
    %15 = arith.addf %5, %14 : vector<1x224xf32>
    %c1 = arith.constant 1 : index
    %c0_13 = arith.constant 0 : index
    %c0_14 = arith.constant 0 : index
    %16 = vector.load %arg3[%c1, %c0_13, %c0_14] : memref<9x160x224xbf16, #tpu.memory_space<vmem>>, vector<1x160x224xbf16>
    %17 = vector.shape_cast %16 : vector<1x160x224xbf16> to vector<160x224xbf16>
    %18 = vector.extract_strided_slice %1 {offsets = [0, 1, 0], sizes = [1, 1, 160], strides = [1, 1, 1]} : vector<3x3x160xbf16> to vector<1x1x160xbf16>
    %19 = vector.shape_cast %18 : vector<1x1x160xbf16> to vector<1x160xbf16>
    %20 = vector.extract_strided_slice %3 {offsets = [0, 1, 0], sizes = [1, 1, 160], strides = [1, 1, 1]} : vector<3x3x160xbf16> to vector<1x1x160xbf16>
    %21 = vector.shape_cast %20 : vector<1x1x160xbf16> to vector<1x160xbf16>
    %cst_15 = arith.constant dense<0.000000e+00> : vector<1x224xf32>
    %22 = tpu.matmul %19, %17, %cst_15 {dimension_numbers = #tpu.dot_dimension_numbers<[1], [0], [0], [1], [0, 0, 1, 1], [], []>} : vector<1x160xbf16>, vector<160x224xbf16>, vector<1x224xf32> -> vector<1x224xf32>
    %23 = arith.addf %13, %22 : vector<1x224xf32>
    %cst_16 = arith.constant dense<0.000000e+00> : vector<1x224xf32>
    %24 = tpu.matmul %21, %17, %cst_16 {dimension_numbers = #tpu.dot_dimension_numbers<[1], [0], [0], [1], [0, 0, 1, 1], [], []>} : vector<1x160xbf16>, vector<160x224xbf16>, vector<1x224xf32> -> vector<1x224xf32>
    %25 = arith.addf %15, %24 : vector<1x224xf32>
    %c2 = arith.constant 2 : index
    %c0_17 = arith.constant 0 : index
    %c0_18 = arith.constant 0 : index
    %26 = vector.load %arg3[%c2, %c0_17, %c0_18] : memref<9x160x224xbf16, #tpu.memory_space<vmem>>, vector<1x160x224xbf16>
    %27 = vector.shape_cast %26 : vector<1x160x224xbf16> to vector<160x224xbf16>
    %28 = vector.extract_strided_slice %1 {offsets = [0, 2, 0], sizes = [1, 1, 160], strides = [1, 1, 1]} : vector<3x3x160xbf16> to vector<1x1x160xbf16>
    %29 = vector.shape_cast %28 : vector<1x1x160xbf16> to vector<1x160xbf16>
    %30 = vector.extract_strided_slice %3 {offsets = [0, 2, 0], sizes = [1, 1, 160], strides = [1, 1, 1]} : vector<3x3x160xbf16> to vector<1x1x160xbf16>
    %31 = vector.shape_cast %30 : vector<1x1x160xbf16> to vector<1x160xbf16>
    %cst_19 = arith.constant dense<0.000000e+00> : vector<1x224xf32>
    %32 = tpu.matmul %29, %27, %cst_19 {dimension_numbers = #tpu.dot_dimension_numbers<[1], [0], [0], [1], [0, 0, 1, 1], [], []>} : vector<1x160xbf16>, vector<160x224xbf16>, vector<1x224xf32> -> vector<1x224xf32>
    %33 = arith.addf %23, %32 : vector<1x224xf32>
    %cst_20 = arith.constant dense<0.000000e+00> : vector<1x224xf32>
    %34 = tpu.matmul %31, %27, %cst_20 {dimension_numbers = #tpu.dot_dimension_numbers<[1], [0], [0], [1], [0, 0, 1, 1], [], []>} : vector<1x160xbf16>, vector<160x224xbf16>, vector<1x224xf32> -> vector<1x224xf32>
    %35 = arith.addf %25, %34 : vector<1x224xf32>
    %c3 = arith.constant 3 : index
    %c0_21 = arith.constant 0 : index
    %c0_22 = arith.constant 0 : index
    %36 = vector.load %arg3[%c3, %c0_21, %c0_22] : memref<9x160x224xbf16, #tpu.memory_space<vmem>>, vector<1x160x224xbf16>
    %37 = vector.shape_cast %36 : vector<1x160x224xbf16> to vector<160x224xbf16>
    %38 = vector.extract_strided_slice %1 {offsets = [1, 0, 0], sizes = [1, 1, 160], strides = [1, 1, 1]} : vector<3x3x160xbf16> to vector<1x1x160xbf16>
    %39 = vector.shape_cast %38 : vector<1x1x160xbf16> to vector<1x160xbf16>
    %40 = vector.extract_strided_slice %3 {offsets = [1, 0, 0], sizes = [1, 1, 160], strides = [1, 1, 1]} : vector<3x3x160xbf16> to vector<1x1x160xbf16>
    %41 = vector.shape_cast %40 : vector<1x1x160xbf16> to vector<1x160xbf16>
    %cst_23 = arith.constant dense<0.000000e+00> : vector<1x224xf32>
    %42 = tpu.matmul %39, %37, %cst_23 {dimension_numbers = #tpu.dot_dimension_numbers<[1], [0], [0], [1], [0, 0, 1, 1], [], []>} : vector<1x160xbf16>, vector<160x224xbf16>, vector<1x224xf32> -> vector<1x224xf32>
    %43 = arith.addf %33, %42 : vector<1x224xf32>
    %cst_24 = arith.constant dense<0.000000e+00> : vector<1x224xf32>
    %44 = tpu.matmul %41, %37, %cst_24 {dimension_numbers = #tpu.dot_dimension_numbers<[1], [0], [0], [1], [0, 0, 1, 1], [], []>} : vector<1x160xbf16>, vector<160x224xbf16>, vector<1x224xf32> -> vector<1x224xf32>
    %45 = arith.addf %35, %44 : vector<1x224xf32>
    %c4 = arith.constant 4 : index
    %c0_25 = arith.constant 0 : index
    %c0_26 = arith.constant 0 : index
    %46 = vector.load %arg3[%c4, %c0_25, %c0_26] : memref<9x160x224xbf16, #tpu.memory_space<vmem>>, vector<1x160x224xbf16>
    %47 = vector.shape_cast %46 : vector<1x160x224xbf16> to vector<160x224xbf16>
    %48 = vector.extract_strided_slice %1 {offsets = [1, 1, 0], sizes = [1, 1, 160], strides = [1, 1, 1]} : vector<3x3x160xbf16> to vector<1x1x160xbf16>
    %49 = vector.shape_cast %48 : vector<1x1x160xbf16> to vector<1x160xbf16>
    %50 = vector.extract_strided_slice %3 {offsets = [1, 1, 0], sizes = [1, 1, 160], strides = [1, 1, 1]} : vector<3x3x160xbf16> to vector<1x1x160xbf16>
    %51 = vector.shape_cast %50 : vector<1x1x160xbf16> to vector<1x160xbf16>
    %cst_27 = arith.constant dense<0.000000e+00> : vector<1x224xf32>
    %52 = tpu.matmul %49, %47, %cst_27 {dimension_numbers = #tpu.dot_dimension_numbers<[1], [0], [0], [1], [0, 0, 1, 1], [], []>} : vector<1x160xbf16>, vector<160x224xbf16>, vector<1x224xf32> -> vector<1x224xf32>
    %53 = arith.addf %43, %52 : vector<1x224xf32>
    %cst_28 = arith.constant dense<0.000000e+00> : vector<1x224xf32>
    %54 = tpu.matmul %51, %47, %cst_28 {dimension_numbers = #tpu.dot_dimension_numbers<[1], [0], [0], [1], [0, 0, 1, 1], [], []>} : vector<1x160xbf16>, vector<160x224xbf16>, vector<1x224xf32> -> vector<1x224xf32>
    %55 = arith.addf %45, %54 : vector<1x224xf32>
    %c5 = arith.constant 5 : index
    %c0_29 = arith.constant 0 : index
    %c0_30 = arith.constant 0 : index
    %56 = vector.load %arg3[%c5, %c0_29, %c0_30] : memref<9x160x224xbf16, #tpu.memory_space<vmem>>, vector<1x160x224xbf16>
    %57 = vector.shape_cast %56 : vector<1x160x224xbf16> to vector<160x224xbf16>
    %58 = vector.extract_strided_slice %1 {offsets = [1, 2, 0], sizes = [1, 1, 160], strides = [1, 1, 1]} : vector<3x3x160xbf16> to vector<1x1x160xbf16>
    %59 = vector.shape_cast %58 : vector<1x1x160xbf16> to vector<1x160xbf16>
    %60 = vector.extract_strided_slice %3 {offsets = [1, 2, 0], sizes = [1, 1, 160], strides = [1, 1, 1]} : vector<3x3x160xbf16> to vector<1x1x160xbf16>
    %61 = vector.shape_cast %60 : vector<1x1x160xbf16> to vector<1x160xbf16>
    %cst_31 = arith.constant dense<0.000000e+00> : vector<1x224xf32>
    %62 = tpu.matmul %59, %57, %cst_31 {dimension_numbers = #tpu.dot_dimension_numbers<[1], [0], [0], [1], [0, 0, 1, 1], [], []>} : vector<1x160xbf16>, vector<160x224xbf16>, vector<1x224xf32> -> vector<1x224xf32>
    %63 = arith.addf %53, %62 : vector<1x224xf32>
    %cst_32 = arith.constant dense<0.000000e+00> : vector<1x224xf32>
    %64 = tpu.matmul %61, %57, %cst_32 {dimension_numbers = #tpu.dot_dimension_numbers<[1], [0], [0], [1], [0, 0, 1, 1], [], []>} : vector<1x160xbf16>, vector<160x224xbf16>, vector<1x224xf32> -> vector<1x224xf32>
    %65 = arith.addf %55, %64 : vector<1x224xf32>
    %c6 = arith.constant 6 : index
    %c0_33 = arith.constant 0 : index
    %c0_34 = arith.constant 0 : index
    %66 = vector.load %arg3[%c6, %c0_33, %c0_34] : memref<9x160x224xbf16, #tpu.memory_space<vmem>>, vector<1x160x224xbf16>
    %67 = vector.shape_cast %66 : vector<1x160x224xbf16> to vector<160x224xbf16>
    %68 = vector.extract_strided_slice %1 {offsets = [2, 0, 0], sizes = [1, 1, 160], strides = [1, 1, 1]} : vector<3x3x160xbf16> to vector<1x1x160xbf16>
    %69 = vector.shape_cast %68 : vector<1x1x160xbf16> to vector<1x160xbf16>
    %70 = vector.extract_strided_slice %3 {offsets = [2, 0, 0], sizes = [1, 1, 160], strides = [1, 1, 1]} : vector<3x3x160xbf16> to vector<1x1x160xbf16>
    %71 = vector.shape_cast %70 : vector<1x1x160xbf16> to vector<1x160xbf16>
    %cst_35 = arith.constant dense<0.000000e+00> : vector<1x224xf32>
    %72 = tpu.matmul %69, %67, %cst_35 {dimension_numbers = #tpu.dot_dimension_numbers<[1], [0], [0], [1], [0, 0, 1, 1], [], []>} : vector<1x160xbf16>, vector<160x224xbf16>, vector<1x224xf32> -> vector<1x224xf32>
    %73 = arith.addf %63, %72 : vector<1x224xf32>
    %cst_36 = arith.constant dense<0.000000e+00> : vector<1x224xf32>
    %74 = tpu.matmul %71, %67, %cst_36 {dimension_numbers = #tpu.dot_dimension_numbers<[1], [0], [0], [1], [0, 0, 1, 1], [], []>} : vector<1x160xbf16>, vector<160x224xbf16>, vector<1x224xf32> -> vector<1x224xf32>
    %75 = arith.addf %65, %74 : vector<1x224xf32>
    %c7 = arith.constant 7 : index
    %c0_37 = arith.constant 0 : index
    %c0_38 = arith.constant 0 : index
    %76 = vector.load %arg3[%c7, %c0_37, %c0_38] : memref<9x160x224xbf16, #tpu.memory_space<vmem>>, vector<1x160x224xbf16>
    %77 = vector.shape_cast %76 : vector<1x160x224xbf16> to vector<160x224xbf16>
    %78 = vector.extract_strided_slice %1 {offsets = [2, 1, 0], sizes = [1, 1, 160], strides = [1, 1, 1]} : vector<3x3x160xbf16> to vector<1x1x160xbf16>
    %79 = vector.shape_cast %78 : vector<1x1x160xbf16> to vector<1x160xbf16>
    %80 = vector.extract_strided_slice %3 {offsets = [2, 1, 0], sizes = [1, 1, 160], strides = [1, 1, 1]} : vector<3x3x160xbf16> to vector<1x1x160xbf16>
    %81 = vector.shape_cast %80 : vector<1x1x160xbf16> to vector<1x160xbf16>
    %cst_39 = arith.constant dense<0.000000e+00> : vector<1x224xf32>
    %82 = tpu.matmul %79, %77, %cst_39 {dimension_numbers = #tpu.dot_dimension_numbers<[1], [0], [0], [1], [0, 0, 1, 1], [], []>} : vector<1x160xbf16>, vector<160x224xbf16>, vector<1x224xf32> -> vector<1x224xf32>
    %83 = arith.addf %73, %82 : vector<1x224xf32>
    %cst_40 = arith.constant dense<0.000000e+00> : vector<1x224xf32>
    %84 = tpu.matmul %81, %77, %cst_40 {dimension_numbers = #tpu.dot_dimension_numbers<[1], [0], [0], [1], [0, 0, 1, 1], [], []>} : vector<1x160xbf16>, vector<160x224xbf16>, vector<1x224xf32> -> vector<1x224xf32>
    %85 = arith.addf %75, %84 : vector<1x224xf32>
    %c8 = arith.constant 8 : index
    %c0_41 = arith.constant 0 : index
    %c0_42 = arith.constant 0 : index
    %86 = vector.load %arg3[%c8, %c0_41, %c0_42] : memref<9x160x224xbf16, #tpu.memory_space<vmem>>, vector<1x160x224xbf16>
    %87 = vector.shape_cast %86 : vector<1x160x224xbf16> to vector<160x224xbf16>
    %88 = vector.extract_strided_slice %1 {offsets = [2, 2, 0], sizes = [1, 1, 160], strides = [1, 1, 1]} : vector<3x3x160xbf16> to vector<1x1x160xbf16>
    %89 = vector.shape_cast %88 : vector<1x1x160xbf16> to vector<1x160xbf16>
    %90 = vector.extract_strided_slice %3 {offsets = [2, 2, 0], sizes = [1, 1, 160], strides = [1, 1, 1]} : vector<3x3x160xbf16> to vector<1x1x160xbf16>
    %91 = vector.shape_cast %90 : vector<1x1x160xbf16> to vector<1x160xbf16>
    %cst_43 = arith.constant dense<0.000000e+00> : vector<1x224xf32>
    %92 = tpu.matmul %89, %87, %cst_43 {dimension_numbers = #tpu.dot_dimension_numbers<[1], [0], [0], [1], [0, 0, 1, 1], [], []>} : vector<1x160xbf16>, vector<160x224xbf16>, vector<1x224xf32> -> vector<1x224xf32>
    %93 = arith.addf %83, %92 : vector<1x224xf32>
    %cst_44 = arith.constant dense<0.000000e+00> : vector<1x224xf32>
    %94 = tpu.matmul %91, %87, %cst_44 {dimension_numbers = #tpu.dot_dimension_numbers<[1], [0], [0], [1], [0, 0, 1, 1], [], []>} : vector<1x160xbf16>, vector<160x224xbf16>, vector<1x224xf32> -> vector<1x224xf32>
    %95 = arith.addf %85, %94 : vector<1x224xf32>
    %c0_45 = arith.constant 0 : index
    %c0_46 = arith.constant 0 : index
    %96 = vector.load %arg4[%c0_45, %c0_46] : memref<1x224xf32, #tpu.memory_space<vmem>>, vector<1x224xf32>
    %97 = arith.addf %93, %96 : vector<1x224xf32>
    %cst_47 = arith.constant 0.000000e+00 : f32
    %98 = vector.broadcast %cst_47 : f32 to vector<1x224xf32>
    %99 = arith.subf %98, %97 : vector<1x224xf32>
    %100 = math.exp %99 : vector<1x224xf32>
    %cst_48 = arith.constant 1.000000e+00 : f32
    %101 = vector.broadcast %cst_48 : f32 to vector<1x224xf32>
    %102 = arith.addf %101, %100 : vector<1x224xf32>
    %103 = tpu.reciprocal %102 {approx = true} : vector<1x224xf32> -> vector<1x224xf32>
    %104 = arith.mulf %97, %103 : vector<1x224xf32>
    %105 = arith.addf %95, %96 : vector<1x224xf32>
    %cst_49 = arith.constant 0.000000e+00 : f32
    %106 = vector.broadcast %cst_49 : f32 to vector<1x224xf32>
    %107 = arith.subf %106, %105 : vector<1x224xf32>
    %108 = math.exp %107 : vector<1x224xf32>
    %cst_50 = arith.constant 1.000000e+00 : f32
    %109 = vector.broadcast %cst_50 : f32 to vector<1x224xf32>
    %110 = arith.addf %109, %108 : vector<1x224xf32>
    %111 = tpu.reciprocal %110 {approx = true} : vector<1x224xf32> -> vector<1x224xf32>
    %112 = arith.mulf %105, %111 : vector<1x224xf32>
    %113 = arith.subf %104, %112 : vector<1x224xf32>
    %114 = math.absf %113 : vector<1x224xf32>
    %115 = vector.shape_cast %114 : vector<1x224xf32> to vector<1x1x224xf32>
    %cst_51 = arith.constant dense<0.000000e+00> : vector<1xf32>
    %116 = vector.multi_reduction <add>, %115, %cst_51 [1, 2] : vector<1x1x224xf32> to vector<1xf32>
    %117 = vector.shape_cast %116 : vector<1xf32> to vector<1x1x1xf32>
    %118 = vector.extract %117[0, 0, 0] : f32 from vector<1x1x1xf32>
    %119 = vector.broadcast %118 : f32 to vector<1x8x128xf32>
    %c0_52 = arith.constant 0 : index
    %c0_53 = arith.constant 0 : index
    %c0_54 = arith.constant 0 : index
    %120 = vector.load %arg5[%c0_52, %c0_53, %c0_54] : memref<1x8x128xf32, #tpu.memory_space<vmem>>, vector<1x8x128xf32>
    tpu.vector_store %arg5[%c0_52, %c0_53, %c0_54], %119 {strides = array<i32>} : memref<1x8x128xf32, #tpu.memory_space<vmem>>, vector<1x8x128xf32>,
    return
  }
  func.func @transform_0(%arg0: i32) -> (i32, i32, i32, i32) {
    %c0_i32 = arith.constant 0 : i32
    %c0_i32_0 = arith.constant 0 : i32
    %c0_i32_1 = arith.constant 0 : i32
    %c0_i32_2 = arith.constant 0 : i32
    return %arg0, %c0_i32, %c0_i32_0, %c0_i32_1 : i32, i32, i32, i32
  }
  func.func @transform_1(%arg0: i32) -> (i32, i32, i32, i32) {
    %c0_i32 = arith.constant 0 : i32
    %c0_i32_0 = arith.constant 0 : i32
    %c0_i32_1 = arith.constant 0 : i32
    %c0_i32_2 = arith.constant 0 : i32
    return %arg0, %c0_i32, %c0_i32_0, %c0_i32_1 : i32, i32, i32, i32
  }
  func.func @transform_2(%arg0: i32) -> (i32, i32, i32) {
    %c0_i32 = arith.constant 0 : i32
    %c0_i32_0 = arith.constant 0 : i32
    %c0_i32_1 = arith.constant 0 : i32
    %c0_i32_2 = arith.constant 0 : i32
    return %c0_i32, %c0_i32_0, %c0_i32_1 : i32, i32, i32
  }
  func.func @transform_3(%arg0: i32) -> (i32, i32) {
    %c0_i32 = arith.constant 0 : i32
    %c0_i32_0 = arith.constant 0 : i32
    %c0_i32_1 = arith.constant 0 : i32
    return %c0_i32, %c0_i32_0 : i32, i32
  }
  func.func @transform_4(%arg0: i32) -> (i32, i32, i32) {
    %c0_i32 = arith.constant 0 : i32
    %c0_i32_0 = arith.constant 0 : i32
    %c0_i32_1 = arith.constant 0 : i32
    return %arg0, %c0_i32, %c0_i32_0 : i32, i32, i32
  }
}

</mosaic_0001>

<bundles_post_ra>
// kernel: effic_loss.6
= control target key start
LH: loop header
LB: loop body
LE: loop exit
PB: predicated region body
PF: predicated region fallthrough
CT: control target
= control target key end

     0   :  { %vm123_vm0 = vcmask 1044480   ;;  %vm124_vm1 = vcmask 1045504   ;;  %v1071_v1 = vmov 65535   ;;  %vm98_vm2 = vcmask 220160   ;;  %s1474_s2 = inlined_call_operand.vmem [shape: bf16[27,64], index: 2, kind: input, shape index: {}]   ;;  %s1475_s0 = inlined_call_operand.vmem [shape: bf16[128,27], index: 0, kind: input, shape index: {}]   ;;  %s1476_s1 = inlined_call_operand.vmem [shape: bf16[128,27], index: 1, kind: input, shape index: {}]   ;;  %s1477_s3 = inlined_call_operand.vmem [shape: f32[1,64], index: 3, kind: input, shape index: {}]   ;;  %s1478_s4 = inlined_call_operand.vmem [shape: bf16[128,64], index: 4, kind: output, shape index: {0}]   ;;  %s1479_s5 = inlined_call_operand.vmem [shape: bf16[128,64], index: 5, kind: output, shape index: {1}]  }
   0x1   :  { %v925_v0 = vld [vmem:[%s1474_s2 + $0x8] sm:$0x3f]   ;;  %v125_v2 = vsel %vm123_vm0, 4294967295, %v1071_v1  ;;  %v927_v4 = vld [vmem:[%s1475_s0] sm:$0xff]   ;;  %v931_v10 = vld [vmem:[%s1475_s0 + $0x10] sm:$0xff]   ;;  %vm660_vm3 = vcmask 519168  }
   0x2   :  { %v126_v3 = vsel %vm124_vm1, %v125_v2, 0  ;;  %v926_v6 = vld [vmem:[%s1474_s2] sm:$0xff]   ;;  %888 = vmatprep.mubr.msk.bf16.mxu0 %vm98_vm2, %v927_v4  ;;  %v929_v8 = vld [vmem:[%s1475_s0 + $0x8] sm:$0xff]   ;;  %v932_v11 = vld [vmem:[%s1476_s1 + $0x10] sm:$0xff]  }
   0x3   :  { %v128_v5 = vand.u32 %v925_v0, %v126_v3  ;;  %v928_v7 = vld [vmem:[%s1476_s1] sm:$0xff]   ;;  %v930_v9 = vld [vmem:[%s1476_s1 + $0x8] sm:$0xff]   ;;  %v933_v12 = vld [vmem:[%s1475_s0 + $0x18] sm:$0xff]  }
   0x4   :  { %908 = vmatprep.mubr.msk.bf16.mxu1 %vm98_vm2, %v928_v7  ;;  %v934_v13 = vld [vmem:[%s1476_s1 + $0x18] sm:$0xff]   ;;  %v935_v14 = vld [vmem:[%s1475_s0 + $0x20] sm:$0xff]   ;;  %v937_v16 = vld [vmem:[%s1475_s0 + $0x28] sm:$0xff]  }
   0x5   :  { %884 = vmatprep.subr.bf16.mxu0 %v128_v5  ;;  %904 = vmatprep.subr.bf16.mxu1 %v128_v5  ;;  %v936_v15 = vld [vmem:[%s1476_s1 + $0x20] sm:$0xff]   ;;  %v938_v17 = vld [vmem:[%s1476_s1 + $0x28] sm:$0xff]   ;;  %v939_v18 = vld [vmem:[%s1475_s0 + $0x30] sm:$0xff]  }
   0x6   :  { %885 = vmatpush3.bf16.msra.mxu0 %v128_v5  ;;  %905 = vmatpush3.bf16.msra.mxu1 %v128_v5  ;;  %v940_v19 = vld [vmem:[%s1476_s1 + $0x30] sm:$0xff]   ;;  %v941_v20 = vld [vmem:[%s1475_s0 + $0x38] sm:$0xff]   ;;  %v1175_v22 = vld [vmem:[%s1477_s3] ss:$0 sm:$0xff] }
   0x7   :  { %886 = vmatprep.subr.bf16.mxu0 %v926_v6  ;;  %906 = vmatprep.subr.bf16.mxu1 %v926_v6  ;;  %v942_v21 = vld [vmem:[%s1476_s1 + $0x38] sm:$0xff]  }
   0xa   :  { %887 = vmatpush3.bf16.msra.mxu0 %v926_v6  ;;  %907 = vmatpush3.bf16.msra.mxu1 %v926_v6 }
   0xd   :  { %889 = vmatmul.mubr.msk.bf16.vlgmr.msra.gmra.mxu0 %vm98_vm2, %v929_v8  ;;  %909 = vmatmul.mubr.msk.bf16.vlgmr.msra.gmra.mxu1 %vm98_vm2, %v930_v9 }
   0xe   :  { %892 = vmatprep.mubr.msk.bf16.mxu0 %vm98_vm2, %v931_v10  ;;  %912 = vmatprep.mubr.msk.bf16.mxu1 %vm98_vm2, %v932_v11 }
  0x15   :  { %893 = vmatmul.mubr.msk.bf16.gmra.mxu0 %vm98_vm2, %v933_v12  ;;  %913 = vmatmul.mubr.msk.bf16.gmra.mxu1 %vm98_vm2, %v934_v13 }
  0x16   :  { %896 = vmatprep.mubr.msk.bf16.mxu0 %vm98_vm2, %v935_v14  ;;  %916 = vmatprep.mubr.msk.bf16.mxu1 %vm98_vm2, %v936_v15 }
  0x1d   :  { %897 = vmatmul.mubr.msk.bf16.gmra.mxu0 %vm98_vm2, %v937_v16  ;;  %917 = vmatmul.mubr.msk.bf16.gmra.mxu1 %vm98_vm2, %v938_v17 }
  0x1e   :  { %900 = vmatprep.mubr.msk.bf16.mxu0 %vm98_vm2, %v939_v18  ;;  %920 = vmatprep.mubr.msk.bf16.mxu1 %vm98_vm2, %v940_v19 }
  0x25   :  { %901 = vmatmul.mubr.msk.bf16.gmra.mxu0 %vm98_vm2, %v941_v20  ;;  %921 = vmatmul.mubr.msk.bf16.gmra.mxu1 %vm98_vm2, %v942_v21 }
  0xcd   :  { %v890_v23 = vpop.f32.mrf.mxu0  ;;  %v910_v24 = vpop.f32.mrf.mxu1 }
  0xce   :  { %v1178_v25 = vadd.f32 %v890_v23, %v1175_v22  ;;  %v1181_v26 = vadd.f32 %v910_v24, %v1175_v22 }
  0xcf   :  { %v164_v27 = vpop.f32.mrf.mxu0  ;;  %v341_v28 = vpop.f32.mrf.mxu1 }
  0xd0   :  { %v406_v29 = vsub.f32 0.0, %v1178_v25  ;;  %v502_v30 = vsub.f32 0.0, %v1181_v26  ;;  %v1186_v31 = vadd.f32 %v1175_v22, %v164_v27  ;;  %v1189_v32 = vadd.f32 %v1175_v22, %v341_v28 }
  0xd1   :  { %v891_v33 = vpop.f32.mrf.mxu0  ;;  %v911_v34 = vpop.f32.mrf.mxu1 }
  0xd2   :  { %v424_v35 = vmul.f32 1.442695, %v406_v29  ;;  %v520_v36 = vmul.f32 1.442695, %v502_v30  ;;  %v404_v37 = vsub.f32 0.0, %v1186_v31  ;;  %v500_v38 = vsub.f32 0.0, %v1189_v32 }
  0xd3   :  { %v1194_v39 = vadd.f32 %v891_v33, %v1175_v22  ;;  %v1197_v40 = vadd.f32 %v911_v34, %v1175_v22  ;;  %v167_v41 = vpop.f32.mrf.mxu0  ;;  %v344_v42 = vpop.f32.mrf.mxu1 }
  0xd4   :  { %943 = vpow2.f32 %v424_v35  ;;  %v420_v43 = vmul.f32 1.442695, %v404_v37  ;;  %v516_v44 = vmul.f32 1.442695, %v500_v38  ;;  %v1200_v45 = vadd.f32 %v1175_v22, %v167_v41 }
  0xd5   :  { %945 = vpow2.f32 %v520_v36  ;;  %v407_v46 = vsub.f32 0.0, %v1194_v39  ;;  %v503_v47 = vsub.f32 0.0, %v1197_v40  ;;  %v1205_v48 = vadd.f32 %v1175_v22, %v344_v42  ;;  %v894_v49 = vpop.f32.mrf.mxu0  ;;  %v914_v50 = vpop.f32.mrf.mxu1 }
  0xd6   :  { %947 = vpow2.f32 %v420_v43  ;;  %v405_v51 = vsub.f32 0.0, %v1200_v45  ;;  %v1209_v52 = vadd.f32 %v894_v49, %v1175_v22  ;;  %v1212_v53 = vadd.f32 %v914_v50, %v1175_v22 }
  0xd7   :  { %949 = vpow2.f32 %v516_v44  ;;  %v426_v54 = vmul.f32 1.442695, %v407_v46  ;;  %v522_v55 = vmul.f32 1.442695, %v503_v47  ;;  %v501_v56 = vsub.f32 0.0, %v1205_v48  ;;  %v180_v57 = vpop.f32.mrf.mxu0  ;;  %v357_v58 = vpop.f32.mrf.mxu1 }
  0xd8   :  { %v422_v59 = vmul.f32 1.442695, %v405_v51  ;;  %v410_v60 = vsub.f32 0.0, %v1209_v52  ;;  %v506_v61 = vsub.f32 0.0, %v1212_v53  ;;  %v1218_v62 = vadd.f32 %v1175_v22, %v180_v57 }
  0xd9   :  { %951 = vpow2.f32 %v426_v54  ;;  %v518_v63 = vmul.f32 1.442695, %v501_v56  ;;  %v1221_v0 = vadd.f32 %v1175_v22, %v357_v58  ;;  %v895_v1 = vpop.f32.mrf.mxu0  ;;  %v915_v2 = vpop.f32.mrf.mxu1 }
  0xda   :  { %953 = vpow2.f32 %v522_v55  ;;  %v432_v3 = vmul.f32 1.442695, %v410_v60  ;;  %v528_v4 = vmul.f32 1.442695, %v506_v61  ;;  %v408_v5 = vsub.f32 0.0, %v1218_v62 }
  0xdb   :  { %955 = vpow2.f32 %v422_v59  ;;  %v504_v6 = vsub.f32 0.0, %v1221_v0  ;;  %v1226_v7 = vadd.f32 %v895_v1, %v1175_v22  ;;  %v1229_v8 = vadd.f32 %v915_v2, %v1175_v22  ;;  %v183_v9 = vpop.f32.mrf.mxu0  ;;  %v360_v10 = vpop.f32.mrf.mxu1 }
  0xdc   :  { %957 = vpow2.f32 %v518_v63  ;;  %v428_v11 = vmul.f32 1.442695, %v408_v5  ;;  %v1232_v12 = vadd.f32 %v1175_v22, %v183_v9  ;;  %v1235_v13 = vadd.f32 %v1175_v22, %v360_v10 }
  0xdd   :  { %959 = vpow2.f32 %v432_v3  ;;  %v524_v14 = vmul.f32 1.442695, %v504_v6  ;;  %v411_v15 = vsub.f32 0.0, %v1226_v7  ;;  %v507_v16 = vsub.f32 0.0, %v1229_v8  ;;  %v898_v17 = vpop.f32.mrf.mxu0  ;;  %v918_v18 = vpop.f32.mrf.mxu1 }
  0xde   :  { %961 = vpow2.f32 %v528_v4  ;;  %v409_v19 = vsub.f32 0.0, %v1232_v12  ;;  %v1241_v20 = vadd.f32 %v898_v17, %v1175_v22  ;;  %v505_v29 = vsub.f32 0.0, %v1235_v13 }
  0xdf   :  { %963 = vpow2.f32 %v428_v11  ;;  %v434_v21 = vmul.f32 1.442695, %v411_v15  ;;  %v530_v23 = vmul.f32 1.442695, %v507_v16  ;;  %v196_v24 = vpop.f32.mrf.mxu0  ;;  %v373_v27 = vpop.f32.mrf.mxu1  ;;  %v1245_v30 = vadd.f32 %v918_v18, %v1175_v22 }
  0xe0   :  { %965 = vpow2.f32 %v524_v14  ;;  %v430_v28 = vmul.f32 1.442695, %v409_v19  ;;  %v414_v38 = vsub.f32 0.0, %v1241_v20  ;;  %v1249_v43 = vadd.f32 %v1175_v22, %v196_v24 }
  0xe1   :  { %v944_v33 = vpop.eup %943  ;;  %967 = vpow2.f32 %v434_v21  ;;  %v899_v34 = vpop.f32.mrf.mxu0  ;;  %v526_v49 = vmul.f32 1.442695, %v505_v29  ;;  %v510_v50 = vsub.f32 0.0, %v1245_v30  ;;  %v1253_v54 = vadd.f32 %v1175_v22, %v373_v27 }
  0xe2   :  { %v919_v35 = vpop.f32.mrf.mxu1  ;;  %v946_v36 = vpop.eup %945  ;;  %v454_v37 = vadd.f32 1.0, %v944_v33  ;;  %969 = vpow2.f32 %v530_v23  ;;  %v1255_v57 = vmul.f32 1.442695, %v414_v38  ;;  %v412_v60 = vsub.f32 0.0, %v1249_v43 }
  0xe3   :  { %v948_v41 = vpop.eup %947  ;;  %v550_v42 = vadd.f32 1.0, %v946_v36  ;;  %971 = vpow2.f32 %v430_v28  ;;  %v199_v44 = vpop.f32.mrf.mxu0  ;;  %v1259_v61 = vadd.f32 %v899_v34, %v1175_v22  ;;  %v1261_v3 = vmul.f32 1.442695, %v510_v50 }
  0xe4   :  { %v950_v46 = vpop.eup %949  ;;  %973 = vrcp.f32 %v454_v37  ;;  %v452_v47 = vadd.f32 1.0, %v948_v41  ;;  %v376_v55 = vpop.f32.mrf.mxu1  ;;  %v1264_v4 = vadd.f32 %v919_v35, %v1175_v22  ;;  %v508_v9 = vsub.f32 0.0, %v1253_v54 }
  0xe5   :  { %975 = vrcp.f32 %v550_v42  ;;  %v548_v51 = vadd.f32 1.0, %v950_v46  ;;  %v902_v63 = vpop.f32.mrf.mxu0  ;;  %v1268_v10 = vadd.f32 %v1175_v22, %v199_v44  ;;  %v1271_v16 = vadd.f32 %v1175_v22, %v376_v55 }
  0xe6   :  { %v952_v56 = vpop.eup %951  ;;  %977 = vrcp.f32 %v452_v47  ;;  %v922_v11 = vpop.f32.mrf.mxu1  ;;  %v1274_v17 = vadd.f32 %v902_v63, %v1175_v22  ;;  %v436_v21 = vmul.f32 1.442695, %v412_v60  ;;  %v415_v23 = vsub.f32 0.0, %v1259_v61 }
  0xe7   :  { %v954_v58 = vpop.eup %953  ;;  %979 = vrcp.f32 %v548_v51  ;;  %v455_v59 = vadd.f32 1.0, %v952_v56  ;;  %v511_v28 = vsub.f32 0.0, %v1264_v4  ;;  %v1279_v29 = vadd.f32 %v922_v11, %v1175_v22  ;;  %v212_v33 = vpop.f32.mrf.mxu0 }
  0xe8   :  { %v956_v1 = vpop.eup %955  ;;  %v551_v2 = vadd.f32 1.0, %v954_v58  ;;  %981 = vpow2.f32 %v526_v49  ;;  %v532_v36 = vmul.f32 1.442695, %v508_v9  ;;  %v413_v37 = vsub.f32 0.0, %v1268_v10  ;;  %v389_v46 = vpop.f32.mrf.mxu1 }
  0xe9   :  { %v958_v5 = vpop.eup %957  ;;  %983 = vrcp.f32 %v455_v59  ;;  %v453_v6 = vadd.f32 1.0, %v956_v1  ;;  %v509_v42 = vsub.f32 0.0, %v1271_v16  ;;  %v418_v44 = vsub.f32 0.0, %v1274_v17  ;;  %v903_v60 = vpop.f32.mrf.mxu0 }
  0xea   :  { %v960_v14 = vpop.eup %959  ;;  %985 = vrcp.f32 %v551_v2  ;;  %v549_v15 = vadd.f32 1.0, %v958_v5  ;;  %v442_v50 = vmul.f32 1.442695, %v415_v23  ;;  %v1285_v51 = vadd.f32 %v1175_v22, %v212_v33 }
  0xeb   :  { %v962_v18 = vpop.eup %961  ;;  %987 = vrcp.f32 %v453_v6  ;;  %v458_v19 = vadd.f32 1.0, %v960_v14  ;;  %v538_v58 = vmul.f32 1.442695, %v511_v28  ;;  %v514_v59 = vsub.f32 0.0, %v1279_v29 }
  0xec   :  { %v964_v24 = vpop.eup %963  ;;  %989 = vrcp.f32 %v549_v15  ;;  %v554_v27 = vadd.f32 1.0, %v962_v18  ;;  %v438_v2 = vmul.f32 1.442695, %v413_v37  ;;  %v1289_v5 = vadd.f32 %v1175_v22, %v389_v46 }
  0xed   :  { %v966_v34 = vpop.eup %965  ;;  %991 = vrcp.f32 %v458_v19  ;;  %v456_v35 = vadd.f32 1.0, %v964_v24  ;;  %v534_v11 = vmul.f32 1.442695, %v509_v42  ;;  %v1292_v14 = vmul.f32 1.442695, %v418_v44  ;;  %v923_v24 = vpop.f32.mrf.mxu1 }
  0xee   :  { %v968_v38 = vpop.eup %967  ;;  %993 = vrcp.f32 %v554_v27  ;;  %v552_v41 = vadd.f32 1.0, %v966_v34  ;;  %v416_v19 = vsub.f32 0.0, %v1285_v51  ;;  %v1297_v23 = vadd.f32 %v903_v60, %v1175_v22  ;;  %v215_v34 = vpop.f32.mrf.mxu0 }
  0xef   :  { %v970_v47 = vpop.eup %969  ;;  %995 = vrcp.f32 %v456_v35  ;;  %v459_v49 = vadd.f32 1.0, %v968_v38  ;;  %v1317_v46 = vadd.f32 %v1175_v22, %v215_v34  ;;  %v392_v60 = vpop.f32.mrf.mxu1 }
  0xf0   :  { %v972_v55 = vpop.eup %971  ;;  %997 = vrcp.f32 %v552_v41  ;;  %v555_v56 = vadd.f32 1.0, %v970_v47 }
  0xf1   :  { %v974_v63 = vpop.eup %973  ;;  %999 = vrcp.f32 %v459_v49  ;;  %v457_v1 = vadd.f32 1.0, %v972_v55  ;;  %v444_v49 = vmul.f32 1.442695, %v416_v19  ;;  %v419_v55 = vsub.f32 0.0, %v1297_v23 }
  0xf2   :  { %v976_v6 = vpop.eup %975  ;;  %v486_v9 = vmul.f32 %v974_v63, %v1178_v25  ;;  %1001 = vrcp.f32 %v555_v56  ;;  %v544_v25 = vmul.f32 1.442695, %v514_v59  ;;  %v1344_v19 = vadd.f32 %v1175_v22, %v392_v60 }
  0xf3   :  { %v978_v15 = vpop.eup %977  ;;  %v582_v18 = vmul.f32 %v976_v6, %v1181_v26  ;;  %1003 = vrcp.f32 %v457_v1  ;;  %v512_v26 = vsub.f32 0.0, %v1289_v5 }
  0xf4   :  { %v980_v27 = vpop.eup %979  ;;  %v834_v28 = vpack.c.bf16 %v486_v9, %v486_v9  ;;  %v484_v33 = vmul.f32 %v978_v15, %v1186_v31  ;;  %1005 = vpow2.f32 %v1255_v57  ;;  %v1309_v57 = vadd.f32 %v923_v24, %v1175_v22 }
  0xf5   :  { %v982_v35 = vpop.eup %981  ;;  %v850_v37 = vpack.c.bf16 %v582_v18, %v582_v18  ;;  %v580_v38 = vmul.f32 %v980_v27, %v1189_v32  ;;  %1007 = vpow2.f32 %v1261_v3  ;;  %v540_v59 = vmul.f32 1.442695, %v512_v26 }
  0xf6   :  { %v984_v41 = vpop.eup %983  ;;  %663 = vst.msk [vmem:[%s1478_s4 + $0x8] sm:$0xf] %vm660_vm3, %v834_v28  ;;  %v832_v42 = vpack.c.bf16 %v484_v33, %v484_v33  ;;  %v553_v31 = vadd.f32 1.0, %v982_v35  ;;  %1009 = vpow2.f32 %v436_v21  ;;  %v515_v6 = vsub.f32 0.0, %v1309_v57 }
  0xf7   :  { %v986_v44 = vpop.eup %985  ;;  %743 = vst.msk [vmem:[%s1479_s5 + $0x8] sm:$0xf] %vm660_vm3, %v850_v37  ;;  %v848_v32 = vpack.c.bf16 %v580_v38, %v580_v38  ;;  %v487_v3 = vmul.f32 %v984_v41, %v1194_v39  ;;  %1011 = vpow2.f32 %v532_v36  ;;  %v450_v27 = vmul.f32 1.442695, %v419_v55 }
  0xf8   :  { %v988_v47 = vpop.eup %987  ;;  %661 = vst.msk [vmem:[%s1478_s4] sm:$0xf] %vm660_vm3, %v832_v42  ;;  %v583_v21 = vmul.f32 %v986_v44, %v1197_v40  ;;  %1013 = vrcp.f32 %v553_v31  ;;  %v513_v37 = vsub.f32 0.0, %v1344_v19 }
  0xf9   :  { %v990_v56 = vpop.eup %989  ;;  %741 = vst.msk [vmem:[%s1479_s5] sm:$0xf] %vm660_vm3, %v848_v32  ;;  %v835_v39 = vpack.c.bf16 %v487_v3, %v487_v3  ;;  %v485_v36 = vmul.f32 %v988_v47, %v1200_v45  ;;  %1015 = vpow2.f32 %v442_v50  ;;  %v417_v45 = vsub.f32 0.0, %v1317_v46 }
  0xfa   :  { %v992_v63 = vpop.eup %991  ;;  %v851_v1 = vpack.c.bf16 %v583_v21, %v583_v21  ;;  %v581_v40 = vmul.f32 %v990_v56, %v1205_v48  ;;  %1017 = vpow2.f32 %v538_v58  ;;  %v542_v47 = vmul.f32 1.442695, %v513_v37 }
  0xfb   :  { %v994_v9 = vpop.eup %993  ;;  %664 = vst.msk [vmem:[%s1478_s4 + $0xc] sm:$0xf] %vm660_vm3, %v835_v39  ;;  %v833_v15 = vpack.c.bf16 %v485_v36, %v485_v36  ;;  %v490_v18 = vmul.f32 %v992_v63, %v1209_v52  ;;  %1019 = vpow2.f32 %v438_v2  ;;  %v446_v34 = vmul.f32 1.442695, %v417_v45 }
  0xfc   :  { %v996_v50 = vpop.eup %995  ;;  %744 = vst.msk [vmem:[%s1479_s5 + $0xc] sm:$0xf] %vm660_vm3, %v851_v1  ;;  %v849_v48 = vpack.c.bf16 %v581_v40, %v581_v40  ;;  %v586_v58 = vmul.f32 %v994_v9, %v1212_v53  ;;  %1021 = vpow2.f32 %v534_v11  ;;  %v546_v11 = vmul.f32 1.442695, %v515_v6 }
  0xfd   :  { %v998_v24 = vpop.eup %997  ;;  %662 = vst.msk [vmem:[%s1478_s4 + $0x4] sm:$0xf] %vm660_vm3, %v833_v15  ;;  %v838_v52 = vpack.c.bf16 %v490_v18, %v490_v18  ;;  %v488_v2 = vmul.f32 %v996_v50, %v1218_v62  ;;  %1023 = vpow2.f32 %v1292_v14 }
  0xfe   :  { %v1000_v28 = vpop.eup %999  ;;  %742 = vst.msk [vmem:[%s1479_s5 + $0x4] sm:$0xf] %vm660_vm3, %v849_v48  ;;  %v854_v22 = vpack.c.bf16 %v586_v58, %v586_v58  ;;  %v584_v53 = vmul.f32 %v998_v24, %v1221_v0  ;;  %1025 = vpow2.f32 %v544_v25 }
  0xff   :  { %v1002_v33 = vpop.eup %1001  ;;  %667 = vst.msk [vmem:[%s1478_s4 + $0x18] sm:$0xf] %vm660_vm3, %v838_v52  ;;  %v836_v62 = vpack.c.bf16 %v488_v2, %v488_v2  ;;  %v491_v14 = vmul.f32 %v1000_v28, %v1226_v7  ;;  %1027 = vpow2.f32 %v444_v49 }
 0x100   :  { %v1004_v35 = vpop.eup %1003  ;;  %747 = vst.msk [vmem:[%s1479_s5 + $0x18] sm:$0xf] %vm660_vm3, %v854_v22  ;;  %v852_v0 = vpack.c.bf16 %v584_v53, %v584_v53  ;;  %v587_v25 = vmul.f32 %v1002_v33, %v1229_v8  ;;  %1029 = vpow2.f32 %v540_v59 }
 0x101   :  { %v1006_v38 = vpop.eup %1005  ;;  %665 = vst.msk [vmem:[%s1478_s4 + $0x10] sm:$0xf] %vm660_vm3, %v836_v62  ;;  %v839_v7 = vpack.c.bf16 %v491_v14, %v491_v14  ;;  %v489_v26 = vmul.f32 %v1004_v35, %v1232_v12  ;;  %1031 = vpow2.f32 %v450_v27 }
 0x102   :  { %v1008_v41 = vpop.eup %1007  ;;  %745 = vst.msk [vmem:[%s1479_s5 + $0x10] sm:$0xf] %vm660_vm3, %v852_v0  ;;  %v855_v8 = vpack.c.bf16 %v587_v25, %v587_v25  ;;  %v462_v42 = vadd.f32 1.0, %v1006_v38  ;;  %1033 = vpow2.f32 %v546_v11 }
 0x103   :  { %v1010_v31 = vpop.eup %1009  ;;  %668 = vst.msk [vmem:[%s1478_s4 + $0x1c] sm:$0xf] %vm660_vm3, %v839_v7  ;;  %v837_v44 = vpack.c.bf16 %v489_v26, %v489_v26  ;;  %v558_v32 = vadd.f32 1.0, %v1008_v41  ;;  %1035 = vpow2.f32 %v446_v34 }
 0x104   :  { %v1012_v12 = vpop.eup %1011  ;;  %748 = vst.msk [vmem:[%s1479_s5 + $0x1c] sm:$0xf] %vm660_vm3, %v855_v8  ;;  %1037 = vrcp.f32 %v462_v42  ;;  %v460_v3 = vadd.f32 1.0, %v1010_v31 }
 0x105   :  { %v1014_v21 = vpop.eup %1013  ;;  %666 = vst.msk [vmem:[%s1478_s4 + $0x14] sm:$0xf] %vm660_vm3, %v837_v44  ;;  %1039 = vrcp.f32 %v558_v32  ;;  %v556_v49 = vadd.f32 1.0, %v1012_v12 }
 0x106   :  { %v1016_v55 = vpop.eup %1015  ;;  %v585_v56 = vmul.f32 %v1014_v21, %v1235_v13  ;;  %1041 = vrcp.f32 %v460_v3 }
 0x107   :  { %v1018_v39 = vpop.eup %1017  ;;  %1043 = vrcp.f32 %v556_v49  ;;  %v463_v36 = vadd.f32 1.0, %v1016_v55 }
 0x108   :  { %v1020_v59 = vpop.eup %1019  ;;  %v853_v60 = vpack.c.bf16 %v585_v56, %v585_v56  ;;  %v559_v63 = vadd.f32 1.0, %v1018_v39  ;;  %1045 = vpow2.f32 %v542_v47 }
 0x109   :  { %v1022_v1 = vpop.eup %1021  ;;  %1047 = vrcp.f32 %v463_v36  ;;  %v461_v40 = vadd.f32 1.0, %v1020_v59 }
 0x10a   :  { %v1024_v6 = vpop.eup %1023  ;;  %746 = vst.msk [vmem:[%s1479_s5 + $0x14] sm:$0xf] %vm660_vm3, %v853_v60  ;;  %1049 = vrcp.f32 %v559_v63  ;;  %v557_v9 = vadd.f32 1.0, %v1022_v1 }
 0x10b   :  { %v1026_v13 = vpop.eup %1025  ;;  %1051 = vrcp.f32 %v461_v40  ;;  %v466_v15 = vadd.f32 1.0, %v1024_v6 }
 0x10c   :  { %v1028_v18 = vpop.eup %1027  ;;  %1053 = vrcp.f32 %v557_v9  ;;  %v562_v45 = vadd.f32 1.0, %v1026_v13 }
 0x10d   :  { %v1030_v50 = vpop.eup %1029  ;;  %1055 = vrcp.f32 %v466_v15  ;;  %v464_v48 = vadd.f32 1.0, %v1028_v18 }
 0x10e   :  { %v1032_v58 = vpop.eup %1031  ;;  %1057 = vrcp.f32 %v562_v45  ;;  %v560_v24 = vadd.f32 1.0, %v1030_v50 }
 0x10f   :  { %v1034_v52 = vpop.eup %1033  ;;  %1059 = vrcp.f32 %v464_v48  ;;  %v467_v2 = vadd.f32 1.0, %v1032_v58 }
 0x110   :  { %v1036_v27 = vpop.eup %1035  ;;  %1061 = vrcp.f32 %v560_v24  ;;  %v563_v28 = vadd.f32 1.0, %v1034_v52 }
 0x111   :  { %v1038_v22 = vpop.eup %1037  ;;  %1063 = vrcp.f32 %v467_v2  ;;  %v465_v53 = vadd.f32 1.0, %v1036_v27 }
 0x112   :  { %v1040_v11 = vpop.eup %1039  ;;  %v494_v33 = vmul.f32 %v1038_v22, %v1241_v20  ;;  %1065 = vrcp.f32 %v563_v28 }
 0x113   :  { %v1042_v62 = vpop.eup %1041  ;;  %v590_v14 = vmul.f32 %v1040_v11, %v1245_v30  ;;  %1067 = vrcp.f32 %v465_v53 }
 0x114   :  { %v1044_v34 = vpop.eup %1043  ;;  %v842_v35 = vpack.c.bf16 %v494_v33, %v494_v33  ;;  %v492_v0 = vmul.f32 %v1042_v62, %v1249_v43 }
 0x115   :  { %v1046_v25 = vpop.eup %1045  ;;  %v858_v37 = vpack.c.bf16 %v590_v14, %v590_v14  ;;  %v588_v38 = vmul.f32 %v1044_v34, %v1253_v54 }
 0x116   :  { %v1048_v7 = vpop.eup %1047  ;;  %671 = vst.msk [vmem:[%s1478_s4 + $0x28] sm:$0xf] %vm660_vm3, %v842_v35  ;;  %v840_v20 = vpack.c.bf16 %v492_v0, %v492_v0  ;;  %v561_v26 = vadd.f32 1.0, %v1046_v25 }
 0x117   :  { %v1050_v41 = vpop.eup %1049  ;;  %751 = vst.msk [vmem:[%s1479_s5 + $0x28] sm:$0xf] %vm660_vm3, %v858_v37  ;;  %v856_v30 = vpack.c.bf16 %v588_v38, %v588_v38  ;;  %v495_v43 = vmul.f32 %v1048_v7, %v1259_v61 }
 0x118   :  { %v1052_v8 = vpop.eup %1051  ;;  %669 = vst.msk [vmem:[%s1478_s4 + $0x20] sm:$0xf] %vm660_vm3, %v840_v20  ;;  %v591_v54 = vmul.f32 %v1050_v41, %v1264_v4  ;;  %1069 = vrcp.f32 %v561_v26 }
 0x119   :  { %v1054_v42 = vpop.eup %1053  ;;  %749 = vst.msk [vmem:[%s1479_s5 + $0x20] sm:$0xf] %vm660_vm3, %v856_v30  ;;  %v843_v31 = vpack.c.bf16 %v495_v43, %v495_v43  ;;  %v493_v44 = vmul.f32 %v1052_v8, %v1268_v10 }
 0x11a   :  { %v1056_v32 = vpop.eup %1055  ;;  %v859_v61 = vpack.c.bf16 %v591_v54, %v591_v54  ;;  %v589_v12 = vmul.f32 %v1054_v42, %v1271_v16 }
 0x11b   :  { %v1058_v3 = vpop.eup %1057  ;;  %672 = vst.msk [vmem:[%s1478_s4 + $0x2c] sm:$0xf] %vm660_vm3, %v843_v31  ;;  %v841_v4 = vpack.c.bf16 %v493_v44, %v493_v44  ;;  %v498_v47 = vmul.f32 %v1056_v32, %v1274_v17 }
 0x11c   :  { %v1060_v21 = vpop.eup %1059  ;;  %752 = vst.msk [vmem:[%s1479_s5 + $0x2c] sm:$0xf] %vm660_vm3, %v859_v61  ;;  %v857_v10 = vpack.c.bf16 %v589_v12, %v589_v12  ;;  %v594_v49 = vmul.f32 %v1058_v3, %v1279_v29 }
 0x11d   :  { %v1062_v55 = vpop.eup %1061  ;;  %670 = vst.msk [vmem:[%s1478_s4 + $0x24] sm:$0xf] %vm660_vm3, %v841_v4  ;;  %v846_v16 = vpack.c.bf16 %v498_v47, %v498_v47  ;;  %v496_v56 = vmul.f32 %v1060_v21, %v1285_v51 }
 0x11e   :  { %v1064_v39 = vpop.eup %1063  ;;  %750 = vst.msk [vmem:[%s1479_s5 + $0x24] sm:$0xf] %vm660_vm3, %v857_v10  ;;  %v862_v17 = vpack.c.bf16 %v594_v49, %v594_v49  ;;  %v592_v36 = vmul.f32 %v1062_v55, %v1289_v5 }
 0x11f   :  { %v1066_v59 = vpop.eup %1065  ;;  %675 = vst.msk [vmem:[%s1478_s4 + $0x38] sm:$0xf] %vm660_vm3, %v846_v16  ;;  %v844_v29 = vpack.c.bf16 %v496_v56, %v496_v56  ;;  %v499_v60 = vmul.f32 %v1064_v39, %v1297_v23 }
 0x120   :  { %v1068_v63 = vpop.eup %1067  ;;  %755 = vst.msk [vmem:[%s1479_s5 + $0x38] sm:$0xf] %vm660_vm3, %v862_v17  ;;  %v860_v51 = vpack.c.bf16 %v592_v36, %v592_v36  ;;  %v595_v1 = vmul.f32 %v1066_v59, %v1309_v57 }
 0x121   :  { %673 = vst.msk [vmem:[%s1478_s4 + $0x30] sm:$0xf] %vm660_vm3, %v844_v29  ;;  %v847_v5 = vpack.c.bf16 %v499_v60, %v499_v60  ;;  %v497_v40 = vmul.f32 %v1068_v63, %v1317_v46 }
 0x122   :  { %753 = vst.msk [vmem:[%s1479_s5 + $0x30] sm:$0xf] %vm660_vm3, %v860_v51  ;;  %v863_v23 = vpack.c.bf16 %v595_v1, %v595_v1 }
 0x123   :  { %676 = vst.msk [vmem:[%s1478_s4 + $0x3c] sm:$0xf] %vm660_vm3, %v847_v5  ;;  %v845_v57 = vpack.c.bf16 %v497_v40, %v497_v40 }
 0x124   :  { %756 = vst.msk [vmem:[%s1479_s5 + $0x3c] sm:$0xf] %vm660_vm3, %v863_v23 }
 0x125   :  { %v1070_v6 = vpop.eup %1069  ;;  %674 = vst.msk [vmem:[%s1478_s4 + $0x34] sm:$0xf] %vm660_vm3, %v845_v57 }
 0x126   :  { %v593_v46 = vmul.f32 %v1070_v6, %v1344_v19 }
 0x128   :  { %v861_v9 = vpack.c.bf16 %v593_v46, %v593_v46 }
 0x12a   :  { %754 = vst.msk [vmem:[%s1479_s5 + $0x34] sm:$0xf] %vm660_vm3, %v861_v9 }

// kernel: effic_loss.7
= control target key start
LH: loop header
LB: loop body
LE: loop exit
PB: predicated region body
PF: predicated region fallthrough
CT: control target
= control target key end

     0   :  { %s3790_s21 = smov 0   ;;  %s4907_s0 = inlined_call_operand.vmem [shape: bf16[2,10,10,64], index: 0, kind: input, shape index: {}]   ;;  %s4908_s1 = inlined_call_operand.vmem [shape: bf16[2,10,10,64], index: 1, kind: input, shape index: {}]   ;;  %s4909_s2 = inlined_call_operand.vmem [shape: bf16[9,64,32], index: 2, kind: input, shape index: {}]   ;;  %s4910_s3 = inlined_call_operand.vmem [shape: f32[1,32], index: 3, kind: input, shape index: {}]   ;;  %s4911_s4 = inlined_call_operand.vmem [shape: bf16[2,8,8,32], index: 4, kind: output, shape index: {0}]   ;;  %s4912_s5 = inlined_call_operand.vmem [shape: bf16[2,8,8,32], index: 5, kind: output, shape index: {1}]   ;;  %s4913_s6 = inlined_call_operand.vmem [shape: f32[2,8,128], index: 6, kind: output, shape index: {2}]  }
   0x1 LB: > { %s2923_s22 = sadd.s32 4294967295, %s3753_s21   ;;  %p2927_p0 = scmp.ge.s32.totalorder %s3753_s21, 1  ;;  %s3753_s21 = sphi %s3790_s21, %s17_s21  }
   0x2   : > { %p227_p1 = scmp.lt.s32.totalorder %s3753_s21, 3 }
   0x4   : > { %p228_p2 = pnand %p2927_p0, %p227_p1 }
   0x6   : > { %231 = sbr.rel (%p228_p2) target bundleno = 640 (0x280), region = 36 }
   0xb   : > { %v3801_v0 = vld [vmem:[%s4909_s2 + $0x38] sm:$0xff]   ;;  %p271_p3 = scmp.lt.s32.totalorder %s2923_s22, 1  ;;  %v3812_v2 = vld [vmem:[%s4909_s2 + $0x30] sm:$0xff]   ;;  %v3828_v4 = vld [vmem:[%s4909_s2 + $0x28] sm:$0xff]   ;;  %vm616_vm0 = vcmask 523264   ;;  %vm1018_vm4 = vcmask 1042432  }
   0xc   : > { %v3806_v1 = vld [vmem:[%s4909_s2 + $0x18] sm:$0xff]   ;;  %3330 = vmatprep.subr.bf16.mxu0 %v3801_v0  ;;  %v3821_v3 = vld [vmem:[%s4909_s2 + $0x10] sm:$0xff]   ;;  %v3835_v5 = vld [vmem:[%s4909_s2 + $0x8] sm:$0xff]   ;;  %vm353_vm1 = vsmask.f32 3328  ;;  %vm1019_vm5 = vcmask 1046532  }
   0xd   : > { %s5000_s22 = smov (!%p271_p3, %s2923_s22), 1  ;;  %3346 = vmatprep.subr.bf16.mxu1 %v3806_v1  ;;  %3331 = vmatpush3.bf16.msra.mxu0 %v3801_v0  ;;  %v3850_v6 = vld [vmem:[%s4909_s2 + $0x20] sm:$0xff]   ;;  %vm354_vm2 = vsmask.f32 7440  ;;  %vm4197_vm6 = vmor %vm1018_vm4, %vm1019_vm5  ;;  %vm2724_vm7 = vcmask 257024   ;;  %vm2765_vm8 = vcmask 261120  }
   0xe   : > { %3347 = vmatpush3.bf16.msra.mxu1 %v3806_v1  ;;  %3332 = vmatprep.subr.bf16.mxu0 %v3812_v2  ;;  %s3618_s9 = smul.u32 80, %s5000_s22  ;;  %v3862_v9 = vld [vmem:[%s4909_s2] sm:$0xff]   ;;  %vm3909_vm3 = vmor %vm353_vm1, %vm354_vm2  ;;  %s3184_s15 = sshll.u32 %s5000_s22, 5 }
   0xf   : > { %3348 = vmatprep.subr.bf16.mxu1 %v3821_v3  ;;  %s4828_s18 = scalar_lea.vmem %s4912_s5, %s3184_s15  ;;  %s4844_s24 = scalar_lea.vmem %s4911_s4, %s3184_s15 }
  0x10   : > { %s3842_s14 = scalar_lea.vmem %s4907_s0, %s3618_s9  ;;  %s3953_s23 = scalar_lea.vmem %s4908_s1, %s3618_s9 }
  0x11   : > { %3333 = vmatpush3.bf16.msra.mxu0 %v3812_v2  ;;  %v3853_v7 = vld [vmem:[%s3842_s14] sm:$0xf]  ;;  %v3856_v8 = vld [vmem:[%s3842_s14 + $0x8] sm:$0xf]  ;;  %v3869_v13 = vld [vmem:[%s3842_s14 + $0x4] sm:$0x1] }
  0x12   : > { %3349 = vmatpush3.bf16.msra.mxu1 %v3821_v3  ;;  %3334 = vmatprep.subr.bf16.mxu0 %v3828_v4  ;;  %v357_v10 = vshrl.u32 %v3853_v7, 16  ;;  %v360_v11 = vshll.u32 %v3853_v7, 16  ;;  %v2955_v12 = vcombine.low %v3853_v7, %v3856_v8  ;;  %v3872_v14 = vld [vmem:[%s3842_s14 + $0xc] sm:$0x1]  ;;  %v3877_v15 = vld [vmem:[%s3842_s14 + $0x10] sm:$0xf] }
  0x13   : > { %3350 = vmatprep.subr.bf16.mxu1 %v3835_v5  ;;  %v3880_v16 = vld [vmem:[%s3842_s14 + $0x14] sm:$0x1]  ;;  %v3886_v19 = vld [vmem:[%s3842_s14 + $0x18] sm:$0xf]  ;;  %v366_v20 = vshll.u32 %v3869_v13, 16  ;;  %v371_v21 = vshrl.u32 %v3856_v8, 16 }
  0x14   : > { %3354 = vmatprep.mubr.msk.bf16.mxu1 %vm616_vm0, %v2955_v12  ;;  %v359_v17 = vrot.slane %v357_v10, 4  ;;  %v362_v18 = vrot.slane %v360_v11, 5  ;;  %v374_v22 = vshll.u32 %v3856_v8, 16  ;;  %v380_v23 = vshll.u32 %v3872_v14, 16  ;;  %v3893_v24 = vld [vmem:[%s3842_s14 + $0x1c] sm:$0x1] }
  0x15   : > { %3335 = vmatpush3.bf16.msra.mxu0 %v3828_v4  ;;  %v385_v26 = vshrl.u32 %v3877_v15, 16  ;;  %v388_v27 = vshll.u32 %v3877_v15, 16  ;;  %v394_v28 = vshll.u32 %v3880_v16, 16  ;;  %v3900_v29 = vld [vmem:[%s3842_s14 + $0x20] sm:$0xf]  ;;  %v368_v30 = vrot.slane %v366_v20, 5 }
  0x16   : > { %3351 = vmatpush3.bf16.msra.mxu1 %v3835_v5  ;;  %3336 = vmatprep.subr.bf16.mxu0 %v3850_v6  ;;  %v363_v25 = vor.u32 %v362_v18, %v359_v17  ;;  %v373_v31 = vrot.slane %v371_v21, 4  ;;  %v376_v32 = vrot.slane %v374_v22, 5  ;;  %v3904_v33 = vcombine.low %v3877_v15, %v3886_v19  ;;  %v3915_v39 = vld [vmem:[%s3842_s14 + $0x24] sm:$0x1]  ;;  %v3935_v59 = vld [vmem:[%s3842_s14 + $0x28] sm:$0xf] }
  0x17   : > { %3352 = vmatprep.subr.bf16.mxu1 %v3862_v9  ;;  %v382_v36 = vrot.slane %v380_v23, 5  ;;  %v387_v37 = vrot.slane %v385_v26, 4  ;;  %v390_v38 = vrot.slane %v388_v27, 5  ;;  %v399_v41 = vshrl.u32 %v3886_v19, 16  ;;  %v3940_v10 = vld [vmem:[%s3842_s14 + $0x2c] sm:$0x1] }
  0x18   : > { %4929 = vst [vmem:[#allocation2_spill] sm:$0xff] %v3904_v33  ;;  %v364_v35 = vrot.slane %v363_v25, 4  ;;  %v377_v40 = vor.u32 %v376_v32, %v373_v31  ;;  %v402_v42 = vshll.u32 %v3886_v19, 16  ;;  %v408_v43 = vshll.u32 %v3893_v24, 16  ;;  %v3965_v23 = vld [vmem:[%s3842_s14 + $0x30] sm:$0xf] }
  0x19   : > { %3337 = vmatpush3.bf16.msra.mxu0 %v3850_v6  ;;  %v391_v44 = vor.u32 %v390_v38, %v387_v37  ;;  %v396_v45 = vrot.slane %v394_v28, 5  ;;  %v413_v46 = vshrl.u32 %v3900_v29, 16  ;;  %v416_v47 = vshll.u32 %v3900_v29, 16  ;;  %v3968_v25 = vld [vmem:[%s3842_s14 + $0x38] sm:$0xf] }
  0x1a   : > { %3353 = vmatpush3.bf16.msra.mxu1 %v3862_v9  ;;  %3362 = vmatprep.subr.bf16.mxu0 %v3801_v0  ;;  %v369_v48 = vsel %vm3909_vm3, %v364_v35, %v368_v30  ;;  %v378_v49 = vrot.slane %v377_v40, 4  ;;  %v401_v50 = vrot.slane %v399_v41, 4  ;;  %v404_v51 = vrot.slane %v402_v42, 5  ;;  %v3990_v35 = vld [vmem:[%s3842_s14 + $0x34] sm:$0x1] }
  0x1b   : > { %3378 = vmatprep.subr.bf16.mxu1 %v3806_v1  ;;  %v392_v52 = vrot.slane %v391_v44, 4  ;;  %v415_v53 = vrot.slane %v413_v46, 4  ;;  %v418_v54 = vrot.slane %v416_v47, 5  ;;  %v422_v55 = vshll.u32 %v3915_v39, 16  ;;  %v3999_v42 = vld [vmem:[%s3953_s23] sm:$0xf] }
  0x1c   : > { %v3931_v56 = vsel %vm3909_vm3, %v378_v49, %v382_v36  ;;  %v405_v57 = vor.u32 %v404_v51, %v401_v50  ;;  %v410_v58 = vrot.slane %v408_v43, 5  ;;  %v3962_v22 = vcombine.low %v3900_v29, %v3935_v59  ;;  %v3993_v36 = vld [vmem:[%s3842_s14 + $0x3c] sm:$0x1]  ;;  %v4016_v51 = vld [vmem:[%s3953_s23 + $0x8] sm:$0xf] }
  0x1d   : > { %3355 = vmatmul.mubr.msk.bf16.vlgmr.msra.gmra.mxu1 %vm616_vm0, %v3904_v33  ;;  %v419_v61 = vor.u32 %v418_v54, %v415_v53  ;;  %v424_v62 = vrot.slane %v422_v55, 5  ;;  %v2943_v63 = vcombine.low %v369_v48, %v3931_v56  ;;  %v427_v27 = vshrl.u32 %v3935_v59, 16  ;;  %v4024_v53 = vld [vmem:[%s4909_s2 + $0x58] sm:$0xff]  }
  0x1e   : > { %3379 = vmatpush3.bf16.msra.mxu1 %v3806_v1  ;;  %v3944_v1 = vsel %vm3909_vm3, %v392_v52, %v396_v45  ;;  %v406_v11 = vrot.slane %v405_v57, 4  ;;  %4932 = vst [vmem:[#allocation3_spill] sm:$0xff] %v3962_v22  ;;  %v430_v28 = vshll.u32 %v3935_v59, 16  ;;  %3358 = vmatprep.mubr.msk.bf16.mxu1 %vm616_vm0, %v3962_v22  ;;  %v436_v32 = vshll.u32 %v3940_v10, 16  ;;  %v4019_v52 = vld [vmem:[%s3953_s23 + $0x4] sm:$0x1] }
  0x1f   : > { %3380 = vmatprep.subr.bf16.mxu1 %v3821_v3  ;;  %v420_v18 = vrot.slane %v419_v61, 4  ;;  %3338 = vmatprep.mubr.msk.bf16.mxu0 %vm616_vm0, %v2943_v63  ;;  %v429_v40 = vrot.slane %v427_v27, 4  ;;  %v4005_v44 = vcombine.low %v3965_v23, %v3968_v25  ;;  %v441_v45 = vshrl.u32 %v3965_v23, 16 }
  0x20   : > { %v3972_v26 = vsel %vm3909_vm3, %v406_v11, %v410_v58  ;;  %v432_v41 = vrot.slane %v430_v28, 5  ;;  %v438_v43 = vrot.slane %v436_v32, 5  ;;  %v444_v46 = vshll.u32 %v3965_v23, 16  ;;  %v4036_v28 = vld [vmem:[%s3953_s23 + $0xc] sm:$0x1] }
  0x21   : > { %4933 = vst [vmem:[#allocation4_spill] sm:$0xff] %v3972_v26  ;;  %v3983_v30 = vcombine.low %v3944_v1, %v3972_v26  ;;  %4936 = vst [vmem:[#allocation7_spill] sm:$0xff] %v4005_v44  ;;  %v450_v48 = vshll.u32 %v3990_v35, 16  ;;  %v455_v49 = vshrl.u32 %v3968_v25, 16  ;;  %v458_v50 = vshll.u32 %v3968_v25, 16 }
  0x22   : > { %3381 = vmatpush3.bf16.msra.mxu1 %v3821_v3  ;;  %v3979_v3 = vsel %vm3909_vm3, %v420_v18, %v424_v62  ;;  %v433_v47 = vor.u32 %v432_v41, %v429_v40  ;;  %v464_v54 = vshll.u32 %v3993_v36, 16  ;;  %v469_v55 = vshrl.u32 %v3999_v42, 16  ;;  %v4039_v32 = vld [vmem:[%s3953_s23 + $0x10] sm:$0xf] }
  0x23   : > { %3382 = vmatprep.subr.bf16.mxu1 %v3835_v5  ;;  %4934 = vst [vmem:[#allocation5_spill] sm:$0xff] %v3979_v3  ;;  %4935 = vst [vmem:[#allocation6_spill] sm:$0xff] %v3983_v30  ;;  %3339 = vmatmul.mubr.msk.bf16.vlgmr.msra.gmra.mxu0 %vm616_vm0, %v3983_v30  ;;  %v452_v58 = vrot.slane %v450_v48, 5  ;;  %v457_v61 = vrot.slane %v455_v49, 4  ;;  %v460_v62 = vrot.slane %v458_v50, 5  ;;  %v472_v18 = vshll.u32 %v3999_v42, 16 }
  0x24   : > { %3363 = vmatpush3.bf16.msra.mxu0 %v3801_v0  ;;  %v443_v0 = vrot.slane %v441_v45, 4  ;;  %v434_v57 = vrot.slane %v433_v47, 4  ;;  %v466_v11 = vrot.slane %v464_v54, 5  ;;  %v2975_v27 = vcombine.low %v3999_v42, %v4016_v51  ;;  %v4052_v47 = vld [vmem:[%s3953_s23 + $0x14] sm:$0x1] }
  0x25   : > { %3364 = vmatprep.subr.bf16.mxu0 %v3812_v2  ;;  %3359 = vmatmul.mubr.msk.bf16.gmra.mxu1 %vm616_vm0, %v4005_v44  ;;  %v461_v41 = vor.u32 %v460_v62, %v457_v61  ;;  %v471_v45 = vrot.slane %v469_v55, 4  ;;  %v483_v49 = vshrl.u32 %v4016_v51, 16  ;;  %v492_v54 = vshll.u32 %v4036_v28, 16  ;;  %v4064_v55 = vld [vmem:[%s3953_s23 + $0x1c] sm:$0x1] }
  0x26   : > { %3383 = vmatpush3.bf16.msra.mxu1 %v3835_v5  ;;  %v446_v5 = vrot.slane %v444_v46, 5  ;;  %v4044_v40 = vsel %vm3909_vm3, %v434_v57, %v438_v43  ;;  %v4048_v46 = vld [vmem:[%s3953_s23 + $0x18] sm:$0xf]  ;;  %3386 = vmatprep.mubr.msk.bf16.mxu1 %vm616_vm0, %v2975_v27  ;;  %v474_v43 = vrot.slane %v472_v18, 5  ;;  %v4079_v18 = vld [vmem:[%s4909_s2 + $0x50] sm:$0xff]  }
  0x27   : > { %3384 = vmatprep.subr.bf16.mxu1 %v3862_v9  ;;  %4937 = vst [vmem:[#allocation8_spill] sm:$0xff] %v4044_v40  ;;  %v4056_v48 = vcombine.low %v3979_v3, %v4044_v40  ;;  %v462_v50 = vrot.slane %v461_v41, 4  ;;  %v485_v62 = vrot.slane %v483_v49, 4  ;;  %v494_v41 = vrot.slane %v492_v54, 5  ;;  %v4100_v49 = vld [vmem:[%s3953_s23 + $0x28] sm:$0xf] }
  0x28   : > { %v447_v63 = vor.u32 %v446_v5, %v443_v0  ;;  %3365 = vmatpush3.bf16.msra.mxu0 %v3812_v2  ;;  %v486_v5 = vshll.u32 %v4016_v51, 16  ;;  %v475_v61 = vor.u32 %v474_v43, %v471_v45  ;;  %v497_v45 = vshrl.u32 %v4039_v32, 16 }
  0x29   : > { %4938 = vst [vmem:[#allocation9_spill] sm:$0xff] %v4056_v48  ;;  %3366 = vmatprep.subr.bf16.mxu0 %v3828_v4  ;;  %3342 = vmatprep.mubr.msk.bf16.mxu0 %vm616_vm0, %v4056_v48  ;;  %v4083_v27 = vsel %vm3909_vm3, %v462_v50, %v466_v11  ;;  %v500_v11 = vshll.u32 %v4039_v32, 16  ;;  %v4103_v50 = vld [vmem:[%s3953_s23 + $0x24] sm:$0x1]  ;;  %v511_v38 = vshrl.u32 %v4048_v46, 16  ;;  %v514_v21 = vshll.u32 %v4048_v46, 16 }
  0x2a   : > { %3385 = vmatpush3.bf16.msra.mxu1 %v3862_v9  ;;  %v478_v9 = vshll.u32 %v4019_v52, 16  ;;  %v448_v2 = vrot.slane %v447_v63, 4  ;;  %v4074_v63 = vcombine.low %v4039_v32, %v4048_v46  ;;  %v476_v43 = vrot.slane %v475_v61, 4 }
  0x2b   : > { %3410 = vmatprep.subr.bf16.mxu1 %v4024_v53  ;;  %v499_v54 = vrot.slane %v497_v45, 4  ;;  %v502_v37 = vrot.slane %v500_v11, 5  ;;  %v513_v31 = vrot.slane %v511_v38, 4  ;;  %v516_v17 = vrot.slane %v514_v21, 5 }
  0x2c   : > { %v480_v0 = vrot.slane %v478_v9, 5  ;;  %v4070_v57 = vsel %vm3909_vm3, %v448_v2, %v452_v58  ;;  %4939 = vst [vmem:[#allocation10_spill] sm:$0xff] %v4074_v63  ;;  %3367 = vmatpush3.bf16.msra.mxu0 %v3828_v4  ;;  %v488_v58 = vrot.slane %v486_v5, 5  ;;  %v4088_v9 = vld [vmem:[%s3953_s23 + $0x20] sm:$0xf]  ;;  %v506_v4 = vshll.u32 %v4052_v47, 16 }
  0x2d   : > { %v4092_v2 = vcombine.low %v4070_v57, %v4083_v27  ;;  %3368 = vmatprep.subr.bf16.mxu0 %v3850_v6  ;;  %3387 = vmatmul.mubr.msk.bf16.vlgmr.msra.gmra.mxu1 %vm616_vm0, %v4074_v63  ;;  %v503_v11 = vor.u32 %v502_v37, %v499_v54  ;;  %v525_v60 = vshrl.u32 %v4088_v9, 16  ;;  %v528_v12 = vshll.u32 %v4088_v9, 16  ;;  %v4143_v54 = vld [vmem:[%s3953_s23 + $0x38] sm:$0xf] }
  0x2e   : > { %v489_v5 = vor.u32 %v488_v58, %v485_v62  ;;  %3411 = vmatpush3.bf16.msra.mxu1 %v4024_v53  ;;  %v481_v61 = vsel %vm3909_vm3, %v476_v43, %v480_v0  ;;  %v508_v20 = vrot.slane %v506_v4, 5  ;;  %v520_v62 = vshll.u32 %v4064_v55, 16  ;;  %v4117_v58 = vld [vmem:[%s4909_s2 + $0x48] sm:$0xff]  }
  0x2f   : > { %4940 = vst [vmem:[#allocation11_spill] sm:$0xff] %v4092_v2  ;;  %3343 = vmatmul.mubr.msk.bf16.gmra.mxu0 %vm616_vm0, %v4092_v2  ;;  %3412 = vmatprep.subr.bf16.mxu1 %v4079_v18  ;;  %v4122_v0 = vcombine.low %v4088_v9, %v4100_v49  ;;  %v4125_v43 = vld [vmem:[%s3953_s23 + $0x2c] sm:$0x1]  ;;  %v517_v38 = vor.u32 %v516_v17, %v513_v31  ;;  %v534_v37 = vshll.u32 %v4103_v50, 16  ;;  %v504_v2 = vrot.slane %v503_v11, 4  ;;  %v4153_v31 = vld [vmem:[%s4909_s2 + $0x40] sm:$0xff]  }
  0x30   : > { %3369 = vmatpush3.bf16.msra.mxu0 %v3850_v6  ;;  %v490_v45 = vrot.slane %v489_v5, 4  ;;  %v522_v4 = vrot.slane %v520_v62, 5  ;;  %v4131_v6 = vld [vmem:[%s3953_s23 + $0x30] sm:$0xf]  ;;  %v539_v5 = vshrl.u32 %v4100_v49, 16  ;;  %v527_v48 = vrot.slane %v525_v60, 4 }
  0x31   : > { %4941 = vst [vmem:[#allocation12_spill] sm:$0xff] %v4122_v0  ;;  %3394 = vmatprep.subr.bf16.mxu0 %v4024_v53  ;;  %3390 = vmatprep.mubr.msk.bf16.mxu1 %vm616_vm0, %v4122_v0  ;;  %v530_v30 = vrot.slane %v528_v12, 5  ;;  %v4148_v17 = vld [vmem:[%s3953_s23 + $0x34] sm:$0x1]  ;;  %v542_v22 = vshll.u32 %v4100_v49, 16  ;;  %v4159_v60 = vsel %vm3909_vm3, %v504_v2, %v508_v20  ;;  %v4164_v11 = vcombine.low %v4131_v6, %v4143_v54 }
  0x32   : > { %v4135_v21 = vsel %vm3909_vm3, %v490_v45, %v494_v41  ;;  %3413 = vmatpush3.bf16.msra.mxu1 %v4079_v18  ;;  %v518_v41 = vrot.slane %v517_v38, 4  ;;  %v536_v45 = vrot.slane %v534_v37, 5  ;;  %v541_v44 = vrot.slane %v539_v5, 4  ;;  %v4167_v0 = vld [vmem:[%s3953_s23 + $0x3c] sm:$0x1] }
  0x33   : > { %v2967_v62 = vcombine.low %v481_v61, %v4135_v21  ;;  %3414 = vmatprep.subr.bf16.mxu1 %v4117_v58  ;;  %v531_v12 = vor.u32 %v530_v30, %v527_v48  ;;  %v548_v61 = vshll.u32 %v4125_v43, 16  ;;  %4942 = vst [vmem:[#allocation13_spill] sm:$0xff] %v4164_v11  ;;  %v544_v37 = vrot.slane %v542_v22, 5  ;;  %v4187_v22 = vld [vmem:[%s4909_s2 + $0x78] sm:$0xff]  }
  0x34   : > { %v4171_v38 = vsel %vm3909_vm3, %v518_v41, %v522_v4  ;;  %v553_v5 = vshrl.u32 %v4131_v6, 16  ;;  %v562_v2 = vshll.u32 %v4148_v17, 16  ;;  %v567_v63 = vshrl.u32 %v4143_v54, 16 }
  0x35   : > { %3370 = vmatprep.mubr.msk.bf16.mxu0 %vm616_vm0, %v2967_v62  ;;  %v556_v62 = vshll.u32 %v4131_v6, 16  ;;  %v4178_v20 = vcombine.low %v4159_v60, %v4171_v38  ;;  %v532_v30 = vrot.slane %v531_v12, 4  ;;  %v550_v48 = vrot.slane %v548_v61, 5  ;;  %3391 = vmatmul.mubr.msk.bf16.gmra.mxu1 %vm616_vm0, %v4164_v11 }
  0x36   : > { %3415 = vmatpush3.bf16.msra.mxu1 %v4117_v58  ;;  %v545_v4 = vor.u32 %v544_v37, %v541_v44  ;;  %v555_v41 = vrot.slane %v553_v5, 4  ;;  %v564_v61 = vrot.slane %v562_v2, 5  ;;  %v570_v11 = vshll.u32 %v4143_v54, 16 }
  0x37   : > { %4943 = vst [vmem:[#allocation14_spill] sm:$0xff] %v4178_v20  ;;  %3416 = vmatprep.subr.bf16.mxu1 %v4153_v31  ;;  %v558_v33 = vrot.slane %v556_v62, 5  ;;  %3371 = vmatmul.mubr.msk.bf16.vlgmr.msra.gmra.mxu0 %vm616_vm0, %v4178_v20  ;;  %v576_v3 = vshll.u32 %v4167_v0, 16  ;;  %v4204_v44 = vsel %vm3909_vm3, %v532_v30, %v536_v45  ;;  %v569_v62 = vrot.slane %v567_v63, 4 }
  0x38   : > { %3395 = vmatpush3.bf16.msra.mxu0 %v4024_v53  ;;  %v546_v37 = vrot.slane %v545_v4, 4  ;;  %v572_v2 = vrot.slane %v570_v11, 5  ;;  %v2999_v20 = vrot.slane %v3999_v42, 9  ;;  %v1063_v40 = vrot.slane %v4019_v52, 5 }
  0x39   : > { %v559_v5 = vor.u32 %v558_v33, %v555_v41  ;;  %3396 = vmatprep.subr.bf16.mxu0 %v4079_v18  ;;  %v578_v12 = vrot.slane %v576_v3, 5  ;;  %v3000_v33 = vrot.slane %v4016_v51, 9  ;;  %v1067_v63 = vrot.slane %v4036_v28, 5 }
  0x3a   : > { %3417 = vmatpush3.bf16.msra.mxu1 %v4153_v31  ;;  %v4213_v53 = vsel %vm3909_vm3, %v546_v37, %v550_v48  ;;  %v573_v3 = vor.u32 %v572_v2, %v569_v62  ;;  %v1064_v42 = vsel %vm4197_vm6, %v2999_v20, %v1063_v40  ;;  %v4946_v52 = vrot.slane %v3869_v13, 5 }
  0x3b   : > { %3442 = vmatprep.subr.bf16.mxu1 %v4187_v22  ;;  %v560_v45 = vrot.slane %v559_v5, 4  ;;  %v4219_v30 = vcombine.low %v4204_v44, %v4213_v53  ;;  %v4947_v11 = vrot.slane %v3853_v7, 9  ;;  %v4236_v4 = vsel %vm4197_vm6, %v3000_v33, %v1067_v63 }
  0x3c   : > { %3397 = vmatpush3.bf16.msra.mxu0 %v4079_v18  ;;  %v2992_v41 = vrot.slane %v3856_v8, 9  ;;  %v3001_v40 = vrot.slane %v4039_v32, 9  ;;  %v574_v7 = vrot.slane %v573_v3, 4  ;;  %v3019_v13 = vcombine.low %v1064_v42, %v4236_v4 }
  0x3d   : > { %v1024_v48 = vsel %vm4197_vm6, %v4947_v11, %v4946_v52  ;;  %v4232_v28 = vsel %vm3909_vm3, %v560_v45, %v564_v61  ;;  %3374 = vmatprep.mubr.msk.bf16.mxu0 %vm616_vm0, %v4219_v30  ;;  %3398 = vmatprep.subr.bf16.mxu0 %v4117_v58  ;;  %v1071_v18 = vrot.slane %v4052_v47, 5  ;;  %v3002_v20 = vrot.slane %v4048_v46, 9 }
  0x3e   : > { %v4948_v61 = vrot.slane %v3872_v14, 5  ;;  %v1075_v5 = vrot.slane %v4064_v55, 5  ;;  %v3003_v62 = vrot.slane %v4088_v9, 9  ;;  %v1079_v2 = vrot.slane %v4103_v50, 5  ;;  %3418 = vmatprep.mubr.msk.bf16.mxu1 %vm616_vm0, %v3019_v13 }
  0x3f   : > { %v4257_v45 = vsel %vm3909_vm3, %v574_v7, %v578_v12  ;;  %v4263_v14 = vsel %vm4197_vm6, %v3001_v40, %v1071_v18  ;;  %v3004_v33 = vrot.slane %v4100_v49, 9  ;;  %v3650_v12 = vld [vmem:[%s4909_s2 + $0x70] sm:$0xff]   ;;  %v1083_v3 = vrot.slane %v4125_v43, 5 }
  0x40   : > { %v4250_v37 = vsel %vm4197_vm6, %v2992_v41, %v4948_v61  ;;  %v4268_v55 = vcombine.low %v4232_v28, %v4257_v45  ;;  %3399 = vmatpush3.bf16.msra.mxu0 %v4117_v58  ;;  %v4273_v50 = vsel %vm4197_vm6, %v3002_v20, %v1075_v5  ;;  %v4280_v63 = vsel %vm4197_vm6, %v3003_v62, %v1079_v2 }
  0x41   : > { %v3007_v47 = vcombine.low %v1024_v48, %v4250_v37  ;;  %v4949_v42 = vrot.slane %v3880_v16, 5  ;;  %v4950_v52 = vrot.slane %v3877_v15, 9  ;;  %3400 = vmatprep.subr.bf16.mxu0 %v4153_v31  ;;  %v4294_v11 = vcombine.low %v4263_v14, %v4273_v50 }
  0x42   : > { %v2995_v48 = vrot.slane %v3900_v29, 9  ;;  %v1039_v41 = vrot.slane %v3915_v39, 5  ;;  %3375 = vmatmul.mubr.msk.bf16.gmra.mxu0 %vm616_vm0, %v4268_v55  ;;  %v4302_v16 = vsel %vm4197_vm6, %v3004_v33, %v1083_v3  ;;  %v2996_v43 = vrot.slane %v3935_v59, 9 }
  0x43   : > { %v4289_v58 = vsel %vm4197_vm6, %v4950_v52, %v4949_v42  ;;  %v1043_v40 = vrot.slane %v3940_v10, 5  ;;  %v3005_v7 = vrot.slane %v4131_v6, 9  ;;  %v4951_v13 = vrot.slane %v3893_v24, 5  ;;  %3402 = vmatprep.mubr.msk.bf16.mxu0 %vm616_vm0, %v3007_v47  ;;  %3419 = vmatmul.mubr.msk.bf16.vlgmr.msra.gmra.mxu1 %vm616_vm0, %v4294_v11 }
  0x44   : > { %v4952_v18 = vrot.slane %v3886_v19, 9  ;;  %v4320_v20 = vcombine.low %v4280_v63, %v4302_v16  ;;  %v1087_v10 = vrot.slane %v4148_v17, 5  ;;  %v3006_v61 = vrot.slane %v4143_v54, 9  ;;  %3401 = vmatpush3.bf16.msra.mxu0 %v4153_v31  ;;  %3443 = vmatpush3.bf16.msra.mxu1 %v4187_v22  ;;  %v3651_v31 = vld [vmem:[%s4909_s2 + $0x68] sm:$0xff]  }
  0x45   : > { %v4328_v24 = vsel %vm4197_vm6, %v2995_v48, %v1039_v41  ;;  %v4332_v5 = vsel %vm4197_vm6, %v2996_v43, %v1043_v40  ;;  %v1091_v62 = vrot.slane %v4167_v0, 5  ;;  %3426 = vmatprep.subr.bf16.mxu0 %v4187_v22  ;;  %3444 = vmatprep.subr.bf16.mxu1 %v3650_v12  ;;  %v2997_v2 = vrot.slane %v3965_v23, 9  ;;  %v313_v48 = vld [vmem:[%s3842_s14 + $0x44] sm:$0x1]  ;;  %v4369_v43 = vld [vmem:[%s3842_s14 + $0x40] sm:$0xf] }
  0x46   : > { %v4313_v39 = vsel %vm4197_vm6, %v4952_v18, %v4951_v13  ;;  %v4338_v17 = vsel %vm4197_vm6, %v3005_v7, %v1087_v10  ;;  %v1047_v47 = vrot.slane %v3990_v35, 5  ;;  %3422 = vmatprep.mubr.msk.bf16.mxu1 %vm616_vm0, %v4320_v20  ;;  %v2998_v3 = vrot.slane %v3968_v25, 9 }
  0x47   : > { %v4347_v33 = vcombine.low %v4289_v58, %v4313_v39  ;;  %v4353_v0 = vsel %vm4197_vm6, %v3006_v61, %v1091_v62  ;;  %v1051_v42 = vrot.slane %v3993_v36, 5  ;;  %v4359_v52 = vcombine.low %v4328_v24, %v4332_v5  ;;  %v3652_v36 = vld [vmem:[%s4909_s2 + $0x60] sm:$0xff]   ;;  %v3656_v61 = vld [vmem:[%s4909_s2 + $0x98] sm:$0xff]  }
  0x48   : > { %3445 = vmatpush3.bf16.msra.mxu1 %v3650_v12  ;;  %v4363_v35 = vcombine.low %v4338_v17, %v4353_v0  ;;  %v3047_v41 = vcombine.low %v4016_v51, %v4039_v32  ;;  %v1536_v40 = vshrl.u32 %v4369_v43, 16  ;;  %v4382_v7 = vsel %vm4197_vm6, %v2997_v2, %v1047_v47 }
  0x49   : > { %4953 = vst [vmem:[#allocation15_spill] sm:$0xff] %v4359_v52  ;;  %3446 = vmatprep.subr.bf16.mxu1 %v3651_v31  ;;  %v4386_v51 = vsel %vm4197_vm6, %v2998_v3, %v1051_v42  ;;  %v1539_v32 = vshll.u32 %v4369_v43, 16  ;;  %v1545_v13 = vshll.u32 %v313_v48, 16  ;;  %v3091_v62 = vrot.slane %v4369_v43, 9 }
  0x4a   : > { %3403 = vmatmul.mubr.msk.bf16.vlgmr.msra.gmra.mxu0 %vm616_vm0, %v4347_v33  ;;  %v1538_v18 = vrot.slane %v1536_v40, 4  ;;  %v4394_v10 = vcombine.low %v4382_v7, %v4386_v51  ;;  %v3035_v2 = vcombine.low %v3856_v8, %v3877_v15  ;;  %v1779_v42 = vrot.slane %v313_v48, 5  ;;  %v3658_v8 = vld [vmem:[%s4909_s2 + $0x90] sm:$0xff]   ;;  %v4416_v15 = vld [vmem:[%s3953_s23 + $0x40] sm:$0xf] }
  0x4b   : > { %3427 = vmatpush3.bf16.msra.mxu0 %v4187_v22  ;;  %3406 = vmatprep.mubr.msk.bf16.mxu0 %vm616_vm0, %v4359_v52  ;;  %v1541_v22 = vrot.slane %v1539_v32, 5  ;;  %v1547_v3 = vrot.slane %v1545_v13, 5  ;;  %v3049_v40 = vcombine.low %v4100_v49, %v4131_v6  ;;  %v3092_v49 = vrot.slane %v4416_v15, 9  ;;  %v4429_v13 = vld [vmem:[%s3953_s23 + $0x48] sm:$0xf] }
  0x4c   : > { %3428 = vmatprep.subr.bf16.mxu0 %v3650_v12  ;;  %3423 = vmatmul.mubr.msk.bf16.gmra.mxu1 %vm616_vm0, %v4363_v35  ;;  %4954 = vst [vmem:[#allocation16_spill] sm:$0xff] %v4394_v10  ;;  %v3037_v48 = vcombine.low %v3935_v59, %v3965_v23  ;;  %v3075_v59 = vcombine.low %v4135_v21, %v4159_v60 }
  0x4d   : > { %3447 = vmatpush3.bf16.msra.mxu1 %v3651_v31  ;;  %3450 = vmatprep.mubr.msk.bf16.mxu1 %vm616_vm0, %v3047_v41  ;;  %v1542_v47 = vor.u32 %v1541_v22, %v1538_v18  ;;  %v3048_v41 = vcombine.low %v4048_v46, %v4088_v9  ;;  %v333_v46 = vld [vmem:[%s3953_s23 + $0x44] sm:$0x1]  ;;  %v4432_v18 = vld [vmem:[%s3842_s14 + $0x48] sm:$0xf]  ;;  %v1550_v22 = vshrl.u32 %v4416_v15, 16  ;;  %v3038_v60 = vcombine.low %v3968_v25, %v4369_v43  ;;  %v3666_v25 = vld [vmem:[%s4909_s2 + $0xb0] sm:$0xff]  }
  0x4e   : > { %3448 = vmatprep.subr.bf16.mxu1 %v3652_v36  ;;  %v1784_v6 = vrot.slane %v333_v46, 5  ;;  %v1559_v21 = vshll.u32 %v333_v46, 16  ;;  %v4957_v46 = vld [vmem:[#allocation4_spill] sm:$0xff] }
  0x4f   : > { %3429 = vmatpush3.bf16.msra.mxu0 %v3650_v12  ;;  %v1543_v32 = vrot.slane %v1542_v47, 4  ;;  %v4408_v12 = vsel %vm4197_vm6, %v3091_v62, %v1779_v42  ;;  %v1553_v62 = vshll.u32 %v4416_v15, 16  ;;  %v3166_v47 = vrot.slane %v4429_v13, 9 }
  0x50   : > { %3430 = vmatprep.subr.bf16.mxu0 %v3651_v31  ;;  %v3036_v42 = vcombine.low %v3886_v19, %v3900_v29  ;;  %v3050_v29 = vcombine.low %v4143_v54, %v4416_v15  ;;  %v1552_v23 = vrot.slane %v1550_v22, 4  ;;  %v3664_v54 = vld [vmem:[%s4909_s2 + $0x80] sm:$0xff]   ;;  %v3665_v22 = vld [vmem:[%s4909_s2 + $0xb8] sm:$0xff]   ;;  %v4971_v34 = vld [vmem:[#allocation15_spill] sm:$0xff] }
  0x51   : > { %3449 = vmatpush3.bf16.msra.mxu1 %v3652_v36  ;;  %v4422_v9 = vsel %vm3909_vm3, %v1543_v32, %v1547_v3 }
  0x52   : > { %3407 = vmatmul.mubr.msk.bf16.gmra.mxu0 %vm616_vm0, %v4394_v10  ;;  %3474 = vmatprep.subr.bf16.mxu1 %v3656_v61  ;;  %v4456_v10 = vsel %vm4197_vm6, %v3092_v49, %v1784_v6  ;;  %v1555_v49 = vrot.slane %v1553_v62, 5 }
  0x53   : > { %3431 = vmatpush3.bf16.msra.mxu0 %v3651_v31  ;;  %3434 = vmatprep.mubr.msk.bf16.mxu0 %vm616_vm0, %v3035_v2  ;;  %v4435_v31 = vld [vmem:[%s3953_s23 + $0x4c] sm:$0x1]  ;;  %s2934_s23 = sshll.u32 %s5000_s22, 3 }
  0x54   : > { %3432 = vmatprep.subr.bf16.mxu0 %v3652_v36  ;;  %3451 = vmatmul.mubr.msk.bf16.vlgmr.msra.gmra.mxu1 %vm616_vm0, %v3048_v41  ;;  %v4441_v2 = vld [vmem:[%s3842_s14 + $0x4c] sm:$0x1]  ;;  %v2415_v3 = vrot.slane %v4435_v31, 5  ;;  %v1556_v26 = vor.u32 %v1555_v49, %v1552_v23  ;;  %v3130_v23 = vcombine.low %v4416_v15, %v4429_v13  ;;  %v4967_v15 = vld [vmem:[#allocation14_spill] sm:$0xff]  ;;  %s294_s26 = scalar_lea.vmem %s4913_s6, %s2934_s23 }
  0x55   : > { %3475 = vmatpush3.bf16.msra.mxu1 %v3656_v61  ;;  %3454 = vmatprep.mubr.msk.bf16.mxu1 %vm616_vm0, %v3049_v40  ;;  %v3662_v41 = vld [vmem:[%s4909_s2 + $0x88] sm:$0xff]   ;;  %v3165_v40 = vrot.slane %v4432_v18, 9  ;;  %v2410_v32 = vrot.slane %v4441_v2, 5 }
  0x56   : > { %3476 = vmatprep.subr.bf16.mxu1 %v3658_v8  ;;  %v4460_v19 = vsel %vm4197_vm6, %v3166_v47, %v2415_v3  ;;  %v1557_v62 = vrot.slane %v1556_v26, 4  ;;  %v1561_v47 = vrot.slane %v1559_v21, 5  ;;  %v4958_v3 = vld [vmem:[#allocation5_spill] sm:$0xff]  ;;  %v4965_v26 = vld [vmem:[#allocation3_spill] sm:$0xff]  ;;  %v3678_v21 = vld [vmem:[%s4909_s2 + $0xe0] sm:$0xff]  }
  0x57   : > { %3433 = vmatpush3.bf16.msra.mxu0 %v3652_v36  ;;  %v3176_v52 = vcombine.low %v4456_v10, %v4460_v19  ;;  %v4468_v36 = vsel %vm4197_vm6, %v3165_v40, %v2410_v32  ;;  %v4960_v40 = vcombine.low %v4083_v27, %v4422_v9  ;;  %v3670_v32 = vld [vmem:[%s4909_s2 + $0xd0] sm:$0xff]   ;;  %v3671_v27 = vld [vmem:[%s4909_s2 + $0xc8] sm:$0xff]  }
  0x58   : > { %3458 = vmatprep.subr.bf16.mxu0 %v3656_v61  ;;  %v3167_v6 = vcombine.low %v4408_v12, %v4468_v36 }
  0x59   : > { %3477 = vmatpush3.bf16.msra.mxu1 %v3658_v8 }
  0x5a   : > { %3435 = vmatmul.mubr.msk.bf16.vlgmr.msra.gmra.mxu0 %vm616_vm0, %v3036_v42  ;;  %3478 = vmatprep.subr.bf16.mxu1 %v3662_v41  ;;  %v4959_v42 = vcombine.low %v4957_v46, %v4958_v3 }
  0x5b   : > { %3459 = vmatpush3.bf16.msra.mxu0 %v3656_v61  ;;  %3438 = vmatprep.mubr.msk.bf16.mxu0 %vm616_vm0, %v3037_v48  ;;  %v3076_v61 = vcombine.low %v4171_v38, %v4204_v44  ;;  %v3077_v48 = vcombine.low %v4213_v53, %v4232_v28  ;;  %v4502_v38 = vsel %vm3909_vm3, %v1557_v62, %v1561_v47  ;;  %v3667_v44 = vld [vmem:[%s4909_s2 + $0xa8] sm:$0xff]   ;;  %v3679_v47 = vld [vmem:[%s4909_s2 + $0x118] sm:$0xff]  }
  0x5c   : > { %3460 = vmatprep.subr.bf16.mxu0 %v3658_v8  ;;  %3455 = vmatmul.mubr.msk.bf16.gmra.mxu1 %vm616_vm0, %v3050_v29  ;;  %v3078_v53 = vcombine.low %v4257_v45, %v4502_v38  ;;  %v3105_v28 = vcombine.low %v4236_v4, %v4263_v14  ;;  %v3093_v4 = vcombine.low %v4250_v37, %v4289_v58  ;;  %v3672_v58 = vld [vmem:[%s4909_s2 + $0xc0] sm:$0xff]   ;;  %v2208_v29 = vshll.u32 %v4429_v13, 16 }
  0x5d   : > { %3479 = vmatpush3.bf16.msra.mxu1 %v3662_v41  ;;  %3482 = vmatprep.mubr.msk.bf16.mxu1 %vm616_vm0, %v3075_v59  ;;  %v3106_v45 = vcombine.low %v4273_v50, %v4280_v63  ;;  %v3107_v14 = vcombine.low %v4302_v16, %v4338_v17  ;;  %v3094_v37 = vcombine.low %v4313_v39, %v4328_v24  ;;  %v4961_v16 = vld [vmem:[#allocation10_spill] sm:$0xff]  ;;  %v3673_v24 = vld [vmem:[%s4909_s2 + $0xf8] sm:$0xff]   ;;  %v3676_v59 = vld [vmem:[%s4909_s2 + $0xe8] sm:$0xff]  }
  0x5e   : > { %3480 = vmatprep.subr.bf16.mxu1 %v3664_v54  ;;  %v3095_v50 = vcombine.low %v4332_v5, %v4382_v7  ;;  %v3108_v63 = vcombine.low %v4353_v0, %v4456_v10  ;;  %v3096_v39 = vcombine.low %v4386_v51, %v4408_v12  ;;  %v3674_v5 = vld [vmem:[%s4909_s2 + $0xf0] sm:$0xff]   ;;  %v4962_v17 = vld [vmem:[#allocation2_spill] sm:$0xff]  ;;  %v4964_v7 = vld [vmem:[#allocation13_spill] sm:$0xff]  ;;  %v2205_v51 = vshrl.u32 %v4429_v13, 16 }
  0x5f   : > { %3461 = vmatpush3.bf16.msra.mxu0 %v3658_v8  ;;  %v4955_v8 = vcombine.low %v3931_v56, %v3944_v1  ;;  %v4956_v56 = vld [vmem:[#allocation8_spill] sm:$0xff]  ;;  %v3121_v62 = vcombine.low %v4369_v43, %v4432_v18  ;;  %v4968_v43 = vld [vmem:[#allocation6_spill] sm:$0xff] }
  0x60   : > { %3462 = vmatprep.subr.bf16.mxu0 %v3662_v41  ;;  %v3065_v1 = vcombine.low %v4956_v56, %v4070_v57  ;;  %v3669_v57 = vld [vmem:[%s4909_s2 + $0xd8] sm:$0xff]   ;;  %v4963_v0 = vld [vmem:[#allocation12_spill] sm:$0xff]  ;;  %v2207_v49 = vrot.slane %v2205_v51, 4 }
  0x61   : > { %3481 = vmatpush3.bf16.msra.mxu1 %v3664_v54 }
  0x62   : > { %3439 = vmatmul.mubr.msk.bf16.gmra.mxu0 %vm616_vm0, %v3038_v60  ;;  %3506 = vmatprep.subr.bf16.mxu1 %v3665_v22  ;;  %v4966_v60 = vld [vmem:[#allocation7_spill] sm:$0xff] }
  0x63   : > { %3463 = vmatpush3.bf16.msra.mxu0 %v3662_v41  ;;  %3466 = vmatprep.mubr.msk.bf16.mxu0 %vm616_vm0, %v4955_v8  ;;  %v3668_v41 = vld [vmem:[%s4909_s2 + $0xa0] sm:$0xff]  }
  0x64   : > { %3464 = vmatprep.subr.bf16.mxu0 %v3664_v54  ;;  %3483 = vmatmul.mubr.msk.bf16.vlgmr.msra.gmra.mxu1 %vm616_vm0, %v3076_v61  ;;  %v2194_v61 = vshll.u32 %v4432_v18, 16 }
  0x65   : > { %3507 = vmatpush3.bf16.msra.mxu1 %v3665_v22  ;;  %3486 = vmatprep.mubr.msk.bf16.mxu1 %vm616_vm0, %v3077_v48  ;;  %v2214_v48 = vshll.u32 %v4435_v31, 16  ;;  %v3680_v31 = vld [vmem:[%s4909_s2 + $0x110] sm:$0xff]  }
  0x66   : > { %3508 = vmatprep.subr.bf16.mxu1 %v3666_v25  ;;  %v2196_v8 = vrot.slane %v2194_v61, 5 }
  0x67   : > { %3465 = vmatpush3.bf16.msra.mxu0 %v3664_v54  ;;  %v2210_v54 = vrot.slane %v2208_v29, 5  ;;  %v2216_v56 = vrot.slane %v2214_v48, 5 }
  0x68   : > { %3490 = vmatprep.subr.bf16.mxu0 %v3665_v22 }
  0x69   : > { %3509 = vmatpush3.bf16.msra.mxu1 %v3666_v25  ;;  %v2211_v13 = vor.u32 %v2210_v54, %v2207_v49 }
  0x6a   : > { %3467 = vmatmul.mubr.msk.bf16.vlgmr.msra.gmra.mxu0 %vm616_vm0, %v4959_v42  ;;  %3510 = vmatprep.subr.bf16.mxu1 %v3667_v44  ;;  %v4970_v42 = vld [vmem:[#allocation11_spill] sm:$0xff] }
  0x6b   : > { %3491 = vmatpush3.bf16.msra.mxu0 %v3665_v22  ;;  %3470 = vmatprep.mubr.msk.bf16.mxu0 %vm616_vm0, %v3065_v1  ;;  %v2191_v22 = vshrl.u32 %v4432_v18, 16  ;;  %v2200_v1 = vshll.u32 %v4441_v2, 16 }
  0x6c   : > { %3492 = vmatprep.subr.bf16.mxu0 %v3666_v25  ;;  %3487 = vmatmul.mubr.msk.bf16.gmra.mxu1 %vm616_vm0, %v3078_v53 }
  0x6d   : > { %3511 = vmatpush3.bf16.msra.mxu1 %v3667_v44  ;;  %3514 = vmatprep.mubr.msk.bf16.mxu1 %vm616_vm0, %v3105_v28  ;;  %v3681_v28 = vld [vmem:[%s4909_s2 + $0x108] sm:$0xff]   ;;  %v2202_v3 = vrot.slane %v2200_v1, 5 }
  0x6e   : > { %3512 = vmatprep.subr.bf16.mxu1 %v3668_v41 }
  0x6f   : > { %3493 = vmatpush3.bf16.msra.mxu0 %v3666_v25  ;;  %v2193_v25 = vrot.slane %v2191_v22, 4 }
  0x70   : > { %3494 = vmatprep.subr.bf16.mxu0 %v3667_v44 }
  0x71   : > { %3513 = vmatpush3.bf16.msra.mxu1 %v3668_v41  ;;  %v2197_v18 = vor.u32 %v2196_v8, %v2193_v25 }
  0x72   : > { %3471 = vmatmul.mubr.msk.bf16.gmra.mxu0 %vm616_vm0, %v4960_v40  ;;  %3538 = vmatprep.subr.bf16.mxu1 %v3669_v57 }
  0x73   : > { %3495 = vmatpush3.bf16.msra.mxu0 %v3667_v44  ;;  %3498 = vmatprep.mubr.msk.bf16.mxu0 %vm616_vm0, %v3093_v4  ;;  %v2212_v44 = vrot.slane %v2211_v13, 4  ;;  %v2198_v46 = vrot.slane %v2197_v18, 4 }
  0x74   : > { %3496 = vmatprep.subr.bf16.mxu0 %v3668_v41  ;;  %3515 = vmatmul.mubr.msk.bf16.vlgmr.msra.gmra.mxu1 %vm616_vm0, %v3106_v45 }
  0x75   : > { %3539 = vmatpush3.bf16.msra.mxu1 %v3669_v57  ;;  %3518 = vmatprep.mubr.msk.bf16.mxu1 %vm616_vm0, %v3107_v14  ;;  %v2217_v53 = vsel %vm3909_vm3, %v2212_v44, %v2216_v56 }
  0x76   : > { %3540 = vmatprep.subr.bf16.mxu1 %v3670_v32  ;;  %v3152_v2 = vcombine.low %v4502_v38, %v2217_v53 }
  0x77   : > { %3497 = vmatpush3.bf16.msra.mxu0 %v3668_v41  ;;  %v2203_v41 = vsel %vm3909_vm3, %v2198_v46, %v2202_v3 }
  0x78   : > { %3522 = vmatprep.subr.bf16.mxu0 %v3669_v57  ;;  %v3143_v38 = vcombine.low %v4422_v9, %v2203_v41 }
  0x79   : > { %3541 = vmatpush3.bf16.msra.mxu1 %v3670_v32 }
  0x7a   : > { %3499 = vmatmul.mubr.msk.bf16.vlgmr.msra.gmra.mxu0 %vm616_vm0, %v3094_v37  ;;  %3542 = vmatprep.subr.bf16.mxu1 %v3671_v27 }
  0x7b   : > { %3523 = vmatpush3.bf16.msra.mxu0 %v3669_v57  ;;  %3502 = vmatprep.mubr.msk.bf16.mxu0 %vm616_vm0, %v3095_v50 }
  0x7c   : > { %3524 = vmatprep.subr.bf16.mxu0 %v3670_v32  ;;  %3519 = vmatmul.mubr.msk.bf16.gmra.mxu1 %vm616_vm0, %v3108_v63 }
  0x7d   : > { %3543 = vmatpush3.bf16.msra.mxu1 %v3671_v27  ;;  %3546 = vmatprep.mubr.msk.bf16.mxu1 %vm616_vm0, %v4961_v16 }
  0x7e   : > { %3544 = vmatprep.subr.bf16.mxu1 %v3672_v58 }
  0x7f   : > { %3525 = vmatpush3.bf16.msra.mxu0 %v3670_v32 }
  0x80   : > { %3526 = vmatprep.subr.bf16.mxu0 %v3671_v27 }
  0x81   : > { %3545 = vmatpush3.bf16.msra.mxu1 %v3672_v58 }
  0x82   : > { %3503 = vmatmul.mubr.msk.bf16.gmra.mxu0 %vm616_vm0, %v3096_v39  ;;  %3570 = vmatprep.subr.bf16.mxu1 %v3673_v24 }
  0x83   : > { %3527 = vmatpush3.bf16.msra.mxu0 %v3671_v27  ;;  %3530 = vmatprep.mubr.msk.bf16.mxu0 %vm616_vm0, %v4962_v17 }
  0x84   : > { %3528 = vmatprep.subr.bf16.mxu0 %v3672_v58  ;;  %3547 = vmatmul.mubr.msk.bf16.vlgmr.msra.gmra.mxu1 %vm616_vm0, %v4963_v0 }
  0x85   : > { %3571 = vmatpush3.bf16.msra.mxu1 %v3673_v24  ;;  %3550 = vmatprep.mubr.msk.bf16.mxu1 %vm616_vm0, %v4964_v7 }
  0x86   : > { %3572 = vmatprep.subr.bf16.mxu1 %v3674_v5 }
  0x87   : > { %3529 = vmatpush3.bf16.msra.mxu0 %v3672_v58 }
  0x88   : > { %3554 = vmatprep.subr.bf16.mxu0 %v3673_v24 }
  0x89   : > { %3573 = vmatpush3.bf16.msra.mxu1 %v3674_v5 }
  0x8a   : > { %3531 = vmatmul.mubr.msk.bf16.vlgmr.msra.gmra.mxu0 %vm616_vm0, %v4965_v26  ;;  %3574 = vmatprep.subr.bf16.mxu1 %v3676_v59 }
  0x8b   : > { %3555 = vmatpush3.bf16.msra.mxu0 %v3673_v24  ;;  %3534 = vmatprep.mubr.msk.bf16.mxu0 %vm616_vm0, %v4966_v60 }
  0x8c   : > { %3556 = vmatprep.subr.bf16.mxu0 %v3674_v5  ;;  %3551 = vmatmul.mubr.msk.bf16.gmra.mxu1 %vm616_vm0, %v3130_v23 }
  0x8d   : > { %3575 = vmatpush3.bf16.msra.mxu1 %v3676_v59  ;;  %3578 = vmatprep.mubr.msk.bf16.mxu1 %vm616_vm0, %v4967_v15 }
  0x8e   : > { %3576 = vmatprep.subr.bf16.mxu1 %v3678_v21 }
  0x8f   : > { %3557 = vmatpush3.bf16.msra.mxu0 %v3674_v5 }
  0x90   : > { %3558 = vmatprep.subr.bf16.mxu0 %v3676_v59 }
  0x91   : > { %3577 = vmatpush3.bf16.msra.mxu1 %v3678_v21 }
  0x92   : > { %3535 = vmatmul.mubr.msk.bf16.gmra.mxu0 %vm616_vm0, %v3121_v62  ;;  %3602 = vmatprep.subr.bf16.mxu1 %v3679_v47 }
  0x93   : > { %3559 = vmatpush3.bf16.msra.mxu0 %v3676_v59  ;;  %3562 = vmatprep.mubr.msk.bf16.mxu0 %vm616_vm0, %v4968_v43 }
  0x94   : > { %3560 = vmatprep.subr.bf16.mxu0 %v3678_v21  ;;  %3579 = vmatmul.mubr.msk.bf16.vlgmr.msra.gmra.mxu1 %vm616_vm0, %v4219_v30  ;;  %v4969_v30 = vld [vmem:[#allocation9_spill] sm:$0xff] }
  0x95   : > { %3603 = vmatpush3.bf16.msra.mxu1 %v3679_v47  ;;  %3582 = vmatprep.mubr.msk.bf16.mxu1 %vm616_vm0, %v4268_v55  ;;  %v3682_v55 = vld [vmem:[%s4909_s2 + $0x100] sm:$0xff]  }
  0x96   : > { %3604 = vmatprep.subr.bf16.mxu1 %v3680_v31 }
  0x97   : > { %3561 = vmatpush3.bf16.msra.mxu0 %v3678_v21 }
  0x98   : > { %3586 = vmatprep.subr.bf16.mxu0 %v3679_v47 }
  0x99   : > { %3605 = vmatpush3.bf16.msra.mxu1 %v3680_v31 }
  0x9a   : > { %3563 = vmatmul.mubr.msk.bf16.vlgmr.msra.gmra.mxu0 %vm616_vm0, %v4969_v30  ;;  %3606 = vmatprep.subr.bf16.mxu1 %v3681_v28 }
  0x9b   : > { %3587 = vmatpush3.bf16.msra.mxu0 %v3679_v47  ;;  %3566 = vmatprep.mubr.msk.bf16.mxu0 %vm616_vm0, %v4970_v42 }
  0x9c   : > { %3588 = vmatprep.subr.bf16.mxu0 %v3680_v31  ;;  %3583 = vmatmul.mubr.msk.bf16.gmra.mxu1 %vm616_vm0, %v3152_v2 }
  0x9d   : > { %3607 = vmatpush3.bf16.msra.mxu1 %v3681_v28  ;;  %3610 = vmatprep.mubr.msk.bf16.mxu1 %vm616_vm0, %v4294_v11  ;;  %v4972_v11 = vld [vmem:[#allocation16_spill] sm:$0xff] }
  0x9e   : > { %3608 = vmatprep.subr.bf16.mxu1 %v3682_v55 }
  0x9f   : > { %3589 = vmatpush3.bf16.msra.mxu0 %v3680_v31 }
  0xa0   : > { %3590 = vmatprep.subr.bf16.mxu0 %v3681_v28 }
  0xa1   : > { %3609 = vmatpush3.bf16.msra.mxu1 %v3682_v55 }
  0xa2   : > { %3567 = vmatmul.mubr.msk.bf16.gmra.mxu0 %vm616_vm0, %v3143_v38 }
  0xa3   : > { %3591 = vmatpush3.bf16.msra.mxu0 %v3681_v28  ;;  %3594 = vmatprep.mubr.msk.bf16.mxu0 %vm616_vm0, %v4347_v33 }
  0xa4   : > { %3592 = vmatprep.subr.bf16.mxu0 %v3682_v55  ;;  %3611 = vmatmul.mubr.msk.bf16.vlgmr.msra.gmra.mxu1 %vm616_vm0, %v4320_v20 }
  0xa5   : > { %3614 = vmatprep.mubr.msk.bf16.mxu1 %vm616_vm0, %v4363_v35 }
  0xa7   : > { %3593 = vmatpush3.bf16.msra.mxu0 %v3682_v55 }
  0xaa   : > { %3595 = vmatmul.mubr.msk.bf16.vlgmr.msra.gmra.mxu0 %vm616_vm0, %v4971_v34 }
  0xab   : > { %3598 = vmatprep.mubr.msk.bf16.mxu0 %vm616_vm0, %v4972_v11 }
  0xac   : > { %3615 = vmatmul.mubr.msk.bf16.gmra.mxu1 %vm616_vm0, %v3176_v52 }
  0xb2   : > { %3599 = vmatmul.mubr.msk.bf16.gmra.mxu0 %vm616_vm0, %v3167_v6 }
  0xdd   : > { %v3356_v20 = vpop.f32.mrf.mxu1 }
  0xdf   : > { %v784_v33 = vpop.f32.mrf.mxu1 }
  0xe1   : > { %v3357_v35 = vpop.f32.mrf.mxu1 }
  0xe3   : > { %v787_v9 = vpop.f32.mrf.mxu1  ;;  %v3340_v57 = vpop.f32.mrf.mxu0 }
  0xe4   : > { %v793_v4 = vadd.f32 %v3356_v20, %v3340_v57 }
  0xe5   : > { %v663_v45 = vpop.f32.mrf.mxu0  ;;  %v3360_v14 = vpop.f32.mrf.mxu1 }
  0xe6   : > { %v785_v40 = vadd.f32 %v784_v33, %v663_v45 }
  0xe7   : > { %v3341_v32 = vpop.f32.mrf.mxu0  ;;  %v800_v37 = vpop.f32.mrf.mxu1 }
  0xe8   : > { %v796_v27 = vadd.f32 %v3357_v35, %v3341_v32 }
  0xe9   : > { %v666_v10 = vpop.f32.mrf.mxu0  ;;  %v3361_v19 = vpop.f32.mrf.mxu1 }
  0xea   : > { %v788_v52 = vadd.f32 %v787_v9, %v666_v10 }
  0xeb   : > { %v803_v50 = vpop.f32.mrf.mxu1 }
  0xed   : > { %v3388_v63 = vpop.f32.mrf.mxu1 }
  0xef   : > { %v3344_v12 = vpop.f32.mrf.mxu0  ;;  %v970_v36 = vpop.f32.mrf.mxu1 }
  0xf0   : > { %v809_v6 = vadd.f32 %v3360_v14, %v3344_v12 }
  0xf1   : > { %v679_v58 = vpop.f32.mrf.mxu0  ;;  %v3389_v16 = vpop.f32.mrf.mxu1 }
  0xf2   : > { %v801_v39 = vadd.f32 %v800_v37, %v679_v58 }
  0xf3   : > { %v3345_v24 = vpop.f32.mrf.mxu0  ;;  %v973_v5 = vpop.f32.mrf.mxu1 }
  0xf4   : > { %v812_v17 = vadd.f32 %v3361_v19, %v3345_v24 }
  0xf5   : > { %v682_v0 = vpop.f32.mrf.mxu0  ;;  %v3392_v51 = vpop.f32.mrf.mxu1 }
  0xf6   : > { %v804_v7 = vadd.f32 %v803_v50, %v682_v0 }
  0xf7   : > { %v3372_v29 = vpop.f32.mrf.mxu0  ;;  %v986_v59 = vpop.f32.mrf.mxu1 }
  0xf8   : > { %v979_v23 = vadd.f32 %v3388_v63, %v3372_v29 }
  0xf9   : > { %v873_v49 = vpop.f32.mrf.mxu0  ;;  %v3393_v21 = vpop.f32.mrf.mxu1 }
  0xfa   : > { %v971_v54 = vadd.f32 %v970_v36, %v873_v49 }
  0xfb   : > { %v3373_v26 = vpop.f32.mrf.mxu0  ;;  %v989_v15 = vpop.f32.mrf.mxu1 }
  0xfc   : > { %v982_v60 = vadd.f32 %v3389_v16, %v3373_v26 }
  0xfd   : > { %v876_v22 = vpop.f32.mrf.mxu0 }
  0xfe   : > { %v974_v61 = vadd.f32 %v973_v5, %v876_v22 }
 0x102   : > { %v3376_v13 = vpop.f32.mrf.mxu0 }
 0x103   : > { %v995_v48 = vadd.f32 %v3392_v51, %v3376_v13  ;;  %v3420_v62 = vpop.f32.mrf.mxu1 }
 0x104   : > { %v889_v47 = vpop.f32.mrf.mxu0  ;;  %v1305_v25 = vadd.f32 %v3420_v62, %v979_v23 }
 0x105   : > { %v987_v8 = vadd.f32 %v986_v59, %v889_v47  ;;  %v1272_v44 = vpop.f32.mrf.mxu1 }
 0x106   : > { %v3377_v56 = vpop.f32.mrf.mxu0  ;;  %v1303_v31 = vadd.f32 %v1272_v44, %v971_v54 }
 0x107   : > { %v998_v43 = vadd.f32 %v3393_v21, %v3377_v56  ;;  %v3421_v18 = vpop.f32.mrf.mxu1 }
 0x108   : > { %v892_v1 = vpop.f32.mrf.mxu0  ;;  %v1306_v53 = vadd.f32 %v3421_v18, %v982_v60 }
 0x109   : > { %v990_v28 = vadd.f32 %v989_v15, %v892_v1  ;;  %v1275_v46 = vpop.f32.mrf.mxu1 }
 0x10a   : > { %v3404_v3 = vpop.f32.mrf.mxu0  ;;  %v1304_v2 = vadd.f32 %v1275_v46, %v974_v61 }
 0x10b   : > { %v1208_v30 = vadd.f32 %v3404_v3, %v793_v4 }
 0x10c   : > { %v1175_v55 = vpop.f32.mrf.mxu0  ;;  %v3424_v42 = vpop.f32.mrf.mxu1 }
 0x10d   : > { %v1206_v41 = vadd.f32 %v1175_v55, %v785_v40  ;;  %v1309_v38 = vadd.f32 %v3424_v42, %v995_v48 }
 0x10e   : > { %v3405_v34 = vpop.f32.mrf.mxu0  ;;  %v1288_v11 = vpop.f32.mrf.mxu1 }
 0x10f   : > { %v1209_v20 = vadd.f32 %v3405_v34, %v796_v27  ;;  %v1307_v33 = vadd.f32 %v1288_v11, %v987_v8 }
 0x110   : > { %v1178_v35 = vpop.f32.mrf.mxu0  ;;  %v3425_v9 = vpop.f32.mrf.mxu1 }
 0x111   : > { %v1207_v57 = vadd.f32 %v1178_v35, %v788_v52  ;;  %v1310_v45 = vadd.f32 %v3425_v9, %v998_v43 }
 0x112   : > { %v3408_v14 = vpop.f32.mrf.mxu0  ;;  %v1291_v32 = vpop.f32.mrf.mxu1 }
 0x113   : > { %v1212_v37 = vadd.f32 %v3408_v14, %v809_v6  ;;  %v1308_v10 = vadd.f32 %v1291_v32, %v990_v28 }
 0x114   : > { %v1191_v19 = vpop.f32.mrf.mxu0  ;;  %v3452_v50 = vpop.f32.mrf.mxu1 }
 0x115   : > { %v1210_v63 = vadd.f32 %v1191_v19, %v801_v39  ;;  %v4648_v4 = vadd.f32 %v3452_v50, %v1305_v25 }
 0x116   : > { %v3409_v12 = vpop.f32.mrf.mxu0  ;;  %v1487_v40 = vpop.f32.mrf.mxu1 }
 0x117   : > { %v1213_v36 = vadd.f32 %v3409_v12, %v812_v17  ;;  %v4650_v58 = vadd.f32 %v1487_v40, %v1303_v31 }
 0x118   : > { %v1194_v27 = vpop.f32.mrf.mxu0  ;;  %v3453_v16 = vpop.f32.mrf.mxu1 }
 0x119   : > { %v1211_v24 = vadd.f32 %v1194_v27, %v804_v7  ;;  %v4652_v5 = vadd.f32 %v3453_v16, %v1306_v53 }
 0x11a   : > { %v3436_v52 = vpop.f32.mrf.mxu0  ;;  %v1490_v0 = vpop.f32.mrf.mxu1 }
 0x11b   : > { %v4654_v51 = vadd.f32 %v3436_v52, %v1208_v30  ;;  %v4656_v6 = vadd.f32 %v1490_v0, %v1304_v2 }
 0x11c   : > { %v1396_v29 = vpop.f32.mrf.mxu0  ;;  %v3456_v39 = vpop.f32.mrf.mxu1 }
 0x11d   : > { %v4658_v59 = vadd.f32 %v1396_v29, %v1206_v41  ;;  %v4660_v23 = vadd.f32 %v3456_v39, %v1309_v38 }
 0x11e   : > { %v3437_v17 = vpop.f32.mrf.mxu0  ;;  %v1503_v49 = vpop.f32.mrf.mxu1 }
 0x11f   : > { %v4662_v54 = vadd.f32 %v3437_v17, %v1209_v20  ;;  %v4664_v26 = vadd.f32 %v1503_v49, %v1307_v33 }
 0x120   : > { %v1399_v7 = vpop.f32.mrf.mxu0  ;;  %v3457_v21 = vpop.f32.mrf.mxu1 }
 0x121   : > { %v4666_v60 = vadd.f32 %v1399_v7, %v1207_v57  ;;  %v4668_v22 = vadd.f32 %v3457_v21, %v1310_v45 }
 0x122   : > { %v3440_v61 = vpop.f32.mrf.mxu0  ;;  %v1506_v15 = vpop.f32.mrf.mxu1 }
 0x123   : > { %v4670_v13 = vadd.f32 %v3440_v61, %v1212_v37  ;;  %v1523_v48 = vadd.f32 %v1506_v15, %v1308_v10 }
 0x124   : > { %v1412_v62 = vpop.f32.mrf.mxu0  ;;  %v3484_v47 = vpop.f32.mrf.mxu1 }
 0x125   : > { %v4672_v25 = vadd.f32 %v1412_v62, %v1210_v63 }
 0x126   : > { %v3441_v8 = vpop.f32.mrf.mxu0  ;;  %v1728_v44 = vpop.f32.mrf.mxu1 }
 0x127   : > { %v4674_v56 = vadd.f32 %v3441_v8, %v1213_v36 }
 0x128   : > { %v1415_v31 = vpop.f32.mrf.mxu0  ;;  %v3485_v43 = vpop.f32.mrf.mxu1 }
 0x129   : > { %v1432_v18 = vadd.f32 %v1415_v31, %v1211_v24 }
 0x12a   : > { %v3468_v1 = vpop.f32.mrf.mxu0  ;;  %v1731_v53 = vpop.f32.mrf.mxu1 }
 0x12c   : > { %v1638_v28 = vpop.f32.mrf.mxu0  ;;  %v3488_v46 = vpop.f32.mrf.mxu1 }
 0x12e   : > { %v3469_v3 = vpop.f32.mrf.mxu0  ;;  %v1744_v2 = vpop.f32.mrf.mxu1 }
 0x130   : > { %v1641_v30 = vpop.f32.mrf.mxu0  ;;  %v3489_v55 = vpop.f32.mrf.mxu1 }
 0x132   : > { %v3472_v42 = vpop.f32.mrf.mxu0  ;;  %v1747_v41 = vpop.f32.mrf.mxu1 }
 0x133   : > { %v4676_v38 = vadd.f32 %v1747_v41, %v1523_v48 }
 0x134   : > { %v1654_v34 = vpop.f32.mrf.mxu0  ;;  %v3516_v11 = vpop.f32.mrf.mxu1 }
 0x135   : > { %4973 = vst [vmem:[#allocation8_spill] sm:$0xff] %v4676_v38 }
 0x136   : > { %v3473_v20 = vpop.f32.mrf.mxu0  ;;  %v1951_v33 = vpop.f32.mrf.mxu1 }
 0x138   : > { %v1657_v35 = vpop.f32.mrf.mxu0  ;;  %v3517_v9 = vpop.f32.mrf.mxu1 }
 0x139   : > { %v4678_v57 = vadd.f32 %v1657_v35, %v1432_v18 }
 0x13a   : > { %v3500_v45 = vpop.f32.mrf.mxu0  ;;  %v1954_v14 = vpop.f32.mrf.mxu1 }
 0x13b   : > { %4974 = vst [vmem:[#allocation4_spill] sm:$0xff] %v4678_v57 }
 0x13c   : > { %v1861_v32 = vpop.f32.mrf.mxu0  ;;  %v3520_v37 = vpop.f32.mrf.mxu1 }
 0x13e   : > { %v3501_v10 = vpop.f32.mrf.mxu0  ;;  %v1967_v19 = vpop.f32.mrf.mxu1 }
 0x140   : > { %v1864_v50 = vpop.f32.mrf.mxu0  ;;  %v3521_v63 = vpop.f32.mrf.mxu1 }
 0x142   : > { %v3504_v12 = vpop.f32.mrf.mxu0  ;;  %v1970_v40 = vpop.f32.mrf.mxu1 }
 0x144   : > { %v1877_v36 = vpop.f32.mrf.mxu0  ;;  %v3548_v27 = vpop.f32.mrf.mxu1 }
 0x146   : > { %v3505_v16 = vpop.f32.mrf.mxu0  ;;  %v2142_v24 = vpop.f32.mrf.mxu1 }
 0x148   : > { %v1880_v52 = vpop.f32.mrf.mxu0  ;;  %v3549_v0 = vpop.f32.mrf.mxu1 }
 0x14a   : > { %v3532_v29 = vpop.f32.mrf.mxu0  ;;  %v2145_v39 = vpop.f32.mrf.mxu1 }
 0x14c   : > { %v2063_v17 = vpop.f32.mrf.mxu0  ;;  %v3552_v49 = vpop.f32.mrf.mxu1 }
 0x14e   : > { %v4680_v7 = vpop.f32.mrf.mxu0  ;;  %v4682_v21 = vpop.f32.mrf.mxu1 }
 0x14f   : > { %4975 = vst [vmem:[#allocation5_spill] sm:$0xff] %v4680_v7  ;;  %4976 = vst [vmem:[#allocation10_spill] sm:$0xff] %v4682_v21 }
 0x150   : > { %v4684_v61 = vpop.f32.mrf.mxu0  ;;  %v4686_v15 = vpop.f32.mrf.mxu1 }
 0x151   : > { %4977 = vst [vmem:[#allocation2_spill] sm:$0xff] %v4684_v61  ;;  %4978 = vst [vmem:[#allocation12_spill] sm:$0xff] %v4686_v15  ;;  %v1761_v15 = vadd.f32 %v3484_v47, %v4648_v4  ;;  %v1762_v61 = vadd.f32 %v3485_v43, %v4652_v5  ;;  %v1765_v4 = vadd.f32 %v3488_v46, %v4660_v23 }
 0x152   : > { %v4688_v48 = vpop.f32.mrf.mxu0  ;;  %v4690_v62 = vpop.f32.mrf.mxu1  ;;  %v1766_v5 = vadd.f32 %v3489_v55, %v4668_v22  ;;  %v1676_v43 = vadd.f32 %v3473_v20, %v4674_v56  ;;  %v4987_v20 = vld [vmem:[#allocation4_spill] sm:$0xff] }
 0x153   : > { %4979 = vst [vmem:[#allocation13_spill] sm:$0xff] %v4688_v48  ;;  %4980 = vst [vmem:[#allocation3_spill] sm:$0xff] %v4690_v62  ;;  %v1759_v48 = vadd.f32 %v1728_v44, %v4650_v58  ;;  %v1671_v62 = vadd.f32 %v3468_v1, %v4654_v51  ;;  %v1763_v58 = vadd.f32 %v1744_v2, %v4664_v26 }
 0x154   : > { %v4692_v8 = vpop.f32.mrf.mxu0  ;;  %v3580_v31 = vpop.f32.mrf.mxu1  ;;  %v1675_v51 = vadd.f32 %v3472_v42, %v4670_v13  ;;  %v1984_v47 = vadd.f32 %v3516_v11, %v1761_v15  ;;  %v1988_v23 = vadd.f32 %v3520_v37, %v1765_v4  ;;  %v1899_v55 = vadd.f32 %v3505_v16, %v1676_v43 }
 0x155   : > { %4981 = vst [vmem:[#allocation7_spill] sm:$0xff] %v4692_v8  ;;  %v1669_v8 = vadd.f32 %v1638_v28, %v4658_v59  ;;  %v1673_v59 = vadd.f32 %v1654_v34, %v4672_v25  ;;  %v1894_v1 = vadd.f32 %v3500_v45, %v1671_v62  ;;  %v1986_v13 = vadd.f32 %v1967_v19, %v1763_v58  ;;  %v4986_v34 = vld [vmem:[#allocation8_spill] sm:$0xff] }
 0x156   : > { %v4694_v18 = vpop.f32.mrf.mxu0  ;;  %v2359_v41 = vpop.f32.mrf.mxu1  ;;  %v2175_v25 = vadd.f32 %v3548_v27, %v1984_v47  ;;  %v1898_v42 = vadd.f32 %v3504_v12, %v1675_v51  ;;  %v1987_v11 = vadd.f32 %v1970_v40, %v4986_v34  ;;  %v4729_v12 = vld [vmem:[%s4910_s3] ss:$0 sm:$0xff]  ;;  %v4988_v40 = vld [vmem:[#allocation5_spill] sm:$0xff] }
 0x157   : > { %4982 = vst [vmem:[#allocation14_spill] sm:$0xff] %v4694_v18  ;;  %v1760_v18 = vadd.f32 %v1731_v53, %v4656_v6  ;;  %v1982_v53 = vadd.f32 %v1951_v33, %v1759_v48  ;;  %v1892_v28 = vadd.f32 %v1861_v32, %v1669_v8  ;;  %v1896_v22 = vadd.f32 %v1877_v36, %v1673_v59  ;;  %v4989_v27 = vld [vmem:[#allocation10_spill] sm:$0xff] }
 0x158   : > { %v4696_v35 = vpop.f32.mrf.mxu0  ;;  %v4698_v57 = vpop.f32.mrf.mxu1  ;;  %v1897_v33 = vadd.f32 %v1880_v52, %v4987_v20  ;;  %v2096_v32 = vadd.f32 %v3532_v29, %v1894_v1  ;;  %v2177_v16 = vadd.f32 %v4989_v27, %v1986_v13 }
 0x159   : > { %4983 = vst [vmem:[#allocation6_spill] sm:$0xff] %v4696_v35  ;;  %v2094_v37 = vadd.f32 %v2063_v17, %v1892_v28  ;;  %v4992_v17 = vld [vmem:[#allocation12_spill] sm:$0xff] }
 0x15a   : > { %v4700_v7 = vpop.f32.mrf.mxu0  ;;  %v4702_v21 = vpop.f32.mrf.mxu1 }
 0x15b   : > { %4984 = vst [vmem:[#allocation9_spill] sm:$0xff] %v4700_v7  ;;  %4985 = vst [vmem:[#allocation11_spill] sm:$0xff] %v4702_v21  ;;  %v1672_v7 = vadd.f32 %v3469_v3, %v4662_v54  ;;  %v1670_v21 = vadd.f32 %v1641_v30, %v4666_v60  ;;  %v1985_v54 = vadd.f32 %v3517_v9, %v1762_v61 }
 0x15c   : > { %v4710_v38 = vpop.f32.mrf.mxu0  ;;  %v4712_v35 = vpop.f32.mrf.mxu1  ;;  %v1983_v3 = vadd.f32 %v1954_v14, %v1760_v18  ;;  %v1989_v30 = vadd.f32 %v3521_v63, %v1766_v5  ;;  %v2173_v9 = vadd.f32 %v2142_v24, %v1982_v53  ;;  %v2392_v14 = vadd.f32 %v3580_v31, %v2175_v25  ;;  %v4990_v24 = vld [vmem:[#allocation2_spill] sm:$0xff]  ;;  %v4994_v8 = vld [vmem:[#allocation7_spill] sm:$0xff] }
 0x15d   : > { %v1895_v60 = vadd.f32 %v3501_v10, %v1672_v7  ;;  %v1893_v2 = vadd.f32 %v1864_v50, %v1670_v21  ;;  %v2176_v45 = vadd.f32 %v3549_v0, %v1985_v54  ;;  %v2179_v50 = vadd.f32 %v3552_v49, %v1988_v23  ;;  %v4991_v21 = vld [vmem:[#allocation13_spill] sm:$0xff]  ;;  %v4993_v49 = vld [vmem:[#allocation3_spill] sm:$0xff] }
 0x15e   : > { %v3565_v6 = vpop.f32.mrf.mxu0  ;;  %v2375_v44 = vpop.f32.mrf.mxu1  ;;  %v2174_v10 = vadd.f32 %v2145_v39, %v1983_v3  ;;  %v2390_v7 = vadd.f32 %v2359_v41, %v2173_v9  ;;  %v2100_v29 = vadd.f32 %v4991_v21, %v1898_v42  ;;  %v2180_v39 = vadd.f32 %v4992_v17, %v1989_v30  ;;  %v4995_v58 = vld [vmem:[#allocation14_spill] sm:$0xff] }
 0x15f   : > { %v2097_v36 = vadd.f32 %v4988_v40, %v1895_v60  ;;  %v2095_v0 = vadd.f32 %v4990_v24, %v1893_v2  ;;  %v4737_v61 = vadd.f32 %v4993_v49, %v1987_v11  ;;  %v2098_v31 = vadd.f32 %v4994_v8, %v1896_v22 }
 0x160   : > { %v2284_v46 = vpop.f32.mrf.mxu0  ;;  %v3585_v26 = vpop.f32.mrf.mxu1  ;;  %v2393_v18 = vadd.f32 %v4698_v57, %v2176_v45  ;;  %v2101_v51 = vadd.f32 %v4995_v58, %v1899_v55  ;;  %v4996_v59 = vld [vmem:[#allocation6_spill] sm:$0xff]  ;;  %v2312_v60 = vadd.f32 %v4710_v38, %v2094_v37  ;;  %v2396_v30 = vadd.f32 %v4712_v35, %v2179_v50 }
 0x161   : > { %v4746_v5 = vadd.f32 %v4996_v59, %v1897_v33  ;;  %v2315_v2 = vadd.f32 %v3565_v6, %v2097_v36  ;;  %v2313_v13 = vadd.f32 %v2284_v46, %v2095_v0  ;;  %v2394_v25 = vadd.f32 %v2375_v44, %v2177_v16 }
 0x162   : > { %v3568_v15 = vpop.f32.mrf.mxu0  ;;  %v4723_v56 = vpop.f32.mrf.mxu1  ;;  %v4997_v47 = vld [vmem:[#allocation9_spill] sm:$0xff]  ;;  %v4998_v1 = vld [vmem:[#allocation11_spill] sm:$0xff]  ;;  %v2397_v9 = vadd.f32 %v3585_v26, %v2180_v39 }
 0x163   : > { %v2314_v43 = vadd.f32 %v4997_v47, %v2096_v32  ;;  %v2391_v53 = vadd.f32 %v4998_v1, %v2174_v10  ;;  %v2318_v38 = vadd.f32 %v3568_v15, %v2100_v29 }
 0x164   : > { %v2297_v19 = vpop.f32.mrf.mxu0  ;;  %v3612_v63 = vpop.f32.mrf.mxu1 }
 0x165   : > { %v2591_v52 = vadd.f32 %v3612_v63, %v2392_v14  ;;  %v2316_v33 = vadd.f32 %v2297_v19, %v2098_v31 }
 0x166   : > { %v3569_v48 = vpop.f32.mrf.mxu0  ;;  %v2558_v62 = vpop.f32.mrf.mxu1 }
 0x167   : > { %v4742_v4 = vadd.f32 %v4729_v12, %v2591_v52  ;;  %v2589_v41 = vadd.f32 %v2558_v62, %v2390_v7  ;;  %v2319_v46 = vadd.f32 %v3569_v48, %v2101_v51 }
 0x168   : > { %v4750_v54 = vpop.f32.mrf.mxu0  ;;  %v3613_v28 = vpop.f32.mrf.mxu1 }
 0x169   : > { %v2670_v57 = vsub.f32 0.0, %v4742_v4  ;;  %v4755_v3 = vadd.f32 %v4729_v12, %v2589_v41  ;;  %v2592_v23 = vadd.f32 %v3613_v28, %v2393_v18 }
 0x16a   : > { %v3596_v42 = vpop.f32.mrf.mxu0  ;;  %v2561_v22 = vpop.f32.mrf.mxu1 }
 0x16b   : > { %v2680_v55 = vmul.f32 1.442695, %v2670_v57  ;;  %v2513_v34 = vadd.f32 %v3596_v42, %v2314_v43  ;;  %v2668_v11 = vsub.f32 0.0, %v4755_v3  ;;  %v4760_v20 = vadd.f32 %v4729_v12, %v2592_v23 }
 0x16c   : > { %v2480_v45 = vpop.f32.mrf.mxu0  ;;  %v2590_v14 = vadd.f32 %v2561_v22, %v2391_v53  ;;  %v3616_v32 = vpop.f32.mrf.mxu1 }
 0x16d   : > { %3683 = vpow2.f32 %v2680_v55  ;;  %v4763_v6 = vadd.f32 %v4729_v12, %v2513_v34  ;;  %v2676_v35 = vmul.f32 1.442695, %v2668_v11  ;;  %v2511_v44 = vadd.f32 %v2480_v45, %v2312_v60 }
 0x16e   : > { %v2671_v37 = vsub.f32 0.0, %v4760_v20  ;;  %v3597_v10 = vpop.f32.mrf.mxu0  ;;  %v4767_v50 = vadd.f32 %v4729_v12, %v2590_v14  ;;  %v2595_v63 = vadd.f32 %v3616_v32, %v2396_v30  ;;  %v2574_v15 = vpop.f32.mrf.mxu1  ;;  %v2317_v34 = vadd.f32 %v4750_v54, %v4746_v5 }
 0x16f   : > { %v2614_v26 = vsub.f32 0.0, %v4763_v6  ;;  %3685 = vpow2.f32 %v2676_v35  ;;  %v4771_v19 = vadd.f32 %v4729_v12, %v2511_v44  ;;  %v2514_v40 = vadd.f32 %v3597_v10, %v2315_v2 }
 0x170   : > { %v2682_v36 = vmul.f32 1.442695, %v2671_v37  ;;  %v2669_v27 = vsub.f32 0.0, %v4767_v50  ;;  %v2483_v16 = vpop.f32.mrf.mxu0  ;;  %v4775_v7 = vadd.f32 %v4729_v12, %v2595_v63  ;;  %v2593_v52 = vadd.f32 %v2574_v15, %v2394_v25  ;;  %v3617_v18 = vpop.f32.mrf.mxu1 }
 0x171   : > { %v2624_v24 = vmul.f32 1.442695, %v2614_v26  ;;  %v2612_v0 = vsub.f32 0.0, %v4771_v19  ;;  %v4779_v21 = vadd.f32 %v4729_v12, %v2514_v40  ;;  %v2512_v29 = vadd.f32 %v2483_v16, %v2313_v13 }
 0x172   : > { %3687 = vpow2.f32 %v2682_v36  ;;  %v2678_v17 = vmul.f32 1.442695, %v2669_v27  ;;  %v2674_v39 = vsub.f32 0.0, %v4775_v7  ;;  %v3600_v49 = vpop.f32.mrf.mxu0  ;;  %v4783_v48 = vadd.f32 %v4729_v12, %v2593_v52  ;;  %v2577_v30 = vpop.f32.mrf.mxu1 }
 0x173   : > { %3689 = vpow2.f32 %v2624_v24  ;;  %v2620_v62 = vmul.f32 1.442695, %v2612_v0  ;;  %v2615_v8 = vsub.f32 0.0, %v4779_v21  ;;  %v4787_v31 = vadd.f32 %v4729_v12, %v2512_v29 }
 0x174   : > { %3691 = vpow2.f32 %v2678_v17  ;;  %v2688_v41 = vmul.f32 1.442695, %v2674_v39  ;;  %v2517_v58 = vadd.f32 %v3600_v49, %v2318_v38  ;;  %v2672_v51 = vsub.f32 0.0, %v4783_v48  ;;  %v2496_v59 = vpop.f32.mrf.mxu0 }
 0x175   : > { %3693 = vpow2.f32 %v2620_v62  ;;  %v2626_v47 = vmul.f32 1.442695, %v2615_v8  ;;  %v2613_v43 = vsub.f32 0.0, %v4787_v31  ;;  %v2515_v1 = vadd.f32 %v2496_v59, %v2316_v33 }
 0x176   : > { %3695 = vpow2.f32 %v2688_v41  ;;  %v4792_v53 = vadd.f32 %v4729_v12, %v2517_v58  ;;  %v2684_v28 = vmul.f32 1.442695, %v2672_v51  ;;  %v2596_v60 = vadd.f32 %v3617_v18, %v2397_v9  ;;  %v3601_v57 = vpop.f32.mrf.mxu0 }
 0x177   : > { %3697 = vpow2.f32 %v2626_v47  ;;  %v2622_v23 = vmul.f32 1.442695, %v2613_v43  ;;  %v4795_v2 = vadd.f32 %v4729_v12, %v2515_v1  ;;  %v2518_v13 = vadd.f32 %v3601_v57, %v2319_v46 }
 0x178   : > { %v2395_v25 = vadd.f32 %v4723_v56, %v4737_v61  ;;  %v2618_v42 = vsub.f32 0.0, %v4792_v53  ;;  %3699 = vpow2.f32 %v2684_v28  ;;  %v4801_v22 = vadd.f32 %v4729_v12, %v2596_v60  ;;  %v2499_v55 = vpop.f32.mrf.mxu0 }
 0x179   : > { %3701 = vpow2.f32 %v2622_v23  ;;  %v2616_v11 = vsub.f32 0.0, %v4795_v2  ;;  %v4807_v38 = vadd.f32 %v4729_v12, %v2518_v13  ;;  %v2516_v35 = vadd.f32 %v2499_v55, %v2317_v34 }
 0x17a   : > { %v3684_v33 = vpop.eup %3683  ;;  %v2632_v9 = vmul.f32 1.442695, %v2618_v42  ;;  %v2675_v56 = vsub.f32 0.0, %v4801_v22  ;;  %v2594_v61 = vadd.f32 %v2577_v30, %v2395_v25 }
 0x17b   : > { %v2694_v45 = vadd.f32 1.0, %v3684_v33  ;;  %v2628_v14 = vmul.f32 1.442695, %v2616_v11  ;;  %v2619_v32 = vsub.f32 0.0, %v4807_v38  ;;  %v4815_v63 = vadd.f32 %v4729_v12, %v2516_v35 }
 0x17c   : > { %v3686_v44 = vpop.eup %3685  ;;  %3703 = vpow2.f32 %v2632_v9  ;;  %v2690_v46 = vmul.f32 1.442695, %v2675_v56  ;;  %v4812_v37 = vadd.f32 %v4729_v12, %v2594_v61 }
 0x17d   : > { %3705 = vrcp.f32 %v2694_v45  ;;  %v2692_v5 = vadd.f32 1.0, %v3686_v44  ;;  %v2634_v54 = vmul.f32 1.442695, %v2619_v32  ;;  %v2617_v29 = vsub.f32 0.0, %v4815_v63 }
 0x17e   : > { %3707 = vpow2.f32 %v2628_v14  ;;  %v2673_v52 = vsub.f32 0.0, %v4812_v37 }
 0x17f   : > { %v3688_v10 = vpop.eup %3687  ;;  %3709 = vrcp.f32 %v2692_v5  ;;  %v2630_v58 = vmul.f32 1.442695, %v2617_v29 }
 0x180   : > { %v3690_v15 = vpop.eup %3689  ;;  %v2695_v26 = vadd.f32 1.0, %v3688_v10  ;;  %3711 = vpow2.f32 %v2690_v46  ;;  %v2686_v18 = vmul.f32 1.442695, %v2673_v52 }
 0x181   : > { %v3692_v40 = vpop.eup %3691  ;;  %v2638_v36 = vadd.f32 1.0, %v3690_v15  ;;  %3713 = vpow2.f32 %v2634_v54 }
 0x182   : > { %v3694_v27 = vpop.eup %3693  ;;  %3715 = vrcp.f32 %v2695_v26  ;;  %v2693_v16 = vadd.f32 1.0, %v3692_v40 }
 0x183   : > { %v3696_v24 = vpop.eup %3695  ;;  %3717 = vrcp.f32 %v2638_v36  ;;  %v2636_v0 = vadd.f32 1.0, %v3694_v27 }
 0x184   : > { %v3698_v17 = vpop.eup %3697  ;;  %3719 = vrcp.f32 %v2693_v16  ;;  %v2698_v12 = vadd.f32 1.0, %v3696_v24 }
 0x185   : > { %v3700_v39 = vpop.eup %3699  ;;  %3721 = vrcp.f32 %v2636_v0  ;;  %v2639_v49 = vadd.f32 1.0, %v3698_v17 }
 0x186   : > { %v3702_v62 = vpop.eup %3701  ;;  %3723 = vrcp.f32 %v2698_v12  ;;  %v2696_v8 = vadd.f32 1.0, %v3700_v39 }
 0x187   : > { %3725 = vrcp.f32 %v2639_v49  ;;  %v2637_v41 = vadd.f32 1.0, %v3702_v62 }
 0x188   : > { %3727 = vrcp.f32 %v2696_v8 }
 0x189   : > { %v3704_v51 = vpop.eup %3703  ;;  %3729 = vrcp.f32 %v2637_v41 }
 0x18a   : > { %v3706_v59 = vpop.eup %3705  ;;  %v2642_v47 = vadd.f32 1.0, %v3704_v51  ;;  %3731 = vpow2.f32 %v2686_v18 }
 0x18b   : > { %v3708_v43 = vpop.eup %3707  ;;  %v4821_v1 = vmul.f32 %v3706_v59, %v4742_v4  ;;  %3733 = vpow2.f32 %v2630_v58 }
 0x18c   : > { %v3710_v28 = vpop.eup %3709  ;;  %3735 = vrcp.f32 %v2642_v47  ;;  %v2640_v60 = vadd.f32 1.0, %v3708_v43 }
 0x18d   : > { %v3712_v57 = vpop.eup %3711  ;;  %v2735_v23 = vpack.c.bf16 %v4821_v1, %v4821_v1  ;;  %v2708_v4 = vmul.f32 %v3710_v28, %v4755_v3 }
 0x18e   : > { %v3714_v13 = vpop.eup %3713  ;;  %3737 = vrcp.f32 %v2640_v60  ;;  %v2699_v30 = vadd.f32 1.0, %v3712_v57 }
 0x18f   : > { %v3716_v25 = vpop.eup %3715  ;;  %2743 = vst.msk [vmem:[%s4828_s18 + $0x8] sm:$0xf] %vm2724_vm7, %v2735_v23  ;;  %v2733_v42 = vpack.c.bf16 %v2708_v4, %v2708_v4  ;;  %v2643_v55 = vadd.f32 1.0, %v3714_v13 }
 0x190   : > { %v3718_v34 = vpop.eup %3717  ;;  %v2711_v11 = vmul.f32 %v3716_v25, %v4760_v20  ;;  %3739 = vrcp.f32 %v2699_v30 }
 0x191   : > { %v3720_v33 = vpop.eup %3719  ;;  %v2654_v9 = vmul.f32 %v3718_v34, %v4763_v6  ;;  %2741 = vst.msk [vmem:[%s4828_s18] sm:$0xf] %vm2724_vm7, %v2733_v42  ;;  %3741 = vrcp.f32 %v2643_v55 }
 0x192   : > { %v3722_v3 = vpop.eup %3721  ;;  %v2736_v56 = vpack.c.bf16 %v2711_v11, %v2711_v11  ;;  %v2709_v61 = vmul.f32 %v3720_v33, %v4767_v50 }
 0x193   : > { %v3724_v20 = vpop.eup %3723  ;;  %v2718_v45 = vpack.c.bf16 %v2654_v9, %v2654_v9  ;;  %v2751_v14 = vsub.f32 %v2654_v9, %v4821_v1  ;;  %v2652_v6 = vmul.f32 %v3722_v3, %v4771_v19 }
 0x194   : > { %v3726_v32 = vpop.eup %3725  ;;  %2744 = vst.msk [vmem:[%s4828_s18 + $0xc] sm:$0xf] %vm2724_vm7, %v2736_v56  ;;  %v2734_v35 = vpack.c.bf16 %v2709_v61, %v2709_v61  ;;  %v4852_v44 = vmul.f32 %v3724_v20, %v4775_v7 }
 0x195   : > { %v3728_v46 = vpop.eup %3727  ;;  %2727 = vst.msk [vmem:[%s4844_s24 + $0x8] sm:$0xf] %vm2724_vm7, %v2718_v45  ;;  %v2716_v5 = vpack.c.bf16 %v2652_v6, %v2652_v6  ;;  %v2749_v50 = vsub.f32 %v2652_v6, %v2708_v4  ;;  %v2655_v54 = vmul.f32 %v3726_v32, %v4779_v21 }
 0x196   : > { %v3730_v10 = vpop.eup %3729  ;;  %2742 = vst.msk [vmem:[%s4828_s18 + $0x4] sm:$0xf] %vm2724_vm7, %v2734_v35  ;;  %v2739_v19 = vpack.c.bf16 %v4852_v44, %v4852_v44  ;;  %v2712_v15 = vmul.f32 %v3728_v46, %v4783_v48 }
 0x197   : > { %v3732_v26 = vpop.eup %3731  ;;  %2725 = vst.msk [vmem:[%s4844_s24] sm:$0xf] %vm2724_vm7, %v2716_v5  ;;  %v2719_v7 = vpack.c.bf16 %v2655_v54, %v2655_v54  ;;  %v2752_v40 = vsub.f32 %v2655_v54, %v2711_v11  ;;  %v2653_v27 = vmul.f32 %v3730_v10, %v4787_v31  ;;  %v2757_v24 = vand.u32 2147483647, %v2749_v50 }
 0x198   : > { %v3734_v36 = vpop.eup %3733  ;;  %2747 = vst.msk [vmem:[%s4828_s18 + $0x18] sm:$0xf] %vm2724_vm7, %v2739_v19  ;;  %v2737_v21 = vpack.c.bf16 %v2712_v15, %v2712_v15  ;;  %v2697_v16 = vadd.f32 1.0, %v3732_v26  ;;  %v2759_v31 = vand.u32 2147483647, %v2751_v14 }
 0x199   : > { %v3736_v52 = vpop.eup %3735  ;;  %2728 = vst.msk [vmem:[%s4844_s24 + $0xc] sm:$0xf] %vm2724_vm7, %v2719_v7  ;;  %v2641_v0 = vadd.f32 1.0, %v3734_v36  ;;  %v2717_v48 = vpack.c.bf16 %v2653_v27, %v2653_v27  ;;  %v2750_v29 = vsub.f32 %v2653_v27, %v2709_v61  ;;  %v2760_v41 = vand.u32 2147483647, %v2752_v40 }
 0x19a   : > { %v2658_v17 = vmul.f32 %v3736_v52, %v4792_v53  ;;  %2745 = vst.msk [vmem:[%s4828_s18 + $0x10] sm:$0xf] %vm2724_vm7, %v2737_v21  ;;  %3743 = vrcp.f32 %v2697_v16  ;;  %v2766_v53 = vsel %vm2765_vm8, %v2757_v24, 0.0  ;;  %v2769_v28 = vsel %vm2765_vm8, %v2759_v31, 0.0 }
 0x19b   : > { %v3738_v12 = vpop.eup %3737  ;;  %3745 = vrcp.f32 %v2641_v0  ;;  %2726 = vst.msk [vmem:[%s4844_s24 + $0x4] sm:$0xf] %vm2724_vm7, %v2717_v48  ;;  %v2758_v39 = vand.u32 2147483647, %v2750_v29  ;;  %v2771_v30 = vsel %vm2765_vm8, %v2760_v41, 0.0 }
 0x19c   : > { %v2722_v49 = vpack.c.bf16 %v2658_v17, %v2658_v17  ;;  %v2656_v62 = vmul.f32 %v3738_v12, %v4795_v2  ;;  %v2755_v8 = vsub.f32 %v2658_v17, %v4852_v44 }
 0x19d   : > { %v3740_v18 = vpop.eup %3739  ;;  %v2767_v51 = vsel %vm2765_vm8, %v2758_v39, 0.0 }
 0x19e   : > { %v3742_v58 = vpop.eup %3741  ;;  %2731 = vst.msk [vmem:[%s4844_s24 + $0x18] sm:$0xf] %vm2724_vm7, %v2722_v49  ;;  %v2720_v59 = vpack.c.bf16 %v2656_v62, %v2656_v62  ;;  %v2753_v47 = vsub.f32 %v2656_v62, %v2712_v15  ;;  %v2715_v43 = vmul.f32 %v3740_v18, %v4801_v22  ;;  %v2768_v1 = vadd.f32 %v2767_v51, %v2766_v53 }
 0x19f   : > { %v2659_v2 = vmul.f32 %v3742_v58, %v4807_v38  ;;  %v2763_v61 = vand.u32 2147483647, %v2755_v8 }
 0x1a0   : > { %2729 = vst.msk [vmem:[%s4844_s24 + $0x10] sm:$0xf] %vm2724_vm7, %v2720_v59  ;;  %v2761_v60 = vand.u32 2147483647, %v2753_v47  ;;  %v2740_v57 = vpack.c.bf16 %v2715_v43, %v2715_v43  ;;  %v2770_v13 = vadd.f32 %v2769_v28, %v2768_v1 }
 0x1a1   : > { %v2723_v23 = vpack.c.bf16 %v2659_v2, %v2659_v2  ;;  %v2756_v4 = vsub.f32 %v2659_v2, %v2715_v43  ;;  %v2777_v6 = vsel %vm2765_vm8, %v2763_v61, 0.0 }
 0x1a2   : > { %2748 = vst.msk [vmem:[%s4828_s18 + $0x1c] sm:$0xf] %vm2724_vm7, %v2740_v57  ;;  %v2772_v22 = vadd.f32 %v2771_v30, %v2770_v13  ;;  %v2773_v38 = vsel %vm2765_vm8, %v2761_v60, 0.0 }
 0x1a3   : > { %2732 = vst.msk [vmem:[%s4844_s24 + $0x1c] sm:$0xf] %vm2724_vm7, %v2723_v23  ;;  %v2764_v20 = vand.u32 2147483647, %v2756_v4 }
 0x1a4   : > { %v2774_v25 = vadd.f32 %v2773_v38, %v2772_v22 }
 0x1a7   : > { %v3744_v42 = vpop.eup %3743 }
 0x1a8   : > { %v3746_v55 = vpop.eup %3745  ;;  %v2713_v34 = vmul.f32 %v3744_v42, %v4812_v37  ;;  %v2779_v37 = vsel %vm2765_vm8, %v2764_v20, 0.0 }
 0x1a9   : > { %v2657_v11 = vmul.f32 %v3746_v55, %v4815_v63 }
 0x1aa   : > { %v2738_v33 = vpack.c.bf16 %v2713_v34, %v2713_v34 }
 0x1ab   : > { %v2721_v9 = vpack.c.bf16 %v2657_v11, %v2657_v11  ;;  %v2754_v3 = vsub.f32 %v2657_v11, %v2713_v34 }
 0x1ac   : > { %2746 = vst.msk [vmem:[%s4828_s18 + $0x14] sm:$0xf] %vm2724_vm7, %v2738_v33 }
 0x1ad   : > { %2730 = vst.msk [vmem:[%s4844_s24 + $0x14] sm:$0xf] %vm2724_vm7, %v2721_v9  ;;  %v2762_v56 = vand.u32 2147483647, %v2754_v3 }
 0x1af   : > { %v2775_v45 = vsel %vm2765_vm8, %v2762_v56, 0.0 }
 0x1b0   : > { %v2776_v14 = vadd.f32 %v2775_v45, %v2774_v25 }
 0x1b2   : > { %v2778_v32 = vadd.f32 %v2777_v6, %v2776_v14 }
 0x1b4   : > { %v2780_v63 = vadd.f32 %v2779_v37, %v2778_v32 }
 0x1b6   : > { %2781 = vadd.xlane.f32.xlu0 %v2780_v63 }
 0x23f   : > { %v2782_v35 = vpop.xlane.xlu0 %2781 }
 0x240   : > { %v2783_v44 = vrot.slane %v2782_v35, 4 }
 0x242   : > { %v2784_v46 = vadd.f32 %v2783_v44, %v2782_v35 }
 0x244   : > { %v2785_v5 = vrot.slane %v2784_v46, 2 }
 0x246   : > { %v2786_v50 = vadd.f32 %v2785_v5, %v2784_v46 }
 0x248   : > { %v2787_v54 = vrot.slane %v2786_v50, 1 }
 0x24a   : > { %v2788_v10 = vadd.f32 %v2787_v54, %v2786_v50 }
 0x24c   : > { %3619 = vpush %v2788_v10 }
 0x27d   : > { %s3620_s27 = spop %3619 }
 0x27e   : > { %v2790_v19 = vstv %s3620_s27 }
 0x27f   : > { %2791 = vst [vmem:[%s294_s26] sm:$0xff] %v2790_v19 }
 0x280 PF: > { %s17_s21 = sadd.s32 1, %s3753_s21  }
 0x281   : > { %p14_p4 = scmp.ge.s32.totalorder %s17_s21, 4  }
 0x283   :  { %16 = sbr.rel (!%p14_p4) target bundleno = 1 (0x1), region = 101 }

// kernel: effic_loss.8
= control target key start
LH: loop header
LB: loop body
LE: loop exit
PB: predicated region body
PF: predicated region fallthrough
CT: control target
= control target key end

     0   :  { %vm210_vm0 = vcmask 261120   ;;  %vm521_vm1 = vcmask 388096   ;;  %vm554_vm2 = vcmask 392192   ;;  %s995_s2 = inlined_call_operand.vmem [shape: bf16[288,48], index: 2, kind: input, shape index: {}]   ;;  %s996_s0 = inlined_call_operand.vmem [shape: bf16[32,288], index: 0, kind: input, shape index: {}]   ;;  %s997_s1 = inlined_call_operand.vmem [shape: bf16[32,288], index: 1, kind: input, shape index: {}]   ;;  %s998_s3 = inlined_call_operand.vmem [shape: f32[1,48], index: 3, kind: input, shape index: {}]   ;;  %s999_s4 = inlined_call_operand.vmem [shape: bf16[32,48], index: 4, kind: output, shape index: {0}]   ;;  %s1000_s5 = inlined_call_operand.vmem [shape: bf16[32,48], index: 5, kind: output, shape index: {1}]   ;;  %s1001_s6 = inlined_call_operand.vmem [shape: f32[1,8,128], index: 6, kind: output, shape index: {2}]  }
   0x1   :  { %v718_v0 = vld [vmem:[%s995_s2 + $0x78] sm:$0xff]   ;;  %v825_v1 = vld [vmem:[%s995_s2 + $0x88] sm:$0xff]   ;;  %v721_v3 = vld [vmem:[%s995_s2 + $0x70] sm:$0xff]  }
   0x2   :  { %636 = vmatprep.subr.bf16.mxu0 %v718_v0  ;;  %v720_v2 = vld [vmem:[%s995_s2 + $0x38] sm:$0xff]   ;;  %700 = vmatprep.subr.bf16.mxu1 %v825_v1  ;;  %v838_v4 = vld [vmem:[%s995_s2 + $0x80] sm:$0xff]   ;;  %v723_v5 = vld [vmem:[%s995_s2 + $0x30] sm:$0xff]  }
   0x3   :  { %637 = vmatpush3.bf16.msra.mxu0 %v720_v2  ;;  %701 = vmatpush3.bf16.msra.mxu1 %v825_v1  ;;  %v724_v6 = vld [vmem:[%s996_s0 + $0x8] ss:$12 sps:$4 sm:$0xff]   ;;  %v726_v8 = vld [vmem:[%s996_s0 + $0x20] ss:$12 sps:$4 sm:$0xff]   ;;  %v730_v12 = vld [vmem:[%s995_s2 + $0x58] sm:$0xff]  }
   0x4   :  { %638 = vmatprep.subr.bf16.mxu0 %v721_v3  ;;  %702 = vmatprep.subr.bf16.mxu1 %v838_v4  ;;  %v725_v7 = vld [vmem:[%s995_s2 + $0x68] sm:$0xff]   ;;  %v728_v10 = vld [vmem:[%s995_s2 + $0x60] sm:$0xff]   ;;  %v731_v13 = vld [vmem:[%s995_s2 + $0x18] sm:$0xff]  }
   0x5   :  { %704 = vmatprep.mubr.msk.bf16.mxu1 %vm210_vm0, %v724_v6  ;;  %v727_v9 = vld [vmem:[%s995_s2 + $0x28] sm:$0xff]   ;;  %v729_v11 = vld [vmem:[%s995_s2 + $0x20] sm:$0xff]   ;;  %v732_v14 = vld [vmem:[%s995_s2 + $0x50] sm:$0xff]  }
   0x6   :  { %v733_v15 = vld [vmem:[%s995_s2 + $0x10] sm:$0xff]   ;;  %v734_v16 = vld [vmem:[%s995_s2 + $0x48] sm:$0xff]   ;;  %v736_v20 = vld [vmem:[%s995_s2 + $0x40] sm:$0xff]  }
   0x7   :  { %639 = vmatpush3.bf16.msra.mxu0 %v723_v5  ;;  %703 = vmatpush3.bf16.msra.mxu1 %v838_v4  ;;  %v740_v17 = vld [vmem:[%s996_s0 + $0x4] ss:$12 sps:$4 sm:$0xff]   ;;  %v735_v19 = vld [vmem:[%s995_s2 + $0x8] sm:$0xff]   ;;  %v585_v34 = vld [vmem:[%s998_s3] ss:$0 sm:$0xff] }
   0x8   :  { %640 = vmatprep.subr.bf16.mxu0 %v725_v7  ;;  %668 = vmatprep.subr.bf16.mxu1 %v718_v0  ;;  %v745_v18 = vld [vmem:[%s997_s1 + $0x4] ss:$12 sps:$4 sm:$0xff]   ;;  %v738_v22 = vld [vmem:[%s996_s0] ss:$12 sps:$4 sm:$0xff]   ;;  %v741_v23 = vld [vmem:[%s996_s0 + $0x1c] ss:$12 sps:$4 sm:$0xff]  }
   0x9   :  { %249 = vmatprep.mubr.bf16.mxu0 %v740_v17  ;;  %v737_v21 = vld [vmem:[%s995_s2] sm:$0xff]   ;;  %v747_v26 = vld [vmem:[%s997_s1 + $0x1c] ss:$12 sps:$4 sm:$0xff]  }
   0xa   :  { %705 = vmatmul.mubr.msk.bf16.vlgmr.msra.gmra.mxu1 %vm210_vm0, %v726_v8  ;;  %v743_v24 = vld [vmem:[%s997_s1] ss:$12 sps:$4 sm:$0xff]   ;;  %v746_v25 = vld [vmem:[%s996_s0 + $0x18] ss:$12 sps:$4 sm:$0xff]   ;;  %v749_v27 = vld [vmem:[%s997_s1 + $0x8] ss:$12 sps:$4 sm:$0xff]  }
   0xb   :  { %641 = vmatpush3.bf16.msra.mxu0 %v727_v9  ;;  %669 = vmatpush3.bf16.msra.mxu1 %v720_v2  ;;  %v750_v28 = vld [vmem:[%s997_s1 + $0x18] ss:$12 sps:$4 sm:$0xff]   ;;  %v751_v29 = vld [vmem:[%s997_s1 + $0x20] ss:$12 sps:$4 sm:$0xff]  }
   0xc   :  { %642 = vmatprep.subr.bf16.mxu0 %v728_v10  ;;  %670 = vmatprep.subr.bf16.mxu1 %v721_v3 }
   0xd   :  { %391 = vmatprep.mubr.bf16.mxu1 %v745_v18 }
   0xf   :  { %643 = vmatpush3.bf16.msra.mxu0 %v729_v11  ;;  %671 = vmatpush3.bf16.msra.mxu1 %v723_v5 }
  0x10   :  { %644 = vmatprep.subr.bf16.mxu0 %v730_v12  ;;  %672 = vmatprep.subr.bf16.mxu1 %v725_v7 }
  0x13   :  { %645 = vmatpush3.bf16.msra.mxu0 %v731_v13  ;;  %673 = vmatpush3.bf16.msra.mxu1 %v727_v9 }
  0x14   :  { %646 = vmatprep.subr.bf16.mxu0 %v732_v14  ;;  %674 = vmatprep.subr.bf16.mxu1 %v728_v10 }
  0x17   :  { %647 = vmatpush3.bf16.msra.mxu0 %v733_v15  ;;  %675 = vmatpush3.bf16.msra.mxu1 %v729_v11 }
  0x18   :  { %648 = vmatprep.subr.bf16.mxu0 %v734_v16  ;;  %676 = vmatprep.subr.bf16.mxu1 %v730_v12 }
  0x1b   :  { %649 = vmatpush3.bf16.msra.mxu0 %v735_v19  ;;  %677 = vmatpush3.bf16.msra.mxu1 %v731_v13 }
  0x1c   :  { %650 = vmatprep.subr.bf16.mxu0 %v736_v20  ;;  %678 = vmatprep.subr.bf16.mxu1 %v732_v14 }
  0x1f   :  { %651 = vmatpush3.bf16.msra.mxu0 %v737_v21  ;;  %679 = vmatpush3.bf16.msra.mxu1 %v733_v15 }
  0x20   :  { %680 = vmatprep.subr.bf16.mxu1 %v734_v16  ;;  %708 = vmatprep.subr.bf16.mxu0 %v825_v1 }
  0x22   :  { %250 = vmatmul.mubr.bf16.vlgmr.msra.gmra.mxu0 %v738_v22 }
  0x23   :  { %681 = vmatpush3.bf16.msra.mxu1 %v735_v19  ;;  %709 = vmatpush3.bf16.msra.mxu0 %v825_v1 }
  0x24   :  { %682 = vmatprep.subr.bf16.mxu1 %v736_v20  ;;  %257 = vmatprep.mubr.bf16.mxu0 %v741_v23 }
  0x25   :  { %710 = vmatprep.subr.bf16.mxu0 %v838_v4 }
  0x27   :  { %683 = vmatpush3.bf16.msra.mxu1 %v737_v21  ;;  %711 = vmatpush3.bf16.msra.mxu0 %v838_v4 }
  0x2a   :  { %258 = vmatmul.mubr.bf16.gmra.mxu0 %v746_v25  ;;  %392 = vmatmul.mubr.bf16.vlgmr.msra.gmra.mxu1 %v743_v24 }
  0x2b   :  { %399 = vmatprep.mubr.bf16.mxu1 %v747_v26  ;;  %712 = vmatprep.mubr.msk.bf16.mxu0 %vm210_vm0, %v749_v27 }
  0x32   :  { %400 = vmatmul.mubr.bf16.gmra.mxu1 %v750_v28  ;;  %713 = vmatmul.mubr.msk.bf16.vlgmr.msra.gmra.mxu0 %vm210_vm0, %v751_v29 }
  0xca   :  { %v706_v30 = vpop.f32.mrf.mxu1 }
  0xcc   :  { %v300_v31 = vpop.f32.mrf.mxu1 }
  0xce   :  { %v707_v33 = vpop.f32.mrf.mxu1 }
  0xd0   :  { %v303_v39 = vpop.f32.mrf.mxu1 }
  0xe2   :  { %v652_v32 = vpop.f32.mrf.mxu0 }
  0xe4   :  { %v653_v35 = vpop.f32.mrf.mxu0 }
  0xe5   :  { %v654_v36 = vadd.f32 %v653_v35, %v652_v32 }
  0xe6   :  { %v655_v37 = vpop.f32.mrf.mxu0 }
  0xe7   :  { %v252_v38 = vadd.f32 %v654_v36, %v585_v34 }
  0xe8   :  { %v656_v40 = vpop.f32.mrf.mxu0 }
  0xe9   :  { %v928_v41 = vadd.f32 %v300_v31, %v252_v38  ;;  %v657_v42 = vadd.f32 %v656_v40, %v655_v37 }
  0xea   :  { %v658_v43 = vpop.f32.mrf.mxu0  ;;  %v684_v44 = vpop.f32.mrf.mxu1 }
  0xeb   :  { %v457_v45 = vsub.f32 0.0, %v928_v41  ;;  %v255_v46 = vadd.f32 %v657_v42, %v585_v34 }
  0xec   :  { %v659_v47 = vpop.f32.mrf.mxu0  ;;  %v685_v48 = vpop.f32.mrf.mxu1 }
  0xed   :  { %v461_v49 = vmul.f32 1.442695, %v457_v45  ;;  %v931_v50 = vadd.f32 %v303_v39, %v255_v46  ;;  %v660_v51 = vadd.f32 %v659_v47, %v658_v43  ;;  %v686_v56 = vadd.f32 %v685_v48, %v684_v44 }
  0xee   :  { %v661_v52 = vpop.f32.mrf.mxu0  ;;  %v687_v53 = vpop.f32.mrf.mxu1 }
  0xef   :  { %752 = vpow2.f32 %v461_v49  ;;  %v458_v54 = vsub.f32 0.0, %v931_v50  ;;  %v260_v55 = vadd.f32 %v660_v51, %v585_v34  ;;  %v394_v2 = vadd.f32 %v686_v56, %v585_v34 }
  0xf0   :  { %v662_v57 = vpop.f32.mrf.mxu0  ;;  %v688_v58 = vpop.f32.mrf.mxu1 }
  0xf1   :  { %v463_v59 = vmul.f32 1.442695, %v458_v54  ;;  %v934_v60 = vadd.f32 %v706_v30, %v260_v55  ;;  %v663_v61 = vadd.f32 %v662_v57, %v661_v52  ;;  %v689_v3 = vadd.f32 %v688_v58, %v687_v53 }
  0xf2   :  { %v690_v62 = vpop.f32.mrf.mxu1  ;;  %v714_v63 = vpop.f32.mrf.mxu0 }
  0xf3   :  { %754 = vpow2.f32 %v463_v59  ;;  %v459_v0 = vsub.f32 0.0, %v934_v60  ;;  %v263_v1 = vadd.f32 %v663_v61, %v585_v34  ;;  %v397_v16 = vadd.f32 %v689_v3, %v585_v34 }
  0xf4   :  { %v691_v4 = vpop.f32.mrf.mxu1  ;;  %v442_v5 = vpop.f32.mrf.mxu0 }
  0xf5   :  { %v465_v6 = vmul.f32 1.442695, %v459_v0  ;;  %v937_v7 = vadd.f32 %v707_v33, %v263_v1  ;;  %v692_v8 = vadd.f32 %v691_v4, %v690_v62  ;;  %v939_v9 = vadd.f32 %v442_v5, %v394_v2 }
  0xf6   :  { %v693_v10 = vpop.f32.mrf.mxu1  ;;  %v715_v11 = vpop.f32.mrf.mxu0 }
  0xf7   :  { %756 = vpow2.f32 %v465_v6  ;;  %v460_v12 = vsub.f32 0.0, %v937_v7  ;;  %v402_v13 = vadd.f32 %v692_v8, %v585_v34  ;;  %v481_v14 = vsub.f32 0.0, %v939_v9 }
  0xf8   :  { %v694_v15 = vpop.f32.mrf.mxu1  ;;  %v445_v17 = vpop.f32.mrf.mxu0 }
  0xf9   :  { %v467_v18 = vmul.f32 1.442695, %v460_v12  ;;  %v943_v19 = vadd.f32 %v714_v63, %v402_v13  ;;  %v485_v20 = vmul.f32 1.442695, %v481_v14  ;;  %v695_v21 = vadd.f32 %v694_v15, %v693_v10 }
  0xfa   :  { %v945_v22 = vadd.f32 %v445_v17, %v397_v16 }
  0xfb   :  { %758 = vpow2.f32 %v467_v18  ;;  %v483_v23 = vsub.f32 0.0, %v943_v19  ;;  %v405_v24 = vadd.f32 %v695_v21, %v585_v34 }
  0xfc   :  { %v753_v25 = vpop.eup %752  ;;  %760 = vpow2.f32 %v485_v20  ;;  %v482_v26 = vsub.f32 0.0, %v945_v22 }
  0xfd   :  { %v469_v27 = vadd.f32 1.0, %v753_v25  ;;  %v489_v28 = vmul.f32 1.442695, %v483_v23  ;;  %v949_v29 = vadd.f32 %v715_v11, %v405_v24 }
  0xfe   :  { %v487_v30 = vmul.f32 1.442695, %v482_v26 }
  0xff   :  { %762 = vrcp.f32 %v469_v27  ;;  %v484_v31 = vsub.f32 0.0, %v949_v29 }
 0x100   :  { %v755_v32 = vpop.eup %754  ;;  %764 = vpow2.f32 %v489_v28 }
 0x101   :  { %v470_v33 = vadd.f32 1.0, %v755_v32  ;;  %v491_v35 = vmul.f32 1.442695, %v484_v31  ;;  %766 = vpow2.f32 %v487_v30 }
 0x103   :  { %768 = vrcp.f32 %v470_v33 }
 0x104   :  { %v757_v36 = vpop.eup %756  ;;  %770 = vpow2.f32 %v491_v35 }
 0x105   :  { %v471_v34 = vadd.f32 1.0, %v757_v36 }
 0x107   :  { %772 = vrcp.f32 %v471_v34 }
 0x108   :  { %v759_v37 = vpop.eup %758 }
 0x109   :  { %v761_v38 = vpop.eup %760  ;;  %v472_v39 = vadd.f32 1.0, %v759_v37 }
 0x10a   :  { %v493_v40 = vadd.f32 1.0, %v761_v38 }
 0x10b   :  { %774 = vrcp.f32 %v472_v39 }
 0x10c   :  { %v763_v42 = vpop.eup %762  ;;  %776 = vrcp.f32 %v493_v40 }
 0x10d   :  { %v765_v43 = vpop.eup %764  ;;  %v477_v44 = vmul.f32 %v763_v42, %v928_v41 }
 0x10e   :  { %v767_v45 = vpop.eup %766  ;;  %v495_v46 = vadd.f32 1.0, %v765_v43 }
 0x10f   :  { %v628_v47 = vpack.c.bf16 %v477_v44, %v477_v44  ;;  %v494_v48 = vadd.f32 1.0, %v767_v45 }
 0x110   :  { %v769_v49 = vpop.eup %768  ;;  %778 = vrcp.f32 %v495_v46 }
 0x111   :  { %v771_v51 = vpop.eup %770  ;;  %522 = vst.msk [vmem:[%s999_s4] sm:$0xf] %vm521_vm1, %v628_v47  ;;  %v478_v52 = vmul.f32 %v769_v49, %v931_v50  ;;  %780 = vrcp.f32 %v494_v48 }
 0x112   :  { %v496_v53 = vadd.f32 1.0, %v771_v51 }
 0x113   :  { %v629_v54 = vpack.c.bf16 %v478_v52, %v478_v52 }
 0x114   :  { %v773_v55 = vpop.eup %772  ;;  %782 = vrcp.f32 %v496_v53 }
 0x115   :  { %v479_v41 = vmul.f32 %v773_v55, %v934_v60  ;;  %523 = vst.msk [vmem:[%s999_s4 + $0x4] sm:$0xf] %vm521_vm1, %v629_v54 }
 0x117   :  { %v630_v56 = vpack.c.bf16 %v479_v41, %v479_v41 }
 0x118   :  { %v775_v57 = vpop.eup %774 }
 0x119   :  { %v777_v58 = vpop.eup %776  ;;  %524 = vst.msk [vmem:[%s999_s4 + $0x8] sm:$0xf] %vm521_vm1, %v630_v56  ;;  %v480_v50 = vmul.f32 %v775_v57, %v937_v7 }
 0x11a   :  { %v501_v59 = vmul.f32 %v777_v58, %v939_v9 }
 0x11b   :  { %v631_v61 = vpack.c.bf16 %v480_v50, %v480_v50 }
 0x11c   :  { %v632_v62 = vpack.c.bf16 %v501_v59, %v501_v59  ;;  %v546_v63 = vsub.f32 %v477_v44, %v501_v59 }
 0x11d   :  { %v779_v60 = vpop.eup %778  ;;  %525 = vst.msk [vmem:[%s999_s4 + $0xc] sm:$0xf] %vm521_vm1, %v631_v61 }
 0x11e   :  { %v781_v0 = vpop.eup %780  ;;  %v503_v1 = vmul.f32 %v779_v60, %v943_v19  ;;  %542 = vst.msk [vmem:[%s1000_s5] sm:$0xf] %vm521_vm1, %v632_v62  ;;  %v550_v6 = vand.u32 2147483647, %v546_v63 }
 0x11f   :  { %v502_v2 = vmul.f32 %v781_v0, %v945_v22 }
 0x120   :  { %v634_v3 = vpack.c.bf16 %v503_v1, %v503_v1  ;;  %v548_v4 = vsub.f32 %v479_v41, %v503_v1  ;;  %v555_v14 = vsel %vm554_vm2, %v550_v6, 0.0 }
 0x121   :  { %v783_v5 = vpop.eup %782  ;;  %v633_v7 = vpack.c.bf16 %v502_v2, %v502_v2  ;;  %v547_v8 = vsub.f32 %v478_v52, %v502_v2 }
 0x122   :  { %544 = vst.msk [vmem:[%s1000_s5 + $0x8] sm:$0xf] %vm521_vm1, %v634_v3  ;;  %v504_v9 = vmul.f32 %v783_v5, %v949_v29  ;;  %v552_v11 = vand.u32 2147483647, %v548_v4 }
 0x123   :  { %543 = vst.msk [vmem:[%s1000_s5 + $0x4] sm:$0xf] %vm521_vm1, %v633_v7  ;;  %v551_v10 = vand.u32 2147483647, %v547_v8 }
 0x124   :  { %v635_v12 = vpack.c.bf16 %v504_v9, %v504_v9  ;;  %v549_v13 = vsub.f32 %v480_v50, %v504_v9  ;;  %v558_v18 = vsel %vm554_vm2, %v552_v11, 0.0 }
 0x125   :  { %v556_v15 = vsel %vm554_vm2, %v551_v10, 0.0 }
 0x126   :  { %545 = vst.msk [vmem:[%s1000_s5 + $0xc] sm:$0xf] %vm521_vm1, %v635_v12  ;;  %v553_v16 = vand.u32 2147483647, %v549_v13  ;;  %v557_v17 = vadd.f32 %v556_v15, %v555_v14 }
 0x128   :  { %v559_v19 = vadd.f32 %v558_v18, %v557_v17  ;;  %v560_v20 = vsel %vm554_vm2, %v553_v16, 0.0 }
 0x12a   :  { %v561_v21 = vadd.f32 %v560_v20, %v559_v19 }
 0x12c   :  { %562 = vadd.xlane.f32.xlu0 %v561_v21 }
 0x1b5   :  { %v563_v22 = vpop.xlane.xlu0 %562 }
 0x1b6   :  { %v564_v23 = vrot.slane %v563_v22, 4 }
 0x1b8   :  { %v565_v24 = vadd.f32 %v564_v23, %v563_v22 }
 0x1ba   :  { %v566_v25 = vrot.slane %v565_v24, 2 }
 0x1bc   :  { %v567_v26 = vadd.f32 %v566_v25, %v565_v24 }
 0x1be   :  { %v568_v27 = vrot.slane %v567_v26, 1 }
 0x1c0   :  { %v569_v28 = vadd.f32 %v568_v27, %v567_v26 }
 0x1c2   :  { %716 = vpush %v569_v28 }
 0x1f3   :  { %s717_s21 = spop %716 }
 0x1f4   :  { %v571_v29 = vstv %s717_s21 }
 0x1f5   :  { %572 = vst [vmem:[%s1001_s6] sm:$0xff] %v571_v29 }

// kernel: effic_loss.9
= control target key start
LH: loop header
LB: loop body
LE: loop exit
PB: predicated region body
PF: predicated region fallthrough
CT: control target
= control target key end

     0   :  { %v613_v0 = vmov 0   ;;  %vm259_vm0 = vcmask 392192   ;;  %vm454_vm1 = vcmask 650240   ;;  %vm460_vm2 = vcmask 654336   ;;  %s856_s2 = inlined_call_operand.vmem [shape: bf16[432,80], index: 2, kind: input, shape index: {}]   ;;  %s857_s0 = inlined_call_operand.vmem [shape: bf16[8,432], index: 0, kind: input, shape index: {}]   ;;  %s858_s1 = inlined_call_operand.vmem [shape: bf16[8,432], index: 1, kind: input, shape index: {}]   ;;  %s859_s3 = inlined_call_operand.vmem [shape: f32[1,80], index: 3, kind: input, shape index: {}]   ;;  %s860_s4 = inlined_call_operand.vmem [shape: bf16[8,80], index: 4, kind: output, shape index: {0}]   ;;  %s861_s5 = inlined_call_operand.vmem [shape: bf16[8,80], index: 5, kind: output, shape index: {1}]   ;;  %s862_s6 = inlined_call_operand.vmem [shape: f32[1,8,128], index: 6, kind: output, shape index: {2}]  }
   0x1   :  { %303 = vmatprep.subr.bf16.mxu1 %v613_v0  ;;  %v653_v1 = vld [vmem:[%s856_s2 + $0xb8] sm:$0xff]   ;;  %v658_v2 = vld [vmem:[%s856_s2 + $0xb0] sm:$0xff]   ;;  %v676_v5 = vld [vmem:[%s856_s2 + $0xa8] sm:$0xff]  }
   0x2   :  { %304 = vmatpush1.bf16.msra.mxu1 %v653_v1  ;;  %v664_v3 = vld [vmem:[%s856_s2 + $0x78] sm:$0xff]   ;;  %v682_v6 = vld [vmem:[%s856_s2 + $0x70] sm:$0xff]   ;;  %v695_v8 = vld [vmem:[%s856_s2 + $0x68] sm:$0xff]  }
   0x3   :  { %305 = vmatprep.subr.bf16.mxu1 %v613_v0  ;;  %v670_v4 = vld [vmem:[%s856_s2 + $0x38] sm:$0xff]   ;;  %523 = vmatprep.subr.bf16.mxu0 %v664_v3  ;;  %v688_v7 = vld [vmem:[%s856_s2 + $0x30] sm:$0xff]   ;;  %v701_v9 = vld [vmem:[%s856_s2 + $0x28] sm:$0xff]  }
   0x4   :  { %524 = vmatpush3.bf16.msra.mxu0 %v670_v4  ;;  %v707_v10 = vld [vmem:[%s856_s2 + $0xa0] sm:$0xff]   ;;  %v719_v12 = vld [vmem:[%s856_s2 + $0x98] sm:$0xff]   ;;  %v738_v15 = vld [vmem:[%s856_s2 + $0x90] sm:$0xff]  }
   0x5   :  { %525 = vmatprep.subr.bf16.mxu0 %v682_v6  ;;  %v714_v11 = vld [vmem:[%s856_s2 + $0x60] sm:$0xff]   ;;  %v732_v14 = vld [vmem:[%s856_s2 + $0x58] sm:$0xff]   ;;  %v751_v17 = vld [vmem:[%s856_s2 + $0x50] sm:$0xff]  }
   0x6   :  { %306 = vmatpush1.bf16.msra.mxu1 %v658_v2  ;;  %v725_v13 = vld [vmem:[%s856_s2 + $0x20] sm:$0xff]   ;;  %v744_v16 = vld [vmem:[%s856_s2 + $0x18] sm:$0xff]   ;;  %v757_v18 = vld [vmem:[%s856_s2 + $0x88] sm:$0xff]  }
   0x7   :  { %307 = vmatprep.subr.bf16.mxu1 %v613_v0  ;;  %v588_v19 = vld [vmem:[%s856_s2 + $0x10] sm:$0xff]   ;;  %v590_v20 = vld [vmem:[%s856_s2 + $0x48] sm:$0xff]   ;;  %v772_v21 = vld [vmem:[%s856_s2 + $0x80] sm:$0xff]  }
   0x8   :  { %526 = vmatpush3.bf16.msra.mxu0 %v688_v7  ;;  %v591_v22 = vld [vmem:[%s856_s2 + $0x8] sm:$0xff]   ;;  %v76_v23 = vld [vmem:[%s857_s0] sm:$0xff]  ;;  %v592_v29 = vld [vmem:[%s856_s2 + $0xd0] sm:$0xff]  }
   0x9   :  { %527 = vmatprep.subr.bf16.mxu0 %v695_v8  ;;  %v593_v24 = vld [vmem:[%s856_s2 + $0x40] sm:$0xff]   ;;  %v487_v25 = vcombine.high %v76_v23, %v76_v23  ;;  %v77_v26 = vld [vmem:[%s857_s0 + $0x8] sm:$0xff]  ;;  %v486_v31 = vcombine.low %v76_v23, %v76_v23 }
   0xa   :  { %308 = vmatpush1.bf16.msra.mxu1 %v676_v5  ;;  %v489_v27 = vcombine.high %v77_v26, %v77_v26  ;;  %v594_v28 = vld [vmem:[%s856_s2] sm:$0xff]   ;;  %v597_v33 = vld [vmem:[%s856_s2 + $0xc8] sm:$0xff]   ;;  %v488_v36 = vcombine.low %v77_v26, %v77_v26 }
   0xb   :  { %309 = vmatprep.subr.bf16.mxu1 %v613_v0  ;;  %295 = vmatprep.mubr.bf16.mxu0 %v487_v25  ;;  %v343_v30 = vld [vmem:[%s858_s1] sm:$0xff]  ;;  %v344_v35 = vld [vmem:[%s858_s1 + $0x8] sm:$0xff] }
   0xc   :  { %528 = vmatpush3.bf16.msra.mxu0 %v701_v9  ;;  %517 = vmatprep.mubr.msk.bf16.mxu1 %vm259_vm0, %v489_v27  ;;  %v519_v32 = vcombine.high %v343_v30, %v343_v30  ;;  %v598_v34 = vld [vmem:[%s856_s2 + $0xc0] sm:$0xff]   ;;  %v521_v37 = vcombine.high %v344_v35, %v344_v35  ;;  %v518_v38 = vcombine.low %v343_v30, %v343_v30 }
   0xd   :  { %529 = vmatprep.subr.bf16.mxu0 %v714_v11  ;;  %v520_v39 = vcombine.low %v344_v35, %v344_v35  ;;  %v485_v43 = vld [vmem:[%s859_s3] ss:$0 sm:$0xff] }
   0xe   :  { %310 = vmatpush1.bf16.msra.mxu1 %v707_v10 }
   0xf   :  { %311 = vmatprep.subr.bf16.mxu1 %v613_v0 }
  0x10   :  { %530 = vmatpush3.bf16.msra.mxu0 %v725_v13 }
  0x11   :  { %531 = vmatprep.subr.bf16.mxu0 %v732_v14 }
  0x12   :  { %312 = vmatpush1.bf16.msra.mxu1 %v719_v12 }
  0x13   :  { %313 = vmatprep.subr.bf16.mxu1 %v613_v0 }
  0x14   :  { %532 = vmatpush3.bf16.msra.mxu0 %v744_v16 }
  0x15   :  { %533 = vmatprep.subr.bf16.mxu0 %v751_v17 }
  0x16   :  { %314 = vmatpush1.bf16.msra.mxu1 %v738_v15 }
  0x17   :  { %315 = vmatprep.subr.bf16.mxu1 %v613_v0 }
  0x18   :  { %534 = vmatpush3.bf16.msra.mxu0 %v588_v19 }
  0x19   :  { %535 = vmatprep.subr.bf16.mxu0 %v590_v20 }
  0x1a   :  { %316 = vmatpush1.bf16.msra.mxu1 %v757_v18 }
  0x1b   :  { %317 = vmatprep.subr.bf16.mxu1 %v613_v0 }
  0x1c   :  { %536 = vmatpush3.bf16.msra.mxu0 %v591_v22 }
  0x1d   :  { %537 = vmatprep.subr.bf16.mxu0 %v593_v24 }
  0x1e   :  { %318 = vmatpush1.bf16.msra.mxu1 %v772_v21 }
  0x1f   :  { %329 = vmatprep.subr.bf16.mxu1 %v613_v0 }
  0x20   :  { %538 = vmatpush3.bf16.msra.mxu0 %v594_v28 }
  0x21   :  { %545 = vmatprep.subr.bf16.mxu0 %v664_v3 }
  0x22   :  { %330 = vmatpush2.bf16.msra.mxu1 %v592_v29 }
  0x23   :  { %331 = vmatprep.subr.bf16.mxu1 %v613_v0  ;;  %296 = vmatmul.mubr.bf16.vlgmr.msra.gmra.mxu0 %v486_v31 }
  0x24   :  { %546 = vmatpush3.bf16.msra.mxu0 %v670_v4  ;;  %393 = vmatprep.mubr.bf16.mxu0 %v519_v32 }
  0x25   :  { %547 = vmatprep.subr.bf16.mxu0 %v682_v6 }
  0x26   :  { %332 = vmatpush2.bf16.msra.mxu1 %v597_v33 }
  0x27   :  { %333 = vmatprep.subr.bf16.mxu1 %v613_v0 }
  0x28   :  { %548 = vmatpush3.bf16.msra.mxu0 %v688_v7 }
  0x29   :  { %549 = vmatprep.subr.bf16.mxu0 %v695_v8 }
  0x2a   :  { %334 = vmatpush2.bf16.msra.mxu1 %v598_v34 }
  0x2b   :  { %401 = vmatprep.subr.bf16.mxu1 %v613_v0 }
  0x2c   :  { %550 = vmatpush3.bf16.msra.mxu0 %v701_v9 }
  0x2d   :  { %336 = vmatmul.mubr.bf16.vlgmr.msra.gmra.mxu1 %v488_v36  ;;  %551 = vmatprep.subr.bf16.mxu0 %v714_v11 }
  0x2e   :  { %402 = vmatpush1.bf16.msra.mxu1 %v653_v1  ;;  %522 = vmatprep.mubr.msk.bf16.mxu1 %vm259_vm0, %v521_v37 }
  0x2f   :  { %403 = vmatprep.subr.bf16.mxu1 %v613_v0 }
  0x30   :  { %552 = vmatpush3.bf16.msra.mxu0 %v725_v13 }
  0x31   :  { %553 = vmatprep.subr.bf16.mxu0 %v732_v14 }
  0x32   :  { %404 = vmatpush1.bf16.msra.mxu1 %v658_v2 }
  0x33   :  { %405 = vmatprep.subr.bf16.mxu1 %v613_v0 }
  0x34   :  { %554 = vmatpush3.bf16.msra.mxu0 %v744_v16 }
  0x35   :  { %555 = vmatprep.subr.bf16.mxu0 %v751_v17 }
  0x36   :  { %406 = vmatpush1.bf16.msra.mxu1 %v676_v5 }
  0x37   :  { %407 = vmatprep.subr.bf16.mxu1 %v613_v0 }
  0x38   :  { %556 = vmatpush3.bf16.msra.mxu0 %v588_v19 }
  0x39   :  { %557 = vmatprep.subr.bf16.mxu0 %v590_v20 }
  0x3a   :  { %408 = vmatpush1.bf16.msra.mxu1 %v707_v10 }
  0x3b   :  { %409 = vmatprep.subr.bf16.mxu1 %v613_v0 }
  0x3c   :  { %558 = vmatpush3.bf16.msra.mxu0 %v591_v22 }
  0x3d   :  { %559 = vmatprep.subr.bf16.mxu0 %v593_v24 }
  0x3e   :  { %410 = vmatpush1.bf16.msra.mxu1 %v719_v12 }
  0x3f   :  { %411 = vmatprep.subr.bf16.mxu1 %v613_v0 }
  0x40   :  { %560 = vmatpush3.bf16.msra.mxu0 %v594_v28 }
  0x42   :  { %412 = vmatpush1.bf16.msra.mxu1 %v738_v15 }
  0x43   :  { %413 = vmatprep.subr.bf16.mxu1 %v613_v0  ;;  %394 = vmatmul.mubr.bf16.vlgmr.msra.gmra.mxu0 %v518_v38 }
  0x46   :  { %414 = vmatpush1.bf16.msra.mxu1 %v757_v18 }
  0x47   :  { %415 = vmatprep.subr.bf16.mxu1 %v613_v0 }
  0x4a   :  { %416 = vmatpush1.bf16.msra.mxu1 %v772_v21 }
  0x4b   :  { %427 = vmatprep.subr.bf16.mxu1 %v613_v0 }
  0x4e   :  { %428 = vmatpush2.bf16.msra.mxu1 %v592_v29 }
  0x4f   :  { %429 = vmatprep.subr.bf16.mxu1 %v613_v0 }
  0x52   :  { %430 = vmatpush2.bf16.msra.mxu1 %v597_v33 }
  0x53   :  { %431 = vmatprep.subr.bf16.mxu1 %v613_v0 }
  0x56   :  { %432 = vmatpush2.bf16.msra.mxu1 %v598_v34 }
  0x59   :  { %434 = vmatmul.mubr.bf16.vlgmr.msra.gmra.mxu1 %v520_v39 }
  0xe3   :  { %v539_v40 = vpop.f32.mrf.mxu0 }
  0xe5   :  { %v540_v41 = vpop.f32.mrf.mxu0 }
  0xe6   :  { %v541_v42 = vadd.f32 %v540_v41, %v539_v40 }
  0xe7   :  { %v542_v44 = vpop.f32.mrf.mxu0 }
  0xe8   :  { %v298_v45 = vadd.f32 %v541_v42, %v485_v43 }
  0xe9   :  { %v543_v46 = vpop.f32.mrf.mxu0 }
  0xed   :  { %v337_v47 = vpop.f32.mrf.mxu1 }
  0xee   :  { %v338_v48 = vadd.f32 %v337_v47, %v298_v45 }
  0xef   :  { %v339_v49 = vpop.f32.mrf.mxu1 }
  0xf0   :  { %v441_v50 = vsub.f32 0.0, %v338_v48 }
  0xf1   :  { %v340_v51 = vpop.f32.mrf.mxu1 }
  0xf2   :  { %v442_v52 = vmul.f32 1.442695, %v441_v50 }
  0xf3   :  { %v341_v53 = vpop.f32.mrf.mxu1 }
  0xf4   :  { %605 = vpow2.f32 %v442_v52 }
 0x101   :  { %v606_v54 = vpop.eup %605 }
 0x102   :  { %v444_v55 = vadd.f32 1.0, %v606_v54 }
 0x103   :  { %v561_v56 = vpop.f32.mrf.mxu0 }
 0x104   :  { %607 = vrcp.f32 %v444_v55 }
 0x105   :  { %v562_v57 = vpop.f32.mrf.mxu0 }
 0x106   :  { %v563_v63 = vadd.f32 %v562_v57, %v561_v56 }
 0x107   :  { %v564_v58 = vpop.f32.mrf.mxu0 }
 0x108   :  { %v396_v0 = vadd.f32 %v563_v63, %v485_v43 }
 0x109   :  { %v565_v59 = vpop.f32.mrf.mxu0 }
 0x111   :  { %v608_v60 = vpop.eup %607 }
 0x112   :  { %v446_v61 = vmul.f32 %v608_v60, %v338_v48 }
 0x114   :  { %v453_v62 = vpack.c.bf16 %v446_v61, %v446_v61 }
 0x116   :  { %455 = vst.msk [vmem:[%s860_s4] sm:$0xf] %vm454_vm1, %v453_v62 }
 0x119   :  { %v435_v1 = vpop.f32.mrf.mxu1 }
 0x11a   :  { %v436_v2 = vadd.f32 %v435_v1, %v396_v0 }
 0x11b   :  { %v437_v3 = vpop.f32.mrf.mxu1 }
 0x11c   :  { %v447_v4 = vsub.f32 0.0, %v436_v2 }
 0x11d   :  { %v438_v5 = vpop.f32.mrf.mxu1 }
 0x11e   :  { %v448_v6 = vmul.f32 1.442695, %v447_v4 }
 0x11f   :  { %v439_v7 = vpop.f32.mrf.mxu1 }
 0x120   :  { %609 = vpow2.f32 %v448_v6 }
 0x12d   :  { %v610_v8 = vpop.eup %609 }
 0x12e   :  { %v450_v9 = vadd.f32 1.0, %v610_v8 }
 0x130   :  { %611 = vrcp.f32 %v450_v9 }
 0x13d   :  { %v612_v10 = vpop.eup %611 }
 0x13e   :  { %v452_v11 = vmul.f32 %v612_v10, %v436_v2 }
 0x140   :  { %v456_v12 = vpack.c.bf16 %v452_v11, %v452_v11  ;;  %v458_v13 = vsub.f32 %v446_v61, %v452_v11 }
 0x142   :  { %457 = vst.msk [vmem:[%s861_s5] sm:$0xf] %vm454_vm1, %v456_v12  ;;  %v459_v14 = vand.u32 2147483647, %v458_v13 }
 0x144   :  { %v461_v15 = vsel %vm460_vm2, %v459_v14, 0.0 }
 0x145   :  { %462 = vadd.xlane.f32.xlu0 %v461_v15 }
 0x1ce   :  { %v463_v16 = vpop.xlane.xlu0 %462 }
 0x1cf   :  { %v464_v17 = vrot.slane %v463_v16, 4 }
 0x1d1   :  { %v465_v18 = vadd.f32 %v464_v17, %v463_v16 }
 0x1d3   :  { %v466_v19 = vrot.slane %v465_v18, 2 }
 0x1d5   :  { %v467_v20 = vadd.f32 %v466_v19, %v465_v18 }
 0x1d7   :  { %v468_v21 = vrot.slane %v467_v20, 1 }
 0x1d9   :  { %v469_v22 = vadd.f32 %v468_v21, %v467_v20 }
 0x1db   :  { %567 = vpush %v469_v22 }
 0x20c   :  { %s568_s12 = spop %567 }
 0x20d   :  { %v471_v23 = vstv %s568_s12 }
 0x20e   :  { %472 = vst [vmem:[%s862_s6] sm:$0xff] %v471_v23 }

// kernel: effic_loss.10
= control target key start
LH: loop header
LB: loop body
LE: loop exit
PB: predicated region body
PF: predicated region fallthrough
CT: control target
= control target key end

     0   :  { %vm596_vm0 = vcmask 654336   ;;  %vm904_vm1 = vcmask 1043456   ;;  %vm905_vm2 = vcmask 261124   ;;  %vm921_vm4 = vcmask 261120   ;;  %s1943_s2 = inlined_call_operand.vmem [shape: bf16[720,160], index: 2, kind: input, shape index: {}]   ;;  %s1944_s0 = inlined_call_operand.vmem [shape: bf16[8,720], index: 0, kind: input, shape index: {}]   ;;  %s1945_s1 = inlined_call_operand.vmem [shape: bf16[8,720], index: 1, kind: input, shape index: {}]   ;;  %s1946_s3 = inlined_call_operand.vmem [shape: f32[1,160], index: 3, kind: input, shape index: {}]   ;;  %s1947_s4 = inlined_call_operand.vmem [shape: bf16[8,160], index: 4, kind: output, shape index: {0}]   ;;  %s1948_s5 = inlined_call_operand.vmem [shape: bf16[8,160], index: 5, kind: output, shape index: {1}]   ;;  %s1949_s6 = inlined_call_operand.vmem [shape: f32[1,8,128], index: 6, kind: output, shape index: {2}]  }
   0x1   :  { %v1258_v0 = vld [vmem:[%s1943_s2 + $0x74] ss:$8 sps:$4 sm:$0xff]   ;;  %v1269_v2 = vld [vmem:[%s1943_s2 + $0x70] ss:$8 sps:$4 sm:$0xff]   ;;  %v1280_v4 = vld [vmem:[%s1943_s2 + $0x64] ss:$8 sps:$4 sm:$0xff]  }
   0x2   :  { %v1263_v1 = vld [vmem:[%s1943_s2 + $0x174] ss:$8 sps:$4 sm:$0xff]   ;;  %600 = vmatprep.subr.bf16.mxu0 %v1258_v0  ;;  %v1274_v3 = vld [vmem:[%s1943_s2 + $0x170] ss:$8 sps:$4 sm:$0xff]   ;;  %v1287_v5 = vld [vmem:[%s1943_s2 + $0x164] ss:$8 sps:$4 sm:$0xff]  }
   0x3   :  { %641 = vmatprep.subr.bf16.mxu1 %v1263_v1  ;;  %601 = vmatpush1.bf16.msra.mxu0 %v1269_v2  ;;  %v1292_v6 = vld [vmem:[%s1943_s2 + $0x60] ss:$8 sps:$4 sm:$0xff]   ;;  %v1304_v8 = vld [vmem:[%s1943_s2 + $0x54] ss:$8 sps:$4 sm:$0xff]   ;;  %v1314_v10 = vld [vmem:[%s1943_s2 + $0x50] ss:$8 sps:$4 sm:$0xff]  }
   0x4   :  { %642 = vmatpush1.bf16.msra.mxu1 %v1274_v3  ;;  %602 = vmatprep.subr.bf16.mxu0 %v1280_v4  ;;  %v1298_v7 = vld [vmem:[%s1943_s2 + $0x160] ss:$8 sps:$4 sm:$0xff]   ;;  %v1309_v9 = vld [vmem:[%s1943_s2 + $0x154] ss:$8 sps:$4 sm:$0xff]   ;;  %v1319_v11 = vld [vmem:[%s1943_s2 + $0x150] ss:$8 sps:$4 sm:$0xff]  }
   0x5   :  { %643 = vmatprep.subr.bf16.mxu1 %v1287_v5  ;;  %v1326_v12 = vld [vmem:[%s1943_s2 + $0x44] ss:$8 sps:$4 sm:$0xff]   ;;  %v1338_v14 = vld [vmem:[%s1943_s2 + $0x40] ss:$8 sps:$4 sm:$0xff]   ;;  %v1350_v16 = vld [vmem:[%s1943_s2 + $0x34] ss:$8 sps:$4 sm:$0xff]  }
   0x6   :  { %v1333_v13 = vld [vmem:[%s1943_s2 + $0x144] ss:$8 sps:$4 sm:$0xff]   ;;  %v1345_v15 = vld [vmem:[%s1943_s2 + $0x140] ss:$8 sps:$4 sm:$0xff]   ;;  %v1357_v17 = vld [vmem:[%s1943_s2 + $0x134] ss:$8 sps:$4 sm:$0xff]  }
   0x7   :  { %603 = vmatpush1.bf16.msra.mxu0 %v1292_v6  ;;  %v1362_v18 = vld [vmem:[%s1943_s2 + $0x30] ss:$8 sps:$4 sm:$0xff]   ;;  %v1374_v20 = vld [vmem:[%s1943_s2 + $0x24] ss:$8 sps:$4 sm:$0xff]   ;;  %v1386_v22 = vld [vmem:[%s1943_s2 + $0x20] ss:$8 sps:$4 sm:$0xff]  }
   0x8   :  { %644 = vmatpush1.bf16.msra.mxu1 %v1298_v7  ;;  %604 = vmatprep.subr.bf16.mxu0 %v1304_v8  ;;  %v1367_v19 = vld [vmem:[%s1943_s2 + $0x130] ss:$8 sps:$4 sm:$0xff]   ;;  %v1381_v21 = vld [vmem:[%s1943_s2 + $0x124] ss:$8 sps:$4 sm:$0xff]   ;;  %v1393_v23 = vld [vmem:[%s1943_s2 + $0x120] ss:$8 sps:$4 sm:$0xff]  }
   0x9   :  { %645 = vmatprep.subr.bf16.mxu1 %v1309_v9  ;;  %v1398_v24 = vld [vmem:[%s1943_s2 + $0x14] ss:$8 sps:$4 sm:$0xff]   ;;  %v1410_v26 = vld [vmem:[%s1943_s2 + $0x10] ss:$8 sps:$4 sm:$0xff]   ;;  %v1422_v28 = vld [vmem:[%s1943_s2 + $0x4] ss:$8 sps:$4 sm:$0xff]  }
   0xa   :  { %v1405_v25 = vld [vmem:[%s1943_s2 + $0x114] ss:$8 sps:$4 sm:$0xff]   ;;  %v1415_v27 = vld [vmem:[%s1943_s2 + $0x110] ss:$8 sps:$4 sm:$0xff]   ;;  %v1429_v29 = vld [vmem:[%s1943_s2 + $0x104] ss:$8 sps:$4 sm:$0xff]  }
   0xb   :  { %605 = vmatpush1.bf16.msra.mxu0 %v1314_v10  ;;  %v1434_v30 = vld [vmem:[%s1943_s2] ss:$8 sps:$4 sm:$0xff]   ;;  %v1446_v32 = vld [vmem:[%s1943_s2 + $0xf4] ss:$8 sps:$4 sm:$0xff]   ;;  %v1458_v34 = vld [vmem:[%s1943_s2 + $0xf0] ss:$8 sps:$4 sm:$0xff]  }
   0xc   :  { %646 = vmatpush1.bf16.msra.mxu1 %v1319_v11  ;;  %606 = vmatprep.subr.bf16.mxu0 %v1326_v12  ;;  %v1441_v31 = vld [vmem:[%s1943_s2 + $0x100] ss:$8 sps:$4 sm:$0xff]   ;;  %v1453_v33 = vld [vmem:[%s1943_s2 + $0x1f4] ss:$8 sps:$4 sm:$0xff]   ;;  %v1463_v35 = vld [vmem:[%s1943_s2 + $0x1f0] ss:$8 sps:$4 sm:$0xff]  }
   0xd   :  { %647 = vmatprep.subr.bf16.mxu1 %v1333_v13  ;;  %v1470_v36 = vld [vmem:[%s1943_s2 + $0xe4] ss:$8 sps:$4 sm:$0xff]   ;;  %v1482_v38 = vld [vmem:[%s1943_s2 + $0xe0] ss:$8 sps:$4 sm:$0xff]   ;;  %v1494_v40 = vld [vmem:[%s1943_s2 + $0xd4] ss:$8 sps:$4 sm:$0xff]  }
   0xe   :  { %v1477_v37 = vld [vmem:[%s1943_s2 + $0x1e4] ss:$8 sps:$4 sm:$0xff]   ;;  %v1489_v39 = vld [vmem:[%s1943_s2 + $0x1e0] ss:$8 sps:$4 sm:$0xff]   ;;  %v1501_v41 = vld [vmem:[%s1943_s2 + $0x1d4] ss:$8 sps:$4 sm:$0xff]  }
   0xf   :  { %607 = vmatpush1.bf16.msra.mxu0 %v1338_v14  ;;  %v1506_v42 = vld [vmem:[%s1943_s2 + $0xd0] ss:$8 sps:$4 sm:$0xff]   ;;  %v1518_v44 = vld [vmem:[%s1943_s2 + $0xc4] ss:$8 sps:$4 sm:$0xff]   ;;  %v1533_v47 = vld [vmem:[%s1943_s2 + $0xc0] ss:$8 sps:$4 sm:$0xff]  }
  0x10   :  { %648 = vmatpush1.bf16.msra.mxu1 %v1345_v15  ;;  %608 = vmatprep.subr.bf16.mxu0 %v1350_v16  ;;  %v1511_v43 = vld [vmem:[%s1943_s2 + $0x1d0] ss:$8 sps:$4 sm:$0xff]   ;;  %v1525_v45 = vld [vmem:[%s1943_s2 + $0x1c4] ss:$8 sps:$4 sm:$0xff]   ;;  %v1543_v50 = vld [vmem:[%s1943_s2 + $0x1c0] ss:$8 sps:$4 sm:$0xff]  }
  0x11   :  { %649 = vmatprep.subr.bf16.mxu1 %v1357_v17  ;;  %1960 = vst [vmem:[#allocation2_spill] sm:$0xff] %v1525_v45  ;;  %v112_v46 = vld [vmem:[%s1944_s0] sm:$0xff]  ;;  %v113_v49 = vld [vmem:[%s1944_s0 + $0x8] sm:$0xff]  ;;  %1961 = vst [vmem:[#allocation3_spill] sm:$0xff] %v1543_v50 }
  0x12   :  { %v948_v48 = vcombine.high %v112_v46, %v112_v46  ;;  %v1548_v51 = vld [vmem:[%s1943_s2 + $0xb4] ss:$8 sps:$4 sm:$0xff]   ;;  %v950_v53 = vcombine.high %v113_v49, %v113_v49  ;;  %v1560_v54 = vld [vmem:[%s1943_s2 + $0xb0] ss:$8 sps:$4 sm:$0xff]   ;;  %v1572_v56 = vld [vmem:[%s1943_s2 + $0xa4] ss:$8 sps:$4 sm:$0xff]  }
  0x13   :  { %609 = vmatpush1.bf16.msra.mxu0 %v1362_v18  ;;  %v1555_v52 = vld [vmem:[%s1943_s2 + $0x1b4] ss:$8 sps:$4 sm:$0xff]   ;;  %v1567_v55 = vld [vmem:[%s1943_s2 + $0x1b0] ss:$8 sps:$4 sm:$0xff]   ;;  %v1579_v57 = vld [vmem:[%s1943_s2 + $0x1a4] ss:$8 sps:$4 sm:$0xff]  }
  0x14   :  { %650 = vmatpush1.bf16.msra.mxu1 %v1367_v19  ;;  %610 = vmatprep.subr.bf16.mxu0 %v1374_v20  ;;  %1962 = vst [vmem:[#allocation4_spill] sm:$0xff] %v1555_v52  ;;  %1963 = vst [vmem:[#allocation5_spill] sm:$0xff] %v1567_v55  ;;  %v1584_v58 = vld [vmem:[%s1943_s2 + $0xa0] ss:$8 sps:$4 sm:$0xff]   ;;  %v1596_v60 = vld [vmem:[%s1943_s2 + $0x94] ss:$8 sps:$4 sm:$0xff]  }
  0x15   :  { %651 = vmatprep.subr.bf16.mxu1 %v1381_v21  ;;  %632 = vmatprep.mubr.bf16.mxu0 %v948_v48  ;;  %1964 = vst [vmem:[#allocation6_spill] sm:$0xff] %v1579_v57  ;;  %v1591_v59 = vld [vmem:[%s1943_s2 + $0x1a0] ss:$8 sps:$4 sm:$0xff]   ;;  %v1603_v61 = vld [vmem:[%s1943_s2 + $0x194] ss:$8 sps:$4 sm:$0xff]   ;;  %vm1926_vm3 = vmor %vm905_vm2, %vm904_vm1 }
  0x16   :  { %673 = vmatprep.mubr.bf16.mxu1 %v950_v53  ;;  %1965 = vst [vmem:[#allocation7_spill] sm:$0xff] %v1591_v59  ;;  %1966 = vst [vmem:[#allocation8_spill] sm:$0xff] %v1603_v61  ;;  %v1608_v62 = vld [vmem:[%s1943_s2 + $0x90] ss:$8 sps:$4 sm:$0xff]   ;;  %v1620_v48 = vld [vmem:[%s1943_s2 + $0x84] ss:$8 sps:$4 sm:$0xff]  }
  0x17   :  { %611 = vmatpush1.bf16.msra.mxu0 %v1386_v22  ;;  %v1615_v63 = vld [vmem:[%s1943_s2 + $0x190] ss:$8 sps:$4 sm:$0xff]   ;;  %v1627_v53 = vld [vmem:[%s1943_s2 + $0x184] ss:$8 sps:$4 sm:$0xff]  }
  0x18   :  { %652 = vmatpush1.bf16.msra.mxu1 %v1393_v23  ;;  %612 = vmatprep.subr.bf16.mxu0 %v1398_v24  ;;  %1967 = vst [vmem:[#allocation9_spill] sm:$0xff] %v1615_v63  ;;  %1968 = vst [vmem:[#allocation10_spill] sm:$0xff] %v1627_v53 }
  0x19   :  { %653 = vmatprep.subr.bf16.mxu1 %v1405_v25 }
  0x1b   :  { %613 = vmatpush1.bf16.msra.mxu0 %v1410_v26 }
  0x1c   :  { %654 = vmatpush1.bf16.msra.mxu1 %v1415_v27  ;;  %614 = vmatprep.subr.bf16.mxu0 %v1422_v28 }
  0x1d   :  { %655 = vmatprep.subr.bf16.mxu1 %v1429_v29 }
  0x1f   :  { %615 = vmatpush1.bf16.msra.mxu0 %v1434_v30 }
  0x20   :  { %656 = vmatpush1.bf16.msra.mxu1 %v1441_v31  ;;  %616 = vmatprep.subr.bf16.mxu0 %v1446_v32 }
  0x21   :  { %657 = vmatprep.subr.bf16.mxu1 %v1453_v33 }
  0x23   :  { %617 = vmatpush2.bf16.msra.mxu0 %v1458_v34 }
  0x24   :  { %658 = vmatpush2.bf16.msra.mxu1 %v1463_v35  ;;  %618 = vmatprep.subr.bf16.mxu0 %v1470_v36 }
  0x25   :  { %659 = vmatprep.subr.bf16.mxu1 %v1477_v37 }
  0x27   :  { %619 = vmatpush2.bf16.msra.mxu0 %v1482_v38 }
  0x28   :  { %660 = vmatpush2.bf16.msra.mxu1 %v1489_v39  ;;  %620 = vmatprep.subr.bf16.mxu0 %v1494_v40 }
  0x29   :  { %661 = vmatprep.subr.bf16.mxu1 %v1501_v41 }
  0x2b   :  { %621 = vmatpush2.bf16.msra.mxu0 %v1506_v42 }
  0x2c   :  { %662 = vmatpush2.bf16.msra.mxu1 %v1511_v43  ;;  %622 = vmatprep.subr.bf16.mxu0 %v1518_v44 }
  0x2d   :  { %663 = vmatprep.subr.bf16.mxu1 %v1525_v45  ;;  %v1688_v45 = vld [vmem:[%s1943_s2 + $0x254] ss:$8 sps:$4 sm:$0xff]  }
  0x2f   :  { %623 = vmatpush2.bf16.msra.mxu0 %v1533_v47 }
  0x30   :  { %664 = vmatpush2.bf16.msra.mxu1 %v1543_v50  ;;  %624 = vmatprep.subr.bf16.mxu0 %v1548_v51  ;;  %v1656_v50 = vld [vmem:[%s1945_s1] sm:$0xff] }
  0x31   :  { %665 = vmatprep.subr.bf16.mxu1 %v1555_v52  ;;  %v949_v52 = vcombine.low %v113_v49, %v113_v49 }
  0x33   :  { %625 = vmatpush2.bf16.msra.mxu0 %v1560_v54 }
  0x34   :  { %666 = vmatpush2.bf16.msra.mxu1 %v1567_v55  ;;  %626 = vmatprep.subr.bf16.mxu0 %v1572_v56  ;;  %v947_v55 = vcombine.low %v112_v46, %v112_v46  ;;  %v1670_v46 = vld [vmem:[%s1943_s2 + $0x264] ss:$8 sps:$4 sm:$0xff]  }
  0x35   :  { %667 = vmatprep.subr.bf16.mxu1 %v1579_v57  ;;  %v1639_v57 = vld [vmem:[%s1943_s2 + $0x180] ss:$8 sps:$4 sm:$0xff]  }
  0x36   :  { %1969 = vst [vmem:[#allocation11_spill] sm:$0xff] %v1639_v57 }
  0x37   :  { %627 = vmatpush2.bf16.msra.mxu0 %v1584_v58 }
  0x38   :  { %668 = vmatpush2.bf16.msra.mxu1 %v1591_v59  ;;  %628 = vmatprep.subr.bf16.mxu0 %v1596_v60  ;;  %v1634_v59 = vld [vmem:[%s1943_s2 + $0x80] ss:$8 sps:$4 sm:$0xff]  }
  0x39   :  { %669 = vmatprep.subr.bf16.mxu1 %v1603_v61  ;;  %v1646_v61 = vld [vmem:[%s1943_s2 + $0x274] ss:$8 sps:$4 sm:$0xff]  }
  0x3b   :  { %629 = vmatpush2.bf16.msra.mxu0 %v1608_v62 }
  0x3c   :  { %670 = vmatpush2.bf16.msra.mxu1 %v1615_v63  ;;  %630 = vmatprep.subr.bf16.mxu0 %v1620_v48  ;;  %v1651_v63 = vld [vmem:[%s1944_s0 + $0x10] sm:$0xff] }
  0x3d   :  { %671 = vmatprep.subr.bf16.mxu1 %v1627_v53  ;;  %v1663_v53 = vld [vmem:[%s1943_s2 + $0x270] ss:$8 sps:$4 sm:$0xff]   ;;  %v952_v49 = vcombine.high %v1651_v63, %v1651_v63 }
  0x3f   :  { %631 = vmatpush2.bf16.msra.mxu0 %v1634_v59 }
  0x40   :  { %672 = vmatpush2.bf16.msra.mxu1 %v1639_v57  ;;  %682 = vmatprep.subr.bf16.mxu0 %v1646_v61  ;;  %v1045_v57 = vcombine.high %v1656_v50, %v1656_v50 }
  0x41   :  { %749 = vmatprep.subr.bf16.mxu1 %v1258_v0  ;;  %v1681_v0 = vld [vmem:[%s1943_s2 + $0x260] ss:$8 sps:$4 sm:$0xff]  }
  0x42   :  { %633 = vmatmul.mubr.bf16.vlgmr.msra.gmra.mxu0 %v947_v55  ;;  %v111_v55 = vld [vmem:[%s1946_s3] sm:$0x3] }
  0x43   :  { %674 = vmatmul.mubr.bf16.vlgmr.msra.gmra.mxu1 %v949_v52  ;;  %683 = vmatpush1.bf16.msra.mxu0 %v1663_v53  ;;  %v1845_v52 = vld [vmem:[%s1945_s1 + $0x8] sm:$0xff] }
  0x44   :  { %750 = vmatpush1.bf16.msra.mxu1 %v1269_v2  ;;  %684 = vmatprep.subr.bf16.mxu0 %v1670_v46  ;;  %v1696_v2 = vld [vmem:[%s1943_s2 + $0x250] ss:$8 sps:$4 sm:$0xff]  }
  0x45   :  { %751 = vmatprep.subr.bf16.mxu1 %v1280_v4  ;;  %1043 = vmatprep.mubr.msk.bf16.mxu0 %vm596_vm0, %v952_v49  ;;  %v1703_v4 = vld [vmem:[%s1943_s2 + $0x244] ss:$8 sps:$4 sm:$0xff]  }
  0x46   :  { %781 = vmatprep.mubr.bf16.mxu1 %v1045_v57 }
  0x47   :  { %685 = vmatpush1.bf16.msra.mxu0 %v1681_v0 }
  0x48   :  { %752 = vmatpush1.bf16.msra.mxu1 %v1292_v6  ;;  %686 = vmatprep.subr.bf16.mxu0 %v1688_v45  ;;  %v1710_v6 = vld [vmem:[%s1943_s2 + $0x240] ss:$8 sps:$4 sm:$0xff]  }
  0x49   :  { %753 = vmatprep.subr.bf16.mxu1 %v1304_v8  ;;  %v1717_v8 = vld [vmem:[%s1943_s2 + $0x234] ss:$8 sps:$4 sm:$0xff]  }
  0x4b   :  { %687 = vmatpush1.bf16.msra.mxu0 %v1696_v2 }
  0x4c   :  { %754 = vmatpush1.bf16.msra.mxu1 %v1314_v10  ;;  %688 = vmatprep.subr.bf16.mxu0 %v1703_v4  ;;  %v1724_v10 = vld [vmem:[%s1943_s2 + $0x230] ss:$8 sps:$4 sm:$0xff]  }
  0x4d   :  { %755 = vmatprep.subr.bf16.mxu1 %v1326_v12  ;;  %v1731_v12 = vld [vmem:[%s1943_s2 + $0x224] ss:$8 sps:$4 sm:$0xff]  }
  0x4f   :  { %689 = vmatpush1.bf16.msra.mxu0 %v1710_v6 }
  0x50   :  { %756 = vmatpush1.bf16.msra.mxu1 %v1338_v14  ;;  %690 = vmatprep.subr.bf16.mxu0 %v1717_v8  ;;  %v1738_v14 = vld [vmem:[%s1943_s2 + $0x220] ss:$8 sps:$4 sm:$0xff]  }
  0x51   :  { %757 = vmatprep.subr.bf16.mxu1 %v1350_v16  ;;  %v1745_v16 = vld [vmem:[%s1943_s2 + $0x214] ss:$8 sps:$4 sm:$0xff]  }
  0x53   :  { %691 = vmatpush1.bf16.msra.mxu0 %v1724_v10 }
  0x54   :  { %758 = vmatpush1.bf16.msra.mxu1 %v1362_v18  ;;  %692 = vmatprep.subr.bf16.mxu0 %v1731_v12  ;;  %v1752_v18 = vld [vmem:[%s1943_s2 + $0x210] ss:$8 sps:$4 sm:$0xff]  }
  0x55   :  { %759 = vmatprep.subr.bf16.mxu1 %v1374_v20  ;;  %v1759_v20 = vld [vmem:[%s1943_s2 + $0x204] ss:$8 sps:$4 sm:$0xff]  }
  0x57   :  { %693 = vmatpush1.bf16.msra.mxu0 %v1738_v14 }
  0x58   :  { %760 = vmatpush1.bf16.msra.mxu1 %v1386_v22  ;;  %694 = vmatprep.subr.bf16.mxu0 %v1745_v16  ;;  %v1766_v22 = vld [vmem:[%s1943_s2 + $0x200] ss:$8 sps:$4 sm:$0xff]  }
  0x59   :  { %761 = vmatprep.subr.bf16.mxu1 %v1398_v24  ;;  %v1773_v24 = vld [vmem:[%s1943_s2 + $0x2c4] ss:$8 sps:$4 sm:$0xff]  }
  0x5b   :  { %695 = vmatpush1.bf16.msra.mxu0 %v1752_v18 }
  0x5c   :  { %762 = vmatpush1.bf16.msra.mxu1 %v1410_v26  ;;  %696 = vmatprep.subr.bf16.mxu0 %v1759_v20  ;;  %v1780_v26 = vld [vmem:[%s1943_s2 + $0x2c0] ss:$8 sps:$4 sm:$0xff]  }
  0x5d   :  { %763 = vmatprep.subr.bf16.mxu1 %v1422_v28  ;;  %v1787_v28 = vld [vmem:[%s1943_s2 + $0x2b4] ss:$8 sps:$4 sm:$0xff]  }
  0x5f   :  { %697 = vmatpush1.bf16.msra.mxu0 %v1766_v22 }
  0x60   :  { %764 = vmatpush1.bf16.msra.mxu1 %v1434_v30  ;;  %704 = vmatprep.subr.bf16.mxu0 %v1773_v24  ;;  %v1794_v30 = vld [vmem:[%s1943_s2 + $0x2b0] ss:$8 sps:$4 sm:$0xff]  }
  0x61   :  { %765 = vmatprep.subr.bf16.mxu1 %v1446_v32  ;;  %v1801_v32 = vld [vmem:[%s1943_s2 + $0x2a4] ss:$8 sps:$4 sm:$0xff]  }
  0x63   :  { %705 = vmatpush2.bf16.msra.mxu0 %v1780_v26 }
  0x64   :  { %766 = vmatpush2.bf16.msra.mxu1 %v1458_v34  ;;  %706 = vmatprep.subr.bf16.mxu0 %v1787_v28  ;;  %v1808_v34 = vld [vmem:[%s1943_s2 + $0x2a0] ss:$8 sps:$4 sm:$0xff]  }
  0x65   :  { %767 = vmatprep.subr.bf16.mxu1 %v1470_v36  ;;  %v1815_v36 = vld [vmem:[%s1943_s2 + $0x294] ss:$8 sps:$4 sm:$0xff]  }
  0x67   :  { %707 = vmatpush2.bf16.msra.mxu0 %v1794_v30 }
  0x68   :  { %768 = vmatpush2.bf16.msra.mxu1 %v1482_v38  ;;  %708 = vmatprep.subr.bf16.mxu0 %v1801_v32  ;;  %v1822_v38 = vld [vmem:[%s1943_s2 + $0x290] ss:$8 sps:$4 sm:$0xff]  }
  0x69   :  { %769 = vmatprep.subr.bf16.mxu1 %v1494_v40  ;;  %v1829_v40 = vld [vmem:[%s1943_s2 + $0x284] ss:$8 sps:$4 sm:$0xff]  }
  0x6b   :  { %709 = vmatpush2.bf16.msra.mxu0 %v1808_v34 }
  0x6c   :  { %770 = vmatpush2.bf16.msra.mxu1 %v1506_v42  ;;  %710 = vmatprep.subr.bf16.mxu0 %v1815_v36  ;;  %v1836_v42 = vld [vmem:[%s1943_s2 + $0x280] ss:$8 sps:$4 sm:$0xff]  }
  0x6d   :  { %771 = vmatprep.subr.bf16.mxu1 %v1518_v44  ;;  %v951_v44 = vcombine.low %v1651_v63, %v1651_v63 }
  0x6f   :  { %711 = vmatpush2.bf16.msra.mxu0 %v1822_v38 }
  0x70   :  { %772 = vmatpush2.bf16.msra.mxu1 %v1533_v47  ;;  %712 = vmatprep.subr.bf16.mxu0 %v1829_v40  ;;  %v1047_v47 = vcombine.high %v1845_v52, %v1845_v52 }
  0x71   :  { %773 = vmatprep.subr.bf16.mxu1 %v1548_v51 }
  0x73   :  { %713 = vmatpush2.bf16.msra.mxu0 %v1836_v42 }
  0x74   :  { %774 = vmatpush2.bf16.msra.mxu1 %v1560_v54  ;;  %790 = vmatprep.subr.bf16.mxu0 %v1263_v1  ;;  %v1044_v1 = vcombine.low %v1656_v50, %v1656_v50  ;;  %v116_v50 = vlaneseq }
  0x75   :  { %775 = vmatprep.subr.bf16.mxu1 %v1572_v56 }
  0x76   :  { %715 = vmatmul.mubr.bf16.vlgmr.msra.gmra.mxu0 %v951_v44  ;;  %v117_v51 = vshrl.u32 %v116_v50, 7 }
  0x77   :  { %791 = vmatpush1.bf16.msra.mxu0 %v1274_v3  ;;  %822 = vmatprep.mubr.bf16.mxu0 %v1047_v47  ;;  %v725_v3 = vld [vmem:[%s1945_s1 + $0x10] sm:$0xff] }
  0x78   :  { %776 = vmatpush2.bf16.msra.mxu1 %v1584_v58  ;;  %792 = vmatprep.subr.bf16.mxu0 %v1287_v5  ;;  %v1049_v5 = vcombine.high %v725_v3, %v725_v3  ;;  %v118_v54 = vsub.s32 0, %v117_v51  ;;  %v122_v56 = vsub.s32 1, %v117_v51 }
  0x79   :  { %777 = vmatprep.subr.bf16.mxu1 %v1596_v60 }
  0x7a   :  { %v119_v57 = vrot.slane %v111_v55, %v118_v54  ;;  %v123_v58 = vrot.slane %v111_v55, %v122_v56 }
  0x7b   :  { %793 = vmatpush1.bf16.msra.mxu0 %v1298_v7  ;;  %v1970_v7 = vld [vmem:[#allocation2_spill] sm:$0xff] }
  0x7c   :  { %778 = vmatpush2.bf16.msra.mxu1 %v1608_v62  ;;  %794 = vmatprep.subr.bf16.mxu0 %v1309_v9  ;;  %v1971_v9 = vld [vmem:[#allocation3_spill] sm:$0xff] }
  0x7d   :  { %779 = vmatprep.subr.bf16.mxu1 %v1620_v48 }
  0x7f   :  { %795 = vmatpush1.bf16.msra.mxu0 %v1319_v11  ;;  %v1972_v11 = vld [vmem:[#allocation4_spill] sm:$0xff] }
  0x80   :  { %780 = vmatpush2.bf16.msra.mxu1 %v1634_v59  ;;  %796 = vmatprep.subr.bf16.mxu0 %v1333_v13  ;;  %v1973_v13 = vld [vmem:[#allocation5_spill] sm:$0xff] }
  0x81   :  { %831 = vmatprep.subr.bf16.mxu1 %v1646_v61 }
  0x83   :  { %782 = vmatmul.mubr.bf16.vlgmr.msra.gmra.mxu1 %v1044_v1  ;;  %797 = vmatpush1.bf16.msra.mxu0 %v1345_v15  ;;  %v1974_v15 = vld [vmem:[#allocation6_spill] sm:$0xff] }
  0x84   :  { %832 = vmatpush1.bf16.msra.mxu1 %v1663_v53  ;;  %798 = vmatprep.subr.bf16.mxu0 %v1357_v17  ;;  %v1975_v17 = vld [vmem:[#allocation7_spill] sm:$0xff] }
  0x85   :  { %833 = vmatprep.subr.bf16.mxu1 %v1670_v46  ;;  %1050 = vmatprep.mubr.msk.bf16.mxu1 %vm596_vm0, %v1049_v5 }
  0x87   :  { %799 = vmatpush1.bf16.msra.mxu0 %v1367_v19  ;;  %v1976_v19 = vld [vmem:[#allocation8_spill] sm:$0xff] }
  0x88   :  { %834 = vmatpush1.bf16.msra.mxu1 %v1681_v0  ;;  %800 = vmatprep.subr.bf16.mxu0 %v1381_v21  ;;  %v1977_v21 = vld [vmem:[#allocation9_spill] sm:$0xff] }
  0x89   :  { %835 = vmatprep.subr.bf16.mxu1 %v1688_v45 }
  0x8b   :  { %801 = vmatpush1.bf16.msra.mxu0 %v1393_v23  ;;  %v1978_v23 = vld [vmem:[#allocation10_spill] sm:$0xff] }
  0x8c   :  { %836 = vmatpush1.bf16.msra.mxu1 %v1696_v2  ;;  %802 = vmatprep.subr.bf16.mxu0 %v1405_v25  ;;  %v1046_v25 = vcombine.low %v1845_v52, %v1845_v52 }
  0x8d   :  { %837 = vmatprep.subr.bf16.mxu1 %v1703_v4 }
  0x8f   :  { %803 = vmatpush1.bf16.msra.mxu0 %v1415_v27  ;;  %v1048_v27 = vcombine.low %v725_v3, %v725_v3 }
  0x90   :  { %838 = vmatpush1.bf16.msra.mxu1 %v1710_v6  ;;  %804 = vmatprep.subr.bf16.mxu0 %v1429_v29  ;;  %v1979_v29 = vld [vmem:[#allocation11_spill] sm:$0xff] }
  0x91   :  { %839 = vmatprep.subr.bf16.mxu1 %v1717_v8 }
  0x93   :  { %805 = vmatpush1.bf16.msra.mxu0 %v1441_v31 }
  0x94   :  { %840 = vmatpush1.bf16.msra.mxu1 %v1724_v10  ;;  %806 = vmatprep.subr.bf16.mxu0 %v1453_v33 }
  0x95   :  { %841 = vmatprep.subr.bf16.mxu1 %v1731_v12 }
  0x97   :  { %807 = vmatpush2.bf16.msra.mxu0 %v1463_v35 }
  0x98   :  { %842 = vmatpush1.bf16.msra.mxu1 %v1738_v14  ;;  %808 = vmatprep.subr.bf16.mxu0 %v1477_v37 }
  0x99   :  { %843 = vmatprep.subr.bf16.mxu1 %v1745_v16 }
  0x9b   :  { %809 = vmatpush2.bf16.msra.mxu0 %v1489_v39 }
  0x9c   :  { %844 = vmatpush1.bf16.msra.mxu1 %v1752_v18  ;;  %810 = vmatprep.subr.bf16.mxu0 %v1501_v41 }
  0x9d   :  { %845 = vmatprep.subr.bf16.mxu1 %v1759_v20 }
  0x9f   :  { %811 = vmatpush2.bf16.msra.mxu0 %v1511_v43 }
  0xa0   :  { %846 = vmatpush1.bf16.msra.mxu1 %v1766_v22  ;;  %812 = vmatprep.subr.bf16.mxu0 %v1970_v7 }
  0xa1   :  { %853 = vmatprep.subr.bf16.mxu1 %v1773_v24 }
  0xa3   :  { %813 = vmatpush2.bf16.msra.mxu0 %v1971_v9 }
  0xa4   :  { %854 = vmatpush2.bf16.msra.mxu1 %v1780_v26  ;;  %814 = vmatprep.subr.bf16.mxu0 %v1972_v11 }
  0xa5   :  { %855 = vmatprep.subr.bf16.mxu1 %v1787_v28 }
  0xa7   :  { %815 = vmatpush2.bf16.msra.mxu0 %v1973_v13 }
  0xa8   :  { %856 = vmatpush2.bf16.msra.mxu1 %v1794_v30  ;;  %816 = vmatprep.subr.bf16.mxu0 %v1974_v15 }
  0xa9   :  { %857 = vmatprep.subr.bf16.mxu1 %v1801_v32 }
  0xab   :  { %817 = vmatpush2.bf16.msra.mxu0 %v1975_v17 }
  0xac   :  { %858 = vmatpush2.bf16.msra.mxu1 %v1808_v34  ;;  %818 = vmatprep.subr.bf16.mxu0 %v1976_v19 }
  0xad   :  { %859 = vmatprep.subr.bf16.mxu1 %v1815_v36 }
  0xaf   :  { %819 = vmatpush2.bf16.msra.mxu0 %v1977_v21 }
  0xb0   :  { %860 = vmatpush2.bf16.msra.mxu1 %v1822_v38  ;;  %820 = vmatprep.subr.bf16.mxu0 %v1978_v23 }
  0xb1   :  { %861 = vmatprep.subr.bf16.mxu1 %v1829_v40 }
  0xb3   :  { %821 = vmatpush2.bf16.msra.mxu0 %v1979_v29 }
  0xb4   :  { %862 = vmatpush2.bf16.msra.mxu1 %v1836_v42 }
  0xb6   :  { %823 = vmatmul.mubr.bf16.vlgmr.msra.gmra.mxu0 %v1046_v25 }
  0xb7   :  { %864 = vmatmul.mubr.bf16.vlgmr.msra.gmra.mxu1 %v1048_v27 }
 0x102   :  { %v634_v31 = vpop.f32.mrf.mxu0 }
 0x103   :  { %v675_v33 = vpop.f32.mrf.mxu1  ;;  %v635_v59 = vadd.f32 %v634_v31, %v119_v57 }
 0x104   :  { %v636_v35 = vpop.f32.mrf.mxu0 }
 0x105   :  { %v677_v37 = vpop.f32.mrf.mxu1  ;;  %v637_v60 = vadd.f32 %v636_v35, %v123_v58  ;;  %v676_v61 = vadd.f32 %v675_v33, %v635_v59 }
 0x106   :  { %v638_v39 = vpop.f32.mrf.mxu0 }
 0x107   :  { %v679_v41 = vpop.f32.mrf.mxu1  ;;  %v678_v63 = vadd.f32 %v677_v37, %v637_v60 }
 0x108   :  { %v639_v43 = vpop.f32.mrf.mxu0 }
 0x109   :  { %v680_v45 = vpop.f32.mrf.mxu1 }
 0x136   :  { %v716_v62 = vpop.f32.mrf.mxu0 }
 0x137   :  { %v717_v48 = vadd.f32 %v716_v62, %v676_v61 }
 0x138   :  { %v718_v53 = vpop.f32.mrf.mxu0 }
 0x139   :  { %v872_v46 = vsub.f32 0.0, %v717_v48  ;;  %v719_v49 = vadd.f32 %v718_v53, %v678_v63 }
 0x13a   :  { %v720_v0 = vpop.f32.mrf.mxu0 }
 0x13b   :  { %v874_v2 = vmul.f32 1.442695, %v872_v46  ;;  %v873_v4 = vsub.f32 0.0, %v719_v49 }
 0x13c   :  { %v721_v6 = vpop.f32.mrf.mxu0 }
 0x13d   :  { %1204 = vpow2.f32 %v874_v2  ;;  %v876_v8 = vmul.f32 1.442695, %v873_v4 }
 0x13f   :  { %1206 = vpow2.f32 %v876_v8 }
 0x143   :  { %v783_v10 = vpop.f32.mrf.mxu1 }
 0x144   :  { %v784_v38 = vadd.f32 %v783_v10, %v119_v57 }
 0x145   :  { %v785_v12 = vpop.f32.mrf.mxu1 }
 0x146   :  { %v786_v44 = vadd.f32 %v785_v12, %v123_v58 }
 0x147   :  { %v787_v14 = vpop.f32.mrf.mxu1 }
 0x149   :  { %v788_v16 = vpop.f32.mrf.mxu1 }
 0x14a   :  { %v1205_v18 = vpop.eup %1204 }
 0x14b   :  { %v878_v20 = vadd.f32 1.0, %v1205_v18 }
 0x14c   :  { %v1207_v22 = vpop.eup %1206 }
 0x14d   :  { %1208 = vrcp.f32 %v878_v20  ;;  %v879_v24 = vadd.f32 1.0, %v1207_v22 }
 0x14f   :  { %1210 = vrcp.f32 %v879_v24 }
 0x15a   :  { %v1209_v26 = vpop.eup %1208 }
 0x15b   :  { %v882_v30 = vmul.f32 %v1209_v26, %v717_v48 }
 0x15c   :  { %v1211_v28 = vpop.eup %1210 }
 0x15d   :  { %v883_v32 = vmul.f32 %v1211_v28, %v719_v49 }
 0x15f   :  { %v1053_v36 = vpack.c.bf16 %v883_v32, %v882_v30 }
 0x161   :  { %907 = vst.msk [vmem:[%s1947_s4] sm:$0xff] %vm1926_vm3, %v1053_v36 }
 0x176   :  { %v824_v40 = vpop.f32.mrf.mxu0 }
 0x177   :  { %v865_v42 = vpop.f32.mrf.mxu1  ;;  %v825_v52 = vadd.f32 %v824_v40, %v784_v38 }
 0x178   :  { %v826_v47 = vpop.f32.mrf.mxu0 }
 0x179   :  { %v867_v1 = vpop.f32.mrf.mxu1  ;;  %v866_v3 = vadd.f32 %v865_v42, %v825_v52  ;;  %v827_v5 = vadd.f32 %v826_v47, %v786_v44 }
 0x17a   :  { %v828_v7 = vpop.f32.mrf.mxu0 }
 0x17b   :  { %v869_v9 = vpop.f32.mrf.mxu1  ;;  %v884_v11 = vsub.f32 0.0, %v866_v3  ;;  %v868_v13 = vadd.f32 %v867_v1, %v827_v5 }
 0x17c   :  { %v829_v15 = vpop.f32.mrf.mxu0 }
 0x17d   :  { %v870_v17 = vpop.f32.mrf.mxu1  ;;  %v886_v19 = vmul.f32 1.442695, %v884_v11  ;;  %v885_v21 = vsub.f32 0.0, %v868_v13 }
 0x17f   :  { %1212 = vpow2.f32 %v886_v19  ;;  %v888_v23 = vmul.f32 1.442695, %v885_v21 }
 0x181   :  { %1214 = vpow2.f32 %v888_v23 }
 0x18c   :  { %v1213_v25 = vpop.eup %1212 }
 0x18d   :  { %v890_v27 = vadd.f32 1.0, %v1213_v25 }
 0x18e   :  { %v1215_v29 = vpop.eup %1214 }
 0x18f   :  { %1216 = vrcp.f32 %v890_v27  ;;  %v891_v31 = vadd.f32 1.0, %v1215_v29 }
 0x191   :  { %1218 = vrcp.f32 %v891_v31 }
 0x19c   :  { %v1217_v33 = vpop.eup %1216 }
 0x19d   :  { %v894_v35 = vmul.f32 %v1217_v33, %v866_v3 }
 0x19e   :  { %v1219_v37 = vpop.eup %1218 }
 0x19f   :  { %v895_v39 = vmul.f32 %v1219_v37, %v868_v13  ;;  %v917_v41 = vsub.f32 %v882_v30, %v894_v35 }
 0x1a1   :  { %v1054_v43 = vpack.c.bf16 %v895_v39, %v894_v35  ;;  %v918_v45 = vsub.f32 %v883_v32, %v895_v39  ;;  %v919_v51 = vand.u32 2147483647, %v917_v41 }
 0x1a3   :  { %916 = vst.msk [vmem:[%s1948_s5] sm:$0xff] %vm1926_vm3, %v1054_v43  ;;  %v920_v50 = vand.u32 2147483647, %v918_v45 }
 0x1a5   :  { %v922_v54 = vsel %vm921_vm4, %v920_v50, 0.0 }
 0x1a6   :  { %v923_v55 = vadd.f32 %v922_v54, %v919_v51 }
 0x1a8   :  { %924 = vadd.xlane.f32.xlu0 %v923_v55 }
 0x231   :  { %v925_v56 = vpop.xlane.xlu0 %924 }
 0x232   :  { %v926_v57 = vrot.slane %v925_v56, 4 }
 0x234   :  { %v927_v58 = vadd.f32 %v926_v57, %v925_v56 }
 0x236   :  { %v928_v59 = vrot.slane %v927_v58, 2 }
 0x238   :  { %v929_v60 = vadd.f32 %v928_v59, %v927_v58 }
 0x23a   :  { %v930_v61 = vrot.slane %v929_v60, 1 }
 0x23c   :  { %v931_v62 = vadd.f32 %v930_v61, %v929_v60 }
 0x23e   :  { %1055 = vpush %v931_v62 }
 0x26f   :  { %s1056_s20 = spop %1055 }
 0x270   :  { %v933_v63 = vstv %s1056_s20 }
 0x271   :  { %934 = vst [vmem:[%s1949_s6] sm:$0xff] %v933_v63 }

// kernel: effic_loss.11
= control target key start
LH: loop header
LB: loop body
LE: loop exit
PB: predicated region body
PF: predicated region fallthrough
CT: control target
= control target key end

     0   :  { %s3075_s15 = smov 0   ;;  %s3902_s0 = inlined_call_operand.vmem [shape: bf16[2,3,3,160], index: 0, kind: input, shape index: {}]   ;;  %s3903_s1 = inlined_call_operand.vmem [shape: bf16[2,3,3,160], index: 1, kind: input, shape index: {}]   ;;  %s3904_s2 = inlined_call_operand.vmem [shape: bf16[9,160,224], index: 2, kind: input, shape index: {}]   ;;  %s3905_s3 = inlined_call_operand.vmem [shape: f32[1,224], index: 3, kind: input, shape index: {}]   ;;  %s3906_s4 = inlined_call_operand.vmem [shape: f32[2,8,128], index: 4, kind: output, shape index: {}]  }
   0x1 LB: > { %s2371_s16 = sadd.s32 4294967295, %s3048_s15   ;;  %p2375_p0 = scmp.ge.s32.totalorder %s3048_s15, 1  ;;  %s3048_s15 = sphi %s3075_s15, %s14_s15  }
   0x2   : > { %p172_p1 = scmp.lt.s32.totalorder %s3048_s15, 3 }
   0x4   : > { %p173_p2 = pnand %p2375_p0, %p172_p1 }
   0x5   : > { %p202_p3 = scmp.lt.s32.totalorder (!%p173_p2), %s2371_s16, 1 }
   0x6   : > { %176 = sbr.rel (%p173_p2) target bundleno = 817 (0x331), region = 36 }
   0xb   : > { %v3086_v0 = vld [vmem:[%s3904_s2 + $0x114] ss:$8 sps:$4 sm:$0xff]   ;;  %v3097_v2 = vld [vmem:[%s3904_s2 + $0x110] ss:$8 sps:$4 sm:$0xff]   ;;  %v3108_v4 = vld [vmem:[%s3904_s2 + $0x104] ss:$8 sps:$4 sm:$0xff]  }
   0xc   : > { %v3091_v1 = vld [vmem:[%s3904_s2 + $0x74] ss:$8 sps:$4 sm:$0xff]   ;;  %384 = vmatprep.subr.bf16.mxu0 %v3086_v0  ;;  %v3102_v3 = vld [vmem:[%s3904_s2 + $0x70] ss:$8 sps:$4 sm:$0xff]   ;;  %v3115_v5 = vld [vmem:[%s3904_s2 + $0x64] ss:$8 sps:$4 sm:$0xff]  }
   0xd   : > { %528 = vmatprep.subr.bf16.mxu1 %v3091_v1  ;;  %385 = vmatpush1.bf16.msra.mxu0 %v3097_v2  ;;  %v3120_v6 = vld [vmem:[%s3904_s2 + $0x100] ss:$8 sps:$4 sm:$0xff]   ;;  %v3132_v8 = vld [vmem:[%s3904_s2 + $0xf4] ss:$8 sps:$4 sm:$0xff]   ;;  %v3142_v10 = vld [vmem:[%s3904_s2 + $0xf0] ss:$8 sps:$4 sm:$0xff]  }
   0xe   : > { %529 = vmatpush1.bf16.msra.mxu1 %v3102_v3  ;;  %386 = vmatprep.subr.bf16.mxu0 %v3108_v4  ;;  %v3126_v7 = vld [vmem:[%s3904_s2 + $0x60] ss:$8 sps:$4 sm:$0xff]   ;;  %v3137_v9 = vld [vmem:[%s3904_s2 + $0x54] ss:$8 sps:$4 sm:$0xff]   ;;  %v3147_v11 = vld [vmem:[%s3904_s2 + $0x50] ss:$8 sps:$4 sm:$0xff]  }
   0xf   : > { %530 = vmatprep.subr.bf16.mxu1 %v3115_v5  ;;  %v3154_v12 = vld [vmem:[%s3904_s2 + $0xe4] ss:$8 sps:$4 sm:$0xff]   ;;  %v3166_v14 = vld [vmem:[%s3904_s2 + $0xe0] ss:$8 sps:$4 sm:$0xff]   ;;  %v3178_v16 = vld [vmem:[%s3904_s2 + $0xd4] ss:$8 sps:$4 sm:$0xff]  }
  0x10   : > { %v3161_v13 = vld [vmem:[%s3904_s2 + $0x44] ss:$8 sps:$4 sm:$0xff]   ;;  %v3173_v15 = vld [vmem:[%s3904_s2 + $0x40] ss:$8 sps:$4 sm:$0xff]   ;;  %v3187_v17 = vld [vmem:[%s3904_s2 + $0x34] ss:$8 sps:$4 sm:$0xff]  }
  0x11   : > { %387 = vmatpush1.bf16.msra.mxu0 %v3120_v6  ;;  %v3192_v18 = vld [vmem:[%s3904_s2 + $0xd0] ss:$8 sps:$4 sm:$0xff]   ;;  %v3204_v20 = vld [vmem:[%s3904_s2 + $0xc4] ss:$8 sps:$4 sm:$0xff]   ;;  %s3908_s16 = smov (!%p202_p3, %s2371_s16), 1  ;;  %vm380_vm0 = vcmask 261120  }
  0x12   : > { %531 = vmatpush1.bf16.msra.mxu1 %v3126_v7  ;;  %388 = vmatprep.subr.bf16.mxu0 %v3132_v8  ;;  %v3197_v19 = vld [vmem:[%s3904_s2 + $0x30] ss:$8 sps:$4 sm:$0xff]   ;;  %v3215_v21 = vld [vmem:[%s3904_s2 + $0x24] ss:$8 sps:$4 sm:$0xff]   ;;  %v3220_v22 = vld [vmem:[%s3904_s2 + $0xc0] ss:$8 sps:$4 sm:$0xff]  }
  0x13   : > { %532 = vmatprep.subr.bf16.mxu1 %v3137_v9  ;;  %v3227_v23 = vld [vmem:[%s3904_s2 + $0x20] ss:$8 sps:$4 sm:$0xff]   ;;  %v3232_v24 = vld [vmem:[%s3904_s2 + $0xb4] ss:$8 sps:$4 sm:$0xff]   ;;  %s2745_s19 = smul.u32 12, %s3908_s16  ;;  %vm2290_vm1 = vcmask 1040384  }
  0x14   : > { %v3240_v25 = vld [vmem:[%s3904_s2 + $0x14] ss:$8 sps:$4 sm:$0xff]   ;;  %v3245_v26 = vld [vmem:[%s3904_s2 + $0xb0] ss:$8 sps:$4 sm:$0xff]   ;;  %v3257_v28 = vld [vmem:[%s3904_s2 + $0xa4] ss:$8 sps:$4 sm:$0xff]  }
  0x15   : > { %389 = vmatpush1.bf16.msra.mxu0 %v3142_v10  ;;  %v3250_v27 = vld [vmem:[%s3904_s2 + $0x10] ss:$8 sps:$4 sm:$0xff]   ;;  %s3264_s30 = scalar_lea.vmem %s3902_s0, %s2745_s19  ;;  %v3271_v29 = vld [vmem:[%s3904_s2 + $0x4] ss:$8 sps:$4 sm:$0xff]   ;;  %v3281_v31 = vld [vmem:[%s3904_s2 + $0xa0] ss:$8 sps:$4 sm:$0xff]   ;;  %s3319_s26 = scalar_lea.vmem %s3903_s1, %s2745_s19 }
  0x16   : > { %533 = vmatpush1.bf16.msra.mxu1 %v3147_v11  ;;  %390 = vmatprep.subr.bf16.mxu0 %v3154_v12  ;;  %v3274_v30 = vld.sshfl [vmem:[%s3264_s30] sm:$0x33 pattern:$0x76325410]  ;;  %v2804_v34 = vld [vmem:[%s3904_s2 + $0x134] ss:$8 sps:$4 sm:$0xff]  }
  0x17   : > { %534 = vmatprep.subr.bf16.mxu1 %v3161_v13  ;;  %v3286_v32 = vld [vmem:[%s3904_s2] ss:$8 sps:$4 sm:$0xff]   ;;  %v3290_v33 = vcombine.high %v3274_v30, %v3274_v30  ;;  %v2806_v35 = vld [vmem:[%s3904_s2 + $0x94] ss:$8 sps:$4 sm:$0xff]   ;;  %v2808_v37 = vld [vmem:[%s3904_s2 + $0x130] ss:$8 sps:$4 sm:$0xff]  }
  0x18   : > { %v2809_v38 = vld [vmem:[%s3904_s2 + $0x90] ss:$8 sps:$4 sm:$0xff]   ;;  %v2810_v39 = vld [vmem:[%s3904_s2 + $0x124] ss:$8 sps:$4 sm:$0xff]   ;;  %v2814_v42 = vld [vmem:[%s3904_s2 + $0x120] ss:$8 sps:$4 sm:$0xff]  }
  0x19   : > { %391 = vmatpush1.bf16.msra.mxu0 %v3166_v14  ;;  %v277_v36 = vshrl.u32 %v3290_v33, 16  ;;  %2441 = vmatprep.mubr.msk.bf16.mxu1 %vm380_vm0, %v3290_v33  ;;  %v2812_v40 = vld [vmem:[%s3904_s2 + $0x84] ss:$8 sps:$4 sm:$0xff]   ;;  %v2815_v43 = vld [vmem:[%s3904_s2 + $0x80] ss:$8 sps:$4 sm:$0xff]   ;;  %v274_v45 = vshrl.u32 %v3274_v30, 16 }
  0x1a   : > { %535 = vmatpush1.bf16.msra.mxu1 %v3173_v15  ;;  %392 = vmatprep.subr.bf16.mxu0 %v3178_v16  ;;  %v3326_v41 = vld.sshfl [vmem:[%s3319_s26] sm:$0x33 pattern:$0x76325410]  ;;  %v2818_v47 = vld [vmem:[%s3904_s2 + $0x1b4] ss:$8 sps:$4 sm:$0xff]  }
  0x1b   : > { %536 = vmatprep.subr.bf16.mxu1 %v3187_v17  ;;  %2420 = vmatprep.mubr.msk.bf16.mxu0 %vm380_vm0, %v277_v36  ;;  %v3336_v44 = vcombine.high %v3326_v41, %v3326_v41  ;;  %v579_v48 = vshrl.u32 %v3326_v41, 16  ;;  %v2816_v49 = vld [vmem:[%s3904_s2 + $0x1b0] ss:$8 sps:$4 sm:$0xff]   ;;  %v2821_v50 = vld [vmem:[%s3904_s2 + $0x1a4] ss:$8 sps:$4 sm:$0xff]   ;;  %v695_v51 = vrot.slane %v3290_v33, 1 }
  0x1c   : > { %v2819_v53 = vld [vmem:[%s3904_s2 + $0x1a0] ss:$8 sps:$4 sm:$0xff]   ;;  %v2824_v54 = vld [vmem:[%s3904_s2 + $0x194] ss:$8 sps:$4 sm:$0xff]   ;;  %v2822_v55 = vld [vmem:[%s3904_s2 + $0x190] ss:$8 sps:$4 sm:$0xff]  }
  0x1d   : > { %393 = vmatpush1.bf16.msra.mxu0 %v3192_v18  ;;  %v582_v46 = vshrl.u32 %v3336_v44, 16  ;;  %v844_v52 = vrot.slane %v3336_v44, 1  ;;  %v2827_v56 = vld [vmem:[%s3904_s2 + $0x184] ss:$8 sps:$4 sm:$0xff]   ;;  %v2825_v57 = vld [vmem:[%s3904_s2 + $0x180] ss:$8 sps:$4 sm:$0xff]  }
  0x1e   : > { %537 = vmatpush1.bf16.msra.mxu1 %v3197_v19  ;;  %394 = vmatprep.subr.bf16.mxu0 %v3204_v20  ;;  %v2830_v58 = vld [vmem:[%s3904_s2 + $0x174] ss:$8 sps:$4 sm:$0xff]   ;;  %v2828_v59 = vld [vmem:[%s3904_s2 + $0x170] ss:$8 sps:$4 sm:$0xff]   ;;  %v2833_v60 = vld [vmem:[%s3904_s2 + $0x164] ss:$8 sps:$4 sm:$0xff]  }
  0x1f   : > { %538 = vmatprep.subr.bf16.mxu1 %v3215_v21  ;;  %v2831_v61 = vld [vmem:[%s3904_s2 + $0x160] ss:$8 sps:$4 sm:$0xff]   ;;  %v2836_v62 = vld [vmem:[%s3904_s2 + $0x154] ss:$8 sps:$4 sm:$0xff]   ;;  %v2834_v63 = vld [vmem:[%s3904_s2 + $0x150] ss:$8 sps:$4 sm:$0xff]  }
  0x20   : > { %v2876_v33 = vld [vmem:[%s3904_s2 + $0x2f0] ss:$8 sps:$4 sm:$0xff]   ;;  %vm2292_vm2 = vcmask 778240   ;;  %s2378_s17 = sshll.u32 %s3908_s16, 3 }
  0x21   : > { %395 = vmatpush1.bf16.msra.mxu0 %v3220_v22  ;;  %s215_s20 = scalar_lea.vmem %s3906_s4, %s2378_s17 }
  0x22   : > { %539 = vmatpush1.bf16.msra.mxu1 %v3227_v23  ;;  %396 = vmatprep.subr.bf16.mxu0 %v3232_v24 }
  0x23   : > { %540 = vmatprep.subr.bf16.mxu1 %v3240_v25 }
  0x25   : > { %397 = vmatpush1.bf16.msra.mxu0 %v3245_v26 }
  0x26   : > { %541 = vmatpush1.bf16.msra.mxu1 %v3250_v27  ;;  %398 = vmatprep.subr.bf16.mxu0 %v3257_v28 }
  0x27   : > { %542 = vmatprep.subr.bf16.mxu1 %v3271_v29 }
  0x29   : > { %399 = vmatpush1.bf16.msra.mxu0 %v3281_v31 }
  0x2a   : > { %543 = vmatpush1.bf16.msra.mxu1 %v3286_v32  ;;  %412 = vmatprep.subr.bf16.mxu0 %v2804_v34 }
  0x2b   : > { %556 = vmatprep.subr.bf16.mxu1 %v2806_v35 }
  0x2d   : > { %413 = vmatpush2.bf16.msra.mxu0 %v2808_v37 }
  0x2e   : > { %557 = vmatpush2.bf16.msra.mxu1 %v2809_v38  ;;  %414 = vmatprep.subr.bf16.mxu0 %v2810_v39 }
  0x2f   : > { %558 = vmatprep.subr.bf16.mxu1 %v2812_v40 }
  0x31   : > { %415 = vmatpush2.bf16.msra.mxu0 %v2814_v42 }
  0x32   : > { %559 = vmatpush2.bf16.msra.mxu1 %v2815_v43  ;;  %588 = vmatprep.subr.bf16.mxu0 %v3086_v0  ;;  %v2839_v0 = vld [vmem:[%s3904_s2 + $0x144] ss:$8 sps:$4 sm:$0xff]  }
  0x33   : > { %632 = vmatprep.subr.bf16.mxu1 %v3091_v1  ;;  %v2837_v1 = vld [vmem:[%s3904_s2 + $0x140] ss:$8 sps:$4 sm:$0xff]  }
  0x34   : > { %417 = vmatmul.mubr.bf16.vlgmr.msra.gmra.mxu0 %v274_v45  ;;  %v2891_v45 = vld [vmem:[%s3904_s2 + $0x2a0] ss:$8 sps:$4 sm:$0xff]  }
  0x35   : > { %561 = vmatmul.mubr.bf16.vlgmr.msra.gmra.mxu1 %v3274_v30  ;;  %589 = vmatpush1.bf16.msra.mxu0 %v3097_v2  ;;  %v2842_v2 = vld [vmem:[%s3904_s2 + $0x1d4] ss:$8 sps:$4 sm:$0xff]  }
  0x36   : > { %633 = vmatpush1.bf16.msra.mxu1 %v3102_v3  ;;  %590 = vmatprep.subr.bf16.mxu0 %v3108_v4  ;;  %v2840_v3 = vld [vmem:[%s3904_s2 + $0x1d0] ss:$8 sps:$4 sm:$0xff]   ;;  %v2845_v4 = vld [vmem:[%s3904_s2 + $0x1c4] ss:$8 sps:$4 sm:$0xff]  }
  0x37   : > { %634 = vmatprep.subr.bf16.mxu1 %v3115_v5  ;;  %2443 = vmatprep.mubr.msk.bf16.mxu0 %vm380_vm0, %v582_v46  ;;  %v2843_v5 = vld [vmem:[%s3904_s2 + $0x1c0] ss:$8 sps:$4 sm:$0xff]   ;;  %v2896_v46 = vld [vmem:[%s3904_s2 + $0x294] ss:$8 sps:$4 sm:$0xff]  }
  0x38   : > { %2444 = vmatprep.mubr.msk.bf16.mxu1 %vm380_vm0, %v3336_v44  ;;  %v2893_v44 = vld [vmem:[%s3904_s2 + $0x2a4] ss:$8 sps:$4 sm:$0xff]  }
  0x39   : > { %591 = vmatpush1.bf16.msra.mxu0 %v3120_v6  ;;  %v2848_v6 = vld [vmem:[%s3904_s2 + $0x254] ss:$8 sps:$4 sm:$0xff]  }
  0x3a   : > { %635 = vmatpush1.bf16.msra.mxu1 %v3126_v7  ;;  %592 = vmatprep.subr.bf16.mxu0 %v3132_v8  ;;  %v3446_v7 = vld.sshfl [vmem:[%s3264_s30 + $0x4] sm:$0x33 pattern:$0x76325410]  ;;  %v694_v8 = vrot.slane %v3274_v30, 1 }
  0x3b   : > { %636 = vmatprep.subr.bf16.mxu1 %v3137_v9  ;;  %v843_v9 = vrot.slane %v3326_v41, 1  ;;  %v2875_v30 = vld [vmem:[%s3904_s2 + $0x264] ss:$8 sps:$4 sm:$0xff]  }
  0x3d   : > { %593 = vmatpush1.bf16.msra.mxu0 %v3142_v10  ;;  %v3451_v10 = vld.sshfl [vmem:[%s3319_s26 + $0x4] sm:$0x33 pattern:$0x76325410] }
  0x3e   : > { %637 = vmatpush1.bf16.msra.mxu1 %v3147_v11  ;;  %594 = vmatprep.subr.bf16.mxu0 %v3154_v12  ;;  %v2846_v11 = vld [vmem:[%s3904_s2 + $0x250] ss:$8 sps:$4 sm:$0xff]   ;;  %v2851_v12 = vld [vmem:[%s3904_s2 + $0x244] ss:$8 sps:$4 sm:$0xff]  }
  0x3f   : > { %638 = vmatprep.subr.bf16.mxu1 %v3161_v13  ;;  %v3461_v13 = vcombine.high %v3446_v7, %v3446_v7 }
  0x41   : > { %595 = vmatpush1.bf16.msra.mxu0 %v3166_v14  ;;  %v3465_v14 = vcombine.high %v3451_v10, %v3451_v10 }
  0x42   : > { %639 = vmatpush1.bf16.msra.mxu1 %v3173_v15  ;;  %596 = vmatprep.subr.bf16.mxu0 %v3178_v16  ;;  %v2849_v15 = vld [vmem:[%s3904_s2 + $0x240] ss:$8 sps:$4 sm:$0xff]   ;;  %v2854_v16 = vld [vmem:[%s3904_s2 + $0x234] ss:$8 sps:$4 sm:$0xff]  }
  0x43   : > { %640 = vmatprep.subr.bf16.mxu1 %v3187_v17  ;;  %v2852_v17 = vld [vmem:[%s3904_s2 + $0x230] ss:$8 sps:$4 sm:$0xff]   ;;  %v1301_v36 = vshrl.u32 %v3465_v14, 16 }
  0x45   : > { %597 = vmatpush1.bf16.msra.mxu0 %v3192_v18  ;;  %v2857_v18 = vld [vmem:[%s3904_s2 + $0x224] ss:$8 sps:$4 sm:$0xff]  }
  0x46   : > { %641 = vmatpush1.bf16.msra.mxu1 %v3197_v19  ;;  %598 = vmatprep.subr.bf16.mxu0 %v3204_v20  ;;  %v2855_v19 = vld [vmem:[%s3904_s2 + $0x220] ss:$8 sps:$4 sm:$0xff]   ;;  %v2860_v20 = vld [vmem:[%s3904_s2 + $0x214] ss:$8 sps:$4 sm:$0xff]  }
  0x47   : > { %642 = vmatprep.subr.bf16.mxu1 %v3215_v21  ;;  %v2858_v21 = vld [vmem:[%s3904_s2 + $0x210] ss:$8 sps:$4 sm:$0xff]  }
  0x49   : > { %599 = vmatpush1.bf16.msra.mxu0 %v3220_v22  ;;  %v2863_v22 = vld [vmem:[%s3904_s2 + $0x204] ss:$8 sps:$4 sm:$0xff]  }
  0x4a   : > { %643 = vmatpush1.bf16.msra.mxu1 %v3227_v23  ;;  %600 = vmatprep.subr.bf16.mxu0 %v3232_v24  ;;  %v2861_v23 = vld [vmem:[%s3904_s2 + $0x200] ss:$8 sps:$4 sm:$0xff]   ;;  %v2866_v24 = vld [vmem:[%s3904_s2 + $0x1f4] ss:$8 sps:$4 sm:$0xff]  }
  0x4b   : > { %644 = vmatprep.subr.bf16.mxu1 %v3240_v25  ;;  %v2864_v25 = vld [vmem:[%s3904_s2 + $0x1f0] ss:$8 sps:$4 sm:$0xff]  }
  0x4d   : > { %601 = vmatpush1.bf16.msra.mxu0 %v3245_v26  ;;  %v2869_v26 = vld [vmem:[%s3904_s2 + $0x1e4] ss:$8 sps:$4 sm:$0xff]  }
  0x4e   : > { %645 = vmatpush1.bf16.msra.mxu1 %v3250_v27  ;;  %602 = vmatprep.subr.bf16.mxu0 %v3257_v28  ;;  %v2867_v27 = vld [vmem:[%s3904_s2 + $0x1e0] ss:$8 sps:$4 sm:$0xff]   ;;  %v2872_v28 = vld [vmem:[%s3904_s2 + $0x274] ss:$8 sps:$4 sm:$0xff]  }
  0x4f   : > { %646 = vmatprep.subr.bf16.mxu1 %v3271_v29  ;;  %v2870_v29 = vld [vmem:[%s3904_s2 + $0x270] ss:$8 sps:$4 sm:$0xff]  }
  0x51   : > { %603 = vmatpush1.bf16.msra.mxu0 %v3281_v31  ;;  %v2873_v31 = vld [vmem:[%s3904_s2 + $0x260] ss:$8 sps:$4 sm:$0xff]  }
  0x52   : > { %647 = vmatpush1.bf16.msra.mxu1 %v3286_v32  ;;  %616 = vmatprep.subr.bf16.mxu0 %v2804_v34  ;;  %v2878_v32 = vld [vmem:[%s3904_s2 + $0x2f4] ss:$8 sps:$4 sm:$0xff]   ;;  %v2881_v34 = vld [vmem:[%s3904_s2 + $0x2e4] ss:$8 sps:$4 sm:$0xff]  }
  0x53   : > { %660 = vmatprep.subr.bf16.mxu1 %v2806_v35  ;;  %v1149_v35 = vshrl.u32 %v3461_v13, 16 }
  0x55   : > { %617 = vmatpush2.bf16.msra.mxu0 %v2808_v37  ;;  %v2879_v37 = vld [vmem:[%s3904_s2 + $0x2e0] ss:$8 sps:$4 sm:$0xff]  }
  0x56   : > { %661 = vmatpush2.bf16.msra.mxu1 %v2809_v38  ;;  %618 = vmatprep.subr.bf16.mxu0 %v2810_v39  ;;  %v2884_v38 = vld [vmem:[%s3904_s2 + $0x2d4] ss:$8 sps:$4 sm:$0xff]   ;;  %v2882_v39 = vld [vmem:[%s3904_s2 + $0x2d0] ss:$8 sps:$4 sm:$0xff]  }
  0x57   : > { %662 = vmatprep.subr.bf16.mxu1 %v2812_v40  ;;  %v2887_v40 = vld [vmem:[%s3904_s2 + $0x2c4] ss:$8 sps:$4 sm:$0xff]  }
  0x59   : > { %619 = vmatpush2.bf16.msra.mxu0 %v2814_v42  ;;  %v2890_v42 = vld [vmem:[%s3904_s2 + $0x2b4] ss:$8 sps:$4 sm:$0xff]  }
  0x5a   : > { %663 = vmatpush2.bf16.msra.mxu1 %v2815_v43  ;;  %800 = vmatprep.subr.bf16.mxu0 %v2818_v47  ;;  %v2888_v43 = vld [vmem:[%s3904_s2 + $0x2b0] ss:$8 sps:$4 sm:$0xff]  }
  0x5b   : > { %849 = vmatprep.subr.bf16.mxu1 %v2818_v47  ;;  %v2894_v47 = vld [vmem:[%s3904_s2 + $0x290] ss:$8 sps:$4 sm:$0xff]  }
  0x5c   : > { %621 = vmatmul.mubr.bf16.vlgmr.msra.gmra.mxu0 %v579_v48  ;;  %v2899_v48 = vld [vmem:[%s3904_s2 + $0x284] ss:$8 sps:$4 sm:$0xff]  }
  0x5d   : > { %665 = vmatmul.mubr.bf16.vlgmr.msra.gmra.mxu1 %v3326_v41  ;;  %801 = vmatpush1.bf16.msra.mxu0 %v2816_v49  ;;  %v2885_v41 = vld [vmem:[%s3904_s2 + $0x2c0] ss:$8 sps:$4 sm:$0xff]  }
  0x5e   : > { %850 = vmatpush1.bf16.msra.mxu1 %v2816_v49  ;;  %802 = vmatprep.subr.bf16.mxu0 %v2821_v50  ;;  %v2897_v49 = vld [vmem:[%s3904_s2 + $0x280] ss:$8 sps:$4 sm:$0xff]  }
  0x5f   : > { %851 = vmatprep.subr.bf16.mxu1 %v2821_v50  ;;  %2485 = vmatprep.mubr.msk.bf16.mxu0 %vm380_vm0, %v695_v51  ;;  %v2902_v50 = vld [vmem:[%s3904_s2 + $0x314] ss:$8 sps:$4 sm:$0xff]   ;;  %v2900_v51 = vld [vmem:[%s3904_s2 + $0x310] ss:$8 sps:$4 sm:$0xff]  }
  0x60   : > { %2486 = vmatprep.mubr.msk.bf16.mxu1 %vm380_vm0, %v844_v52  ;;  %v2905_v52 = vld [vmem:[%s3904_s2 + $0x304] ss:$8 sps:$4 sm:$0xff]  }
  0x61   : > { %803 = vmatpush1.bf16.msra.mxu0 %v2819_v53 }
  0x62   : > { %852 = vmatpush1.bf16.msra.mxu1 %v2819_v53  ;;  %804 = vmatprep.subr.bf16.mxu0 %v2824_v54  ;;  %v2903_v53 = vld [vmem:[%s3904_s2 + $0x300] ss:$8 sps:$4 sm:$0xff]  }
  0x63   : > { %853 = vmatprep.subr.bf16.mxu1 %v2824_v54  ;;  %v2908_v54 = vld [vmem:[%s3904_s2 + $0x394] ss:$8 sps:$4 sm:$0xff]  }
  0x65   : > { %805 = vmatpush1.bf16.msra.mxu0 %v2822_v55 }
  0x66   : > { %854 = vmatpush1.bf16.msra.mxu1 %v2822_v55  ;;  %806 = vmatprep.subr.bf16.mxu0 %v2827_v56  ;;  %v1147_v55 = vshrl.u32 %v3446_v7, 16 }
  0x67   : > { %855 = vmatprep.subr.bf16.mxu1 %v2827_v56  ;;  %v1299_v56 = vshrl.u32 %v3451_v10, 16 }
  0x69   : > { %807 = vmatpush1.bf16.msra.mxu0 %v2825_v57 }
  0x6a   : > { %856 = vmatpush1.bf16.msra.mxu1 %v2825_v57  ;;  %808 = vmatprep.subr.bf16.mxu0 %v2830_v58  ;;  %v2906_v57 = vld [vmem:[%s3904_s2 + $0x390] ss:$8 sps:$4 sm:$0xff]  }
  0x6b   : > { %857 = vmatprep.subr.bf16.mxu1 %v2830_v58  ;;  %v2911_v58 = vld [vmem:[%s3904_s2 + $0x384] ss:$8 sps:$4 sm:$0xff]  }
  0x6d   : > { %809 = vmatpush1.bf16.msra.mxu0 %v2828_v59 }
  0x6e   : > { %858 = vmatpush1.bf16.msra.mxu1 %v2828_v59  ;;  %810 = vmatprep.subr.bf16.mxu0 %v2833_v60  ;;  %v1372_v59 = vrot.slane %v3461_v13, 1 }
  0x6f   : > { %859 = vmatprep.subr.bf16.mxu1 %v2833_v60  ;;  %v1521_v60 = vrot.slane %v3465_v14, 1 }
  0x71   : > { %811 = vmatpush1.bf16.msra.mxu0 %v2831_v61 }
  0x72   : > { %860 = vmatpush1.bf16.msra.mxu1 %v2831_v61  ;;  %812 = vmatprep.subr.bf16.mxu0 %v2836_v62  ;;  %v2909_v61 = vld [vmem:[%s3904_s2 + $0x380] ss:$8 sps:$4 sm:$0xff]  }
  0x73   : > { %861 = vmatprep.subr.bf16.mxu1 %v2836_v62  ;;  %v2914_v62 = vld [vmem:[%s3904_s2 + $0x374] ss:$8 sps:$4 sm:$0xff]  }
  0x75   : > { %813 = vmatpush1.bf16.msra.mxu0 %v2834_v63 }
  0x76   : > { %862 = vmatpush1.bf16.msra.mxu1 %v2834_v63  ;;  %814 = vmatprep.subr.bf16.mxu0 %v2839_v0  ;;  %v2912_v63 = vld [vmem:[%s3904_s2 + $0x370] ss:$8 sps:$4 sm:$0xff]  }
  0x77   : > { %863 = vmatprep.subr.bf16.mxu1 %v2839_v0  ;;  %v2917_v0 = vld [vmem:[%s3904_s2 + $0x364] ss:$8 sps:$4 sm:$0xff]  }
  0x79   : > { %815 = vmatpush1.bf16.msra.mxu0 %v2837_v1 }
  0x7a   : > { %864 = vmatpush1.bf16.msra.mxu1 %v2837_v1  ;;  %828 = vmatprep.subr.bf16.mxu0 %v2842_v2  ;;  %v2915_v1 = vld [vmem:[%s3904_s2 + $0x360] ss:$8 sps:$4 sm:$0xff]  }
  0x7b   : > { %877 = vmatprep.subr.bf16.mxu1 %v2842_v2  ;;  %v2920_v2 = vld [vmem:[%s3904_s2 + $0x354] ss:$8 sps:$4 sm:$0xff]  }
  0x7d   : > { %829 = vmatpush2.bf16.msra.mxu0 %v2840_v3 }
  0x7e   : > { %878 = vmatpush2.bf16.msra.mxu1 %v2840_v3  ;;  %830 = vmatprep.subr.bf16.mxu0 %v2845_v4  ;;  %v2918_v3 = vld [vmem:[%s3904_s2 + $0x350] ss:$8 sps:$4 sm:$0xff]  }
  0x7f   : > { %879 = vmatprep.subr.bf16.mxu1 %v2845_v4  ;;  %v2923_v4 = vld [vmem:[%s3904_s2 + $0x344] ss:$8 sps:$4 sm:$0xff]  }
  0x81   : > { %831 = vmatpush2.bf16.msra.mxu0 %v2843_v5 }
  0x82   : > { %880 = vmatpush2.bf16.msra.mxu1 %v2843_v5  ;;  %1026 = vmatprep.subr.bf16.mxu0 %v2848_v6  ;;  %v2921_v5 = vld [vmem:[%s3904_s2 + $0x340] ss:$8 sps:$4 sm:$0xff]  }
  0x83   : > { %1082 = vmatprep.subr.bf16.mxu1 %v2848_v6  ;;  %v2926_v6 = vld [vmem:[%s3904_s2 + $0x334] ss:$8 sps:$4 sm:$0xff]  }
  0x84   : > { %833 = vmatmul.mubr.bf16.vlgmr.msra.gmra.mxu0 %v694_v8  ;;  %v2924_v8 = vld [vmem:[%s3904_s2 + $0x330] ss:$8 sps:$4 sm:$0xff]  }
  0x85   : > { %882 = vmatmul.mubr.bf16.vlgmr.msra.gmra.mxu1 %v843_v9  ;;  %1027 = vmatpush1.bf16.msra.mxu0 %v2846_v11  ;;  %v2929_v9 = vld [vmem:[%s3904_s2 + $0x324] ss:$8 sps:$4 sm:$0xff]  }
  0x86   : > { %1083 = vmatpush1.bf16.msra.mxu1 %v2846_v11  ;;  %1028 = vmatprep.subr.bf16.mxu0 %v2851_v12  ;;  %v2927_v11 = vld [vmem:[%s3904_s2 + $0x320] ss:$8 sps:$4 sm:$0xff]  }
  0x87   : > { %1084 = vmatprep.subr.bf16.mxu1 %v2851_v12  ;;  %2528 = vmatprep.mubr.msk.bf16.mxu0 %vm380_vm0, %v3461_v13  ;;  %v2932_v12 = vld [vmem:[%s3904_s2 + $0x3b4] ss:$8 sps:$4 sm:$0xff]   ;;  %v2930_v13 = vld [vmem:[%s3904_s2 + $0x3b0] ss:$8 sps:$4 sm:$0xff]  }
  0x88   : > { %2530 = vmatprep.mubr.msk.bf16.mxu1 %vm380_vm0, %v3465_v14  ;;  %v2935_v14 = vld [vmem:[%s3904_s2 + $0x3a4] ss:$8 sps:$4 sm:$0xff]  }
  0x89   : > { %1029 = vmatpush1.bf16.msra.mxu0 %v2849_v15 }
  0x8a   : > { %1085 = vmatpush1.bf16.msra.mxu1 %v2849_v15  ;;  %1030 = vmatprep.subr.bf16.mxu0 %v2854_v16 }
  0x8b   : > { %1086 = vmatprep.subr.bf16.mxu1 %v2854_v16 }
  0x8d   : > { %1031 = vmatpush1.bf16.msra.mxu0 %v2852_v17 }
  0x8e   : > { %1087 = vmatpush1.bf16.msra.mxu1 %v2852_v17  ;;  %1032 = vmatprep.subr.bf16.mxu0 %v2857_v18 }
  0x8f   : > { %1088 = vmatprep.subr.bf16.mxu1 %v2857_v18  ;;  %v2933_v18 = vld [vmem:[%s3904_s2 + $0x3a0] ss:$8 sps:$4 sm:$0xff]  }
  0x91   : > { %1033 = vmatpush1.bf16.msra.mxu0 %v2855_v19 }
  0x92   : > { %1089 = vmatpush1.bf16.msra.mxu1 %v2855_v19  ;;  %1034 = vmatprep.subr.bf16.mxu0 %v2860_v20 }
  0x93   : > { %1090 = vmatprep.subr.bf16.mxu1 %v2860_v20 }
  0x95   : > { %1035 = vmatpush1.bf16.msra.mxu0 %v2858_v21 }
  0x96   : > { %1091 = vmatpush1.bf16.msra.mxu1 %v2858_v21  ;;  %1036 = vmatprep.subr.bf16.mxu0 %v2863_v22  ;;  %v2938_v21 = vld [vmem:[%s3904_s2 + $0x434] ss:$8 sps:$4 sm:$0xff]  }
  0x97   : > { %1092 = vmatprep.subr.bf16.mxu1 %v2863_v22 }
  0x99   : > { %1037 = vmatpush1.bf16.msra.mxu0 %v2861_v23 }
  0x9a   : > { %1093 = vmatpush1.bf16.msra.mxu1 %v2861_v23  ;;  %1038 = vmatprep.subr.bf16.mxu0 %v2866_v24  ;;  %v3662_v23 = vld.sshfl [vmem:[%s3264_s30 + $0x8] sm:$0x33 pattern:$0x76325410] }
  0x9b   : > { %1094 = vmatprep.subr.bf16.mxu1 %v2866_v24 }
  0x9d   : > { %1039 = vmatpush1.bf16.msra.mxu0 %v2864_v25 }
  0x9e   : > { %1095 = vmatpush1.bf16.msra.mxu1 %v2864_v25  ;;  %1040 = vmatprep.subr.bf16.mxu0 %v2869_v26 }
  0x9f   : > { %1096 = vmatprep.subr.bf16.mxu1 %v2869_v26  ;;  %v1371_v26 = vrot.slane %v3446_v7, 1 }
  0xa1   : > { %1041 = vmatpush1.bf16.msra.mxu0 %v2867_v27 }
  0xa2   : > { %1097 = vmatpush1.bf16.msra.mxu1 %v2867_v27  ;;  %1054 = vmatprep.subr.bf16.mxu0 %v2872_v28  ;;  %v1520_v27 = vrot.slane %v3451_v10, 1 }
  0xa3   : > { %1110 = vmatprep.subr.bf16.mxu1 %v2872_v28  ;;  %v3667_v28 = vld.sshfl [vmem:[%s3319_s26 + $0x8] sm:$0x33 pattern:$0x76325410] }
  0xa5   : > { %1055 = vmatpush2.bf16.msra.mxu0 %v2870_v29 }
  0xa6   : > { %1111 = vmatpush2.bf16.msra.mxu1 %v2870_v29  ;;  %1056 = vmatprep.subr.bf16.mxu0 %v2875_v30  ;;  %v2936_v29 = vld [vmem:[%s3904_s2 + $0x430] ss:$8 sps:$4 sm:$0xff]  }
  0xa7   : > { %1112 = vmatprep.subr.bf16.mxu1 %v2875_v30 }
  0xa9   : > { %1057 = vmatpush2.bf16.msra.mxu0 %v2873_v31 }
  0xaa   : > { %1113 = vmatpush2.bf16.msra.mxu1 %v2873_v31  ;;  %1255 = vmatprep.subr.bf16.mxu0 %v2878_v32 }
  0xab   : > { %1307 = vmatprep.subr.bf16.mxu1 %v2878_v32  ;;  %v2941_v32 = vld [vmem:[%s3904_s2 + $0x424] ss:$8 sps:$4 sm:$0xff]  }
  0xac   : > { %1059 = vmatmul.mubr.bf16.vlgmr.msra.gmra.mxu0 %v3446_v7  ;;  %v3677_v7 = vcombine.high %v3662_v23, %v3662_v23 }
  0xad   : > { %1115 = vmatmul.mubr.bf16.vlgmr.msra.gmra.mxu1 %v3451_v10  ;;  %1256 = vmatpush1.bf16.msra.mxu0 %v2876_v33  ;;  %v3681_v10 = vcombine.high %v3667_v28, %v3667_v28 }
  0xae   : > { %1308 = vmatpush1.bf16.msra.mxu1 %v2876_v33  ;;  %1257 = vmatprep.subr.bf16.mxu0 %v2881_v34  ;;  %v2939_v33 = vld [vmem:[%s3904_s2 + $0x420] ss:$8 sps:$4 sm:$0xff]  }
  0xaf   : > { %1309 = vmatprep.subr.bf16.mxu1 %v2881_v34  ;;  %2571 = vmatprep.mubr.msk.bf16.mxu0 %vm380_vm0, %v1149_v35  ;;  %v2944_v34 = vld [vmem:[%s3904_s2 + $0x414] ss:$8 sps:$4 sm:$0xff]   ;;  %v2942_v35 = vld [vmem:[%s3904_s2 + $0x410] ss:$8 sps:$4 sm:$0xff]  }
  0xb0   : > { %2572 = vmatprep.mubr.msk.bf16.mxu1 %vm380_vm0, %v1301_v36  ;;  %v2947_v36 = vld [vmem:[%s3904_s2 + $0x404] ss:$8 sps:$4 sm:$0xff]  }
  0xb1   : > { %1258 = vmatpush1.bf16.msra.mxu0 %v2879_v37 }
  0xb2   : > { %1310 = vmatpush1.bf16.msra.mxu1 %v2879_v37  ;;  %1259 = vmatprep.subr.bf16.mxu0 %v2884_v38  ;;  %v2945_v37 = vld [vmem:[%s3904_s2 + $0x400] ss:$8 sps:$4 sm:$0xff]  }
  0xb3   : > { %1311 = vmatprep.subr.bf16.mxu1 %v2884_v38  ;;  %v2950_v38 = vld [vmem:[%s3904_s2 + $0x3f4] ss:$8 sps:$4 sm:$0xff]  }
  0xb5   : > { %1260 = vmatpush1.bf16.msra.mxu0 %v2882_v39 }
  0xb6   : > { %1312 = vmatpush1.bf16.msra.mxu1 %v2882_v39  ;;  %1261 = vmatprep.subr.bf16.mxu0 %v2887_v40  ;;  %v2948_v39 = vld [vmem:[%s3904_s2 + $0x3f0] ss:$8 sps:$4 sm:$0xff]  }
  0xb7   : > { %1313 = vmatprep.subr.bf16.mxu1 %v2887_v40  ;;  %v2953_v40 = vld [vmem:[%s3904_s2 + $0x3e4] ss:$8 sps:$4 sm:$0xff]  }
  0xb9   : > { %1262 = vmatpush1.bf16.msra.mxu0 %v2885_v41 }
  0xba   : > { %1314 = vmatpush1.bf16.msra.mxu1 %v2885_v41  ;;  %1263 = vmatprep.subr.bf16.mxu0 %v2890_v42  ;;  %v2951_v41 = vld [vmem:[%s3904_s2 + $0x3e0] ss:$8 sps:$4 sm:$0xff]  }
  0xbb   : > { %1315 = vmatprep.subr.bf16.mxu1 %v2890_v42  ;;  %v2956_v42 = vld [vmem:[%s3904_s2 + $0x3d4] ss:$8 sps:$4 sm:$0xff]  }
  0xbd   : > { %1264 = vmatpush1.bf16.msra.mxu0 %v2888_v43 }
  0xbe   : > { %1316 = vmatpush1.bf16.msra.mxu1 %v2888_v43  ;;  %1265 = vmatprep.subr.bf16.mxu0 %v2893_v44  ;;  %v2954_v43 = vld [vmem:[%s3904_s2 + $0x3d0] ss:$8 sps:$4 sm:$0xff]  }
  0xbf   : > { %1317 = vmatprep.subr.bf16.mxu1 %v2893_v44  ;;  %v2959_v44 = vld [vmem:[%s3904_s2 + $0x3c4] ss:$8 sps:$4 sm:$0xff]  }
  0xc1   : > { %1266 = vmatpush1.bf16.msra.mxu0 %v2891_v45 }
  0xc2   : > { %1318 = vmatpush1.bf16.msra.mxu1 %v2891_v45  ;;  %1267 = vmatprep.subr.bf16.mxu0 %v2896_v46  ;;  %v2957_v45 = vld [vmem:[%s3904_s2 + $0x3c0] ss:$8 sps:$4 sm:$0xff]  }
  0xc3   : > { %1319 = vmatprep.subr.bf16.mxu1 %v2896_v46  ;;  %v2962_v46 = vld [vmem:[%s3904_s2 + $0x454] ss:$8 sps:$4 sm:$0xff]  }
  0xc5   : > { %1268 = vmatpush1.bf16.msra.mxu0 %v2894_v47 }
  0xc6   : > { %1320 = vmatpush1.bf16.msra.mxu1 %v2894_v47  ;;  %1269 = vmatprep.subr.bf16.mxu0 %v2899_v48  ;;  %v2960_v47 = vld [vmem:[%s3904_s2 + $0x450] ss:$8 sps:$4 sm:$0xff]  }
  0xc7   : > { %1321 = vmatprep.subr.bf16.mxu1 %v2899_v48  ;;  %v2965_v48 = vld [vmem:[%s3904_s2 + $0x444] ss:$8 sps:$4 sm:$0xff]  }
  0xc9   : > { %1270 = vmatpush1.bf16.msra.mxu0 %v2897_v49 }
  0xca   : > { %1322 = vmatpush1.bf16.msra.mxu1 %v2897_v49  ;;  %1283 = vmatprep.subr.bf16.mxu0 %v2902_v50 }
  0xcb   : > { %1335 = vmatprep.subr.bf16.mxu1 %v2902_v50 }
  0xcd   : > { %1284 = vmatpush2.bf16.msra.mxu0 %v2900_v51 }
  0xce   : > { %1336 = vmatpush2.bf16.msra.mxu1 %v2900_v51  ;;  %1285 = vmatprep.subr.bf16.mxu0 %v2905_v52 }
  0xcf   : > { %1337 = vmatprep.subr.bf16.mxu1 %v2905_v52  ;;  %v2963_v52 = vld [vmem:[%s3904_s2 + $0x440] ss:$8 sps:$4 sm:$0xff]  }
  0xd1   : > { %1286 = vmatpush2.bf16.msra.mxu0 %v2903_v53 }
  0xd2   : > { %1338 = vmatpush2.bf16.msra.mxu1 %v2903_v53  ;;  %1477 = vmatprep.subr.bf16.mxu0 %v2908_v54 }
  0xd3   : > { %1526 = vmatprep.subr.bf16.mxu1 %v2908_v54 }
  0xd4   : > { %1288 = vmatmul.mubr.bf16.vlgmr.msra.gmra.mxu0 %v1147_v55  ;;  %v2968_v55 = vld [vmem:[%s3904_s2 + $0x4d4] ss:$8 sps:$4 sm:$0xff]  }
  0xd5   : > { %1340 = vmatmul.mubr.bf16.vlgmr.msra.gmra.mxu1 %v1299_v56  ;;  %1478 = vmatpush1.bf16.msra.mxu0 %v2906_v57 }
  0xd6   : > { %1527 = vmatpush1.bf16.msra.mxu1 %v2906_v57  ;;  %1479 = vmatprep.subr.bf16.mxu0 %v2911_v58 }
  0xd7   : > { %1528 = vmatprep.subr.bf16.mxu1 %v2911_v58  ;;  %2613 = vmatprep.mubr.msk.bf16.mxu0 %vm380_vm0, %v1372_v59  ;;  %v2966_v59 = vld [vmem:[%s3904_s2 + $0x4d0] ss:$8 sps:$4 sm:$0xff]  }
  0xd8   : > { %2614 = vmatprep.mubr.msk.bf16.mxu1 %vm380_vm0, %v1521_v60 }
  0xd9   : > { %1480 = vmatpush1.bf16.msra.mxu0 %v2909_v61 }
  0xda   : > { %1529 = vmatpush1.bf16.msra.mxu1 %v2909_v61  ;;  %1481 = vmatprep.subr.bf16.mxu0 %v2914_v62 }
  0xdb   : > { %1530 = vmatprep.subr.bf16.mxu1 %v2914_v62  ;;  %v2971_v62 = vld [vmem:[%s3904_s2 + $0x4c4] ss:$8 sps:$4 sm:$0xff]  }
  0xdd   : > { %1482 = vmatpush1.bf16.msra.mxu0 %v2912_v63 }
  0xde   : > { %1531 = vmatpush1.bf16.msra.mxu1 %v2912_v63  ;;  %1483 = vmatprep.subr.bf16.mxu0 %v2917_v0  ;;  %v1826_v63 = vshrl.u32 %v3677_v7, 16 }
  0xdf   : > { %1532 = vmatprep.subr.bf16.mxu1 %v2917_v0  ;;  %v1978_v0 = vshrl.u32 %v3681_v10, 16 }
  0xe1   : > { %1484 = vmatpush1.bf16.msra.mxu0 %v2915_v1 }
  0xe2   : > { %1533 = vmatpush1.bf16.msra.mxu1 %v2915_v1  ;;  %1485 = vmatprep.subr.bf16.mxu0 %v2920_v2  ;;  %v2969_v1 = vld [vmem:[%s3904_s2 + $0x4c0] ss:$8 sps:$4 sm:$0xff]  }
  0xe3   : > { %1534 = vmatprep.subr.bf16.mxu1 %v2920_v2  ;;  %v2974_v2 = vld [vmem:[%s3904_s2 + $0x4b4] ss:$8 sps:$4 sm:$0xff]  }
  0xe5   : > { %1486 = vmatpush1.bf16.msra.mxu0 %v2918_v3 }
  0xe6   : > { %1535 = vmatpush1.bf16.msra.mxu1 %v2918_v3  ;;  %1487 = vmatprep.subr.bf16.mxu0 %v2923_v4  ;;  %v2972_v3 = vld [vmem:[%s3904_s2 + $0x4b0] ss:$8 sps:$4 sm:$0xff]  }
  0xe7   : > { %1536 = vmatprep.subr.bf16.mxu1 %v2923_v4  ;;  %v2977_v4 = vld [vmem:[%s3904_s2 + $0x4a4] ss:$8 sps:$4 sm:$0xff]  }
  0xe9   : > { %1488 = vmatpush1.bf16.msra.mxu0 %v2921_v5 }
  0xea   : > { %1537 = vmatpush1.bf16.msra.mxu1 %v2921_v5  ;;  %1489 = vmatprep.subr.bf16.mxu0 %v2926_v6  ;;  %v2975_v5 = vld [vmem:[%s3904_s2 + $0x4a0] ss:$8 sps:$4 sm:$0xff]  }
  0xeb   : > { %1538 = vmatprep.subr.bf16.mxu1 %v2926_v6  ;;  %v2980_v6 = vld [vmem:[%s3904_s2 + $0x494] ss:$8 sps:$4 sm:$0xff]  }
  0xed   : > { %1490 = vmatpush1.bf16.msra.mxu0 %v2924_v8 }
  0xee   : > { %1539 = vmatpush1.bf16.msra.mxu1 %v2924_v8  ;;  %1491 = vmatprep.subr.bf16.mxu0 %v2929_v9  ;;  %v2978_v8 = vld [vmem:[%s3904_s2 + $0x490] ss:$8 sps:$4 sm:$0xff]  }
  0xef   : > { %1540 = vmatprep.subr.bf16.mxu1 %v2929_v9  ;;  %v2983_v9 = vld [vmem:[%s3904_s2 + $0x484] ss:$8 sps:$4 sm:$0xff]  }
  0xf1   : > { %1492 = vmatpush1.bf16.msra.mxu0 %v2927_v11 }
  0xf2   : > { %1541 = vmatpush1.bf16.msra.mxu1 %v2927_v11  ;;  %1505 = vmatprep.subr.bf16.mxu0 %v2932_v12  ;;  %v2981_v11 = vld [vmem:[%s3904_s2 + $0x480] ss:$8 sps:$4 sm:$0xff]  }
  0xf3   : > { %1554 = vmatprep.subr.bf16.mxu1 %v2932_v12  ;;  %v2986_v12 = vld [vmem:[%s3904_s2 + $0x474] ss:$8 sps:$4 sm:$0xff]  }
  0xf4   : > { %v418_v15 = vpop.f32.mrf.mxu0 }
  0xf5   : > { %v562_v16 = vpop.f32.mrf.mxu1  ;;  %1506 = vmatpush2.bf16.msra.mxu0 %v2930_v13 }
  0xf6   : > { %v3651_v17 = vadd.f32 %v562_v16, %v418_v15  ;;  %1555 = vmatpush2.bf16.msra.mxu1 %v2930_v13  ;;  %v420_v19 = vpop.f32.mrf.mxu0  ;;  %1507 = vmatprep.subr.bf16.mxu0 %v2935_v14  ;;  %v2984_v13 = vld [vmem:[%s3904_s2 + $0x470] ss:$8 sps:$4 sm:$0xff]   ;;  %v2987_v15 = vld [vmem:[%s3904_s2 + $0x460] ss:$8 sps:$4 sm:$0xff]   ;;  %v2992_v16 = vld [vmem:[%s3904_s2 + $0x4f4] ss:$8 sps:$4 sm:$0xff]  }
  0xf7   : > { %v564_v20 = vpop.f32.mrf.mxu1  ;;  %1556 = vmatprep.subr.bf16.mxu1 %v2935_v14  ;;  %v2989_v14 = vld [vmem:[%s3904_s2 + $0x464] ss:$8 sps:$4 sm:$0xff]  }
  0xf8   : > { %v3659_v22 = vadd.f32 %v564_v20, %v420_v19  ;;  %v422_v24 = vpop.f32.mrf.mxu0  ;;  %v2995_v19 = vld [vmem:[%s3904_s2 + $0x4e4] ss:$8 sps:$4 sm:$0xff]  }
  0xf9   : > { %v566_v25 = vpop.f32.mrf.mxu1  ;;  %1508 = vmatpush2.bf16.msra.mxu0 %v2933_v18 }
  0xfa   : > { %1557 = vmatpush2.bf16.msra.mxu1 %v2933_v18  ;;  %v423_v30 = vpop.f32.mrf.mxu0  ;;  %1703 = vmatprep.subr.bf16.mxu0 %v2938_v21  ;;  %v2990_v18 = vld [vmem:[%s3904_s2 + $0x4f0] ss:$8 sps:$4 sm:$0xff]  }
  0xfb   : > { %v567_v31 = vpop.f32.mrf.mxu1  ;;  %1759 = vmatprep.subr.bf16.mxu1 %v2938_v21  ;;  %v2998_v30 = vld [vmem:[%s3904_s2 + $0x574] ss:$8 sps:$4 sm:$0xff]  }
  0xfc   : > { %1510 = vmatmul.mubr.bf16.vlgmr.msra.gmra.mxu0 %v1371_v26  ;;  %v2993_v26 = vld [vmem:[%s3904_s2 + $0x4e0] ss:$8 sps:$4 sm:$0xff]  }
  0xfd   : > { %1559 = vmatmul.mubr.bf16.vlgmr.msra.gmra.mxu1 %v1520_v27  ;;  %1704 = vmatpush1.bf16.msra.mxu0 %v2936_v29 }
  0xfe   : > { %1760 = vmatpush1.bf16.msra.mxu1 %v2936_v29  ;;  %1705 = vmatprep.subr.bf16.mxu0 %v2941_v32 }
  0xff   : > { %1761 = vmatprep.subr.bf16.mxu1 %v2941_v32  ;;  %2656 = vmatprep.mubr.msk.bf16.mxu0 %vm380_vm0, %v3677_v7 }
 0x100   : > { %2658 = vmatprep.mubr.msk.bf16.mxu1 %vm380_vm0, %v3681_v10 }
 0x101   : > { %1706 = vmatpush1.bf16.msra.mxu0 %v2939_v33 }
 0x102   : > { %1762 = vmatpush1.bf16.msra.mxu1 %v2939_v33  ;;  %1707 = vmatprep.subr.bf16.mxu0 %v2944_v34 }
 0x103   : > { %1763 = vmatprep.subr.bf16.mxu1 %v2944_v34  ;;  %v1824_v34 = vshrl.u32 %v3662_v23, 16 }
 0x105   : > { %1708 = vmatpush1.bf16.msra.mxu0 %v2942_v35 }
 0x106   : > { %1764 = vmatpush1.bf16.msra.mxu1 %v2942_v35  ;;  %1709 = vmatprep.subr.bf16.mxu0 %v2947_v36  ;;  %v1976_v35 = vshrl.u32 %v3667_v28, 16 }
 0x107   : > { %1765 = vmatprep.subr.bf16.mxu1 %v2947_v36  ;;  %v2996_v36 = vld [vmem:[%s3904_s2 + $0x570] ss:$8 sps:$4 sm:$0xff]  }
 0x109   : > { %1710 = vmatpush1.bf16.msra.mxu0 %v2945_v37 }
 0x10a   : > { %1766 = vmatpush1.bf16.msra.mxu1 %v2945_v37  ;;  %1711 = vmatprep.subr.bf16.mxu0 %v2950_v38 }
 0x10b   : > { %1767 = vmatprep.subr.bf16.mxu1 %v2950_v38 }
 0x10d   : > { %1712 = vmatpush1.bf16.msra.mxu0 %v2948_v39 }
 0x10e   : > { %1768 = vmatpush1.bf16.msra.mxu1 %v2948_v39  ;;  %1713 = vmatprep.subr.bf16.mxu0 %v2953_v40  ;;  %v2049_v39 = vrot.slane %v3677_v7, 1  ;;  %v3002_v7 = vld [vmem:[%s3904_s2 + $0x550] ss:$8 sps:$4 sm:$0xff]  }
 0x10f   : > { %1769 = vmatprep.subr.bf16.mxu1 %v2953_v40  ;;  %v2198_v40 = vrot.slane %v3681_v10, 1  ;;  %v3007_v10 = vld [vmem:[%s3904_s2 + $0x544] ss:$8 sps:$4 sm:$0xff]  }
 0x111   : > { %1714 = vmatpush1.bf16.msra.mxu0 %v2951_v41 }
 0x112   : > { %1770 = vmatpush1.bf16.msra.mxu1 %v2951_v41  ;;  %1715 = vmatprep.subr.bf16.mxu0 %v2956_v42  ;;  %v2999_v41 = vld [vmem:[%s3904_s2 + $0x560] ss:$8 sps:$4 sm:$0xff]  }
 0x113   : > { %1771 = vmatprep.subr.bf16.mxu1 %v2956_v42  ;;  %v3004_v42 = vld [vmem:[%s3904_s2 + $0x554] ss:$8 sps:$4 sm:$0xff]  }
 0x115   : > { %1716 = vmatpush1.bf16.msra.mxu0 %v2954_v43 }
 0x116   : > { %1772 = vmatpush1.bf16.msra.mxu1 %v2954_v43  ;;  %1717 = vmatprep.subr.bf16.mxu0 %v2959_v44  ;;  %v3005_v43 = vld [vmem:[%s3904_s2 + $0x540] ss:$8 sps:$4 sm:$0xff]  }
 0x117   : > { %1773 = vmatprep.subr.bf16.mxu1 %v2959_v44  ;;  %v3010_v44 = vld [vmem:[%s3904_s2 + $0x534] ss:$8 sps:$4 sm:$0xff]  }
 0x119   : > { %1718 = vmatpush1.bf16.msra.mxu0 %v2957_v45 }
 0x11a   : > { %1774 = vmatpush1.bf16.msra.mxu1 %v2957_v45  ;;  %1731 = vmatprep.subr.bf16.mxu0 %v2962_v46  ;;  %v3008_v45 = vld [vmem:[%s3904_s2 + $0x530] ss:$8 sps:$4 sm:$0xff]  }
 0x11b   : > { %1787 = vmatprep.subr.bf16.mxu1 %v2962_v46  ;;  %v3013_v46 = vld [vmem:[%s3904_s2 + $0x524] ss:$8 sps:$4 sm:$0xff]  }
 0x11c   : > { %v622_v49 = vpop.f32.mrf.mxu0 }
 0x11d   : > { %v666_v50 = vpop.f32.mrf.mxu1  ;;  %1732 = vmatpush2.bf16.msra.mxu0 %v2960_v47 }
 0x11e   : > { %v3735_v51 = vadd.f32 %v666_v50, %v622_v49  ;;  %1788 = vmatpush2.bf16.msra.mxu1 %v2960_v47  ;;  %v624_v53 = vpop.f32.mrf.mxu0  ;;  %1733 = vmatprep.subr.bf16.mxu0 %v2965_v48  ;;  %v3011_v47 = vld [vmem:[%s3904_s2 + $0x520] ss:$8 sps:$4 sm:$0xff]   ;;  %v3014_v49 = vld [vmem:[%s3904_s2 + $0x510] ss:$8 sps:$4 sm:$0xff]   ;;  %v3019_v50 = vld [vmem:[%s3904_s2 + $0x504] ss:$8 sps:$4 sm:$0xff]  }
 0x11f   : > { %v668_v54 = vpop.f32.mrf.mxu1  ;;  %1789 = vmatprep.subr.bf16.mxu1 %v2965_v48  ;;  %v3016_v48 = vld [vmem:[%s3904_s2 + $0x514] ss:$8 sps:$4 sm:$0xff]  }
 0x120   : > { %v3743_v56 = vadd.f32 %v668_v54, %v624_v53  ;;  %v626_v57 = vpop.f32.mrf.mxu0  ;;  %v3020_v53 = vld [vmem:[%s3904_s2 + $0x590] ss:$8 sps:$4 sm:$0xff]   ;;  %v3025_v54 = vld [vmem:[%s3904_s2 + $0x584] ss:$8 sps:$4 sm:$0xff]  }
 0x121   : > { %v670_v58 = vpop.f32.mrf.mxu1  ;;  %1734 = vmatpush2.bf16.msra.mxu0 %v2963_v52 }
 0x122   : > { %1790 = vmatpush2.bf16.msra.mxu1 %v2963_v52  ;;  %v627_v60 = vpop.f32.mrf.mxu0  ;;  %1932 = vmatprep.subr.bf16.mxu0 %v2968_v55  ;;  %v3022_v52 = vld [vmem:[%s3904_s2 + $0x594] ss:$8 sps:$4 sm:$0xff]  }
 0x123   : > { %v671_v61 = vpop.f32.mrf.mxu1  ;;  %1984 = vmatprep.subr.bf16.mxu1 %v2968_v55 }
 0x124   : > { %1736 = vmatmul.mubr.bf16.vlgmr.msra.gmra.mxu0 %v3662_v23 }
 0x125   : > { %1792 = vmatmul.mubr.bf16.vlgmr.msra.gmra.mxu1 %v3667_v28  ;;  %1933 = vmatpush1.bf16.msra.mxu0 %v2966_v59 }
 0x126   : > { %1985 = vmatpush1.bf16.msra.mxu1 %v2966_v59  ;;  %1934 = vmatprep.subr.bf16.mxu0 %v2971_v62  ;;  %v3023_v59 = vld [vmem:[%s3904_s2 + $0x580] ss:$8 sps:$4 sm:$0xff]  }
 0x127   : > { %1986 = vmatprep.subr.bf16.mxu1 %v2971_v62  ;;  %2699 = vmatprep.mubr.msk.bf16.mxu0 %vm380_vm0, %v1826_v63 }
 0x128   : > { %2700 = vmatprep.mubr.msk.bf16.mxu1 %vm380_vm0, %v1978_v0 }
 0x129   : > { %1935 = vmatpush1.bf16.msra.mxu0 %v2969_v1 }
 0x12a   : > { %1987 = vmatpush1.bf16.msra.mxu1 %v2969_v1  ;;  %1936 = vmatprep.subr.bf16.mxu0 %v2974_v2 }
 0x12b   : > { %1988 = vmatprep.subr.bf16.mxu1 %v2974_v2  ;;  %v2048_v2 = vrot.slane %v3662_v23, 1 }
 0x12d   : > { %1937 = vmatpush1.bf16.msra.mxu0 %v2972_v3 }
 0x12e   : > { %1989 = vmatpush1.bf16.msra.mxu1 %v2972_v3  ;;  %1938 = vmatprep.subr.bf16.mxu0 %v2977_v4  ;;  %v2197_v3 = vrot.slane %v3667_v28, 1 }
 0x12f   : > { %1990 = vmatprep.subr.bf16.mxu1 %v2977_v4 }
 0x131   : > { %1939 = vmatpush1.bf16.msra.mxu0 %v2975_v5 }
 0x132   : > { %1991 = vmatpush1.bf16.msra.mxu1 %v2975_v5  ;;  %1940 = vmatprep.subr.bf16.mxu0 %v2980_v6 }
 0x133   : > { %1992 = vmatprep.subr.bf16.mxu1 %v2980_v6 }
 0x135   : > { %1941 = vmatpush1.bf16.msra.mxu0 %v2978_v8 }
 0x136   : > { %1993 = vmatpush1.bf16.msra.mxu1 %v2978_v8  ;;  %1942 = vmatprep.subr.bf16.mxu0 %v2983_v9 }
 0x137   : > { %1994 = vmatprep.subr.bf16.mxu1 %v2983_v9 }
 0x139   : > { %1943 = vmatpush1.bf16.msra.mxu0 %v2981_v11 }
 0x13a   : > { %1995 = vmatpush1.bf16.msra.mxu1 %v2981_v11  ;;  %1944 = vmatprep.subr.bf16.mxu0 %v2986_v12 }
 0x13b   : > { %1996 = vmatprep.subr.bf16.mxu1 %v2986_v12 }
 0x13d   : > { %1945 = vmatpush1.bf16.msra.mxu0 %v2984_v13 }
 0x13e   : > { %1997 = vmatpush1.bf16.msra.mxu1 %v2984_v13  ;;  %1946 = vmatprep.subr.bf16.mxu0 %v2989_v14 }
 0x13f   : > { %1998 = vmatprep.subr.bf16.mxu1 %v2989_v14 }
 0x141   : > { %1947 = vmatpush1.bf16.msra.mxu0 %v2987_v15 }
 0x142   : > { %1999 = vmatpush1.bf16.msra.mxu1 %v2987_v15  ;;  %1960 = vmatprep.subr.bf16.mxu0 %v2992_v16 }
 0x143   : > { %2012 = vmatprep.subr.bf16.mxu1 %v2992_v16 }
 0x144   : > { %v834_v20 = vpop.f32.mrf.mxu0 }
 0x145   : > { %v883_v21 = vpop.f32.mrf.mxu1  ;;  %v3806_v24 = vadd.f32 %v834_v20, %v3651_v17  ;;  %1961 = vmatpush2.bf16.msra.mxu0 %v2990_v18 }
 0x146   : > { %v3809_v25 = vadd.f32 %v883_v21, %v3735_v51  ;;  %2013 = vmatpush2.bf16.msra.mxu1 %v2990_v18  ;;  %v836_v27 = vpop.f32.mrf.mxu0  ;;  %1962 = vmatprep.subr.bf16.mxu0 %v2995_v19  ;;  %v3017_v51 = vld [vmem:[%s3904_s2 + $0x500] ss:$8 sps:$4 sm:$0xff]  }
 0x147   : > { %v885_v29 = vpop.f32.mrf.mxu1  ;;  %2014 = vmatprep.subr.bf16.mxu1 %v2995_v19  ;;  %v3818_v17 = vadd.f32 %v836_v27, %v3659_v22  ;;  %v3001_v22 = vld [vmem:[%s3904_s2 + $0x564] ss:$8 sps:$4 sm:$0xff]  }
 0x148   : > { %v3821_v31 = vadd.f32 %v885_v29, %v3743_v56  ;;  %v838_v32 = vpop.f32.mrf.mxu0 }
 0x149   : > { %v887_v33 = vpop.f32.mrf.mxu1  ;;  %1963 = vmatpush2.bf16.msra.mxu0 %v2993_v26 }
 0x14a   : > { %2015 = vmatpush2.bf16.msra.mxu1 %v2993_v26  ;;  %v839_v37 = vpop.f32.mrf.mxu0  ;;  %2154 = vmatprep.subr.bf16.mxu0 %v2998_v30 }
 0x14b   : > { %v888_v38 = vpop.f32.mrf.mxu1  ;;  %2203 = vmatprep.subr.bf16.mxu1 %v2998_v30 }
 0x14c   : > { %1965 = vmatmul.mubr.bf16.vlgmr.msra.gmra.mxu0 %v1824_v34 }
 0x14d   : > { %2017 = vmatmul.mubr.bf16.vlgmr.msra.gmra.mxu1 %v1976_v35  ;;  %2155 = vmatpush1.bf16.msra.mxu0 %v2996_v36 }
 0x14e   : > { %2204 = vmatpush1.bf16.msra.mxu1 %v2996_v36  ;;  %2156 = vmatprep.subr.bf16.mxu0 %v3001_v22 }
 0x14f   : > { %2205 = vmatprep.subr.bf16.mxu1 %v3001_v22  ;;  %2741 = vmatprep.mubr.msk.bf16.mxu0 %vm380_vm0, %v2049_v39 }
 0x150   : > { %2742 = vmatprep.mubr.msk.bf16.mxu1 %vm380_vm0, %v2198_v40 }
 0x151   : > { %2157 = vmatpush1.bf16.msra.mxu0 %v2999_v41 }
 0x152   : > { %2206 = vmatpush1.bf16.msra.mxu1 %v2999_v41  ;;  %2158 = vmatprep.subr.bf16.mxu0 %v3004_v42 }
 0x153   : > { %2207 = vmatprep.subr.bf16.mxu1 %v3004_v42 }
 0x155   : > { %2159 = vmatpush1.bf16.msra.mxu0 %v3002_v7 }
 0x156   : > { %2208 = vmatpush1.bf16.msra.mxu1 %v3002_v7  ;;  %2160 = vmatprep.subr.bf16.mxu0 %v3007_v10 }
 0x157   : > { %2209 = vmatprep.subr.bf16.mxu1 %v3007_v10 }
 0x159   : > { %2161 = vmatpush1.bf16.msra.mxu0 %v3005_v43 }
 0x15a   : > { %2210 = vmatpush1.bf16.msra.mxu1 %v3005_v43  ;;  %2162 = vmatprep.subr.bf16.mxu0 %v3010_v44 }
 0x15b   : > { %2211 = vmatprep.subr.bf16.mxu1 %v3010_v44 }
 0x15d   : > { %2163 = vmatpush1.bf16.msra.mxu0 %v3008_v45 }
 0x15e   : > { %2212 = vmatpush1.bf16.msra.mxu1 %v3008_v45  ;;  %2164 = vmatprep.subr.bf16.mxu0 %v3013_v46 }
 0x15f   : > { %2213 = vmatprep.subr.bf16.mxu1 %v3013_v46 }
 0x161   : > { %2165 = vmatpush1.bf16.msra.mxu0 %v3011_v47 }
 0x162   : > { %2214 = vmatpush1.bf16.msra.mxu1 %v3011_v47  ;;  %2166 = vmatprep.subr.bf16.mxu0 %v3016_v48 }
 0x163   : > { %2215 = vmatprep.subr.bf16.mxu1 %v3016_v48 }
 0x165   : > { %2167 = vmatpush1.bf16.msra.mxu0 %v3014_v49 }
 0x166   : > { %2216 = vmatpush1.bf16.msra.mxu1 %v3014_v49  ;;  %2168 = vmatprep.subr.bf16.mxu0 %v3019_v50 }
 0x167   : > { %2217 = vmatprep.subr.bf16.mxu1 %v3019_v50  ;;  %v2248_v50 = vlaneseq }
 0x169   : > { %2169 = vmatpush1.bf16.msra.mxu0 %v3017_v51 }
 0x16a   : > { %2218 = vmatpush1.bf16.msra.mxu1 %v3017_v51  ;;  %2182 = vmatprep.subr.bf16.mxu0 %v3022_v52  ;;  %v2249_v51 = vshrl.u32 %v2248_v50, 7 }
 0x16b   : > { %2231 = vmatprep.subr.bf16.mxu1 %v3022_v52 }
 0x16c   : > { %v1060_v55 = vpop.f32.mrf.mxu0  ;;  %v2250_v52 = vsub.s32 0, %v2249_v51 }
 0x16d   : > { %v1116_v56 = vpop.f32.mrf.mxu1  ;;  %v1067_v57 = vadd.f32 %v1060_v55, %v3806_v24  ;;  %2183 = vmatpush2.bf16.msra.mxu0 %v3020_v53 }
 0x16e   : > { %v1123_v58 = vadd.f32 %v1116_v56, %v3809_v25  ;;  %2232 = vmatpush2.bf16.msra.mxu1 %v3020_v53  ;;  %v1062_v60 = vpop.f32.mrf.mxu0  ;;  %2184 = vmatprep.subr.bf16.mxu0 %v3025_v54  ;;  %v2246_v53 = vld [vmem:[%s3905_s3] sm:$0x3] }
 0x16f   : > { %v1118_v61 = vpop.f32.mrf.mxu1  ;;  %2233 = vmatprep.subr.bf16.mxu1 %v3025_v54  ;;  %v1068_v62 = vadd.f32 %v1062_v60, %v3818_v17  ;;  %v2254_v54 = vsub.s32 1, %v2249_v51 }
 0x170   : > { %v1124_v63 = vadd.f32 %v1118_v61, %v3821_v31  ;;  %v1064_v0 = vpop.f32.mrf.mxu0 }
 0x171   : > { %v1120_v1 = vpop.f32.mrf.mxu1  ;;  %2185 = vmatpush2.bf16.msra.mxu0 %v3023_v59  ;;  %v2255_v60 = vrot.slane %v2246_v53, %v2254_v54 }
 0x172   : > { %2234 = vmatpush2.bf16.msra.mxu1 %v3023_v59  ;;  %v1065_v4 = vpop.f32.mrf.mxu0 }
 0x173   : > { %v1121_v5 = vpop.f32.mrf.mxu1 }
 0x174   : > { %2187 = vmatmul.mubr.bf16.vlgmr.msra.gmra.mxu0 %v2048_v2 }
 0x175   : > { %2236 = vmatmul.mubr.bf16.vlgmr.msra.gmra.mxu1 %v2197_v3 }
 0x194   : > { %v1289_v6 = vpop.f32.mrf.mxu0 }
 0x195   : > { %v1341_v8 = vpop.f32.mrf.mxu1  ;;  %v1296_v9 = vadd.f32 %v1289_v6, %v1067_v57  ;;  %v2251_v57 = vrot.slane %v2246_v53, %v2250_v52 }
 0x196   : > { %v1348_v11 = vadd.f32 %v1341_v8, %v1123_v58  ;;  %v1291_v12 = vpop.f32.mrf.mxu0 }
 0x197   : > { %v1343_v13 = vpop.f32.mrf.mxu1  ;;  %v1297_v14 = vadd.f32 %v1291_v12, %v1068_v62 }
 0x198   : > { %v1349_v15 = vadd.f32 %v1343_v13, %v1124_v63  ;;  %v1293_v16 = vpop.f32.mrf.mxu0 }
 0x199   : > { %v1345_v18 = vpop.f32.mrf.mxu1 }
 0x19a   : > { %v1294_v19 = vpop.f32.mrf.mxu0 }
 0x19b   : > { %v1346_v23 = vpop.f32.mrf.mxu1 }
 0x1bc   : > { %v1511_v20 = vpop.f32.mrf.mxu0 }
 0x1bd   : > { %v1560_v28 = vpop.f32.mrf.mxu1  ;;  %v1518_v21 = vadd.f32 %v1511_v20, %v1296_v9 }
 0x1be   : > { %v1567_v24 = vadd.f32 %v1560_v28, %v1348_v11  ;;  %v1513_v25 = vpop.f32.mrf.mxu0 }
 0x1bf   : > { %v1562_v26 = vpop.f32.mrf.mxu1  ;;  %v1519_v27 = vadd.f32 %v1513_v25, %v1297_v14 }
 0x1c0   : > { %v1568_v29 = vadd.f32 %v1562_v26, %v1349_v15  ;;  %v1515_v30 = vpop.f32.mrf.mxu0 }
 0x1c1   : > { %v1564_v17 = vpop.f32.mrf.mxu1 }
 0x1c2   : > { %v1516_v31 = vpop.f32.mrf.mxu0 }
 0x1c3   : > { %v1565_v32 = vpop.f32.mrf.mxu1 }
 0x1e4   : > { %v1737_v33 = vpop.f32.mrf.mxu0 }
 0x1e5   : > { %v1793_v34 = vpop.f32.mrf.mxu1  ;;  %v1744_v35 = vadd.f32 %v1737_v33, %v1518_v21 }
 0x1e6   : > { %v1800_v36 = vadd.f32 %v1793_v34, %v1567_v24  ;;  %v1739_v37 = vpop.f32.mrf.mxu0 }
 0x1e7   : > { %v1795_v38 = vpop.f32.mrf.mxu1  ;;  %v1745_v22 = vadd.f32 %v1739_v37, %v1519_v27 }
 0x1e8   : > { %v1801_v39 = vadd.f32 %v1795_v38, %v1568_v29  ;;  %v1741_v40 = vpop.f32.mrf.mxu0 }
 0x1e9   : > { %v1797_v41 = vpop.f32.mrf.mxu1 }
 0x1ea   : > { %v1742_v42 = vpop.f32.mrf.mxu0 }
 0x1eb   : > { %v1798_v7 = vpop.f32.mrf.mxu1 }
 0x20c   : > { %v1966_v10 = vpop.f32.mrf.mxu0 }
 0x20d   : > { %v2018_v43 = vpop.f32.mrf.mxu1  ;;  %v1973_v55 = vadd.f32 %v1966_v10, %v1744_v35 }
 0x20e   : > { %v1968_v44 = vpop.f32.mrf.mxu0  ;;  %v2025_v56 = vadd.f32 %v2018_v43, %v1800_v36 }
 0x20f   : > { %v2020_v45 = vpop.f32.mrf.mxu1  ;;  %v1974_v61 = vadd.f32 %v1968_v44, %v1745_v22 }
 0x210   : > { %v1970_v46 = vpop.f32.mrf.mxu0  ;;  %v2026_v62 = vadd.f32 %v2020_v45, %v1801_v39 }
 0x211   : > { %v2022_v47 = vpop.f32.mrf.mxu1 }
 0x212   : > { %v1971_v48 = vpop.f32.mrf.mxu0 }
 0x213   : > { %v2023_v49 = vpop.f32.mrf.mxu1 }
 0x234   : > { %v2188_v58 = vpop.f32.mrf.mxu0 }
 0x235   : > { %v2237_v59 = vpop.f32.mrf.mxu1  ;;  %v2195_v63 = vadd.f32 %v2188_v58, %v1973_v55 }
 0x236   : > { %v2244_v0 = vadd.f32 %v2237_v59, %v2025_v56  ;;  %v2190_v1 = vpop.f32.mrf.mxu0 }
 0x237   : > { %v2239_v2 = vpop.f32.mrf.mxu1  ;;  %v2258_v3 = vadd.f32 %v2251_v57, %v2195_v63  ;;  %v2196_v5 = vadd.f32 %v2190_v1, %v1974_v61 }
 0x238   : > { %v2272_v4 = vadd.f32 %v2251_v57, %v2244_v0  ;;  %v2245_v6 = vadd.f32 %v2239_v2, %v2026_v62  ;;  %v2192_v8 = vpop.f32.mrf.mxu0 }
 0x239   : > { %v2241_v9 = vpop.f32.mrf.mxu1  ;;  %v2260_v11 = vsub.f32 0.0, %v2258_v3  ;;  %v2259_v13 = vadd.f32 %v2255_v60, %v2196_v5 }
 0x23a   : > { %v2274_v12 = vsub.f32 0.0, %v2272_v4  ;;  %v2273_v14 = vadd.f32 %v2255_v60, %v2245_v6  ;;  %v2193_v15 = vpop.f32.mrf.mxu0 }
 0x23b   : > { %v2242_v16 = vpop.f32.mrf.mxu1  ;;  %v2262_v18 = vmul.f32 1.442695, %v2260_v11  ;;  %v2261_v23 = vsub.f32 0.0, %v2259_v13 }
 0x23c   : > { %v2276_v19 = vmul.f32 1.442695, %v2274_v12  ;;  %v2275_v20 = vsub.f32 0.0, %v2273_v14 }
 0x23d   : > { %3026 = vpow2.f32 %v2262_v18  ;;  %v2264_v28 = vmul.f32 1.442695, %v2261_v23 }
 0x23e   : > { %v2278_v21 = vmul.f32 1.442695, %v2275_v20  ;;  %3028 = vpow2.f32 %v2276_v19 }
 0x23f   : > { %3030 = vpow2.f32 %v2264_v28 }
 0x240   : > { %3032 = vpow2.f32 %v2278_v21 }
 0x24a   : > { %v3027_v24 = vpop.eup %3026 }
 0x24b   : > { %v3029_v25 = vpop.eup %3028  ;;  %v2266_v26 = vadd.f32 1.0, %v3027_v24 }
 0x24c   : > { %v3031_v27 = vpop.eup %3030  ;;  %v2280_v29 = vadd.f32 1.0, %v3029_v25 }
 0x24d   : > { %v3033_v30 = vpop.eup %3032  ;;  %3034 = vrcp.f32 %v2266_v26  ;;  %v2267_v17 = vadd.f32 1.0, %v3031_v27 }
 0x24e   : > { %3036 = vrcp.f32 %v2280_v29  ;;  %v2281_v31 = vadd.f32 1.0, %v3033_v30 }
 0x24f   : > { %3038 = vrcp.f32 %v2267_v17 }
 0x250   : > { %3040 = vrcp.f32 %v2281_v31 }
 0x25a   : > { %v3035_v32 = vpop.eup %3034 }
 0x25b   : > { %v3037_v33 = vpop.eup %3036  ;;  %v2270_v34 = vmul.f32 %v3035_v32, %v2258_v3 }
 0x25c   : > { %v3039_v35 = vpop.eup %3038  ;;  %v2284_v36 = vmul.f32 %v3037_v33, %v2272_v4 }
 0x25d   : > { %v3041_v37 = vpop.eup %3040  ;;  %v2271_v38 = vmul.f32 %v3039_v35, %v2259_v13 }
 0x25e   : > { %v2285_v22 = vmul.f32 %v3041_v37, %v2273_v14  ;;  %v2286_v39 = vsub.f32 %v2270_v34, %v2284_v36 }
 0x260   : > { %v2287_v40 = vsub.f32 %v2271_v38, %v2285_v22  ;;  %v2288_v41 = vand.u32 2147483647, %v2286_v39 }
 0x262   : > { %v2289_v42 = vand.u32 2147483647, %v2287_v40  ;;  %v2291_v7 = vsel %vm2290_vm1, %v2288_v41, 0.0 }
 0x264   : > { %v2293_v10 = vsel %vm2292_vm2, %v2289_v42, 0.0 }
 0x265   : > { %v2294_v43 = vadd.f32 %v2293_v10, %v2291_v7 }
 0x267   : > { %2295 = vadd.xlane.f32.xlu0 %v2294_v43 }
 0x2f0   : > { %v2296_v44 = vpop.xlane.xlu0 %2295 }
 0x2f1   : > { %v2297_v45 = vrot.slane %v2296_v44, 4 }
 0x2f3   : > { %v2298_v46 = vadd.f32 %v2297_v45, %v2296_v44 }
 0x2f5   : > { %v2299_v47 = vrot.slane %v2298_v46, 2 }
 0x2f7   : > { %v2300_v48 = vadd.f32 %v2299_v47, %v2298_v46 }
 0x2f9   : > { %v2301_v49 = vrot.slane %v2300_v48, 1 }
 0x2fb   : > { %v2302_v50 = vadd.f32 %v2301_v49, %v2300_v48 }
 0x2fd   : > { %2746 = vpush %v2302_v50 }
 0x32e   : > { %s2747_s26 = spop %2746 }
 0x32f   : > { %v2304_v51 = vstv %s2747_s26 }
 0x330   : > { %2305 = vst [vmem:[%s215_s20] sm:$0xff] %v2304_v51 }
 0x331 PF: > { %s14_s15 = sadd.s32 1, %s3048_s15  }
 0x332   : > { %p11_p4 = scmp.ge.s32.totalorder %s14_s15, 4  }
 0x334   :  { %13 = sbr.rel (!%p11_p4) target bundleno = 1 (0x1), region = 77 }

</bundles_post_ra>
